<compile_context>
chip_gen: v7x
topology: tpu7x:2x2x1
jax: 0.10.0
libtpu: 0.0.40
codegen_flags: <defaults>
</compile_context>

<pallas_src>
import jax
import jax.numpy as jnp
from jax.experimental import pallas as pl
from jax.experimental.pallas import tpu as pltpu

VMEM = pltpu.MemorySpace.VMEM

CP = 128       # all channel dims are zero-padded to 128 lanes (dense vst/vld, MXU fill)
IDENT = 1.0    # PReLU with alpha == 1.0 is the identity (used for BN-only convs)


def _round8(n):
    return -(-n // 8) * 8


# ----------------------------------------------------------------------------
# Tap preparation: pad + phase-decompose + flatten so every conv/pool tap is a
# contiguous row slice (1x HBM traffic, no im2col duplication).
# ----------------------------------------------------------------------------


def _prepare_taps(x, KH, KW, stride, pad, pad_value=0.0):
    """Returns (x_ph, Ho, Wo, Wph, Lph).

    x_ph: (B, stride*stride, Lph, C) bf16; phase (p, q) holds xp[:, p::s, q::s, :]
    flattened over (H, W) with one extra pad row so that tap (i, j) of the
    conv/pool is exactly rows [off, off + Ho*Wph) with
        off = (i//s)*Wph + (j//s)   of phase ((i%s)*s + (j%s)).
    Columns [Wo, Wph) of the output are wrap-around garbage, cropped by caller.
    Wph is rounded up to a multiple of 8 (sublane-tile aligned row counts).
    """
    B, H, W, C = x.shape
    s = stride
    Ho = (H + 2 * pad - KH) // s + 1
    Wo = (W + 2 * pad - KW) // s + 1
    Hph = (KH - 1) // s + Ho
    Wph = _round8((KW - 1) // s + Wo)
    if pad > 0:
        xp = jnp.pad(x, ((0, 0), (pad, pad), (pad, pad), (0, 0)),
                     constant_values=pad_value)
    else:
        xp = x
    phases = []
    for p in range(s):
        for q in range(s):
            ph = xp[:, p::s, q::s, :][:, :Hph, :Wph, :]
            ph = jnp.pad(
                ph,
                ((0, 0), (0, Hph + 1 - ph.shape[1]), (0, Wph - ph.shape[2]), (0, 0)),
                constant_values=pad_value)
            phases.append(ph.reshape(B, (Hph + 1) * Wph, C))
    x_ph = jnp.stack(phases, axis=1)  # (B, s*s, Lph, C)
    return x_ph, Ho, Wo, Wph, (Hph + 1) * Wph


# ----------------------------------------------------------------------------
# Pallas kernels
# ----------------------------------------------------------------------------


def _make_conv_kernel(KH, KW, s, B, M_flat, Wph, has_mm2, sc_mode):
    """Fused: [conv (ONE K-concatenated MXU matmul) + folded-BN + PReLU]
              [+ 1x1 conv + BN] [+ shortcut (plain or 1x1-conv+BN)] [+ PReLU]."""

    def kernel(*refs):
        it = iter(refs)
        x_ref = next(it)
        w_ref = next(it)
        scale_ref = next(it)
        bias_ref = next(it)
        alpha_ref = next(it)
        if has_mm2:
            w2_ref, scale2_ref, bias2_ref = next(it), next(it), next(it)
        if sc_mode == "plain":
            sc_ref = next(it)
        elif sc_mode == "conv":
            scx_ref, wsc_ref, ssc_ref, bsc_ref = next(it), next(it), next(it), next(it)
        if sc_mode is not None:
            alpha_out_ref = next(it)
        o_ref = next(it)

        # K-concatenated patch matrix with batch folded into rows:
        #   rows  = [img0 | img1 | ...] x M_flat          (M_flat % 8 == 0)
        #   lanes = KH*KW taps x CP channels              (each tap a full 128-lane tile)
        per_b = []
        for b in range(B):
            taps = []
            for i in range(KH):
                for j in range(KW):
                    ph = (i % s) * s + (j % s)
                    off = (i // s) * Wph + (j // s)
                    taps.append(x_ref[b, ph, off:off + M_flat, :])
            per_b.append(taps[0] if len(taps) == 1
                         else jnp.concatenate(taps, axis=-1))
        patches = per_b[0] if B == 1 else jnp.concatenate(per_b, axis=0)

        # Main conv: ONE bf16 x bf16 -> f32 MXU matmul, K = KH*KW*CP.
        y = jnp.dot(patches, w_ref[...], preferred_element_type=jnp.float32)
        y = y * scale_ref[...] + bias_ref[...]              # folded BN (f32)
        a = alpha_ref[...]
        y = jnp.where(y >= 0.0, y, a * y)                   # PReLU (alpha=1 -> identity)

        if has_mm2:                                          # fused 1x1 conv + BN
            y = jnp.dot(y.astype(jnp.bfloat16), w2_ref[...],
                        preferred_element_type=jnp.float32)
            y = y * scale2_ref[...] + bias2_ref[...]

        if sc_mode == "plain":                               # identity shortcut
            y = y + sc_ref[...].astype(jnp.float32)
        elif sc_mode == "conv":                              # fused 1x1 shortcut conv + BN
            sc = jnp.dot(scx_ref[...], wsc_ref[...],
                         preferred_element_type=jnp.float32)
            y = y + sc * ssc_ref[...] + bsc_ref[...]
        if sc_mode is not None:
            ao = alpha_out_ref[...]
            y = jnp.where(y >= 0.0, y, ao * y)               # block-output PReLU

        o_ref[...] = y.astype(o_ref.dtype)                   # bf16 store, 128 dense lanes

    return kernel


def _make_pool_kernel(KH, KW, s, B, M_flat, Wph):
    """Windowed max over KH*KW taps, all in VMEM, batch unrolled."""

    def kernel(x_ref, o_ref):
        for b in range(B):
            m = None
            for i in range(KH):
                for j in range(KW):
                    ph = (i % s) * s + (j % s)
                    off = (i // s) * Wph + (j // s)
                    t = x_ref[b, ph, off:off + M_flat, :]
                    m = t if m is None else jnp.maximum(m, t)
            o_ref[b, :, :] = m

    return kernel


def _head_kernel(x_ref, w_ref, b_ref, feats_ref, logits_ref):
    # x: (B, H*W, CP) bf16 -> global average pool -> linear classifier (fused).
    x = x_ref[...].astype(jnp.float32)
    feats = jnp.mean(x, axis=1)                                    # (B, CP)
    feats_ref[...] = feats
    logits_ref[...] = (
        jnp.dot(feats, w_ref[...], preferred_element_type=jnp.float32) + b_ref[...])


# ----------------------------------------------------------------------------
# Kernel wrappers
# ----------------------------------------------------------------------------

_CPARAMS = pltpu.CompilerParams(vmem_limit_bytes=32 * 1024 * 1024)


def conv_call(x, conv_p, stride, pad, mm2=None, sc=None, alpha_out=None):
    """One fused pallas_call.

    x       : NHWC bf16 activation, channels padded to CP.
    conv_p  : {"k", "wk" (KH*KW*CP, CP) bf16, "scale"/"bias" (1, CP) f32, "alpha" (1,1) f32}
    mm2     : optional fused 1x1 conv+BN following the main conv (same dict layout).
    sc      : None | ("plain", X) | ("conv", X, sc_stride, sc_params) fused residual.
    alpha_out : (1,1) f32 PReLU applied after the residual add (iff sc is not None).
    Returns NHWC bf16 (CP channels).
    """
    B, H, W, _ = x.shape
    KH = KW = conv_p["k"]
    s = stride
    x_ph, Ho, Wo, Wph, Lph = _prepare_taps(x, KH, KW, s, pad)
    M_flat = Ho * Wph
    C_final = (mm2["wk"] if mm2 is not None else conv_p["wk"]).shape[1]

    inputs = [x_ph, conv_p["wk"], conv_p["scale"], conv_p["bias"], conv_p["alpha"]]
    if mm2 is not None:
        inputs += [mm2["wk"], mm2["scale"], mm2["bias"]]

    sc_mode = None
    if sc is not None:
        if sc[0] == "plain":
            sc_mode, sc_x = sc
        else:
            sc_mode, sc_x, sc_stride, sc_p = sc
            sc_x = sc_x[:, ::sc_stride, ::sc_stride, :]
        assert sc_x.shape[1] == Ho and sc_x.shape[2] == Wo, (sc_x.shape, Ho, Wo)
        # Lay the shortcut input out in the main conv's (Ho, Wph) output geometry.
        sc_x = jnp.pad(sc_x, ((0, 0), (0, 0), (0, Wph - Wo), (0, 0)))
        inputs.append(sc_x.reshape(B * M_flat, sc_x.shape[-1]))
        if sc_mode == "conv":
            inputs += [sc_p["wk"], sc_p["scale"], sc_p["bias"]]
        inputs.append(alpha_out)

    out = pl.pallas_call(
        _make_conv_kernel(KH, KW, s, B, M_flat, Wph, mm2 is not None, sc_mode),
        out_shape=jax.ShapeDtypeStruct((B * M_flat, C_final), jnp.bfloat16),
        in_specs=[pl.BlockSpec(memory_space=VMEM)] * len(inputs),
        out_specs=pl.BlockSpec(memory_space=VMEM),
        compiler_params=_CPARAMS,
    )(*inputs)
    return out.reshape(B, Ho, Wph, C_final)[:, :, :Wo, :]


def maxpool_3x3_s2_p1(x):
    B, H, W, C = x.shape
    x_ph, Ho, Wo, Wph, Lph = _prepare_taps(x, 3, 3, 2, 1, pad_value=-jnp.inf)
    M_flat = Ho * Wph
    out = pl.pallas_call(
        _make_pool_kernel(3, 3, 2, B, M_flat, Wph),
        out_shape=jax.ShapeDtypeStruct((B, M_flat, C), x.dtype),
        in_specs=[pl.BlockSpec(memory_space=VMEM)],
        out_specs=pl.BlockSpec(memory_space=VMEM),
        compiler_params=_CPARAMS,
    )(x_ph)
    return out.reshape(B, Ho, Wph, C)[:, :, :Wo, :]


def head_forward(x, cls_p):
    """Global AvgPool + Flatten + Linear classifier fused into one kernel."""
    B, H, W, C = x.shape
    ncls = cls_p["w"].shape[1]
    feats, logits = pl.pallas_call(
        _head_kernel,
        out_shape=(jax.ShapeDtypeStruct((B, C), jnp.float32),
                   jax.ShapeDtypeStruct((B, ncls), jnp.float32)),
        in_specs=[pl.BlockSpec(memory_space=VMEM)] * 3,
        out_specs=(pl.BlockSpec(memory_space=VMEM),
                   pl.BlockSpec(memory_space=VMEM)),
        compiler_params=_CPARAMS,
    )(x.reshape(B, H * W, C), cls_p["w"], cls_p["b"])
    return feats, logits


def stem_forward(x, stem_p):
    # Stem conv 7x7/s2 on a 1-channel input: per-tap K would be 1 (useless MXU
    # matmuls), so im2col the tiny single-channel image (negligible bytes),
    # pad K 49 -> 128, and run it as one dense matmul through the fused conv kernel.
    B, H, W, _ = x.shape
    KH = KW = 7
    stride, pad = 2, 3
    Ho = (H + 2 * pad - KH) // stride + 1
    xp = jnp.pad(x[..., 0], ((0, 0), (pad, pad), (pad, pad)))
    cols = [xp[:, i:i + stride * (Ho - 1) + 1:stride,
               j:j + stride * (Ho - 1) + 1:stride]
            for i in range(KH) for j in range(KW)]
    patches = jnp.stack(cols, axis=-1)                             # (B, Ho, Wo, 49)
    patches = jnp.pad(patches, ((0, 0), (0, 0), (0, 0), (0, CP - KH * KW)))
    return conv_call(patches.astype(jnp.bfloat16), stem_p, stride=1, pad=0)


# ----------------------------------------------------------------------------
# BatchNorm folding and parameter preparation (channel padding, bf16 weights)
# ----------------------------------------------------------------------------


def fold_bn(gamma, beta, mean, var, conv_bias=None, eps=1e-5):
    scale = gamma * jax.lax.rsqrt(var + eps)
    base = conv_bias if conv_bias is not None else 0.0
    bias = (base - mean) * scale + beta
    return scale, bias


def _alpha_arr(a):
    return jnp.asarray(a, jnp.float32).reshape(1, 1)


def prep_conv(p, alpha=IDENT, conv_bias=None):
    """conv weight (k,k,Cin,Cout) + BN -> channel-padded, folded, K-concatenated params."""
    w = p["w"]
    KH, KW, Cin, Cout = w.shape
    scale, bias = fold_bn(*p["bn"], conv_bias=conv_bias)
    wk = jnp.pad(w, ((0, 0), (0, 0), (0, CP - Cin), (0, CP - Cout)))
    return {
        "k": KH,
        "wk": wk.reshape(KH * KW * CP, CP).astype(jnp.bfloat16),
        "scale": jnp.pad(scale, (0, CP - Cout)).reshape(1, CP).astype(jnp.float32),
        "bias": jnp.pad(bias, (0, CP - Cout)).reshape(1, CP).astype(jnp.float32),
        "alpha": _alpha_arr(alpha),
    }


def prep_stem(p):
    w = p["w"].reshape(7 * 7, 64)                                  # (49, 64)
    scale, bias = fold_bn(*p["bn"], conv_bias=p["b"])
    return {
        "k": 1,
        "wk": jnp.pad(w, ((0, CP - 49), (0, CP - 64))).astype(jnp.bfloat16),
        "scale": jnp.pad(scale, (0, CP - 64)).reshape(1, CP).astype(jnp.float32),
        "bias": jnp.pad(bias, (0, CP - 64)).reshape(1, CP).astype(jnp.float32),
        "alpha": _alpha_arr(IDENT),
    }


def prepare_params(params, num_classes):
    q = {"stem": prep_stem(params["stem"]), "blocks": []}
    for kind, p in params["blocks"]:
        blk = {"stride": p["stride"], "identity": p["identity"],
               "alpha_out": _alpha_arr(p["alpha_out"])}
        if not p["identity"]:
            blk["shortcut"] = prep_conv(p["shortcut"])
        if kind == "basic":
            blk["spatial"] = prep_conv(p["spatial"], alpha=p["alpha_spatial"])
            blk["bneck"] = prep_conv(p["bneck"])                   # BN only (PReLU after add)
        else:
            blk["feature"] = prep_conv(p["feature"], alpha=p["alpha_feature"])
            blk["spatial"] = prep_conv(p["spatial"], alpha=p["alpha_spatial"])
            blk["bneck"] = prep_conv(p["bneck"])                   # fused as mm2
        q["blocks"].append((kind, blk))
    cin = params["cls"]["w"].shape[0]
    q["cls"] = {
        "w": jnp.pad(params["cls"]["w"], ((0, CP - cin), (0, 0))).astype(jnp.float32),
        "b": params["cls"]["b"].reshape(1, num_classes).astype(jnp.float32),
    }
    q["true_feat_dim"] = cin
    return q


# ----------------------------------------------------------------------------
# Parameter init (deterministic, synthetic; mirrors nn.Module __init__ shapes)
# ----------------------------------------------------------------------------


class KeyGen:
    def __init__(self, key):
        self._key = key

    def __call__(self):
        self._key, k = jax.random.split(self._key)
        return k


def init_conv_w(kg, kh, kw, cin, cout):
    fan_in = kh * kw * cin
    std = (2.0 / fan_in) ** 0.5  # kaiming normal
    return std * jax.random.normal(kg(), (kh, kw, cin, cout), jnp.float32)


def init_bn(kg, c):
    gamma = 1.0 + 0.1 * jax.random.normal(kg(), (c,), jnp.float32)
    beta = 0.1 * jax.random.normal(kg(), (c,), jnp.float32)
    mean = 0.1 * jax.random.normal(kg(), (c,), jnp.float32)
    var = 1.0 + 0.1 * jnp.abs(jax.random.normal(kg(), (c,), jnp.float32))
    return (gamma, beta, mean, var)


def init_conv_bn(kg, k, cin, cout):
    return {"w": init_conv_w(kg, k, k, cin, cout), "bn": init_bn(kg, cout)}


def prelu_alpha():
    return jnp.full((1,), 0.25, jnp.float32)  # PyTorch PReLU default init


def init_basic_block(kg, cin, cout, stride):
    p = {"stride": stride, "identity": (stride == 1 and cin == cout)}
    if not p["identity"]:
        p["shortcut"] = init_conv_bn(kg, 1, cin, cout)
    p["spatial"] = init_conv_bn(kg, 3, cin, cout)
    p["alpha_spatial"] = prelu_alpha()
    p["bneck"] = init_conv_bn(kg, 3, cout, cout)
    p["alpha_out"] = prelu_alpha()
    return p


def init_bottleneck_block(kg, cin, cout, hidden, stride):
    p = {"stride": stride, "identity": (stride == 1 and cin == cout)}
    if not p["identity"]:
        p["shortcut"] = init_conv_bn(kg, 1, cin, cout)
    p["feature"] = init_conv_bn(kg, 1, cin, hidden)
    p["alpha_feature"] = prelu_alpha()
    p["spatial"] = init_conv_bn(kg, 3, hidden, hidden)
    p["alpha_spatial"] = prelu_alpha()
    p["bneck"] = init_conv_bn(kg, 1, hidden, cout)
    p["alpha_out"] = prelu_alpha()
    return p


def init_resnet_gray(kg, stage_cfgs, num_classes):
    params = {}
    params["stem"] = {
        "w": init_conv_w(kg, 7, 7, 1, 64),
        "b": 0.01 * jax.random.normal(kg(), (64,), jnp.float32),  # stem conv bias=True
        "bn": init_bn(kg, 64),
    }
    in_ch = 64
    blocks = []
    for hidden, num_ch, num_blocks, stride in stage_cfgs:
        for bi in range(num_blocks):
            s = stride if bi == 0 else 1
            if hidden is None:
                blocks.append(("basic", init_basic_block(kg, in_ch, num_ch, s)))
            else:
                blocks.append(("bneck", init_bottleneck_block(kg, in_ch, num_ch, hidden, s)))
            in_ch = num_ch
    params["blocks"] = blocks
    std = (2.0 / in_ch) ** 0.5
    params["cls"] = {
        "w": std * jax.random.normal(kg(), (in_ch, num_classes), jnp.float32),
        "b": 0.01 * jax.random.normal(kg(), (num_classes,), jnp.float32),
    }
    return params


# ----------------------------------------------------------------------------
# Forward pass
# ----------------------------------------------------------------------------


def basic_block_fwd(x, q):
    out = conv_call(x, q["spatial"], stride=q["stride"], pad=1)     # conv3x3 + BN + PReLU
    sc = ("plain", x) if q["identity"] else ("conv", x, q["stride"], q["shortcut"])
    # TODO(synk): StochasticDepth(mode='batch') training-time random drop not implemented (eval == identity).
    return conv_call(out, q["bneck"], stride=1, pad=1,              # conv3x3 + BN
                     sc=sc, alpha_out=q["alpha_out"])               # + shortcut + add + PReLU (fused)


def bottleneck_block_fwd(x, q):
    out = conv_call(x, q["feature"], stride=1, pad=0)               # conv1x1 + BN + PReLU
    sc = ("plain", x) if q["identity"] else ("conv", x, q["stride"], q["shortcut"])
    # TODO(synk): StochasticDepth(mode='batch') training-time random drop not implemented (eval == identity).
    return conv_call(out, q["spatial"], stride=q["stride"], pad=1,  # conv3x3 + BN + PReLU
                     mm2=q["bneck"],                                 # + conv1x1 + BN
                     sc=sc, alpha_out=q["alpha_out"])                # + shortcut + add + PReLU (fused)


def resnet_gray_forward(x_nchw, q, return_feats=False):
    x = jnp.transpose(x_nchw, (0, 2, 3, 1)).astype(jnp.float32)     # NCHW -> NHWC
    out = stem_forward(x, q["stem"])
    out = maxpool_3x3_s2_p1(out)
    for kind, blk in q["blocks"]:
        out = basic_block_fwd(out, blk) if kind == "basic" else bottleneck_block_fwd(out, blk)
    feats, logits = head_forward(out, q["cls"])                      # AvgPool + Flatten + Linear fused
    if return_feats:
        return feats[:, :q["true_feat_dim"]]
    return logits


# ----------------------------------------------------------------------------
# Main
# ----------------------------------------------------------------------------

if __name__ == "__main__":
    # Small config consistent with the module: one BasicBlock stage and one
    # BottleneckBlock stage (stem is fixed at 64 channels by the module).
    stage_cfgs = [[None, 16, 1, 1], [8, 32, 2, 2]]
    num_classes = 16
    batch, input_width = 2, 32

    params = init_resnet_gray(KeyGen(jax.random.PRNGKey(1)), stage_cfgs, num_classes)
    qparams = prepare_params(params, num_classes)

    x = jax.random.normal(jax.random.PRNGKey(0),
                          (batch, 1, input_width, input_width), jnp.float32)

    fwd = jax.jit(lambda xx: resnet_gray_forward(xx, qparams))
    out = fwd(x)
    jax.block_until_ready(out)
    assert out.shape == (batch, num_classes), out.shape
    assert bool(jnp.all(jnp.isfinite(out)))
    print("KERNEL_OK")
</pallas_src>

<mosaic_0001>
module attributes {stable_mosaic.version = 11 : i64} {
  func.func @kernel(%arg0: memref<2x1x272x128xbf16, #tpu.memory_space<vmem>>, %arg1: memref<128x128xbf16, #tpu.memory_space<vmem>>, %arg2: memref<1x128xf32, #tpu.memory_space<vmem>>, %arg3: memref<1x128xf32, #tpu.memory_space<vmem>>, %arg4: memref<1x1xf32, #tpu.memory_space<vmem>>, %arg5: memref<512x128xbf16, #tpu.memory_space<vmem>>) attributes {dimension_semantics = [], scalar_prefetch = 0 : i64, scratch_operands = 0 : i64, tpu.core_type = #tpu.core_type<tc>} {
    %c0 = arith.constant 0 : index
    %c0_0 = arith.constant 0 : index
    %c0_1 = arith.constant 0 : index
    %c0_2 = arith.constant 0 : index
    %0 = vector.load %arg0[%c0, %c0_0, %c0_1, %c0_2] : memref<2x1x272x128xbf16, #tpu.memory_space<vmem>>, vector<1x1x256x128xbf16>
    %1 = vector.shape_cast %0 : vector<1x1x256x128xbf16> to vector<256x128xbf16>
    %c1 = arith.constant 1 : index
    %c0_3 = arith.constant 0 : index
    %c0_4 = arith.constant 0 : index
    %c0_5 = arith.constant 0 : index
    %2 = vector.load %arg0[%c1, %c0_3, %c0_4, %c0_5] : memref<2x1x272x128xbf16, #tpu.memory_space<vmem>>, vector<1x1x256x128xbf16>
    %3 = vector.shape_cast %2 : vector<1x1x256x128xbf16> to vector<256x128xbf16>
    %4 = tpu.concatenate %1, %3 in 0 : vector<256x128xbf16>, vector<256x128xbf16> -> vector<512x128xbf16>
    %c0_6 = arith.constant 0 : index
    %c0_7 = arith.constant 0 : index
    %5 = vector.load %arg1[%c0_6, %c0_7] : memref<128x128xbf16, #tpu.memory_space<vmem>>, vector<128x128xbf16>
    %cst = arith.constant dense<0.000000e+00> : vector<512x128xf32>
    %6 = tpu.matmul %4, %5, %cst {dimension_numbers = #tpu.dot_dimension_numbers<[1], [0], [0], [1], [0, 0, 1, 1], [], []>} : vector<512x128xbf16>, vector<128x128xbf16>, vector<512x128xf32> -> vector<512x128xf32>
    %c0_8 = arith.constant 0 : index
    %c0_9 = arith.constant 0 : index
    %7 = vector.load %arg2[%c0_8, %c0_9] : memref<1x128xf32, #tpu.memory_space<vmem>>, vector<1x128xf32>
    %8 = vector.broadcast %7 : vector<1x128xf32> to vector<512x128xf32>
    %9 = arith.mulf %6, %8 : vector<512x128xf32>
    %c0_10 = arith.constant 0 : index
    %c0_11 = arith.constant 0 : index
    %10 = vector.load %arg3[%c0_10, %c0_11] : memref<1x128xf32, #tpu.memory_space<vmem>>, vector<1x128xf32>
    %11 = vector.broadcast %10 : vector<1x128xf32> to vector<512x128xf32>
    %12 = arith.addf %9, %11 : vector<512x128xf32>
    %c0_12 = arith.constant 0 : index
    %c0_13 = arith.constant 0 : index
    %13 = vector.load %arg4[%c0_12, %c0_13] : memref<1x1xf32, #tpu.memory_space<vmem>>, vector<1x1xf32>
    %cst_14 = arith.constant 0.000000e+00 : f32
    %14 = vector.broadcast %cst_14 : f32 to vector<512x128xf32>
    %15 = arith.cmpf oge, %12, %14 : vector<512x128xf32>
    %16 = vector.broadcast %13 : vector<1x1xf32> to vector<512x128xf32>
    %17 = arith.mulf %16, %12 : vector<512x128xf32>
    %18 = arith.select %15, %12, %17 : vector<512x128xi1>, vector<512x128xf32>
    %19 = arith.truncf %18 : vector<512x128xf32> to vector<512x128xbf16>
    %c0_15 = arith.constant 0 : index
    %c0_16 = arith.constant 0 : index
    %20 = vector.load %arg5[%c0_15, %c0_16] : memref<512x128xbf16, #tpu.memory_space<vmem>>, vector<512x128xbf16>
    tpu.vector_store %arg5[%c0_15, %c0_16], %19 {strides = array<i32>} : memref<512x128xbf16, #tpu.memory_space<vmem>>, vector<512x128xbf16>,
    return
  }
}

module attributes {stable_mosaic.version = 11 : i64} {
  func.func @kernel(%arg0: memref<2x4x160x128xbf16, #tpu.memory_space<vmem>>, %arg1: memref<2x128x128xbf16, #tpu.memory_space<vmem>>) attributes {dimension_semantics = [], scalar_prefetch = 0 : i64, scratch_operands = 0 : i64, tpu.core_type = #tpu.core_type<tc>} {
    %c0 = arith.constant 0 : index
    %c0_0 = arith.constant 0 : index
    %c0_1 = arith.constant 0 : index
    %c0_2 = arith.constant 0 : index
    %0 = vector.load %arg0[%c0, %c0_0, %c0_1, %c0_2] : memref<2x4x160x128xbf16, #tpu.memory_space<vmem>>, vector<1x1x128x128xbf16>
    %1 = vector.shape_cast %0 : vector<1x1x128x128xbf16> to vector<128x128xbf16>
    %c0_3 = arith.constant 0 : index
    %c1 = arith.constant 1 : index
    %c0_4 = arith.constant 0 : index
    %c0_5 = arith.constant 0 : index
    %2 = vector.load %arg0[%c0_3, %c1, %c0_4, %c0_5] : memref<2x4x160x128xbf16, #tpu.memory_space<vmem>>, vector<1x1x128x128xbf16>
    %3 = vector.shape_cast %2 : vector<1x1x128x128xbf16> to vector<128x128xbf16>
    %4 = arith.maximumf %1, %3 : vector<128x128xbf16>
    %c0_6 = arith.constant 0 : index
    %c0_7 = arith.constant 0 : index
    %c1_8 = arith.constant 1 : index
    %c0_9 = arith.constant 0 : index
    %5 = vector.load %arg0[%c0_6, %c0_7, %c1_8, %c0_9] : memref<2x4x160x128xbf16, #tpu.memory_space<vmem>>, vector<1x1x128x128xbf16>
    %6 = vector.shape_cast %5 : vector<1x1x128x128xbf16> to vector<128x128xbf16>
    %7 = arith.maximumf %4, %6 : vector<128x128xbf16>
    %c0_10 = arith.constant 0 : index
    %c2 = arith.constant 2 : index
    %c0_11 = arith.constant 0 : index
    %c0_12 = arith.constant 0 : index
    %8 = vector.load %arg0[%c0_10, %c2, %c0_11, %c0_12] : memref<2x4x160x128xbf16, #tpu.memory_space<vmem>>, vector<1x1x128x128xbf16>
    %9 = vector.shape_cast %8 : vector<1x1x128x128xbf16> to vector<128x128xbf16>
    %10 = arith.maximumf %7, %9 : vector<128x128xbf16>
    %c0_13 = arith.constant 0 : index
    %c3 = arith.constant 3 : index
    %c0_14 = arith.constant 0 : index
    %c0_15 = arith.constant 0 : index
    %11 = vector.load %arg0[%c0_13, %c3, %c0_14, %c0_15] : memref<2x4x160x128xbf16, #tpu.memory_space<vmem>>, vector<1x1x128x128xbf16>
    %12 = vector.shape_cast %11 : vector<1x1x128x128xbf16> to vector<128x128xbf16>
    %13 = arith.maximumf %10, %12 : vector<128x128xbf16>
    %c0_16 = arith.constant 0 : index
    %c2_17 = arith.constant 2 : index
    %c1_18 = arith.constant 1 : index
    %c0_19 = arith.constant 0 : index
    %14 = vector.load %arg0[%c0_16, %c2_17, %c1_18, %c0_19] : memref<2x4x160x128xbf16, #tpu.memory_space<vmem>>, vector<1x1x128x128xbf16>
    %15 = vector.shape_cast %14 : vector<1x1x128x128xbf16> to vector<128x128xbf16>
    %16 = arith.maximumf %13, %15 : vector<128x128xbf16>
    %c0_20 = arith.constant 0 : index
    %c0_21 = arith.constant 0 : index
    %c16 = arith.constant 16 : index
    %c0_22 = arith.constant 0 : index
    %17 = vector.load %arg0[%c0_20, %c0_21, %c16, %c0_22] : memref<2x4x160x128xbf16, #tpu.memory_space<vmem>>, vector<1x1x128x128xbf16>
    %18 = vector.shape_cast %17 : vector<1x1x128x128xbf16> to vector<128x128xbf16>
    %19 = arith.maximumf %16, %18 : vector<128x128xbf16>
    %c0_23 = arith.constant 0 : index
    %c1_24 = arith.constant 1 : index
    %c16_25 = arith.constant 16 : index
    %c0_26 = arith.constant 0 : index
    %20 = vector.load %arg0[%c0_23, %c1_24, %c16_25, %c0_26] : memref<2x4x160x128xbf16, #tpu.memory_space<vmem>>, vector<1x1x128x128xbf16>
    %21 = vector.shape_cast %20 : vector<1x1x128x128xbf16> to vector<128x128xbf16>
    %22 = arith.maximumf %19, %21 : vector<128x128xbf16>
    %c0_27 = arith.constant 0 : index
    %c0_28 = arith.constant 0 : index
    %c17 = arith.constant 17 : index
    %c0_29 = arith.constant 0 : index
    %23 = vector.load %arg0[%c0_27, %c0_28, %c17, %c0_29] : memref<2x4x160x128xbf16, #tpu.memory_space<vmem>>, vector<1x1x128x128xbf16>
    %24 = vector.shape_cast %23 : vector<1x1x128x128xbf16> to vector<128x128xbf16>
    %25 = arith.maximumf %22, %24 : vector<128x128xbf16>
    %c0_30 = arith.constant 0 : index
    %c0_31 = arith.constant 0 : index
    %c0_32 = arith.constant 0 : index
    %26 = vector.load %arg1[%c0_30, %c0_31, %c0_32] : memref<2x128x128xbf16, #tpu.memory_space<vmem>>, vector<1x128x128xbf16>
    %27 = vector.shape_cast %26 : vector<1x128x128xbf16> to vector<128x128xbf16>
    %28 = vector.shape_cast %25 : vector<128x128xbf16> to vector<1x128x128xbf16>
    tpu.vector_store %arg1[%c0_30, %c0_31, %c0_32], %28 {strides = array<i32>} : memref<2x128x128xbf16, #tpu.memory_space<vmem>>, vector<1x128x128xbf16>,
    %c1_33 = arith.constant 1 : index
    %c0_34 = arith.constant 0 : index
    %c0_35 = arith.constant 0 : index
    %c0_36 = arith.constant 0 : index
    %29 = vector.load %arg0[%c1_33, %c0_34, %c0_35, %c0_36] : memref<2x4x160x128xbf16, #tpu.memory_space<vmem>>, vector<1x1x128x128xbf16>
    %30 = vector.shape_cast %29 : vector<1x1x128x128xbf16> to vector<128x128xbf16>
    %c1_37 = arith.constant 1 : index
    %c1_38 = arith.constant 1 : index
    %c0_39 = arith.constant 0 : index
    %c0_40 = arith.constant 0 : index
    %31 = vector.load %arg0[%c1_37, %c1_38, %c0_39, %c0_40] : memref<2x4x160x128xbf16, #tpu.memory_space<vmem>>, vector<1x1x128x128xbf16>
    %32 = vector.shape_cast %31 : vector<1x1x128x128xbf16> to vector<128x128xbf16>
    %33 = arith.maximumf %30, %32 : vector<128x128xbf16>
    %c1_41 = arith.constant 1 : index
    %c0_42 = arith.constant 0 : index
    %c1_43 = arith.constant 1 : index
    %c0_44 = arith.constant 0 : index
    %34 = vector.load %arg0[%c1_41, %c0_42, %c1_43, %c0_44] : memref<2x4x160x128xbf16, #tpu.memory_space<vmem>>, vector<1x1x128x128xbf16>
    %35 = vector.shape_cast %34 : vector<1x1x128x128xbf16> to vector<128x128xbf16>
    %36 = arith.maximumf %33, %35 : vector<128x128xbf16>
    %c1_45 = arith.constant 1 : index
    %c2_46 = arith.constant 2 : index
    %c0_47 = arith.constant 0 : index
    %c0_48 = arith.constant 0 : index
    %37 = vector.load %arg0[%c1_45, %c2_46, %c0_47, %c0_48] : memref<2x4x160x128xbf16, #tpu.memory_space<vmem>>, vector<1x1x128x128xbf16>
    %38 = vector.shape_cast %37 : vector<1x1x128x128xbf16> to vector<128x128xbf16>
    %39 = arith.maximumf %36, %38 : vector<128x128xbf16>
    %c1_49 = arith.constant 1 : index
    %c3_50 = arith.constant 3 : index
    %c0_51 = arith.constant 0 : index
    %c0_52 = arith.constant 0 : index
    %40 = vector.load %arg0[%c1_49, %c3_50, %c0_51, %c0_52] : memref<2x4x160x128xbf16, #tpu.memory_space<vmem>>, vector<1x1x128x128xbf16>
    %41 = vector.shape_cast %40 : vector<1x1x128x128xbf16> to vector<128x128xbf16>
    %42 = arith.maximumf %39, %41 : vector<128x128xbf16>
    %c1_53 = arith.constant 1 : index
    %c2_54 = arith.constant 2 : index
    %c1_55 = arith.constant 1 : index
    %c0_56 = arith.constant 0 : index
    %43 = vector.load %arg0[%c1_53, %c2_54, %c1_55, %c0_56] : memref<2x4x160x128xbf16, #tpu.memory_space<vmem>>, vector<1x1x128x128xbf16>
    %44 = vector.shape_cast %43 : vector<1x1x128x128xbf16> to vector<128x128xbf16>
    %45 = arith.maximumf %42, %44 : vector<128x128xbf16>
    %c1_57 = arith.constant 1 : index
    %c0_58 = arith.constant 0 : index
    %c16_59 = arith.constant 16 : index
    %c0_60 = arith.constant 0 : index
    %46 = vector.load %arg0[%c1_57, %c0_58, %c16_59, %c0_60] : memref<2x4x160x128xbf16, #tpu.memory_space<vmem>>, vector<1x1x128x128xbf16>
    %47 = vector.shape_cast %46 : vector<1x1x128x128xbf16> to vector<128x128xbf16>
    %48 = arith.maximumf %45, %47 : vector<128x128xbf16>
    %c1_61 = arith.constant 1 : index
    %c1_62 = arith.constant 1 : index
    %c16_63 = arith.constant 16 : index
    %c0_64 = arith.constant 0 : index
    %49 = vector.load %arg0[%c1_61, %c1_62, %c16_63, %c0_64] : memref<2x4x160x128xbf16, #tpu.memory_space<vmem>>, vector<1x1x128x128xbf16>
    %50 = vector.shape_cast %49 : vector<1x1x128x128xbf16> to vector<128x128xbf16>
    %51 = arith.maximumf %48, %50 : vector<128x128xbf16>
    %c1_65 = arith.constant 1 : index
    %c0_66 = arith.constant 0 : index
    %c17_67 = arith.constant 17 : index
    %c0_68 = arith.constant 0 : index
    %52 = vector.load %arg0[%c1_65, %c0_66, %c17_67, %c0_68] : memref<2x4x160x128xbf16, #tpu.memory_space<vmem>>, vector<1x1x128x128xbf16>
    %53 = vector.shape_cast %52 : vector<1x1x128x128xbf16> to vector<128x128xbf16>
    %54 = arith.maximumf %51, %53 : vector<128x128xbf16>
    %c1_69 = arith.constant 1 : index
    %c0_70 = arith.constant 0 : index
    %c0_71 = arith.constant 0 : index
    %55 = vector.load %arg1[%c1_69, %c0_70, %c0_71] : memref<2x128x128xbf16, #tpu.memory_space<vmem>>, vector<1x128x128xbf16>
    %56 = vector.shape_cast %55 : vector<1x128x128xbf16> to vector<128x128xbf16>
    %57 = vector.shape_cast %54 : vector<128x128xbf16> to vector<1x128x128xbf16>
    tpu.vector_store %arg1[%c1_69, %c0_70, %c0_71], %57 {strides = array<i32>} : memref<2x128x128xbf16, #tpu.memory_space<vmem>>, vector<1x128x128xbf16>,
    return
  }
}

module attributes {stable_mosaic.version = 11 : i64} {
  func.func @kernel(%arg0: memref<2x1x176x128xbf16, #tpu.memory_space<vmem>>, %arg1: memref<1152x128xbf16, #tpu.memory_space<vmem>>, %arg2: memref<1x128xf32, #tpu.memory_space<vmem>>, %arg3: memref<1x128xf32, #tpu.memory_space<vmem>>, %arg4: memref<1x1xf32, #tpu.memory_space<vmem>>, %arg5: memref<256x128xbf16, #tpu.memory_space<vmem>>) attributes {dimension_semantics = [], scalar_prefetch = 0 : i64, scratch_operands = 0 : i64, tpu.core_type = #tpu.core_type<tc>} {
    %c0 = arith.constant 0 : index
    %c0_0 = arith.constant 0 : index
    %c0_1 = arith.constant 0 : index
    %c0_2 = arith.constant 0 : index
    %0 = vector.load %arg0[%c0, %c0_0, %c0_1, %c0_2] : memref<2x1x176x128xbf16, #tpu.memory_space<vmem>>, vector<1x1x128x128xbf16>
    %1 = vector.shape_cast %0 : vector<1x1x128x128xbf16> to vector<128x128xbf16>
    %c0_3 = arith.constant 0 : index
    %c0_4 = arith.constant 0 : index
    %c1 = arith.constant 1 : index
    %c0_5 = arith.constant 0 : index
    %2 = vector.load %arg0[%c0_3, %c0_4, %c1, %c0_5] : memref<2x1x176x128xbf16, #tpu.memory_space<vmem>>, vector<1x1x128x128xbf16>
    %3 = vector.shape_cast %2 : vector<1x1x128x128xbf16> to vector<128x128xbf16>
    %c0_6 = arith.constant 0 : index
    %c0_7 = arith.constant 0 : index
    %c2 = arith.constant 2 : index
    %c0_8 = arith.constant 0 : index
    %4 = vector.load %arg0[%c0_6, %c0_7, %c2, %c0_8] : memref<2x1x176x128xbf16, #tpu.memory_space<vmem>>, vector<1x1x128x128xbf16>
    %5 = vector.shape_cast %4 : vector<1x1x128x128xbf16> to vector<128x128xbf16>
    %c0_9 = arith.constant 0 : index
    %c0_10 = arith.constant 0 : index
    %c16 = arith.constant 16 : index
    %c0_11 = arith.constant 0 : index
    %6 = vector.load %arg0[%c0_9, %c0_10, %c16, %c0_11] : memref<2x1x176x128xbf16, #tpu.memory_space<vmem>>, vector<1x1x128x128xbf16>
    %7 = vector.shape_cast %6 : vector<1x1x128x128xbf16> to vector<128x128xbf16>
    %c0_12 = arith.constant 0 : index
    %c0_13 = arith.constant 0 : index
    %c17 = arith.constant 17 : index
    %c0_14 = arith.constant 0 : index
    %8 = vector.load %arg0[%c0_12, %c0_13, %c17, %c0_14] : memref<2x1x176x128xbf16, #tpu.memory_space<vmem>>, vector<1x1x128x128xbf16>
    %9 = vector.shape_cast %8 : vector<1x1x128x128xbf16> to vector<128x128xbf16>
    %c0_15 = arith.constant 0 : index
    %c0_16 = arith.constant 0 : index
    %c18 = arith.constant 18 : index
    %c0_17 = arith.constant 0 : index
    %10 = vector.load %arg0[%c0_15, %c0_16, %c18, %c0_17] : memref<2x1x176x128xbf16, #tpu.memory_space<vmem>>, vector<1x1x128x128xbf16>
    %11 = vector.shape_cast %10 : vector<1x1x128x128xbf16> to vector<128x128xbf16>
    %c0_18 = arith.constant 0 : index
    %c0_19 = arith.constant 0 : index
    %c32 = arith.constant 32 : index
    %c0_20 = arith.constant 0 : index
    %12 = vector.load %arg0[%c0_18, %c0_19, %c32, %c0_20] : memref<2x1x176x128xbf16, #tpu.memory_space<vmem>>, vector<1x1x128x128xbf16>
    %13 = vector.shape_cast %12 : vector<1x1x128x128xbf16> to vector<128x128xbf16>
    %c0_21 = arith.constant 0 : index
    %c0_22 = arith.constant 0 : index
    %c33 = arith.constant 33 : index
    %c0_23 = arith.constant 0 : index
    %14 = vector.load %arg0[%c0_21, %c0_22, %c33, %c0_23] : memref<2x1x176x128xbf16, #tpu.memory_space<vmem>>, vector<1x1x128x128xbf16>
    %15 = vector.shape_cast %14 : vector<1x1x128x128xbf16> to vector<128x128xbf16>
    %c0_24 = arith.constant 0 : index
    %c0_25 = arith.constant 0 : index
    %c34 = arith.constant 34 : index
    %c0_26 = arith.constant 0 : index
    %16 = vector.load %arg0[%c0_24, %c0_25, %c34, %c0_26] : memref<2x1x176x128xbf16, #tpu.memory_space<vmem>>, vector<1x1x128x128xbf16>
    %17 = vector.shape_cast %16 : vector<1x1x128x128xbf16> to vector<128x128xbf16>
    %18 = tpu.concatenate %1, %3, %5, %7, %9, %11, %13, %15, %17 in 1 : vector<128x128xbf16>, vector<128x128xbf16>, vector<128x128xbf16>, vector<128x128xbf16>, vector<128x128xbf16>, vector<128x128xbf16>, vector<128x128xbf16>, vector<128x128xbf16>, vector<128x128xbf16> -> vector<128x1152xbf16>
    %c1_27 = arith.constant 1 : index
    %c0_28 = arith.constant 0 : index
    %c0_29 = arith.constant 0 : index
    %c0_30 = arith.constant 0 : index
    %19 = vector.load %arg0[%c1_27, %c0_28, %c0_29, %c0_30] : memref<2x1x176x128xbf16, #tpu.memory_space<vmem>>, vector<1x1x128x128xbf16>
    %20 = vector.shape_cast %19 : vector<1x1x128x128xbf16> to vector<128x128xbf16>
    %c1_31 = arith.constant 1 : index
    %c0_32 = arith.constant 0 : index
    %c1_33 = arith.constant 1 : index
    %c0_34 = arith.constant 0 : index
    %21 = vector.load %arg0[%c1_31, %c0_32, %c1_33, %c0_34] : memref<2x1x176x128xbf16, #tpu.memory_space<vmem>>, vector<1x1x128x128xbf16>
    %22 = vector.shape_cast %21 : vector<1x1x128x128xbf16> to vector<128x128xbf16>
    %c1_35 = arith.constant 1 : index
    %c0_36 = arith.constant 0 : index
    %c2_37 = arith.constant 2 : index
    %c0_38 = arith.constant 0 : index
    %23 = vector.load %arg0[%c1_35, %c0_36, %c2_37, %c0_38] : memref<2x1x176x128xbf16, #tpu.memory_space<vmem>>, vector<1x1x128x128xbf16>
    %24 = vector.shape_cast %23 : vector<1x1x128x128xbf16> to vector<128x128xbf16>
    %c1_39 = arith.constant 1 : index
    %c0_40 = arith.constant 0 : index
    %c16_41 = arith.constant 16 : index
    %c0_42 = arith.constant 0 : index
    %25 = vector.load %arg0[%c1_39, %c0_40, %c16_41, %c0_42] : memref<2x1x176x128xbf16, #tpu.memory_space<vmem>>, vector<1x1x128x128xbf16>
    %26 = vector.shape_cast %25 : vector<1x1x128x128xbf16> to vector<128x128xbf16>
    %c1_43 = arith.constant 1 : index
    %c0_44 = arith.constant 0 : index
    %c17_45 = arith.constant 17 : index
    %c0_46 = arith.constant 0 : index
    %27 = vector.load %arg0[%c1_43, %c0_44, %c17_45, %c0_46] : memref<2x1x176x128xbf16, #tpu.memory_space<vmem>>, vector<1x1x128x128xbf16>
    %28 = vector.shape_cast %27 : vector<1x1x128x128xbf16> to vector<128x128xbf16>
    %c1_47 = arith.constant 1 : index
    %c0_48 = arith.constant 0 : index
    %c18_49 = arith.constant 18 : index
    %c0_50 = arith.constant 0 : index
    %29 = vector.load %arg0[%c1_47, %c0_48, %c18_49, %c0_50] : memref<2x1x176x128xbf16, #tpu.memory_space<vmem>>, vector<1x1x128x128xbf16>
    %30 = vector.shape_cast %29 : vector<1x1x128x128xbf16> to vector<128x128xbf16>
    %c1_51 = arith.constant 1 : index
    %c0_52 = arith.constant 0 : index
    %c32_53 = arith.constant 32 : index
    %c0_54 = arith.constant 0 : index
    %31 = vector.load %arg0[%c1_51, %c0_52, %c32_53, %c0_54] : memref<2x1x176x128xbf16, #tpu.memory_space<vmem>>, vector<1x1x128x128xbf16>
    %32 = vector.shape_cast %31 : vector<1x1x128x128xbf16> to vector<128x128xbf16>
    %c1_55 = arith.constant 1 : index
    %c0_56 = arith.constant 0 : index
    %c33_57 = arith.constant 33 : index
    %c0_58 = arith.constant 0 : index
    %33 = vector.load %arg0[%c1_55, %c0_56, %c33_57, %c0_58] : memref<2x1x176x128xbf16, #tpu.memory_space<vmem>>, vector<1x1x128x128xbf16>
    %34 = vector.shape_cast %33 : vector<1x1x128x128xbf16> to vector<128x128xbf16>
    %c1_59 = arith.constant 1 : index
    %c0_60 = arith.constant 0 : index
    %c34_61 = arith.constant 34 : index
    %c0_62 = arith.constant 0 : index
    %35 = vector.load %arg0[%c1_59, %c0_60, %c34_61, %c0_62] : memref<2x1x176x128xbf16, #tpu.memory_space<vmem>>, vector<1x1x128x128xbf16>
    %36 = vector.shape_cast %35 : vector<1x1x128x128xbf16> to vector<128x128xbf16>
    %37 = tpu.concatenate %20, %22, %24, %26, %28, %30, %32, %34, %36 in 1 : vector<128x128xbf16>, vector<128x128xbf16>, vector<128x128xbf16>, vector<128x128xbf16>, vector<128x128xbf16>, vector<128x128xbf16>, vector<128x128xbf16>, vector<128x128xbf16>, vector<128x128xbf16> -> vector<128x1152xbf16>
    %38 = tpu.concatenate %18, %37 in 0 : vector<128x1152xbf16>, vector<128x1152xbf16> -> vector<256x1152xbf16>
    %c0_63 = arith.constant 0 : index
    %c0_64 = arith.constant 0 : index
    %39 = vector.load %arg1[%c0_63, %c0_64] : memref<1152x128xbf16, #tpu.memory_space<vmem>>, vector<1152x128xbf16>
    %cst = arith.constant dense<0.000000e+00> : vector<256x128xf32>
    %40 = tpu.matmul %38, %39, %cst {dimension_numbers = #tpu.dot_dimension_numbers<[1], [0], [0], [1], [0, 0, 1, 1], [], []>} : vector<256x1152xbf16>, vector<1152x128xbf16>, vector<256x128xf32> -> vector<256x128xf32>
    %c0_65 = arith.constant 0 : index
    %c0_66 = arith.constant 0 : index
    %41 = vector.load %arg2[%c0_65, %c0_66] : memref<1x128xf32, #tpu.memory_space<vmem>>, vector<1x128xf32>
    %42 = vector.broadcast %41 : vector<1x128xf32> to vector<256x128xf32>
    %43 = arith.mulf %40, %42 : vector<256x128xf32>
    %c0_67 = arith.constant 0 : index
    %c0_68 = arith.constant 0 : index
    %44 = vector.load %arg3[%c0_67, %c0_68] : memref<1x128xf32, #tpu.memory_space<vmem>>, vector<1x128xf32>
    %45 = vector.broadcast %44 : vector<1x128xf32> to vector<256x128xf32>
    %46 = arith.addf %43, %45 : vector<256x128xf32>
    %c0_69 = arith.constant 0 : index
    %c0_70 = arith.constant 0 : index
    %47 = vector.load %arg4[%c0_69, %c0_70] : memref<1x1xf32, #tpu.memory_space<vmem>>, vector<1x1xf32>
    %cst_71 = arith.constant 0.000000e+00 : f32
    %48 = vector.broadcast %cst_71 : f32 to vector<256x128xf32>
    %49 = arith.cmpf oge, %46, %48 : vector<256x128xf32>
    %50 = vector.broadcast %47 : vector<1x1xf32> to vector<256x128xf32>
    %51 = arith.mulf %50, %46 : vector<256x128xf32>
    %52 = arith.select %49, %46, %51 : vector<256x128xi1>, vector<256x128xf32>
    %53 = arith.truncf %52 : vector<256x128xf32> to vector<256x128xbf16>
    %c0_72 = arith.constant 0 : index
    %c0_73 = arith.constant 0 : index
    %54 = vector.load %arg5[%c0_72, %c0_73] : memref<256x128xbf16, #tpu.memory_space<vmem>>, vector<256x128xbf16>
    tpu.vector_store %arg5[%c0_72, %c0_73], %53 {strides = array<i32>} : memref<256x128xbf16, #tpu.memory_space<vmem>>, vector<256x128xbf16>,
    return
  }
}

module attributes {stable_mosaic.version = 11 : i64} {
  func.func @kernel(%arg0: memref<2x1x176x128xbf16, #tpu.memory_space<vmem>>, %arg1: memref<1152x128xbf16, #tpu.memory_space<vmem>>, %arg2: memref<1x128xf32, #tpu.memory_space<vmem>>, %arg3: memref<1x128xf32, #tpu.memory_space<vmem>>, %arg4: memref<1x1xf32, #tpu.memory_space<vmem>>, %arg5: memref<256x128xbf16, #tpu.memory_space<vmem>>, %arg6: memref<128x128xbf16, #tpu.memory_space<vmem>>, %arg7: memref<1x128xf32, #tpu.memory_space<vmem>>, %arg8: memref<1x128xf32, #tpu.memory_space<vmem>>, %arg9: memref<1x1xf32, #tpu.memory_space<vmem>>, %arg10: memref<256x128xbf16, #tpu.memory_space<vmem>>) attributes {dimension_semantics = [], scalar_prefetch = 0 : i64, scratch_operands = 0 : i64, tpu.core_type = #tpu.core_type<tc>} {
    %c0 = arith.constant 0 : index
    %c0_0 = arith.constant 0 : index
    %c0_1 = arith.constant 0 : index
    %c0_2 = arith.constant 0 : index
    %0 = vector.load %arg0[%c0, %c0_0, %c0_1, %c0_2] : memref<2x1x176x128xbf16, #tpu.memory_space<vmem>>, vector<1x1x128x128xbf16>
    %1 = vector.shape_cast %0 : vector<1x1x128x128xbf16> to vector<128x128xbf16>
    %c0_3 = arith.constant 0 : index
    %c0_4 = arith.constant 0 : index
    %c1 = arith.constant 1 : index
    %c0_5 = arith.constant 0 : index
    %2 = vector.load %arg0[%c0_3, %c0_4, %c1, %c0_5] : memref<2x1x176x128xbf16, #tpu.memory_space<vmem>>, vector<1x1x128x128xbf16>
    %3 = vector.shape_cast %2 : vector<1x1x128x128xbf16> to vector<128x128xbf16>
    %c0_6 = arith.constant 0 : index
    %c0_7 = arith.constant 0 : index
    %c2 = arith.constant 2 : index
    %c0_8 = arith.constant 0 : index
    %4 = vector.load %arg0[%c0_6, %c0_7, %c2, %c0_8] : memref<2x1x176x128xbf16, #tpu.memory_space<vmem>>, vector<1x1x128x128xbf16>
    %5 = vector.shape_cast %4 : vector<1x1x128x128xbf16> to vector<128x128xbf16>
    %c0_9 = arith.constant 0 : index
    %c0_10 = arith.constant 0 : index
    %c16 = arith.constant 16 : index
    %c0_11 = arith.constant 0 : index
    %6 = vector.load %arg0[%c0_9, %c0_10, %c16, %c0_11] : memref<2x1x176x128xbf16, #tpu.memory_space<vmem>>, vector<1x1x128x128xbf16>
    %7 = vector.shape_cast %6 : vector<1x1x128x128xbf16> to vector<128x128xbf16>
    %c0_12 = arith.constant 0 : index
    %c0_13 = arith.constant 0 : index
    %c17 = arith.constant 17 : index
    %c0_14 = arith.constant 0 : index
    %8 = vector.load %arg0[%c0_12, %c0_13, %c17, %c0_14] : memref<2x1x176x128xbf16, #tpu.memory_space<vmem>>, vector<1x1x128x128xbf16>
    %9 = vector.shape_cast %8 : vector<1x1x128x128xbf16> to vector<128x128xbf16>
    %c0_15 = arith.constant 0 : index
    %c0_16 = arith.constant 0 : index
    %c18 = arith.constant 18 : index
    %c0_17 = arith.constant 0 : index
    %10 = vector.load %arg0[%c0_15, %c0_16, %c18, %c0_17] : memref<2x1x176x128xbf16, #tpu.memory_space<vmem>>, vector<1x1x128x128xbf16>
    %11 = vector.shape_cast %10 : vector<1x1x128x128xbf16> to vector<128x128xbf16>
    %c0_18 = arith.constant 0 : index
    %c0_19 = arith.constant 0 : index
    %c32 = arith.constant 32 : index
    %c0_20 = arith.constant 0 : index
    %12 = vector.load %arg0[%c0_18, %c0_19, %c32, %c0_20] : memref<2x1x176x128xbf16, #tpu.memory_space<vmem>>, vector<1x1x128x128xbf16>
    %13 = vector.shape_cast %12 : vector<1x1x128x128xbf16> to vector<128x128xbf16>
    %c0_21 = arith.constant 0 : index
    %c0_22 = arith.constant 0 : index
    %c33 = arith.constant 33 : index
    %c0_23 = arith.constant 0 : index
    %14 = vector.load %arg0[%c0_21, %c0_22, %c33, %c0_23] : memref<2x1x176x128xbf16, #tpu.memory_space<vmem>>, vector<1x1x128x128xbf16>
    %15 = vector.shape_cast %14 : vector<1x1x128x128xbf16> to vector<128x128xbf16>
    %c0_24 = arith.constant 0 : index
    %c0_25 = arith.constant 0 : index
    %c34 = arith.constant 34 : index
    %c0_26 = arith.constant 0 : index
    %16 = vector.load %arg0[%c0_24, %c0_25, %c34, %c0_26] : memref<2x1x176x128xbf16, #tpu.memory_space<vmem>>, vector<1x1x128x128xbf16>
    %17 = vector.shape_cast %16 : vector<1x1x128x128xbf16> to vector<128x128xbf16>
    %18 = tpu.concatenate %1, %3, %5, %7, %9, %11, %13, %15, %17 in 1 : vector<128x128xbf16>, vector<128x128xbf16>, vector<128x128xbf16>, vector<128x128xbf16>, vector<128x128xbf16>, vector<128x128xbf16>, vector<128x128xbf16>, vector<128x128xbf16>, vector<128x128xbf16> -> vector<128x1152xbf16>
    %c1_27 = arith.constant 1 : index
    %c0_28 = arith.constant 0 : index
    %c0_29 = arith.constant 0 : index
    %c0_30 = arith.constant 0 : index
    %19 = vector.load %arg0[%c1_27, %c0_28, %c0_29, %c0_30] : memref<2x1x176x128xbf16, #tpu.memory_space<vmem>>, vector<1x1x128x128xbf16>
    %20 = vector.shape_cast %19 : vector<1x1x128x128xbf16> to vector<128x128xbf16>
    %c1_31 = arith.constant 1 : index
    %c0_32 = arith.constant 0 : index
    %c1_33 = arith.constant 1 : index
    %c0_34 = arith.constant 0 : index
    %21 = vector.load %arg0[%c1_31, %c0_32, %c1_33, %c0_34] : memref<2x1x176x128xbf16, #tpu.memory_space<vmem>>, vector<1x1x128x128xbf16>
    %22 = vector.shape_cast %21 : vector<1x1x128x128xbf16> to vector<128x128xbf16>
    %c1_35 = arith.constant 1 : index
    %c0_36 = arith.constant 0 : index
    %c2_37 = arith.constant 2 : index
    %c0_38 = arith.constant 0 : index
    %23 = vector.load %arg0[%c1_35, %c0_36, %c2_37, %c0_38] : memref<2x1x176x128xbf16, #tpu.memory_space<vmem>>, vector<1x1x128x128xbf16>
    %24 = vector.shape_cast %23 : vector<1x1x128x128xbf16> to vector<128x128xbf16>
    %c1_39 = arith.constant 1 : index
    %c0_40 = arith.constant 0 : index
    %c16_41 = arith.constant 16 : index
    %c0_42 = arith.constant 0 : index
    %25 = vector.load %arg0[%c1_39, %c0_40, %c16_41, %c0_42] : memref<2x1x176x128xbf16, #tpu.memory_space<vmem>>, vector<1x1x128x128xbf16>
    %26 = vector.shape_cast %25 : vector<1x1x128x128xbf16> to vector<128x128xbf16>
    %c1_43 = arith.constant 1 : index
    %c0_44 = arith.constant 0 : index
    %c17_45 = arith.constant 17 : index
    %c0_46 = arith.constant 0 : index
    %27 = vector.load %arg0[%c1_43, %c0_44, %c17_45, %c0_46] : memref<2x1x176x128xbf16, #tpu.memory_space<vmem>>, vector<1x1x128x128xbf16>
    %28 = vector.shape_cast %27 : vector<1x1x128x128xbf16> to vector<128x128xbf16>
    %c1_47 = arith.constant 1 : index
    %c0_48 = arith.constant 0 : index
    %c18_49 = arith.constant 18 : index
    %c0_50 = arith.constant 0 : index
    %29 = vector.load %arg0[%c1_47, %c0_48, %c18_49, %c0_50] : memref<2x1x176x128xbf16, #tpu.memory_space<vmem>>, vector<1x1x128x128xbf16>
    %30 = vector.shape_cast %29 : vector<1x1x128x128xbf16> to vector<128x128xbf16>
    %c1_51 = arith.constant 1 : index
    %c0_52 = arith.constant 0 : index
    %c32_53 = arith.constant 32 : index
    %c0_54 = arith.constant 0 : index
    %31 = vector.load %arg0[%c1_51, %c0_52, %c32_53, %c0_54] : memref<2x1x176x128xbf16, #tpu.memory_space<vmem>>, vector<1x1x128x128xbf16>
    %32 = vector.shape_cast %31 : vector<1x1x128x128xbf16> to vector<128x128xbf16>
    %c1_55 = arith.constant 1 : index
    %c0_56 = arith.constant 0 : index
    %c33_57 = arith.constant 33 : index
    %c0_58 = arith.constant 0 : index
    %33 = vector.load %arg0[%c1_55, %c0_56, %c33_57, %c0_58] : memref<2x1x176x128xbf16, #tpu.memory_space<vmem>>, vector<1x1x128x128xbf16>
    %34 = vector.shape_cast %33 : vector<1x1x128x128xbf16> to vector<128x128xbf16>
    %c1_59 = arith.constant 1 : index
    %c0_60 = arith.constant 0 : index
    %c34_61 = arith.constant 34 : index
    %c0_62 = arith.constant 0 : index
    %35 = vector.load %arg0[%c1_59, %c0_60, %c34_61, %c0_62] : memref<2x1x176x128xbf16, #tpu.memory_space<vmem>>, vector<1x1x128x128xbf16>
    %36 = vector.shape_cast %35 : vector<1x1x128x128xbf16> to vector<128x128xbf16>
    %37 = tpu.concatenate %20, %22, %24, %26, %28, %30, %32, %34, %36 in 1 : vector<128x128xbf16>, vector<128x128xbf16>, vector<128x128xbf16>, vector<128x128xbf16>, vector<128x128xbf16>, vector<128x128xbf16>, vector<128x128xbf16>, vector<128x128xbf16>, vector<128x128xbf16> -> vector<128x1152xbf16>
    %38 = tpu.concatenate %18, %37 in 0 : vector<128x1152xbf16>, vector<128x1152xbf16> -> vector<256x1152xbf16>
    %c0_63 = arith.constant 0 : index
    %c0_64 = arith.constant 0 : index
    %39 = vector.load %arg1[%c0_63, %c0_64] : memref<1152x128xbf16, #tpu.memory_space<vmem>>, vector<1152x128xbf16>
    %cst = arith.constant dense<0.000000e+00> : vector<256x128xf32>
    %40 = tpu.matmul %38, %39, %cst {dimension_numbers = #tpu.dot_dimension_numbers<[1], [0], [0], [1], [0, 0, 1, 1], [], []>} : vector<256x1152xbf16>, vector<1152x128xbf16>, vector<256x128xf32> -> vector<256x128xf32>
    %c0_65 = arith.constant 0 : index
    %c0_66 = arith.constant 0 : index
    %41 = vector.load %arg2[%c0_65, %c0_66] : memref<1x128xf32, #tpu.memory_space<vmem>>, vector<1x128xf32>
    %42 = vector.broadcast %41 : vector<1x128xf32> to vector<256x128xf32>
    %43 = arith.mulf %40, %42 : vector<256x128xf32>
    %c0_67 = arith.constant 0 : index
    %c0_68 = arith.constant 0 : index
    %44 = vector.load %arg3[%c0_67, %c0_68] : memref<1x128xf32, #tpu.memory_space<vmem>>, vector<1x128xf32>
    %45 = vector.broadcast %44 : vector<1x128xf32> to vector<256x128xf32>
    %46 = arith.addf %43, %45 : vector<256x128xf32>
    %c0_69 = arith.constant 0 : index
    %c0_70 = arith.constant 0 : index
    %47 = vector.load %arg4[%c0_69, %c0_70] : memref<1x1xf32, #tpu.memory_space<vmem>>, vector<1x1xf32>
    %cst_71 = arith.constant 0.000000e+00 : f32
    %48 = vector.broadcast %cst_71 : f32 to vector<256x128xf32>
    %49 = arith.cmpf oge, %46, %48 : vector<256x128xf32>
    %50 = vector.broadcast %47 : vector<1x1xf32> to vector<256x128xf32>
    %51 = arith.mulf %50, %46 : vector<256x128xf32>
    %52 = arith.select %49, %46, %51 : vector<256x128xi1>, vector<256x128xf32>
    %c0_72 = arith.constant 0 : index
    %c0_73 = arith.constant 0 : index
    %53 = vector.load %arg5[%c0_72, %c0_73] : memref<256x128xbf16, #tpu.memory_space<vmem>>, vector<256x128xbf16>
    %c0_74 = arith.constant 0 : index
    %c0_75 = arith.constant 0 : index
    %54 = vector.load %arg6[%c0_74, %c0_75] : memref<128x128xbf16, #tpu.memory_space<vmem>>, vector<128x128xbf16>
    %cst_76 = arith.constant dense<0.000000e+00> : vector<256x128xf32>
    %55 = tpu.matmul %53, %54, %cst_76 {dimension_numbers = #tpu.dot_dimension_numbers<[1], [0], [0], [1], [0, 0, 1, 1], [], []>} : vector<256x128xbf16>, vector<128x128xbf16>, vector<256x128xf32> -> vector<256x128xf32>
    %c0_77 = arith.constant 0 : index
    %c0_78 = arith.constant 0 : index
    %56 = vector.load %arg7[%c0_77, %c0_78] : memref<1x128xf32, #tpu.memory_space<vmem>>, vector<1x128xf32>
    %57 = vector.broadcast %56 : vector<1x128xf32> to vector<256x128xf32>
    %58 = arith.mulf %55, %57 : vector<256x128xf32>
    %59 = arith.addf %52, %58 : vector<256x128xf32>
    %c0_79 = arith.constant 0 : index
    %c0_80 = arith.constant 0 : index
    %60 = vector.load %arg8[%c0_79, %c0_80] : memref<1x128xf32, #tpu.memory_space<vmem>>, vector<1x128xf32>
    %61 = vector.broadcast %60 : vector<1x128xf32> to vector<256x128xf32>
    %62 = arith.addf %59, %61 : vector<256x128xf32>
    %c0_81 = arith.constant 0 : index
    %c0_82 = arith.constant 0 : index
    %63 = vector.load %arg9[%c0_81, %c0_82] : memref<1x1xf32, #tpu.memory_space<vmem>>, vector<1x1xf32>
    %cst_83 = arith.constant 0.000000e+00 : f32
    %64 = vector.broadcast %cst_83 : f32 to vector<256x128xf32>
    %65 = arith.cmpf oge, %62, %64 : vector<256x128xf32>
    %66 = vector.broadcast %63 : vector<1x1xf32> to vector<256x128xf32>
    %67 = arith.mulf %66, %62 : vector<256x128xf32>
    %68 = arith.select %65, %62, %67 : vector<256x128xi1>, vector<256x128xf32>
    %69 = arith.truncf %68 : vector<256x128xf32> to vector<256x128xbf16>
    %c0_84 = arith.constant 0 : index
    %c0_85 = arith.constant 0 : index
    %70 = vector.load %arg10[%c0_84, %c0_85] : memref<256x128xbf16, #tpu.memory_space<vmem>>, vector<256x128xbf16>
    tpu.vector_store %arg10[%c0_84, %c0_85], %69 {strides = array<i32>} : memref<256x128xbf16, #tpu.memory_space<vmem>>, vector<256x128xbf16>,
    return
  }
}

module attributes {stable_mosaic.version = 11 : i64} {
  func.func @kernel(%arg0: memref<2x1x72x128xbf16, #tpu.memory_space<vmem>>, %arg1: memref<128x128xbf16, #tpu.memory_space<vmem>>, %arg2: memref<1x128xf32, #tpu.memory_space<vmem>>, %arg3: memref<1x128xf32, #tpu.memory_space<vmem>>, %arg4: memref<1x1xf32, #tpu.memory_space<vmem>>, %arg5: memref<128x128xbf16, #tpu.memory_space<vmem>>) attributes {dimension_semantics = [], scalar_prefetch = 0 : i64, scratch_operands = 0 : i64, tpu.core_type = #tpu.core_type<tc>} {
    %c0 = arith.constant 0 : index
    %c0_0 = arith.constant 0 : index
    %c0_1 = arith.constant 0 : index
    %c0_2 = arith.constant 0 : index
    %0 = vector.load %arg0[%c0, %c0_0, %c0_1, %c0_2] : memref<2x1x72x128xbf16, #tpu.memory_space<vmem>>, vector<1x1x64x128xbf16>
    %1 = vector.shape_cast %0 : vector<1x1x64x128xbf16> to vector<64x128xbf16>
    %c1 = arith.constant 1 : index
    %c0_3 = arith.constant 0 : index
    %c0_4 = arith.constant 0 : index
    %c0_5 = arith.constant 0 : index
    %2 = vector.load %arg0[%c1, %c0_3, %c0_4, %c0_5] : memref<2x1x72x128xbf16, #tpu.memory_space<vmem>>, vector<1x1x64x128xbf16>
    %3 = vector.shape_cast %2 : vector<1x1x64x128xbf16> to vector<64x128xbf16>
    %4 = tpu.concatenate %1, %3 in 0 : vector<64x128xbf16>, vector<64x128xbf16> -> vector<128x128xbf16>
    %c0_6 = arith.constant 0 : index
    %c0_7 = arith.constant 0 : index
    %5 = vector.load %arg1[%c0_6, %c0_7] : memref<128x128xbf16, #tpu.memory_space<vmem>>, vector<128x128xbf16>
    %cst = arith.constant dense<0.000000e+00> : vector<128x128xf32>
    %6 = tpu.matmul %4, %5, %cst {dimension_numbers = #tpu.dot_dimension_numbers<[1], [0], [0], [1], [0, 0, 1, 1], [], []>} : vector<128x128xbf16>, vector<128x128xbf16>, vector<128x128xf32> -> vector<128x128xf32>
    %c0_8 = arith.constant 0 : index
    %c0_9 = arith.constant 0 : index
    %7 = vector.load %arg2[%c0_8, %c0_9] : memref<1x128xf32, #tpu.memory_space<vmem>>, vector<1x128xf32>
    %8 = vector.broadcast %7 : vector<1x128xf32> to vector<128x128xf32>
    %9 = arith.mulf %6, %8 : vector<128x128xf32>
    %c0_10 = arith.constant 0 : index
    %c0_11 = arith.constant 0 : index
    %10 = vector.load %arg3[%c0_10, %c0_11] : memref<1x128xf32, #tpu.memory_space<vmem>>, vector<1x128xf32>
    %11 = vector.broadcast %10 : vector<1x128xf32> to vector<128x128xf32>
    %12 = arith.addf %9, %11 : vector<128x128xf32>
    %c0_12 = arith.constant 0 : index
    %c0_13 = arith.constant 0 : index
    %13 = vector.load %arg4[%c0_12, %c0_13] : memref<1x1xf32, #tpu.memory_space<vmem>>, vector<1x1xf32>
    %cst_14 = arith.constant 0.000000e+00 : f32
    %14 = vector.broadcast %cst_14 : f32 to vector<128x128xf32>
    %15 = arith.cmpf oge, %12, %14 : vector<128x128xf32>
    %16 = vector.broadcast %13 : vector<1x1xf32> to vector<128x128xf32>
    %17 = arith.mulf %16, %12 : vector<128x128xf32>
    %18 = arith.select %15, %12, %17 : vector<128x128xi1>, vector<128x128xf32>
    %19 = arith.truncf %18 : vector<128x128xf32> to vector<128x128xbf16>
    %c0_15 = arith.constant 0 : index
    %c0_16 = arith.constant 0 : index
    %20 = vector.load %arg5[%c0_15, %c0_16] : memref<128x128xbf16, #tpu.memory_space<vmem>>, vector<128x128xbf16>
    tpu.vector_store %arg5[%c0_15, %c0_16], %19 {strides = array<i32>} : memref<128x128xbf16, #tpu.memory_space<vmem>>, vector<128x128xbf16>,
    return
  }
}

module attributes {stable_mosaic.version = 11 : i64} {
  func.func @kernel(%arg0: memref<2x1x40x128xbf16, #tpu.memory_space<vmem>>, %arg1: memref<128x128xbf16, #tpu.memory_space<vmem>>, %arg2: memref<1x128xf32, #tpu.memory_space<vmem>>, %arg3: memref<1x128xf32, #tpu.memory_space<vmem>>, %arg4: memref<1x1xf32, #tpu.memory_space<vmem>>, %arg5: memref<64x128xbf16, #tpu.memory_space<vmem>>) attributes {dimension_semantics = [], scalar_prefetch = 0 : i64, scratch_operands = 0 : i64, tpu.core_type = #tpu.core_type<tc>} {
    %c0 = arith.constant 0 : index
    %c0_0 = arith.constant 0 : index
    %c0_1 = arith.constant 0 : index
    %c0_2 = arith.constant 0 : index
    %0 = vector.load %arg0[%c0, %c0_0, %c0_1, %c0_2] : memref<2x1x40x128xbf16, #tpu.memory_space<vmem>>, vector<1x1x32x128xbf16>
    %1 = vector.shape_cast %0 : vector<1x1x32x128xbf16> to vector<32x128xbf16>
    %c1 = arith.constant 1 : index
    %c0_3 = arith.constant 0 : index
    %c0_4 = arith.constant 0 : index
    %c0_5 = arith.constant 0 : index
    %2 = vector.load %arg0[%c1, %c0_3, %c0_4, %c0_5] : memref<2x1x40x128xbf16, #tpu.memory_space<vmem>>, vector<1x1x32x128xbf16>
    %3 = vector.shape_cast %2 : vector<1x1x32x128xbf16> to vector<32x128xbf16>
    %4 = tpu.concatenate %1, %3 in 0 : vector<32x128xbf16>, vector<32x128xbf16> -> vector<64x128xbf16>
    %c0_6 = arith.constant 0 : index
    %c0_7 = arith.constant 0 : index
    %5 = vector.load %arg1[%c0_6, %c0_7] : memref<128x128xbf16, #tpu.memory_space<vmem>>, vector<128x128xbf16>
    %cst = arith.constant dense<0.000000e+00> : vector<64x128xf32>
    %6 = tpu.matmul %4, %5, %cst {dimension_numbers = #tpu.dot_dimension_numbers<[1], [0], [0], [1], [0, 0, 1, 1], [], []>} : vector<64x128xbf16>, vector<128x128xbf16>, vector<64x128xf32> -> vector<64x128xf32>
    %c0_8 = arith.constant 0 : index
    %c0_9 = arith.constant 0 : index
    %7 = vector.load %arg2[%c0_8, %c0_9] : memref<1x128xf32, #tpu.memory_space<vmem>>, vector<1x128xf32>
    %8 = vector.broadcast %7 : vector<1x128xf32> to vector<64x128xf32>
    %9 = arith.mulf %6, %8 : vector<64x128xf32>
    %c0_10 = arith.constant 0 : index
    %c0_11 = arith.constant 0 : index
    %10 = vector.load %arg3[%c0_10, %c0_11] : memref<1x128xf32, #tpu.memory_space<vmem>>, vector<1x128xf32>
    %11 = vector.broadcast %10 : vector<1x128xf32> to vector<64x128xf32>
    %12 = arith.addf %9, %11 : vector<64x128xf32>
    %c0_12 = arith.constant 0 : index
    %c0_13 = arith.constant 0 : index
    %13 = vector.load %arg4[%c0_12, %c0_13] : memref<1x1xf32, #tpu.memory_space<vmem>>, vector<1x1xf32>
    %cst_14 = arith.constant 0.000000e+00 : f32
    %14 = vector.broadcast %cst_14 : f32 to vector<64x128xf32>
    %15 = arith.cmpf oge, %12, %14 : vector<64x128xf32>
    %16 = vector.broadcast %13 : vector<1x1xf32> to vector<64x128xf32>
    %17 = arith.mulf %16, %12 : vector<64x128xf32>
    %18 = arith.select %15, %12, %17 : vector<64x128xi1>, vector<64x128xf32>
    %19 = arith.truncf %18 : vector<64x128xf32> to vector<64x128xbf16>
    %c0_15 = arith.constant 0 : index
    %c0_16 = arith.constant 0 : index
    %20 = vector.load %arg5[%c0_15, %c0_16] : memref<64x128xbf16, #tpu.memory_space<vmem>>, vector<64x128xbf16>
    tpu.vector_store %arg5[%c0_15, %c0_16], %19 {strides = array<i32>} : memref<64x128xbf16, #tpu.memory_space<vmem>>, vector<64x128xbf16>,
    return
  }
}

module attributes {stable_mosaic.version = 11 : i64} {
  func.func @kernel(%arg0: memref<2x4x48x128xbf16, #tpu.memory_space<vmem>>, %arg1: memref<1152x128xbf16, #tpu.memory_space<vmem>>, %arg2: memref<1x128xf32, #tpu.memory_space<vmem>>, %arg3: memref<1x128xf32, #tpu.memory_space<vmem>>, %arg4: memref<1x1xf32, #tpu.memory_space<vmem>>, %arg5: memref<128x128xbf16, #tpu.memory_space<vmem>>, %arg6: memref<1x128xf32, #tpu.memory_space<vmem>>, %arg7: memref<1x128xf32, #tpu.memory_space<vmem>>, %arg8: memref<64x128xbf16, #tpu.memory_space<vmem>>, %arg9: memref<128x128xbf16, #tpu.memory_space<vmem>>, %arg10: memref<1x128xf32, #tpu.memory_space<vmem>>, %arg11: memref<1x128xf32, #tpu.memory_space<vmem>>, %arg12: memref<1x1xf32, #tpu.memory_space<vmem>>, %arg13: memref<64x128xbf16, #tpu.memory_space<vmem>>) attributes {dimension_semantics = [], scalar_prefetch = 0 : i64, scratch_operands = 0 : i64, tpu.core_type = #tpu.core_type<tc>} {
    %c0 = arith.constant 0 : index
    %c0_0 = arith.constant 0 : index
    %c0_1 = arith.constant 0 : index
    %c0_2 = arith.constant 0 : index
    %0 = vector.load %arg0[%c0, %c0_0, %c0_1, %c0_2] : memref<2x4x48x128xbf16, #tpu.memory_space<vmem>>, vector<1x1x32x128xbf16>
    %1 = vector.shape_cast %0 : vector<1x1x32x128xbf16> to vector<32x128xbf16>
    %c0_3 = arith.constant 0 : index
    %c1 = arith.constant 1 : index
    %c0_4 = arith.constant 0 : index
    %c0_5 = arith.constant 0 : index
    %2 = vector.load %arg0[%c0_3, %c1, %c0_4, %c0_5] : memref<2x4x48x128xbf16, #tpu.memory_space<vmem>>, vector<1x1x32x128xbf16>
    %3 = vector.shape_cast %2 : vector<1x1x32x128xbf16> to vector<32x128xbf16>
    %c0_6 = arith.constant 0 : index
    %c0_7 = arith.constant 0 : index
    %c1_8 = arith.constant 1 : index
    %c0_9 = arith.constant 0 : index
    %4 = vector.load %arg0[%c0_6, %c0_7, %c1_8, %c0_9] : memref<2x4x48x128xbf16, #tpu.memory_space<vmem>>, vector<1x1x32x128xbf16>
    %5 = vector.shape_cast %4 : vector<1x1x32x128xbf16> to vector<32x128xbf16>
    %c0_10 = arith.constant 0 : index
    %c2 = arith.constant 2 : index
    %c0_11 = arith.constant 0 : index
    %c0_12 = arith.constant 0 : index
    %6 = vector.load %arg0[%c0_10, %c2, %c0_11, %c0_12] : memref<2x4x48x128xbf16, #tpu.memory_space<vmem>>, vector<1x1x32x128xbf16>
    %7 = vector.shape_cast %6 : vector<1x1x32x128xbf16> to vector<32x128xbf16>
    %c0_13 = arith.constant 0 : index
    %c3 = arith.constant 3 : index
    %c0_14 = arith.constant 0 : index
    %c0_15 = arith.constant 0 : index
    %8 = vector.load %arg0[%c0_13, %c3, %c0_14, %c0_15] : memref<2x4x48x128xbf16, #tpu.memory_space<vmem>>, vector<1x1x32x128xbf16>
    %9 = vector.shape_cast %8 : vector<1x1x32x128xbf16> to vector<32x128xbf16>
    %c0_16 = arith.constant 0 : index
    %c2_17 = arith.constant 2 : index
    %c1_18 = arith.constant 1 : index
    %c0_19 = arith.constant 0 : index
    %10 = vector.load %arg0[%c0_16, %c2_17, %c1_18, %c0_19] : memref<2x4x48x128xbf16, #tpu.memory_space<vmem>>, vector<1x1x32x128xbf16>
    %11 = vector.shape_cast %10 : vector<1x1x32x128xbf16> to vector<32x128xbf16>
    %c0_20 = arith.constant 0 : index
    %c0_21 = arith.constant 0 : index
    %c8 = arith.constant 8 : index
    %c0_22 = arith.constant 0 : index
    %12 = vector.load %arg0[%c0_20, %c0_21, %c8, %c0_22] : memref<2x4x48x128xbf16, #tpu.memory_space<vmem>>, vector<1x1x32x128xbf16>
    %13 = vector.shape_cast %12 : vector<1x1x32x128xbf16> to vector<32x128xbf16>
    %c0_23 = arith.constant 0 : index
    %c1_24 = arith.constant 1 : index
    %c8_25 = arith.constant 8 : index
    %c0_26 = arith.constant 0 : index
    %14 = vector.load %arg0[%c0_23, %c1_24, %c8_25, %c0_26] : memref<2x4x48x128xbf16, #tpu.memory_space<vmem>>, vector<1x1x32x128xbf16>
    %15 = vector.shape_cast %14 : vector<1x1x32x128xbf16> to vector<32x128xbf16>
    %c0_27 = arith.constant 0 : index
    %c0_28 = arith.constant 0 : index
    %c9 = arith.constant 9 : index
    %c0_29 = arith.constant 0 : index
    %16 = vector.load %arg0[%c0_27, %c0_28, %c9, %c0_29] : memref<2x4x48x128xbf16, #tpu.memory_space<vmem>>, vector<1x1x32x128xbf16>
    %17 = vector.shape_cast %16 : vector<1x1x32x128xbf16> to vector<32x128xbf16>
    %18 = tpu.concatenate %1, %3, %5, %7, %9, %11, %13, %15, %17 in 1 : vector<32x128xbf16>, vector<32x128xbf16>, vector<32x128xbf16>, vector<32x128xbf16>, vector<32x128xbf16>, vector<32x128xbf16>, vector<32x128xbf16>, vector<32x128xbf16>, vector<32x128xbf16> -> vector<32x1152xbf16>
    %c1_30 = arith.constant 1 : index
    %c0_31 = arith.constant 0 : index
    %c0_32 = arith.constant 0 : index
    %c0_33 = arith.constant 0 : index
    %19 = vector.load %arg0[%c1_30, %c0_31, %c0_32, %c0_33] : memref<2x4x48x128xbf16, #tpu.memory_space<vmem>>, vector<1x1x32x128xbf16>
    %20 = vector.shape_cast %19 : vector<1x1x32x128xbf16> to vector<32x128xbf16>
    %c1_34 = arith.constant 1 : index
    %c1_35 = arith.constant 1 : index
    %c0_36 = arith.constant 0 : index
    %c0_37 = arith.constant 0 : index
    %21 = vector.load %arg0[%c1_34, %c1_35, %c0_36, %c0_37] : memref<2x4x48x128xbf16, #tpu.memory_space<vmem>>, vector<1x1x32x128xbf16>
    %22 = vector.shape_cast %21 : vector<1x1x32x128xbf16> to vector<32x128xbf16>
    %c1_38 = arith.constant 1 : index
    %c0_39 = arith.constant 0 : index
    %c1_40 = arith.constant 1 : index
    %c0_41 = arith.constant 0 : index
    %23 = vector.load %arg0[%c1_38, %c0_39, %c1_40, %c0_41] : memref<2x4x48x128xbf16, #tpu.memory_space<vmem>>, vector<1x1x32x128xbf16>
    %24 = vector.shape_cast %23 : vector<1x1x32x128xbf16> to vector<32x128xbf16>
    %c1_42 = arith.constant 1 : index
    %c2_43 = arith.constant 2 : index
    %c0_44 = arith.constant 0 : index
    %c0_45 = arith.constant 0 : index
    %25 = vector.load %arg0[%c1_42, %c2_43, %c0_44, %c0_45] : memref<2x4x48x128xbf16, #tpu.memory_space<vmem>>, vector<1x1x32x128xbf16>
    %26 = vector.shape_cast %25 : vector<1x1x32x128xbf16> to vector<32x128xbf16>
    %c1_46 = arith.constant 1 : index
    %c3_47 = arith.constant 3 : index
    %c0_48 = arith.constant 0 : index
    %c0_49 = arith.constant 0 : index
    %27 = vector.load %arg0[%c1_46, %c3_47, %c0_48, %c0_49] : memref<2x4x48x128xbf16, #tpu.memory_space<vmem>>, vector<1x1x32x128xbf16>
    %28 = vector.shape_cast %27 : vector<1x1x32x128xbf16> to vector<32x128xbf16>
    %c1_50 = arith.constant 1 : index
    %c2_51 = arith.constant 2 : index
    %c1_52 = arith.constant 1 : index
    %c0_53 = arith.constant 0 : index
    %29 = vector.load %arg0[%c1_50, %c2_51, %c1_52, %c0_53] : memref<2x4x48x128xbf16, #tpu.memory_space<vmem>>, vector<1x1x32x128xbf16>
    %30 = vector.shape_cast %29 : vector<1x1x32x128xbf16> to vector<32x128xbf16>
    %c1_54 = arith.constant 1 : index
    %c0_55 = arith.constant 0 : index
    %c8_56 = arith.constant 8 : index
    %c0_57 = arith.constant 0 : index
    %31 = vector.load %arg0[%c1_54, %c0_55, %c8_56, %c0_57] : memref<2x4x48x128xbf16, #tpu.memory_space<vmem>>, vector<1x1x32x128xbf16>
    %32 = vector.shape_cast %31 : vector<1x1x32x128xbf16> to vector<32x128xbf16>
    %c1_58 = arith.constant 1 : index
    %c1_59 = arith.constant 1 : index
    %c8_60 = arith.constant 8 : index
    %c0_61 = arith.constant 0 : index
    %33 = vector.load %arg0[%c1_58, %c1_59, %c8_60, %c0_61] : memref<2x4x48x128xbf16, #tpu.memory_space<vmem>>, vector<1x1x32x128xbf16>
    %34 = vector.shape_cast %33 : vector<1x1x32x128xbf16> to vector<32x128xbf16>
    %c1_62 = arith.constant 1 : index
    %c0_63 = arith.constant 0 : index
    %c9_64 = arith.constant 9 : index
    %c0_65 = arith.constant 0 : index
    %35 = vector.load %arg0[%c1_62, %c0_63, %c9_64, %c0_65] : memref<2x4x48x128xbf16, #tpu.memory_space<vmem>>, vector<1x1x32x128xbf16>
    %36 = vector.shape_cast %35 : vector<1x1x32x128xbf16> to vector<32x128xbf16>
    %37 = tpu.concatenate %20, %22, %24, %26, %28, %30, %32, %34, %36 in 1 : vector<32x128xbf16>, vector<32x128xbf16>, vector<32x128xbf16>, vector<32x128xbf16>, vector<32x128xbf16>, vector<32x128xbf16>, vector<32x128xbf16>, vector<32x128xbf16>, vector<32x128xbf16> -> vector<32x1152xbf16>
    %38 = tpu.concatenate %18, %37 in 0 : vector<32x1152xbf16>, vector<32x1152xbf16> -> vector<64x1152xbf16>
    %c0_66 = arith.constant 0 : index
    %c0_67 = arith.constant 0 : index
    %39 = vector.load %arg1[%c0_66, %c0_67] : memref<1152x128xbf16, #tpu.memory_space<vmem>>, vector<1152x128xbf16>
    %cst = arith.constant dense<0.000000e+00> : vector<64x128xf32>
    %40 = tpu.matmul %38, %39, %cst {dimension_numbers = #tpu.dot_dimension_numbers<[1], [0], [0], [1], [0, 0, 1, 1], [], []>} : vector<64x1152xbf16>, vector<1152x128xbf16>, vector<64x128xf32> -> vector<64x128xf32>
    %c0_68 = arith.constant 0 : index
    %c0_69 = arith.constant 0 : index
    %41 = vector.load %arg2[%c0_68, %c0_69] : memref<1x128xf32, #tpu.memory_space<vmem>>, vector<1x128xf32>
    %42 = vector.broadcast %41 : vector<1x128xf32> to vector<64x128xf32>
    %43 = arith.mulf %40, %42 : vector<64x128xf32>
    %c0_70 = arith.constant 0 : index
    %c0_71 = arith.constant 0 : index
    %44 = vector.load %arg3[%c0_70, %c0_71] : memref<1x128xf32, #tpu.memory_space<vmem>>, vector<1x128xf32>
    %45 = vector.broadcast %44 : vector<1x128xf32> to vector<64x128xf32>
    %46 = arith.addf %43, %45 : vector<64x128xf32>
    %c0_72 = arith.constant 0 : index
    %c0_73 = arith.constant 0 : index
    %47 = vector.load %arg4[%c0_72, %c0_73] : memref<1x1xf32, #tpu.memory_space<vmem>>, vector<1x1xf32>
    %cst_74 = arith.constant 0.000000e+00 : f32
    %48 = vector.broadcast %cst_74 : f32 to vector<64x128xf32>
    %49 = arith.cmpf oge, %46, %48 : vector<64x128xf32>
    %50 = vector.broadcast %47 : vector<1x1xf32> to vector<64x128xf32>
    %51 = arith.mulf %50, %46 : vector<64x128xf32>
    %52 = arith.select %49, %46, %51 : vector<64x128xi1>, vector<64x128xf32>
    %53 = arith.truncf %52 : vector<64x128xf32> to vector<64x128xbf16>
    %c0_75 = arith.constant 0 : index
    %c0_76 = arith.constant 0 : index
    %54 = vector.load %arg5[%c0_75, %c0_76] : memref<128x128xbf16, #tpu.memory_space<vmem>>, vector<128x128xbf16>
    %cst_77 = arith.constant dense<0.000000e+00> : vector<64x128xf32>
    %55 = tpu.matmul %53, %54, %cst_77 {dimension_numbers = #tpu.dot_dimension_numbers<[1], [0], [0], [1], [0, 0, 1, 1], [], []>} : vector<64x128xbf16>, vector<128x128xbf16>, vector<64x128xf32> -> vector<64x128xf32>
    %c0_78 = arith.constant 0 : index
    %c0_79 = arith.constant 0 : index
    %56 = vector.load %arg6[%c0_78, %c0_79] : memref<1x128xf32, #tpu.memory_space<vmem>>, vector<1x128xf32>
    %57 = vector.broadcast %56 : vector<1x128xf32> to vector<64x128xf32>
    %58 = arith.mulf %55, %57 : vector<64x128xf32>
    %c0_80 = arith.constant 0 : index
    %c0_81 = arith.constant 0 : index
    %59 = vector.load %arg7[%c0_80, %c0_81] : memref<1x128xf32, #tpu.memory_space<vmem>>, vector<1x128xf32>
    %60 = vector.broadcast %59 : vector<1x128xf32> to vector<64x128xf32>
    %61 = arith.addf %58, %60 : vector<64x128xf32>
    %c0_82 = arith.constant 0 : index
    %c0_83 = arith.constant 0 : index
    %62 = vector.load %arg8[%c0_82, %c0_83] : memref<64x128xbf16, #tpu.memory_space<vmem>>, vector<64x128xbf16>
    %c0_84 = arith.constant 0 : index
    %c0_85 = arith.constant 0 : index
    %63 = vector.load %arg9[%c0_84, %c0_85] : memref<128x128xbf16, #tpu.memory_space<vmem>>, vector<128x128xbf16>
    %cst_86 = arith.constant dense<0.000000e+00> : vector<64x128xf32>
    %64 = tpu.matmul %62, %63, %cst_86 {dimension_numbers = #tpu.dot_dimension_numbers<[1], [0], [0], [1], [0, 0, 1, 1], [], []>} : vector<64x128xbf16>, vector<128x128xbf16>, vector<64x128xf32> -> vector<64x128xf32>
    %c0_87 = arith.constant 0 : index
    %c0_88 = arith.constant 0 : index
    %65 = vector.load %arg10[%c0_87, %c0_88] : memref<1x128xf32, #tpu.memory_space<vmem>>, vector<1x128xf32>
    %66 = vector.broadcast %65 : vector<1x128xf32> to vector<64x128xf32>
    %67 = arith.mulf %64, %66 : vector<64x128xf32>
    %68 = arith.addf %61, %67 : vector<64x128xf32>
    %c0_89 = arith.constant 0 : index
    %c0_90 = arith.constant 0 : index
    %69 = vector.load %arg11[%c0_89, %c0_90] : memref<1x128xf32, #tpu.memory_space<vmem>>, vector<1x128xf32>
    %70 = vector.broadcast %69 : vector<1x128xf32> to vector<64x128xf32>
    %71 = arith.addf %68, %70 : vector<64x128xf32>
    %c0_91 = arith.constant 0 : index
    %c0_92 = arith.constant 0 : index
    %72 = vector.load %arg12[%c0_91, %c0_92] : memref<1x1xf32, #tpu.memory_space<vmem>>, vector<1x1xf32>
    %cst_93 = arith.constant 0.000000e+00 : f32
    %73 = vector.broadcast %cst_93 : f32 to vector<64x128xf32>
    %74 = arith.cmpf oge, %71, %73 : vector<64x128xf32>
    %75 = vector.broadcast %72 : vector<1x1xf32> to vector<64x128xf32>
    %76 = arith.mulf %75, %71 : vector<64x128xf32>
    %77 = arith.select %74, %71, %76 : vector<64x128xi1>, vector<64x128xf32>
    %78 = arith.truncf %77 : vector<64x128xf32> to vector<64x128xbf16>
    %c0_94 = arith.constant 0 : index
    %c0_95 = arith.constant 0 : index
    %79 = vector.load %arg13[%c0_94, %c0_95] : memref<64x128xbf16, #tpu.memory_space<vmem>>, vector<64x128xbf16>
    tpu.vector_store %arg13[%c0_94, %c0_95], %78 {strides = array<i32>} : memref<64x128xbf16, #tpu.memory_space<vmem>>, vector<64x128xbf16>,
    return
  }
}

module attributes {stable_mosaic.version = 11 : i64} {
  func.func @kernel(%arg0: memref<2x1x56x128xbf16, #tpu.memory_space<vmem>>, %arg1: memref<1152x128xbf16, #tpu.memory_space<vmem>>, %arg2: memref<1x128xf32, #tpu.memory_space<vmem>>, %arg3: memref<1x128xf32, #tpu.memory_space<vmem>>, %arg4: memref<1x1xf32, #tpu.memory_space<vmem>>, %arg5: memref<128x128xbf16, #tpu.memory_space<vmem>>, %arg6: memref<1x128xf32, #tpu.memory_space<vmem>>, %arg7: memref<1x128xf32, #tpu.memory_space<vmem>>, %arg8: memref<64x128xbf16, #tpu.memory_space<vmem>>, %arg9: memref<1x1xf32, #tpu.memory_space<vmem>>, %arg10: memref<64x128xbf16, #tpu.memory_space<vmem>>) attributes {dimension_semantics = [], scalar_prefetch = 0 : i64, scratch_operands = 0 : i64, tpu.core_type = #tpu.core_type<tc>} {
    %c0 = arith.constant 0 : index
    %c0_0 = arith.constant 0 : index
    %c0_1 = arith.constant 0 : index
    %c0_2 = arith.constant 0 : index
    %0 = vector.load %arg0[%c0, %c0_0, %c0_1, %c0_2] : memref<2x1x56x128xbf16, #tpu.memory_space<vmem>>, vector<1x1x32x128xbf16>
    %1 = vector.shape_cast %0 : vector<1x1x32x128xbf16> to vector<32x128xbf16>
    %c0_3 = arith.constant 0 : index
    %c0_4 = arith.constant 0 : index
    %c1 = arith.constant 1 : index
    %c0_5 = arith.constant 0 : index
    %2 = vector.load %arg0[%c0_3, %c0_4, %c1, %c0_5] : memref<2x1x56x128xbf16, #tpu.memory_space<vmem>>, vector<1x1x32x128xbf16>
    %3 = vector.shape_cast %2 : vector<1x1x32x128xbf16> to vector<32x128xbf16>
    %c0_6 = arith.constant 0 : index
    %c0_7 = arith.constant 0 : index
    %c2 = arith.constant 2 : index
    %c0_8 = arith.constant 0 : index
    %4 = vector.load %arg0[%c0_6, %c0_7, %c2, %c0_8] : memref<2x1x56x128xbf16, #tpu.memory_space<vmem>>, vector<1x1x32x128xbf16>
    %5 = vector.shape_cast %4 : vector<1x1x32x128xbf16> to vector<32x128xbf16>
    %c0_9 = arith.constant 0 : index
    %c0_10 = arith.constant 0 : index
    %c8 = arith.constant 8 : index
    %c0_11 = arith.constant 0 : index
    %6 = vector.load %arg0[%c0_9, %c0_10, %c8, %c0_11] : memref<2x1x56x128xbf16, #tpu.memory_space<vmem>>, vector<1x1x32x128xbf16>
    %7 = vector.shape_cast %6 : vector<1x1x32x128xbf16> to vector<32x128xbf16>
    %c0_12 = arith.constant 0 : index
    %c0_13 = arith.constant 0 : index
    %c9 = arith.constant 9 : index
    %c0_14 = arith.constant 0 : index
    %8 = vector.load %arg0[%c0_12, %c0_13, %c9, %c0_14] : memref<2x1x56x128xbf16, #tpu.memory_space<vmem>>, vector<1x1x32x128xbf16>
    %9 = vector.shape_cast %8 : vector<1x1x32x128xbf16> to vector<32x128xbf16>
    %c0_15 = arith.constant 0 : index
    %c0_16 = arith.constant 0 : index
    %c10 = arith.constant 10 : index
    %c0_17 = arith.constant 0 : index
    %10 = vector.load %arg0[%c0_15, %c0_16, %c10, %c0_17] : memref<2x1x56x128xbf16, #tpu.memory_space<vmem>>, vector<1x1x32x128xbf16>
    %11 = vector.shape_cast %10 : vector<1x1x32x128xbf16> to vector<32x128xbf16>
    %c0_18 = arith.constant 0 : index
    %c0_19 = arith.constant 0 : index
    %c16 = arith.constant 16 : index
    %c0_20 = arith.constant 0 : index
    %12 = vector.load %arg0[%c0_18, %c0_19, %c16, %c0_20] : memref<2x1x56x128xbf16, #tpu.memory_space<vmem>>, vector<1x1x32x128xbf16>
    %13 = vector.shape_cast %12 : vector<1x1x32x128xbf16> to vector<32x128xbf16>
    %c0_21 = arith.constant 0 : index
    %c0_22 = arith.constant 0 : index
    %c17 = arith.constant 17 : index
    %c0_23 = arith.constant 0 : index
    %14 = vector.load %arg0[%c0_21, %c0_22, %c17, %c0_23] : memref<2x1x56x128xbf16, #tpu.memory_space<vmem>>, vector<1x1x32x128xbf16>
    %15 = vector.shape_cast %14 : vector<1x1x32x128xbf16> to vector<32x128xbf16>
    %c0_24 = arith.constant 0 : index
    %c0_25 = arith.constant 0 : index
    %c18 = arith.constant 18 : index
    %c0_26 = arith.constant 0 : index
    %16 = vector.load %arg0[%c0_24, %c0_25, %c18, %c0_26] : memref<2x1x56x128xbf16, #tpu.memory_space<vmem>>, vector<1x1x32x128xbf16>
    %17 = vector.shape_cast %16 : vector<1x1x32x128xbf16> to vector<32x128xbf16>
    %18 = tpu.concatenate %1, %3, %5, %7, %9, %11, %13, %15, %17 in 1 : vector<32x128xbf16>, vector<32x128xbf16>, vector<32x128xbf16>, vector<32x128xbf16>, vector<32x128xbf16>, vector<32x128xbf16>, vector<32x128xbf16>, vector<32x128xbf16>, vector<32x128xbf16> -> vector<32x1152xbf16>
    %c1_27 = arith.constant 1 : index
    %c0_28 = arith.constant 0 : index
    %c0_29 = arith.constant 0 : index
    %c0_30 = arith.constant 0 : index
    %19 = vector.load %arg0[%c1_27, %c0_28, %c0_29, %c0_30] : memref<2x1x56x128xbf16, #tpu.memory_space<vmem>>, vector<1x1x32x128xbf16>
    %20 = vector.shape_cast %19 : vector<1x1x32x128xbf16> to vector<32x128xbf16>
    %c1_31 = arith.constant 1 : index
    %c0_32 = arith.constant 0 : index
    %c1_33 = arith.constant 1 : index
    %c0_34 = arith.constant 0 : index
    %21 = vector.load %arg0[%c1_31, %c0_32, %c1_33, %c0_34] : memref<2x1x56x128xbf16, #tpu.memory_space<vmem>>, vector<1x1x32x128xbf16>
    %22 = vector.shape_cast %21 : vector<1x1x32x128xbf16> to vector<32x128xbf16>
    %c1_35 = arith.constant 1 : index
    %c0_36 = arith.constant 0 : index
    %c2_37 = arith.constant 2 : index
    %c0_38 = arith.constant 0 : index
    %23 = vector.load %arg0[%c1_35, %c0_36, %c2_37, %c0_38] : memref<2x1x56x128xbf16, #tpu.memory_space<vmem>>, vector<1x1x32x128xbf16>
    %24 = vector.shape_cast %23 : vector<1x1x32x128xbf16> to vector<32x128xbf16>
    %c1_39 = arith.constant 1 : index
    %c0_40 = arith.constant 0 : index
    %c8_41 = arith.constant 8 : index
    %c0_42 = arith.constant 0 : index
    %25 = vector.load %arg0[%c1_39, %c0_40, %c8_41, %c0_42] : memref<2x1x56x128xbf16, #tpu.memory_space<vmem>>, vector<1x1x32x128xbf16>
    %26 = vector.shape_cast %25 : vector<1x1x32x128xbf16> to vector<32x128xbf16>
    %c1_43 = arith.constant 1 : index
    %c0_44 = arith.constant 0 : index
    %c9_45 = arith.constant 9 : index
    %c0_46 = arith.constant 0 : index
    %27 = vector.load %arg0[%c1_43, %c0_44, %c9_45, %c0_46] : memref<2x1x56x128xbf16, #tpu.memory_space<vmem>>, vector<1x1x32x128xbf16>
    %28 = vector.shape_cast %27 : vector<1x1x32x128xbf16> to vector<32x128xbf16>
    %c1_47 = arith.constant 1 : index
    %c0_48 = arith.constant 0 : index
    %c10_49 = arith.constant 10 : index
    %c0_50 = arith.constant 0 : index
    %29 = vector.load %arg0[%c1_47, %c0_48, %c10_49, %c0_50] : memref<2x1x56x128xbf16, #tpu.memory_space<vmem>>, vector<1x1x32x128xbf16>
    %30 = vector.shape_cast %29 : vector<1x1x32x128xbf16> to vector<32x128xbf16>
    %c1_51 = arith.constant 1 : index
    %c0_52 = arith.constant 0 : index
    %c16_53 = arith.constant 16 : index
    %c0_54 = arith.constant 0 : index
    %31 = vector.load %arg0[%c1_51, %c0_52, %c16_53, %c0_54] : memref<2x1x56x128xbf16, #tpu.memory_space<vmem>>, vector<1x1x32x128xbf16>
    %32 = vector.shape_cast %31 : vector<1x1x32x128xbf16> to vector<32x128xbf16>
    %c1_55 = arith.constant 1 : index
    %c0_56 = arith.constant 0 : index
    %c17_57 = arith.constant 17 : index
    %c0_58 = arith.constant 0 : index
    %33 = vector.load %arg0[%c1_55, %c0_56, %c17_57, %c0_58] : memref<2x1x56x128xbf16, #tpu.memory_space<vmem>>, vector<1x1x32x128xbf16>
    %34 = vector.shape_cast %33 : vector<1x1x32x128xbf16> to vector<32x128xbf16>
    %c1_59 = arith.constant 1 : index
    %c0_60 = arith.constant 0 : index
    %c18_61 = arith.constant 18 : index
    %c0_62 = arith.constant 0 : index
    %35 = vector.load %arg0[%c1_59, %c0_60, %c18_61, %c0_62] : memref<2x1x56x128xbf16, #tpu.memory_space<vmem>>, vector<1x1x32x128xbf16>
    %36 = vector.shape_cast %35 : vector<1x1x32x128xbf16> to vector<32x128xbf16>
    %37 = tpu.concatenate %20, %22, %24, %26, %28, %30, %32, %34, %36 in 1 : vector<32x128xbf16>, vector<32x128xbf16>, vector<32x128xbf16>, vector<32x128xbf16>, vector<32x128xbf16>, vector<32x128xbf16>, vector<32x128xbf16>, vector<32x128xbf16>, vector<32x128xbf16> -> vector<32x1152xbf16>
    %38 = tpu.concatenate %18, %37 in 0 : vector<32x1152xbf16>, vector<32x1152xbf16> -> vector<64x1152xbf16>
    %c0_63 = arith.constant 0 : index
    %c0_64 = arith.constant 0 : index
    %39 = vector.load %arg1[%c0_63, %c0_64] : memref<1152x128xbf16, #tpu.memory_space<vmem>>, vector<1152x128xbf16>
    %cst = arith.constant dense<0.000000e+00> : vector<64x128xf32>
    %40 = tpu.matmul %38, %39, %cst {dimension_numbers = #tpu.dot_dimension_numbers<[1], [0], [0], [1], [0, 0, 1, 1], [], []>} : vector<64x1152xbf16>, vector<1152x128xbf16>, vector<64x128xf32> -> vector<64x128xf32>
    %c0_65 = arith.constant 0 : index
    %c0_66 = arith.constant 0 : index
    %41 = vector.load %arg2[%c0_65, %c0_66] : memref<1x128xf32, #tpu.memory_space<vmem>>, vector<1x128xf32>
    %42 = vector.broadcast %41 : vector<1x128xf32> to vector<64x128xf32>
    %43 = arith.mulf %40, %42 : vector<64x128xf32>
    %c0_67 = arith.constant 0 : index
    %c0_68 = arith.constant 0 : index
    %44 = vector.load %arg3[%c0_67, %c0_68] : memref<1x128xf32, #tpu.memory_space<vmem>>, vector<1x128xf32>
    %45 = vector.broadcast %44 : vector<1x128xf32> to vector<64x128xf32>
    %46 = arith.addf %43, %45 : vector<64x128xf32>
    %c0_69 = arith.constant 0 : index
    %c0_70 = arith.constant 0 : index
    %47 = vector.load %arg4[%c0_69, %c0_70] : memref<1x1xf32, #tpu.memory_space<vmem>>, vector<1x1xf32>
    %cst_71 = arith.constant 0.000000e+00 : f32
    %48 = vector.broadcast %cst_71 : f32 to vector<64x128xf32>
    %49 = arith.cmpf oge, %46, %48 : vector<64x128xf32>
    %50 = vector.broadcast %47 : vector<1x1xf32> to vector<64x128xf32>
    %51 = arith.mulf %50, %46 : vector<64x128xf32>
    %52 = arith.select %49, %46, %51 : vector<64x128xi1>, vector<64x128xf32>
    %53 = arith.truncf %52 : vector<64x128xf32> to vector<64x128xbf16>
    %c0_72 = arith.constant 0 : index
    %c0_73 = arith.constant 0 : index
    %54 = vector.load %arg5[%c0_72, %c0_73] : memref<128x128xbf16, #tpu.memory_space<vmem>>, vector<128x128xbf16>
    %cst_74 = arith.constant dense<0.000000e+00> : vector<64x128xf32>
    %55 = tpu.matmul %53, %54, %cst_74 {dimension_numbers = #tpu.dot_dimension_numbers<[1], [0], [0], [1], [0, 0, 1, 1], [], []>} : vector<64x128xbf16>, vector<128x128xbf16>, vector<64x128xf32> -> vector<64x128xf32>
    %c0_75 = arith.constant 0 : index
    %c0_76 = arith.constant 0 : index
    %56 = vector.load %arg6[%c0_75, %c0_76] : memref<1x128xf32, #tpu.memory_space<vmem>>, vector<1x128xf32>
    %57 = vector.broadcast %56 : vector<1x128xf32> to vector<64x128xf32>
    %58 = arith.mulf %55, %57 : vector<64x128xf32>
    %c0_77 = arith.constant 0 : index
    %c0_78 = arith.constant 0 : index
    %59 = vector.load %arg7[%c0_77, %c0_78] : memref<1x128xf32, #tpu.memory_space<vmem>>, vector<1x128xf32>
    %60 = vector.broadcast %59 : vector<1x128xf32> to vector<64x128xf32>
    %61 = arith.addf %58, %60 : vector<64x128xf32>
    %c0_79 = arith.constant 0 : index
    %c0_80 = arith.constant 0 : index
    %62 = vector.load %arg8[%c0_79, %c0_80] : memref<64x128xbf16, #tpu.memory_space<vmem>>, vector<64x128xbf16>
    %63 = arith.extf %62 : vector<64x128xbf16> to vector<64x128xf32>
    %64 = arith.addf %61, %63 : vector<64x128xf32>
    %c0_81 = arith.constant 0 : index
    %c0_82 = arith.constant 0 : index
    %65 = vector.load %arg9[%c0_81, %c0_82] : memref<1x1xf32, #tpu.memory_space<vmem>>, vector<1x1xf32>
    %cst_83 = arith.constant 0.000000e+00 : f32
    %66 = vector.broadcast %cst_83 : f32 to vector<64x128xf32>
    %67 = arith.cmpf oge, %64, %66 : vector<64x128xf32>
    %68 = vector.broadcast %65 : vector<1x1xf32> to vector<64x128xf32>
    %69 = arith.mulf %68, %64 : vector<64x128xf32>
    %70 = arith.select %67, %64, %69 : vector<64x128xi1>, vector<64x128xf32>
    %71 = arith.truncf %70 : vector<64x128xf32> to vector<64x128xbf16>
    %c0_84 = arith.constant 0 : index
    %c0_85 = arith.constant 0 : index
    %72 = vector.load %arg10[%c0_84, %c0_85] : memref<64x128xbf16, #tpu.memory_space<vmem>>, vector<64x128xbf16>
    tpu.vector_store %arg10[%c0_84, %c0_85], %71 {strides = array<i32>} : memref<64x128xbf16, #tpu.memory_space<vmem>>, vector<64x128xbf16>,
    return
  }
}

module attributes {stable_mosaic.version = 11 : i64} {
  func.func @_head_kernel(%arg0: memref<2x16x128xbf16, #tpu.memory_space<vmem>>, %arg1: memref<128x16xf32, #tpu.memory_space<vmem>>, %arg2: memref<1x16xf32, #tpu.memory_space<vmem>>, %arg3: memref<2x128xf32, #tpu.memory_space<vmem>>, %arg4: memref<2x16xf32, #tpu.memory_space<vmem>>) attributes {dimension_semantics = [], scalar_prefetch = 0 : i64, scratch_operands = 0 : i64, tpu.core_type = #tpu.core_type<tc>} {
    %c0 = arith.constant 0 : index
    %c0_0 = arith.constant 0 : index
    %c0_1 = arith.constant 0 : index
    %0 = vector.load %arg0[%c0, %c0_0, %c0_1] : memref<2x16x128xbf16, #tpu.memory_space<vmem>>, vector<2x16x128xbf16>
    %1 = arith.extf %0 : vector<2x16x128xbf16> to vector<2x16x128xf32>
    %cst = arith.constant dense<0.000000e+00> : vector<2x128xf32>
    %2 = vector.multi_reduction <add>, %1, %cst [1] : vector<2x16x128xf32> to vector<2x128xf32>
    %cst_2 = arith.constant 1.600000e+01 : f32
    %3 = vector.broadcast %cst_2 : f32 to vector<2x128xf32>
    %4 = arith.divf %2, %3 : vector<2x128xf32>
    %c0_3 = arith.constant 0 : index
    %c0_4 = arith.constant 0 : index
    %5 = vector.load %arg3[%c0_3, %c0_4] : memref<2x128xf32, #tpu.memory_space<vmem>>, vector<2x128xf32>
    tpu.vector_store %arg3[%c0_3, %c0_4], %4 {strides = array<i32>} : memref<2x128xf32, #tpu.memory_space<vmem>>, vector<2x128xf32>,
    %c0_5 = arith.constant 0 : index
    %c0_6 = arith.constant 0 : index
    %6 = vector.load %arg1[%c0_5, %c0_6] : memref<128x16xf32, #tpu.memory_space<vmem>>, vector<128x16xf32>
    %cst_7 = arith.constant dense<0.000000e+00> : vector<2x16xf32>
    %7 = tpu.matmul %4, %6, %cst_7 {dimension_numbers = #tpu.dot_dimension_numbers<[1], [0], [0], [1], [0, 0, 1, 1], [], []>} : vector<2x128xf32>, vector<128x16xf32>, vector<2x16xf32> -> vector<2x16xf32>
    %c0_8 = arith.constant 0 : index
    %c0_9 = arith.constant 0 : index
    %8 = vector.load %arg2[%c0_8, %c0_9] : memref<1x16xf32, #tpu.memory_space<vmem>>, vector<1x16xf32>
    %9 = vector.broadcast %8 : vector<1x16xf32> to vector<2x16xf32>
    %10 = arith.addf %7, %9 : vector<2x16xf32>
    %c0_10 = arith.constant 0 : index
    %c0_11 = arith.constant 0 : index
    %11 = vector.load %arg4[%c0_10, %c0_11] : memref<2x16xf32, #tpu.memory_space<vmem>>, vector<2x16xf32>
    tpu.vector_store %arg4[%c0_10, %c0_11], %10 {strides = array<i32>} : memref<2x16xf32, #tpu.memory_space<vmem>>, vector<2x16xf32>,
    return
  }
}

</mosaic_0001>

<bundles_post_ra>
// kernel: _lambda_.9
= control target key start
LH: loop header
LB: loop body
LE: loop exit
PB: predicated region body
PF: predicated region fallthrough
CT: control target
= control target key end

     0   :  { %v1873_v1 = vmov 0   ;;  %s2451_s1 = inlined_call_operand.vmem [shape: bf16[128,128], index: 1, kind: input, shape index: {}]   ;;  %s2452_s4 = inlined_call_operand.<no memory space> [shape: f32[1,1], index: 4, kind: input, shape index: {}]   ;;  %s2453_s0 = inlined_call_operand.vmem [shape: bf16[2,1,272,128], index: 0, kind: input, shape index: {}]   ;;  %s2454_s2 = inlined_call_operand.vmem [shape: f32[1,128], index: 2, kind: input, shape index: {}]   ;;  %s2455_s3 = inlined_call_operand.vmem [shape: f32[1,128], index: 3, kind: input, shape index: {}]   ;;  %s2456_s5 = inlined_call_operand.vmem [shape: bf16[512,128], index: 5, kind: output, shape index: {}]  }
   0x1   :  { %v1833_v0 = vld [vmem:[%s2451_s1] sm:$0xff]   ;;  %1832 = vset.pattern.permute.xlu0 %v1873_v1  ;;  %v10_v2 = vstv %s2452_s4  ;;  %v1834_v3 = vld [vmem:[%s2451_s1 + $0x8] sm:$0xff]   ;;  %v1835_v4 = vld [vmem:[%s2451_s1 + $0x10] sm:$0xff]  }
   0x2   :  { %11 = vst [vmem:[#allocation2] sm:$0x1] %v10_v2  ;;  %1735 = vmatprep.subr.bf16.mxu0 %v1833_v0  ;;  %1815 = vmatprep.subr.bf16.mxu1 %v1833_v0  ;;  %v1836_v5 = vld [vmem:[%s2451_s1 + $0x18] sm:$0xff]   ;;  %v1841_v6 = vld [vmem:[%s2453_s0] sm:$0xff]   ;;  %v1842_v7 = vld [vmem:[%s2453_s0 + $0x88] sm:$0xff]  }
   0x3   :  { %1736 = vmatpush3.bf16.msra.mxu0 %v1833_v0  ;;  %1823 = vmatpush3.bf16.msra.mxu1 %v1833_v0  ;;  %v1837_v8 = vld [vmem:[%s2451_s1 + $0x20] sm:$0xff]   ;;  %v1838_v9 = vld [vmem:[%s2451_s1 + $0x28] sm:$0xff]   ;;  %v1839_v10 = vld [vmem:[%s2451_s1 + $0x30] sm:$0xff]  }
   0x4   :  { %1737 = vmatprep.subr.bf16.mxu0 %v1834_v3  ;;  %1816 = vmatprep.subr.bf16.mxu1 %v1834_v3  ;;  %v1840_v11 = vld [vmem:[%s2451_s1 + $0x38] sm:$0xff]   ;;  %v1843_v12 = vld [vmem:[%s2453_s0 + $0x8] sm:$0xff]   ;;  %v1844_v13 = vld [vmem:[%s2453_s0 + $0x90] sm:$0xff]  }
   0x5   :  { %1751 = vmatprep.mubr.bf16.mxu0 %v1841_v6  ;;  %1783 = vmatprep.mubr.bf16.mxu1 %v1842_v7  ;;  %v1845_v14 = vld [vmem:[%s2453_s0 + $0x10] sm:$0xff]   ;;  %v1846_v15 = vld [vmem:[%s2453_s0 + $0x98] sm:$0xff]   ;;  %v1848_v17 = vld [vmem:[%s2453_s0 + $0xa0] sm:$0xff]  }
   0x6   :  { %v1847_v16 = vld [vmem:[%s2453_s0 + $0x18] sm:$0xff]   ;;  %v1849_v18 = vld [vmem:[%s2453_s0 + $0x20] sm:$0xff]   ;;  %v1850_v19 = vld [vmem:[%s2453_s0 + $0xa8] sm:$0xff]  }
   0x7   :  { %1738 = vmatpush3.bf16.msra.mxu0 %v1834_v3  ;;  %1824 = vmatpush3.bf16.msra.mxu1 %v1834_v3  ;;  %v1851_v21 = vld [vmem:[%s2453_s0 + $0x28] sm:$0xff]   ;;  %v1852_v22 = vld [vmem:[%s2453_s0 + $0xb0] sm:$0xff]   ;;  %v1854_v24 = vld [vmem:[%s2453_s0 + $0xb8] sm:$0xff]  }
   0x8   :  { %1739 = vmatprep.subr.bf16.mxu0 %v1835_v4  ;;  %1817 = vmatprep.subr.bf16.mxu1 %v1835_v4  ;;  %v1853_v23 = vld [vmem:[%s2453_s0 + $0x30] sm:$0xff]   ;;  %v1855_v25 = vld [vmem:[%s2453_s0 + $0x38] sm:$0xff]   ;;  %v1856_v26 = vld [vmem:[%s2453_s0 + $0xc0] sm:$0xff]  }
   0x9   :  { %v1375_v20 = vld [vmem:[#allocation2] ss:$0 sm:$0xff]  ;;  %v1858_v28 = vld [vmem:[%s2453_s0 + $0xc8] sm:$0xff]   ;;  %v1860_v30 = vld [vmem:[%s2453_s0 + $0xd0] sm:$0xff]  }
   0xa   :  { %846 = vperm.xlu0 %1832, %v1375_v20   ;;  %v1857_v27 = vld [vmem:[%s2453_s0 + $0x40] sm:$0xff]   ;;  %v1859_v29 = vld [vmem:[%s2453_s0 + $0x48] sm:$0xff]   ;;  %v1861_v31 = vld [vmem:[%s2453_s0 + $0x50] sm:$0xff]  }
   0xb   :  { %1740 = vmatpush3.bf16.msra.mxu0 %v1835_v4  ;;  %1825 = vmatpush3.bf16.msra.mxu1 %v1835_v4  ;;  %v1862_v32 = vld [vmem:[%s2453_s0 + $0xd8] sm:$0xff]   ;;  %v1864_v34 = vld [vmem:[%s2453_s0 + $0xe0] sm:$0xff]   ;;  %v1866_v36 = vld [vmem:[%s2453_s0 + $0xe8] sm:$0xff]  }
   0xc   :  { %1741 = vmatprep.subr.bf16.mxu0 %v1836_v5  ;;  %1818 = vmatprep.subr.bf16.mxu1 %v1836_v5  ;;  %v1863_v33 = vld [vmem:[%s2453_s0 + $0x58] sm:$0xff]   ;;  %v1865_v35 = vld [vmem:[%s2453_s0 + $0x60] sm:$0xff]   ;;  %v1867_v37 = vld [vmem:[%s2453_s0 + $0x68] sm:$0xff]  }
   0xd   :  { %v1868_v38 = vld [vmem:[%s2453_s0 + $0xf0] sm:$0xff]   ;;  %v1870_v40 = vld [vmem:[%s2453_s0 + $0xf8] sm:$0xff]   ;;  %v1872_v42 = vld [vmem:[%s2453_s0 + $0x100] sm:$0xff]  }
   0xe   :  { %v1869_v39 = vld [vmem:[%s2453_s0 + $0x70] sm:$0xff]   ;;  %v1871_v41 = vld [vmem:[%s2453_s0 + $0x78] sm:$0xff]   ;;  %v2030_v43 = vld [vmem:[%s2454_s2] ss:$0 sm:$0xff] }
   0xf   :  { %1742 = vmatpush3.bf16.msra.mxu0 %v1836_v5  ;;  %1826 = vmatpush3.bf16.msra.mxu1 %v1836_v5  ;;  %v2035_v45 = vld [vmem:[%s2455_s3] ss:$0 sm:$0xff] }
  0x10   :  { %1743 = vmatprep.subr.bf16.mxu0 %v1837_v8  ;;  %1819 = vmatprep.subr.bf16.mxu1 %v1837_v8 }
  0x13   :  { %1744 = vmatpush3.bf16.msra.mxu0 %v1837_v8  ;;  %1827 = vmatpush3.bf16.msra.mxu1 %v1837_v8 }
  0x14   :  { %1745 = vmatprep.subr.bf16.mxu0 %v1838_v9  ;;  %1820 = vmatprep.subr.bf16.mxu1 %v1838_v9 }
  0x17   :  { %1746 = vmatpush3.bf16.msra.mxu0 %v1838_v9  ;;  %1828 = vmatpush3.bf16.msra.mxu1 %v1838_v9 }
  0x18   :  { %1747 = vmatprep.subr.bf16.mxu0 %v1839_v10  ;;  %1821 = vmatprep.subr.bf16.mxu1 %v1839_v10 }
  0x1b   :  { %1748 = vmatpush3.bf16.msra.mxu0 %v1839_v10  ;;  %1829 = vmatpush3.bf16.msra.mxu1 %v1839_v10 }
  0x1c   :  { %1749 = vmatprep.subr.bf16.mxu0 %v1840_v11  ;;  %1822 = vmatprep.subr.bf16.mxu1 %v1840_v11 }
  0x1f   :  { %1750 = vmatpush3.bf16.msra.mxu0 %v1840_v11  ;;  %1830 = vmatpush3.bf16.msra.mxu1 %v1840_v11 }
  0x22   :  { %1752 = vmatmul.mubr.bf16.vlgmr.msra.gmra.mrb[0].mxu0 %v1843_v12  ;;  %1784 = vmatmul.mubr.bf16.vlgmr.msra.gmra.mrb[0].mxu1 %v1844_v13 }
  0x23   :  { %1755 = vmatprep.mubr.bf16.mxu0 %v1845_v14  ;;  %1787 = vmatprep.mubr.bf16.mxu1 %v1846_v15 }
  0x2a   :  { %1756 = vmatmul.mubr.bf16.gmra.mrb[4].mxu0 %v1847_v16  ;;  %1788 = vmatmul.mubr.bf16.gmra.mrb[4].mxu1 %v1848_v17 }
  0x2b   :  { %1759 = vmatprep.mubr.bf16.mxu0 %v1849_v18  ;;  %1791 = vmatprep.mubr.bf16.mxu1 %v1850_v19 }
  0x32   :  { %1760 = vmatmul.mubr.bf16.gmra.mrb[8].mxu0 %v1851_v21  ;;  %1792 = vmatmul.mubr.bf16.gmra.mrb[8].mxu1 %v1852_v22 }
  0x33   :  { %1763 = vmatprep.mubr.bf16.mxu0 %v1853_v23  ;;  %1795 = vmatprep.mubr.bf16.mxu1 %v1854_v24 }
  0x3a   :  { %1764 = vmatmul.mubr.bf16.gmra.mrb[12].mxu0 %v1855_v25  ;;  %1796 = vmatmul.mubr.bf16.gmra.mrb[12].mxu1 %v1856_v26 }
  0x3b   :  { %1767 = vmatprep.mubr.bf16.mxu0 %v1857_v27  ;;  %1799 = vmatprep.mubr.bf16.mxu1 %v1858_v28 }
  0x42   :  { %1768 = vmatmul.mubr.bf16.gmra.mrb[16].mxu0 %v1859_v29  ;;  %1800 = vmatmul.mubr.bf16.gmra.mrb[16].mxu1 %v1860_v30 }
  0x43   :  { %1771 = vmatprep.mubr.bf16.mxu0 %v1861_v31  ;;  %1803 = vmatprep.mubr.bf16.mxu1 %v1862_v32 }
  0x4a   :  { %1772 = vmatmul.mubr.bf16.gmra.mrb[20].mxu0 %v1863_v33  ;;  %1804 = vmatmul.mubr.bf16.gmra.mrb[20].mxu1 %v1864_v34 }
  0x4b   :  { %1775 = vmatprep.mubr.bf16.mxu0 %v1865_v35  ;;  %1807 = vmatprep.mubr.bf16.mxu1 %v1866_v36 }
  0x52   :  { %1776 = vmatmul.mubr.bf16.gmra.mrb[24].mxu0 %v1867_v37  ;;  %1808 = vmatmul.mubr.bf16.gmra.mrb[24].mxu1 %v1868_v38 }
  0x53   :  { %1779 = vmatprep.mubr.bf16.mxu0 %v1869_v39  ;;  %1811 = vmatprep.mubr.bf16.mxu1 %v1870_v40 }
  0x5a   :  { %1780 = vmatmul.mubr.bf16.gmra.mrb[28].mxu0 %v1871_v41  ;;  %1812 = vmatmul.mubr.bf16.gmra.mrb[28].mxu1 %v1872_v42 }
  0x89   :  { %v2051_v1 = vpop.permute.xlu0 %846 }
  0xf5   :  { %v1753_v44 = vpop.f32.mrb[0].mxu0  ;;  %v1785_v46 = vpop.f32.mrb[0].mxu1 }
  0xf6   :  { %v642_v47 = vmul.f32 %v1753_v44, %v2030_v43  ;;  %v674_v48 = vmul.f32 %v1785_v46, %v2030_v43  ;;  %v378_v49 = vpop.f32.mrb[1].mxu0  ;;  %v506_v50 = vpop.f32.mrb[1].mxu1 }
  0xf7   :  { %v640_v51 = vmul.f32 %v2030_v43, %v378_v49  ;;  %v672_v52 = vmul.f32 %v2030_v43, %v506_v50  ;;  %v1754_v53 = vpop.f32.mrb[2].mxu0  ;;  %v1786_v54 = vpop.f32.mrb[2].mxu1 }
  0xf8   :  { %v713_v55 = vadd.f32 %v2035_v45, %v642_v47  ;;  %v2043_v56 = vadd.f32 %v2035_v45, %v674_v48  ;;  %v643_v57 = vmul.f32 %v1754_v53, %v2030_v43  ;;  %v675_v58 = vmul.f32 %v1786_v54, %v2030_v43  ;;  %v381_v59 = vpop.f32.mrb[3].mxu0  ;;  %v509_v60 = vpop.f32.mrb[3].mxu1 }
  0xf9   :  { %v711_v61 = vadd.f32 %v2035_v45, %v640_v51  ;;  %v743_v62 = vadd.f32 %v2035_v45, %v672_v52  ;;  %v641_v63 = vmul.f32 %v2030_v43, %v381_v59  ;;  %v673_v0 = vmul.f32 %v2030_v43, %v509_v60 }
  0xfa   :  { %vm778_vm0 = vcmp.ge.f32.partialorder %v713_v55, 0.0  ;;  %v714_v2 = vadd.f32 %v2035_v45, %v643_v57  ;;  %v746_v3 = vadd.f32 %v2035_v45, %v675_v58  ;;  %vm810_vm1 = vcmp.ge.f32.partialorder %v2043_v56, 0.0 }
  0xfb   :  { %vm776_vm2 = vcmp.ge.f32.partialorder %v711_v61, 0.0  ;;  %vm808_vm3 = vcmp.ge.f32.partialorder %v743_v62, 0.0  ;;  %v712_v4 = vadd.f32 %v2035_v45, %v641_v63  ;;  %v744_v5 = vadd.f32 %v2035_v45, %v673_v0 }
  0xfc   :  { %vm779_vm4 = vcmp.ge.f32.partialorder %v714_v2, 0.0  ;;  %vm811_vm5 = vcmp.ge.f32.partialorder %v746_v3, 0.0  ;;  %v849_v6 = vmul.f32 %v2051_v1, %v711_v61  ;;  %v851_v7 = vmul.f32 %v2051_v1, %v713_v55 }
  0xfd   :  { %vm777_vm6 = vcmp.ge.f32.partialorder %v712_v4, 0.0  ;;  %vm809_vm7 = vcmp.ge.f32.partialorder %v744_v5, 0.0  ;;  %v1757_v8 = vpop.f32.mrb[4].mxu0  ;;  %v1789_v9 = vpop.f32.mrb[4].mxu1  ;;  %v850_v10 = vmul.f32 %v2051_v1, %v712_v4  ;;  %v852_v11 = vmul.f32 %v2051_v1, %v714_v2 }
  0xfe   :  { %v646_v12 = vmul.f32 %v1757_v8, %v2030_v43  ;;  %v678_v13 = vmul.f32 %v1789_v9, %v2030_v43  ;;  %v394_v14 = vpop.f32.mrb[5].mxu0  ;;  %v522_v15 = vpop.f32.mrb[5].mxu1  ;;  %v881_v16 = vmul.f32 %v2051_v1, %v743_v62  ;;  %v882_v17 = vmul.f32 %v2051_v1, %v744_v5 }
  0xff   :  { %v644_v18 = vmul.f32 %v2030_v43, %v394_v14  ;;  %v676_v19 = vmul.f32 %v2030_v43, %v522_v15  ;;  %v1758_v20 = vpop.f32.mrb[6].mxu0  ;;  %v883_v21 = vmul.f32 %v2051_v1, %v2043_v56  ;;  %v884_v22 = vmul.f32 %v2051_v1, %v746_v3  ;;  %v1790_v23 = vpop.f32.mrb[6].mxu1 }
 0x100   :  { %v717_v24 = vadd.f32 %v2035_v45, %v646_v12  ;;  %v749_v25 = vadd.f32 %v2035_v45, %v678_v13  ;;  %v647_v26 = vmul.f32 %v1758_v20, %v2030_v43  ;;  %v913_v27 = vsel %vm776_vm2, %v711_v61, %v849_v6  ;;  %v397_v28 = vpop.f32.mrb[7].mxu0  ;;  %v525_v29 = vpop.f32.mrb[7].mxu1 }
 0x101   :  { %v715_v30 = vadd.f32 %v2035_v45, %v644_v18  ;;  %v747_v31 = vadd.f32 %v2035_v45, %v676_v19  ;;  %v914_v32 = vsel %vm777_vm6, %v712_v4, %v850_v10  ;;  %v915_v33 = vsel %vm778_vm0, %v713_v55, %v851_v7 }
 0x102   :  { %vm782_vm8 = vcmp.ge.f32.partialorder %v717_v24, 0.0  ;;  %v855_v34 = vmul.f32 %v2051_v1, %v717_v24  ;;  %vm814_vm9 = vcmp.ge.f32.partialorder %v749_v25, 0.0  ;;  %v887_v35 = vmul.f32 %v2051_v1, %v749_v25 }
 0x103   :  { %vm780_vm10 = vcmp.ge.f32.partialorder %v715_v30, 0.0  ;;  %v853_v36 = vmul.f32 %v2051_v1, %v715_v30  ;;  %vm812_vm11 = vcmp.ge.f32.partialorder %v747_v31, 0.0  ;;  %v885_v37 = vmul.f32 %v2051_v1, %v747_v31 }
 0x104   :  { %v919_v38 = vsel %vm782_vm8, %v717_v24, %v855_v34  ;;  %v2083_v39 = vsel %vm814_vm9, %v749_v25, %v887_v35  ;;  %v718_v40 = vadd.f32 %v2035_v45, %v647_v26  ;;  %v916_v41 = vsel %vm779_vm4, %v714_v2, %v852_v11 }
 0x105   :  { %v2087_v42 = vsel %vm780_vm10, %v715_v30, %v853_v36  ;;  %v2089_v44 = vsel %vm812_vm11, %v747_v31, %v885_v37  ;;  %v945_v46 = vsel %vm808_vm3, %v743_v62, %v881_v16  ;;  %v946_v47 = vsel %vm809_vm7, %v744_v5, %v882_v17  ;;  %v1761_v48 = vpop.f32.mrb[8].mxu0  ;;  %v1793_v49 = vpop.f32.mrb[8].mxu1 }
 0x106   :  { %vm783_vm12 = vcmp.ge.f32.partialorder %v718_v40, 0.0  ;;  %v856_v50 = vmul.f32 %v2051_v1, %v718_v40  ;;  %v947_v51 = vsel %vm810_vm1, %v2043_v56, %v883_v21  ;;  %v948_v52 = vsel %vm811_vm5, %v746_v3, %v884_v22  ;;  %v410_v53 = vpop.f32.mrb[9].mxu0  ;;  %v538_v54 = vpop.f32.mrb[9].mxu1 }
 0x107   :  { %v1507_v55 = vpack.c.bf16 %v914_v32, %v913_v27  ;;  %v1512_v57 = vpack.c.bf16 %v916_v41, %v915_v33  ;;  %v1587_v58 = vpack.c.bf16 %v946_v47, %v945_v46  ;;  %v1592_v59 = vpack.c.bf16 %v948_v52, %v947_v51  ;;  %v1762_v60 = vpop.f32.mrb[10].mxu0  ;;  %v1794_v61 = vpop.f32.mrb[10].mxu1 }
 0x108   :  { %v920_v62 = vsel %vm783_vm12, %v718_v40, %v856_v50  ;;  %v679_v63 = vmul.f32 %v1790_v23, %v2030_v43  ;;  %v645_v0 = vmul.f32 %v2030_v43, %v397_v28  ;;  %v677_v2 = vmul.f32 %v2030_v43, %v525_v29  ;;  %v413_v4 = vpop.f32.mrb[11].mxu0  ;;  %v541_v5 = vpop.f32.mrb[11].mxu1 }
 0x109   :  { %1508 = vst [vmem:[%s2456_s5] sm:$0xff] %v1507_v55   ;;  %1664 = vst [vmem:[%s2456_s5 + $0x8] sm:$0xff] %v1512_v57   ;;  %v1522_v56 = vpack.c.bf16 %v920_v62, %v919_v38  ;;  %v650_v3 = vmul.f32 %v1761_v48, %v2030_v43  ;;  %v682_v6 = vmul.f32 %v1793_v49, %v2030_v43 }
 0x10a   :  { %1679 = vst [vmem:[%s2456_s5 + $0x80] sm:$0xff] %v1587_v58   ;;  %1680 = vst [vmem:[%s2456_s5 + $0x88] sm:$0xff] %v1592_v59   ;;  %v648_v7 = vmul.f32 %v2030_v43, %v410_v53  ;;  %v750_v8 = vadd.f32 %v2035_v45, %v679_v63  ;;  %v716_v9 = vadd.f32 %v2035_v45, %v645_v0 }
 0x10b   :  { %v748_v10 = vadd.f32 %v2035_v45, %v677_v2  ;;  %v680_v11 = vmul.f32 %v2030_v43, %v538_v54  ;;  %1666 = vst [vmem:[%s2456_s5 + $0x18] sm:$0xff] %v1522_v56   ;;  %v721_v12 = vadd.f32 %v2035_v45, %v650_v3  ;;  %v753_v13 = vadd.f32 %v2035_v45, %v682_v6 }
 0x10c   :  { %v719_v14 = vadd.f32 %v2035_v45, %v648_v7  ;;  %v651_v15 = vmul.f32 %v1762_v60, %v2030_v43  ;;  %vm815_vm13 = vcmp.ge.f32.partialorder %v750_v8, 0.0  ;;  %v888_v16 = vmul.f32 %v2051_v1, %v750_v8 }
 0x10d   :  { %vm781_vm14 = vcmp.ge.f32.partialorder %v716_v9, 0.0  ;;  %v854_v17 = vmul.f32 %v2051_v1, %v716_v9  ;;  %vm813_vm15 = vcmp.ge.f32.partialorder %v748_v10, 0.0  ;;  %v886_v18 = vmul.f32 %v2051_v1, %v748_v10  ;;  %v1765_v20 = vpop.f32.mrb[12].mxu0  ;;  %v1797_v21 = vpop.f32.mrb[12].mxu1 }
 0x10e   :  { %vm786_vm0 = vcmp.ge.f32.partialorder %v721_v12, 0.0  ;;  %v859_v19 = vmul.f32 %v2051_v1, %v721_v12  ;;  %v952_v22 = vsel %vm815_vm13, %v750_v8, %v888_v16  ;;  %vm818_vm1 = vcmp.ge.f32.partialorder %v753_v13, 0.0  ;;  %v426_v25 = vpop.f32.mrb[13].mxu0  ;;  %v2132_v26 = vpop.f32.mrb[13].mxu1 }
 0x10f   :  { %v918_v23 = vsel %vm781_vm14, %v716_v9, %v854_v17  ;;  %v891_v24 = vmul.f32 %v2051_v1, %v753_v13  ;;  %v1602_v27 = vpack.c.bf16 %v952_v22, %v2083_v39  ;;  %v950_v29 = vsel %vm813_vm15, %v748_v10, %v886_v18  ;;  %v2136_v31 = vpop.f32.mrb[14].mxu0  ;;  %v2138_v32 = vpop.f32.mrb[14].mxu1 }
 0x110   :  { %v1517_v28 = vpack.c.bf16 %v918_v23, %v2087_v42  ;;  %v923_v30 = vsel %vm786_vm0, %v721_v12, %v859_v19  ;;  %v1597_v33 = vpack.c.bf16 %v950_v29, %v2089_v44  ;;  %vm784_vm2 = vcmp.ge.f32.partialorder %v719_v14, 0.0  ;;  %v429_v36 = vpop.f32.mrb[15].mxu0  ;;  %v557_v37 = vpop.f32.mrb[15].mxu1 }
 0x111   :  { %v955_v34 = vsel %vm818_vm1, %v753_v13, %v891_v24  ;;  %v857_v35 = vmul.f32 %v2051_v1, %v719_v14  ;;  %1682 = vst [vmem:[%s2456_s5 + $0x98] sm:$0xff] %v1602_v27   ;;  %v751_v38 = vadd.f32 %v2035_v45, %v680_v11  ;;  %v722_v39 = vadd.f32 %v2035_v45, %v651_v15 }
 0x112   :  { %1665 = vst [vmem:[%s2456_s5 + $0x10] sm:$0xff] %v1517_v28   ;;  %v683_v40 = vmul.f32 %v1794_v61, %v2030_v43  ;;  %v649_v41 = vmul.f32 %v2030_v43, %v413_v4  ;;  %1681 = vst [vmem:[%s2456_s5 + $0x90] sm:$0xff] %v1597_v33   ;;  %v681_v44 = vmul.f32 %v2030_v43, %v541_v5 }
 0x113   :  { %v921_v42 = vsel %vm784_vm2, %v719_v14, %v857_v35  ;;  %v654_v46 = vmul.f32 %v1765_v20, %v2030_v43  ;;  %v686_v47 = vmul.f32 %v1797_v21, %v2030_v43  ;;  %vm816_vm3 = vcmp.ge.f32.partialorder %v751_v38, 0.0 }
 0x114   :  { %v889_v48 = vmul.f32 %v2051_v1, %v751_v38  ;;  %vm787_vm4 = vcmp.ge.f32.partialorder %v722_v39, 0.0  ;;  %v860_v49 = vmul.f32 %v2051_v1, %v722_v39  ;;  %v754_v50 = vadd.f32 %v2035_v45, %v683_v40 }
 0x115   :  { %v720_v51 = vadd.f32 %v2035_v45, %v649_v41  ;;  %v752_v52 = vadd.f32 %v2035_v45, %v681_v44  ;;  %v725_v53 = vadd.f32 %v2035_v45, %v654_v46  ;;  %v757_v57 = vadd.f32 %v2035_v45, %v686_v47  ;;  %v1769_v59 = vpop.f32.mrb[16].mxu0  ;;  %v1801_v60 = vpop.f32.mrb[16].mxu1 }
 0x116   :  { %v953_v54 = vsel %vm816_vm3, %v751_v38, %v889_v48  ;;  %v924_v55 = vsel %vm787_vm4, %v722_v39, %v860_v49  ;;  %v652_v58 = vmul.f32 %v2030_v43, %v426_v25  ;;  %vm819_vm5 = vcmp.ge.f32.partialorder %v754_v50, 0.0  ;;  %v2167_v63 = vpop.f32.mrb[17].mxu0  ;;  %v2169_v0 = vpop.f32.mrb[17].mxu1 }
 0x117   :  { %v1532_v61 = vpack.c.bf16 %v924_v55, %v923_v30  ;;  %v892_v62 = vmul.f32 %v2051_v1, %v754_v50  ;;  %vm785_vm6 = vcmp.ge.f32.partialorder %v720_v51, 0.0  ;;  %v858_v2 = vmul.f32 %v2051_v1, %v720_v51  ;;  %v2173_v5 = vpop.f32.mrb[18].mxu0  ;;  %v2175_v56 = vpop.f32.mrb[18].mxu1 }
 0x118   :  { %vm817_vm7 = vcmp.ge.f32.partialorder %v752_v52, 0.0  ;;  %v890_v4 = vmul.f32 %v2051_v1, %v752_v52  ;;  %vm790_vm8 = vcmp.ge.f32.partialorder %v725_v53, 0.0  ;;  %v863_v6 = vmul.f32 %v2051_v1, %v725_v53  ;;  %v2182_v8 = vpop.f32.mrb[19].mxu0  ;;  %v2184_v9 = vpop.f32.mrb[19].mxu1 }
 0x119   :  { %1668 = vst [vmem:[%s2456_s5 + $0x28] sm:$0xff] %v1532_v61   ;;  %v956_v3 = vsel %vm819_vm5, %v754_v50, %v892_v62  ;;  %vm822_vm9 = vcmp.ge.f32.partialorder %v757_v57, 0.0  ;;  %v895_v7 = vmul.f32 %v2051_v1, %v757_v57  ;;  %v922_v11 = vsel %vm785_vm6, %v720_v51, %v858_v2 }
 0x11a   :  { %v1612_v10 = vpack.c.bf16 %v956_v3, %v955_v34  ;;  %v954_v12 = vsel %vm817_vm7, %v752_v52, %v890_v4  ;;  %v723_v13 = vadd.f32 %v2035_v45, %v652_v58  ;;  %v1527_v14 = vpack.c.bf16 %v922_v11, %v921_v42 }
 0x11b   :  { %v1607_v15 = vpack.c.bf16 %v954_v12, %v953_v54  ;;  %v927_v16 = vsel %vm790_vm8, %v725_v53, %v863_v6  ;;  %v959_v17 = vsel %vm822_vm9, %v757_v57, %v895_v7  ;;  %v684_v19 = vmul.f32 %v2030_v43, %v2132_v26 }
 0x11c   :  { %1684 = vst [vmem:[%s2456_s5 + $0xa8] sm:$0xff] %v1612_v10   ;;  %vm788_vm10 = vcmp.ge.f32.partialorder %v723_v13, 0.0  ;;  %v861_v18 = vmul.f32 %v2051_v1, %v723_v13  ;;  %v655_v20 = vmul.f32 %v2136_v31, %v2030_v43  ;;  %1667 = vst [vmem:[%s2456_s5 + $0x20] sm:$0xff] %v1527_v14   ;;  %v687_v21 = vmul.f32 %v2138_v32, %v2030_v43 }
 0x11d   :  { %1683 = vst [vmem:[%s2456_s5 + $0xa0] sm:$0xff] %v1607_v15   ;;  %v653_v22 = vmul.f32 %v2030_v43, %v429_v36  ;;  %v685_v23 = vmul.f32 %v2030_v43, %v557_v37  ;;  %v658_v24 = vmul.f32 %v1769_v59, %v2030_v43  ;;  %v755_v26 = vadd.f32 %v2035_v45, %v684_v19  ;;  %v2211_v29 = vpop.f32.mrb[20].mxu0  ;;  %v2213_v30 = vpop.f32.mrb[20].mxu1 }
 0x11e   :  { %v925_v25 = vsel %vm788_vm10, %v723_v13, %v861_v18  ;;  %v726_v27 = vadd.f32 %v2035_v45, %v655_v20  ;;  %v690_v28 = vmul.f32 %v1801_v60, %v2030_v43  ;;  %v758_v31 = vadd.f32 %v2035_v45, %v687_v21  ;;  %v2219_v35 = vpop.f32.mrb[21].mxu0  ;;  %v2221_v36 = vpop.f32.mrb[21].mxu1 }
 0x11f   :  { %v724_v32 = vadd.f32 %v2035_v45, %v653_v22  ;;  %v756_v33 = vadd.f32 %v2035_v45, %v685_v23  ;;  %v729_v34 = vadd.f32 %v2035_v45, %v658_v24  ;;  %vm820_vm11 = vcmp.ge.f32.partialorder %v755_v26, 0.0  ;;  %v2225_v39 = vpop.f32.mrb[22].mxu0  ;;  %v2227_v40 = vpop.f32.mrb[22].mxu1 }
 0x120   :  { %v893_v37 = vmul.f32 %v2051_v1, %v755_v26  ;;  %vm791_vm12 = vcmp.ge.f32.partialorder %v726_v27, 0.0  ;;  %v864_v38 = vmul.f32 %v2051_v1, %v726_v27  ;;  %vm823_vm13 = vcmp.ge.f32.partialorder %v758_v31, 0.0  ;;  %v2231_v44 = vpop.f32.mrb[23].mxu0  ;;  %v2233_v46 = vpop.f32.mrb[23].mxu1 }
 0x121   :  { %v896_v41 = vmul.f32 %v2051_v1, %v758_v31  ;;  %vm789_vm14 = vcmp.ge.f32.partialorder %v724_v32, 0.0  ;;  %v862_v42 = vmul.f32 %v2051_v1, %v724_v32  ;;  %vm821_vm15 = vcmp.ge.f32.partialorder %v756_v33, 0.0 }
 0x122   :  { %v957_v47 = vsel %vm820_vm11, %v755_v26, %v893_v37  ;;  %v928_v48 = vsel %vm791_vm12, %v726_v27, %v864_v38  ;;  %v894_v49 = vmul.f32 %v2051_v1, %v756_v33  ;;  %vm794_vm0 = vcmp.ge.f32.partialorder %v729_v34, 0.0 }
 0x123   :  { %v1542_v50 = vpack.c.bf16 %v928_v48, %v927_v16  ;;  %v960_v51 = vsel %vm823_vm13, %v758_v31, %v896_v41  ;;  %v926_v52 = vsel %vm789_vm14, %v724_v32, %v862_v42  ;;  %v867_v57 = vmul.f32 %v2051_v1, %v729_v34 }
 0x124   :  { %v1622_v53 = vpack.c.bf16 %v960_v51, %v959_v17  ;;  %v1537_v54 = vpack.c.bf16 %v926_v52, %v925_v25  ;;  %v958_v55 = vsel %vm821_vm15, %v756_v33, %v894_v49  ;;  %v761_v59 = vadd.f32 %v2035_v45, %v690_v28 }
 0x125   :  { %1670 = vst [vmem:[%s2456_s5 + $0x38] sm:$0xff] %v1542_v50   ;;  %v1617_v58 = vpack.c.bf16 %v958_v55, %v957_v47  ;;  %v656_v60 = vmul.f32 %v2030_v43, %v2167_v63  ;;  %v688_v61 = vmul.f32 %v2030_v43, %v2169_v0  ;;  %v931_v62 = vsel %vm794_vm0, %v729_v34, %v867_v57  ;;  %v2257_v3 = vpop.f32.mrb[24].mxu0  ;;  %v2259_v0 = vpop.f32.mrb[24].mxu1 }
 0x126   :  { %1686 = vst [vmem:[%s2456_s5 + $0xb8] sm:$0xff] %v1622_v53   ;;  %1669 = vst [vmem:[%s2456_s5 + $0x30] sm:$0xff] %v1537_v54   ;;  %v659_v2 = vmul.f32 %v2173_v5, %v2030_v43  ;;  %v691_v4 = vmul.f32 %v2175_v56, %v2030_v43  ;;  %v657_v63 = vmul.f32 %v2030_v43, %v2182_v8  ;;  %vm826_vm1 = vcmp.ge.f32.partialorder %v761_v59, 0.0  ;;  %v2267_v10 = vpop.f32.mrb[25].mxu0  ;;  %v2269_v56 = vpop.f32.mrb[25].mxu1 }
 0x127   :  { %1685 = vst [vmem:[%s2456_s5 + $0xb0] sm:$0xff] %v1617_v58   ;;  %v899_v6 = vmul.f32 %v2051_v1, %v761_v59  ;;  %v727_v7 = vadd.f32 %v2035_v45, %v656_v60  ;;  %v759_v5 = vadd.f32 %v2035_v45, %v688_v61  ;;  %v689_v13 = vmul.f32 %v2030_v43, %v2184_v9  ;;  %v2276_v14 = vpop.f32.mrb[26].mxu0  ;;  %v2278_v15 = vpop.f32.mrb[26].mxu1 }
 0x128   :  { %v730_v8 = vadd.f32 %v2035_v45, %v659_v2  ;;  %v762_v11 = vadd.f32 %v2035_v45, %v691_v4  ;;  %v728_v12 = vadd.f32 %v2035_v45, %v657_v63  ;;  %v2281_v18 = vpop.f32.mrb[27].mxu0  ;;  %v2283_v19 = vpop.f32.mrb[27].mxu1  ;;  %v662_v27 = vmul.f32 %v2211_v29, %v2030_v43 }
 0x129   :  { %v963_v16 = vsel %vm826_vm1, %v761_v59, %v899_v6  ;;  %vm792_vm2 = vcmp.ge.f32.partialorder %v727_v7, 0.0  ;;  %v865_v17 = vmul.f32 %v2051_v1, %v727_v7  ;;  %vm824_vm3 = vcmp.ge.f32.partialorder %v759_v5, 0.0 }
 0x12a   :  { %v897_v20 = vmul.f32 %v2051_v1, %v759_v5  ;;  %vm795_vm4 = vcmp.ge.f32.partialorder %v730_v8, 0.0  ;;  %v868_v21 = vmul.f32 %v2051_v1, %v730_v8  ;;  %vm827_vm5 = vcmp.ge.f32.partialorder %v762_v11, 0.0 }
 0x12b   :  { %v929_v9 = vsel %vm792_vm2, %v727_v7, %v865_v17  ;;  %v900_v22 = vmul.f32 %v2051_v1, %v762_v11  ;;  %vm793_vm6 = vcmp.ge.f32.partialorder %v728_v12, 0.0  ;;  %v866_v23 = vmul.f32 %v2051_v1, %v728_v12 }
 0x12c   :  { %v961_v24 = vsel %vm824_vm3, %v759_v5, %v897_v20  ;;  %v932_v25 = vsel %vm795_vm4, %v730_v8, %v868_v21  ;;  %v760_v26 = vadd.f32 %v2035_v45, %v689_v13  ;;  %v694_v33 = vmul.f32 %v2213_v30, %v2030_v43 }
 0x12d   :  { %v1552_v28 = vpack.c.bf16 %v932_v25, %v931_v62  ;;  %v964_v31 = vsel %vm827_vm5, %v762_v11, %v900_v22  ;;  %v930_v32 = vsel %vm793_vm6, %v728_v12, %v866_v23  ;;  %v2295_v41 = vpop.f32.mrb[28].mxu0  ;;  %v2297_v42 = vpop.f32.mrb[28].mxu1  ;;  %v733_v29 = vadd.f32 %v2035_v45, %v662_v27 }
 0x12e   :  { %v1632_v34 = vpack.c.bf16 %v964_v31, %v963_v16  ;;  %v1547_v37 = vpack.c.bf16 %v930_v32, %v929_v9  ;;  %vm825_vm7 = vcmp.ge.f32.partialorder %v760_v26, 0.0  ;;  %v898_v38 = vmul.f32 %v2051_v1, %v760_v26  ;;  %v2308_v49 = vpop.f32.mrb[29].mxu0  ;;  %v2310_v50 = vpop.f32.mrb[29].mxu1 }
 0x12f   :  { %1672 = vst [vmem:[%s2456_s5 + $0x48] sm:$0xff] %v1552_v28   ;;  %v765_v47 = vadd.f32 %v2035_v45, %v694_v33  ;;  %v660_v30 = vmul.f32 %v2030_v43, %v2219_v35  ;;  %v692_v48 = vmul.f32 %v2030_v43, %v2221_v36  ;;  %v663_v52 = vmul.f32 %v2225_v39, %v2030_v43  ;;  %v2324_v53 = vpop.f32.mrb[30].mxu0  ;;  %v2326_v54 = vpop.f32.mrb[30].mxu1 }
 0x130   :  { %1688 = vst [vmem:[%s2456_s5 + $0xc8] sm:$0xff] %v1632_v34   ;;  %1671 = vst [vmem:[%s2456_s5 + $0x40] sm:$0xff] %v1547_v37   ;;  %v962_v51 = vsel %vm825_vm7, %v760_v26, %v898_v38  ;;  %v695_v35 = vmul.f32 %v2227_v40, %v2030_v43  ;;  %v661_v36 = vmul.f32 %v2030_v43, %v2231_v44  ;;  %vm798_vm8 = vcmp.ge.f32.partialorder %v733_v29, 0.0  ;;  %v2329_v58 = vpop.f32.mrb[31].mxu0  ;;  %v2331_v59 = vpop.f32.mrb[31].mxu1 }
 0x131   :  { %v1627_v55 = vpack.c.bf16 %v962_v51, %v961_v24  ;;  %v871_v57 = vmul.f32 %v2051_v1, %v733_v29  ;;  %vm830_vm9 = vcmp.ge.f32.partialorder %v765_v47, 0.0  ;;  %v903_v39 = vmul.f32 %v2051_v1, %v765_v47 }
 0x132   :  { %v731_v40 = vadd.f32 %v2035_v45, %v660_v30  ;;  %v763_v60 = vadd.f32 %v2035_v45, %v692_v48  ;;  %v734_v44 = vadd.f32 %v2035_v45, %v663_v52  ;;  %v766_v62 = vadd.f32 %v2035_v45, %v695_v35 }
 0x133   :  { %1687 = vst [vmem:[%s2456_s5 + $0xc0] sm:$0xff] %v1627_v55   ;;  %v935_v61 = vsel %vm798_vm8, %v733_v29, %v871_v57  ;;  %v732_v2 = vadd.f32 %v2035_v45, %v661_v36  ;;  %v693_v4 = vmul.f32 %v2030_v43, %v2233_v46  ;;  %v967_v63 = vsel %vm830_vm9, %v765_v47, %v903_v39 }
 0x134   :  { %vm796_vm10 = vcmp.ge.f32.partialorder %v731_v40, 0.0  ;;  %v869_v6 = vmul.f32 %v2051_v1, %v731_v40  ;;  %vm828_vm11 = vcmp.ge.f32.partialorder %v763_v60, 0.0  ;;  %v901_v7 = vmul.f32 %v2051_v1, %v763_v60 }
 0x135   :  { %vm799_vm12 = vcmp.ge.f32.partialorder %v734_v44, 0.0  ;;  %v872_v5 = vmul.f32 %v2051_v1, %v734_v44  ;;  %vm831_vm13 = vcmp.ge.f32.partialorder %v766_v62, 0.0  ;;  %v904_v11 = vmul.f32 %v2051_v1, %v766_v62 }
 0x136   :  { %v933_v8 = vsel %vm796_vm10, %v731_v40, %v869_v6  ;;  %vm797_vm14 = vcmp.ge.f32.partialorder %v732_v2, 0.0  ;;  %v870_v12 = vmul.f32 %v2051_v1, %v732_v2  ;;  %v965_v13 = vsel %vm828_vm11, %v763_v60, %v901_v7 }
 0x137   :  { %v936_v16 = vsel %vm799_vm12, %v734_v44, %v872_v5  ;;  %v764_v46 = vadd.f32 %v2035_v45, %v693_v4  ;;  %v666_v17 = vmul.f32 %v2257_v3, %v2030_v43  ;;  %v968_v21 = vsel %vm831_vm13, %v766_v62, %v904_v11 }
 0x138   :  { %v1562_v20 = vpack.c.bf16 %v936_v16, %v935_v61  ;;  %v934_v9 = vsel %vm797_vm14, %v732_v2, %v870_v12  ;;  %v698_v22 = vmul.f32 %v2259_v0, %v2030_v43  ;;  %v1642_v23 = vpack.c.bf16 %v968_v21, %v967_v63 }
 0x139   :  { %v1557_v24 = vpack.c.bf16 %v934_v9, %v933_v8  ;;  %vm829_vm15 = vcmp.ge.f32.partialorder %v764_v46, 0.0  ;;  %v902_v25 = vmul.f32 %v2051_v1, %v764_v46  ;;  %v737_v26 = vadd.f32 %v2035_v45, %v666_v17 }
 0x13a   :  { %1674 = vst [vmem:[%s2456_s5 + $0x58] sm:$0xff] %v1562_v20   ;;  %v769_v27 = vadd.f32 %v2035_v45, %v698_v22  ;;  %v664_v3 = vmul.f32 %v2030_v43, %v2267_v10  ;;  %v696_v28 = vmul.f32 %v2030_v43, %v2269_v56  ;;  %1690 = vst [vmem:[%s2456_s5 + $0xd8] sm:$0xff] %v1642_v23  }
 0x13b   :  { %1673 = vst [vmem:[%s2456_s5 + $0x50] sm:$0xff] %v1557_v24   ;;  %v966_v0 = vsel %vm829_vm15, %v764_v46, %v902_v25  ;;  %v667_v31 = vmul.f32 %v2276_v14, %v2030_v43  ;;  %v699_v32 = vmul.f32 %v2278_v15, %v2030_v43  ;;  %v665_v10 = vmul.f32 %v2030_v43, %v2281_v18 }
 0x13c   :  { %v1637_v33 = vpack.c.bf16 %v966_v0, %v965_v13  ;;  %vm802_vm0 = vcmp.ge.f32.partialorder %v737_v26, 0.0  ;;  %v875_v56 = vmul.f32 %v2051_v1, %v737_v26  ;;  %vm834_vm1 = vcmp.ge.f32.partialorder %v769_v27, 0.0 }
 0x13d   :  { %v907_v34 = vmul.f32 %v2051_v1, %v769_v27  ;;  %v735_v37 = vadd.f32 %v2035_v45, %v664_v3  ;;  %v767_v38 = vadd.f32 %v2035_v45, %v696_v28  ;;  %v738_v29 = vadd.f32 %v2035_v45, %v667_v31 }
 0x13e   :  { %1689 = vst [vmem:[%s2456_s5 + $0xd0] sm:$0xff] %v1637_v33   ;;  %v939_v14 = vsel %vm802_vm0, %v737_v26, %v875_v56  ;;  %v770_v15 = vadd.f32 %v2035_v45, %v699_v32  ;;  %v736_v18 = vadd.f32 %v2035_v45, %v665_v10  ;;  %v697_v47 = vmul.f32 %v2030_v43, %v2283_v19 }
 0x13f   :  { %v971_v30 = vsel %vm834_vm1, %v769_v27, %v907_v34  ;;  %vm800_vm2 = vcmp.ge.f32.partialorder %v735_v37, 0.0  ;;  %v873_v48 = vmul.f32 %v2051_v1, %v735_v37  ;;  %vm832_vm3 = vcmp.ge.f32.partialorder %v767_v38, 0.0 }
 0x140   :  { %v905_v51 = vmul.f32 %v2051_v1, %v767_v38  ;;  %vm803_vm4 = vcmp.ge.f32.partialorder %v738_v29, 0.0  ;;  %v876_v52 = vmul.f32 %v2051_v1, %v738_v29  ;;  %vm835_vm5 = vcmp.ge.f32.partialorder %v770_v15, 0.0 }
 0x141   :  { %v937_v35 = vsel %vm800_vm2, %v735_v37, %v873_v48  ;;  %v908_v36 = vmul.f32 %v2051_v1, %v770_v15  ;;  %vm801_vm6 = vcmp.ge.f32.partialorder %v736_v18, 0.0  ;;  %v874_v55 = vmul.f32 %v2051_v1, %v736_v18 }
 0x142   :  { %v969_v57 = vsel %vm832_vm3, %v767_v38, %v905_v51  ;;  %v940_v39 = vsel %vm803_vm4, %v738_v29, %v876_v52  ;;  %v768_v19 = vadd.f32 %v2035_v45, %v697_v47  ;;  %v670_v40 = vmul.f32 %v2295_v41, %v2030_v43 }
 0x143   :  { %v1572_v60 = vpack.c.bf16 %v940_v39, %v939_v14  ;;  %v972_v44 = vsel %vm835_vm5, %v770_v15, %v908_v36  ;;  %v938_v61 = vsel %vm801_vm6, %v736_v18, %v874_v55  ;;  %v702_v62 = vmul.f32 %v2297_v42, %v2030_v43 }
 0x144   :  { %v1652_v2 = vpack.c.bf16 %v972_v44, %v971_v30  ;;  %v1567_v4 = vpack.c.bf16 %v938_v61, %v937_v35  ;;  %vm833_vm7 = vcmp.ge.f32.partialorder %v768_v19, 0.0  ;;  %v906_v63 = vmul.f32 %v2051_v1, %v768_v19 }
 0x145   :  { %1676 = vst [vmem:[%s2456_s5 + $0x68] sm:$0xff] %v1572_v60   ;;  %v741_v6 = vadd.f32 %v2035_v45, %v670_v40  ;;  %v773_v7 = vadd.f32 %v2035_v45, %v702_v62  ;;  %v668_v41 = vmul.f32 %v2030_v43, %v2308_v49  ;;  %v700_v5 = vmul.f32 %v2030_v43, %v2310_v50 }
 0x146   :  { %1692 = vst [vmem:[%s2456_s5 + $0xe8] sm:$0xff] %v1652_v2   ;;  %1675 = vst [vmem:[%s2456_s5 + $0x60] sm:$0xff] %v1567_v4   ;;  %v970_v42 = vsel %vm833_vm7, %v768_v19, %v906_v63  ;;  %v671_v8 = vmul.f32 %v2324_v53, %v2030_v43  ;;  %v703_v11 = vmul.f32 %v2326_v54, %v2030_v43 }
 0x147   :  { %v669_v49 = vmul.f32 %v2030_v43, %v2329_v58  ;;  %v1647_v12 = vpack.c.bf16 %v970_v42, %v969_v57  ;;  %vm806_vm8 = vcmp.ge.f32.partialorder %v741_v6, 0.0  ;;  %v879_v50 = vmul.f32 %v2051_v1, %v741_v6 }
 0x148   :  { %vm838_vm9 = vcmp.ge.f32.partialorder %v773_v7, 0.0  ;;  %v911_v13 = vmul.f32 %v2051_v1, %v773_v7  ;;  %v739_v16 = vadd.f32 %v2035_v45, %v668_v41  ;;  %v742_v46 = vadd.f32 %v2035_v45, %v671_v8 }
 0x149   :  { %1691 = vst [vmem:[%s2456_s5 + $0xe0] sm:$0xff] %v1647_v12   ;;  %v771_v53 = vadd.f32 %v2035_v45, %v700_v5  ;;  %v774_v54 = vadd.f32 %v2035_v45, %v703_v11  ;;  %v740_v58 = vadd.f32 %v2035_v45, %v669_v49  ;;  %v701_v17 = vmul.f32 %v2030_v43, %v2331_v59 }
 0x14a   :  { %v943_v20 = vsel %vm806_vm8, %v741_v6, %v879_v50  ;;  %v877_v21 = vmul.f32 %v2051_v1, %v739_v16  ;;  %vm804_vm10 = vcmp.ge.f32.partialorder %v739_v16, 0.0  ;;  %vm807_vm11 = vcmp.ge.f32.partialorder %v742_v46, 0.0 }
 0x14b   :  { %v880_v9 = vmul.f32 %v2051_v1, %v742_v46  ;;  %vm839_vm12 = vcmp.ge.f32.partialorder %v774_v54, 0.0  ;;  %v975_v22 = vsel %vm838_vm9, %v773_v7, %v911_v13  ;;  %v912_v23 = vmul.f32 %v2051_v1, %v774_v54 }
 0x14c   :  { %vm805_vm13 = vcmp.ge.f32.partialorder %v740_v58, 0.0  ;;  %v878_v24 = vmul.f32 %v2051_v1, %v740_v58  ;;  %vm836_vm14 = vcmp.ge.f32.partialorder %v771_v53, 0.0  ;;  %v909_v25 = vmul.f32 %v2051_v1, %v771_v53 }
 0x14d   :  { %v944_v26 = vsel %vm807_vm11, %v742_v46, %v880_v9  ;;  %v772_v43 = vadd.f32 %v2035_v45, %v701_v17  ;;  %v941_v59 = vsel %vm804_vm10, %v739_v16, %v877_v21  ;;  %v976_v3 = vsel %vm839_vm12, %v774_v54, %v912_v23 }
 0x14e   :  { %v1582_v27 = vpack.c.bf16 %v944_v26, %v943_v20  ;;  %v942_v28 = vsel %vm805_vm13, %v740_v58, %v878_v24  ;;  %v1662_v0 = vpack.c.bf16 %v976_v3, %v975_v22  ;;  %v973_v10 = vsel %vm836_vm14, %v771_v53, %v909_v25 }
 0x14f   :  { %v1577_v31 = vpack.c.bf16 %v942_v28, %v941_v59  ;;  %vm837_vm15 = vcmp.ge.f32.partialorder %v772_v43, 0.0  ;;  %v910_v32 = vmul.f32 %v2051_v1, %v772_v43 }
 0x150   :  { %1678 = vst [vmem:[%s2456_s5 + $0x78] sm:$0xff] %v1582_v27   ;;  %1694 = vst [vmem:[%s2456_s5 + $0xf8] sm:$0xff] %v1662_v0  }
 0x151   :  { %1677 = vst [vmem:[%s2456_s5 + $0x70] sm:$0xff] %v1577_v31   ;;  %v974_v45 = vsel %vm837_vm15, %v772_v43, %v910_v32 }
 0x152   :  { %v1657_v33 = vpack.c.bf16 %v974_v45, %v973_v10 }
 0x154   :  { %1693 = vst [vmem:[%s2456_s5 + $0xf0] sm:$0xff] %v1657_v33  }

// kernel: _lambda_.10
= control target key start
LH: loop header
LB: loop body
LE: loop exit
PB: predicated region body
PF: predicated region fallthrough
CT: control target
= control target key end

     0   :  { %vm58_vm0 = vsmask.f32 3328  ;;  %vm59_vm1 = vsmask.f32 7440  ;;  %s2459_s0 = inlined_call_operand.vmem [shape: bf16[2,4,160,128], index: 0, kind: input, shape index: {}]   ;;  %s2460_s1 = inlined_call_operand.vmem [shape: bf16[2,128,128], index: 1, kind: output, shape index: {}]  }
   0x1   :  { %v8_v0 = vld [vmem:[%s2459_s0] sm:$0xf]  ;;  %v9_v1 = vld [vmem:[%s2459_s0 + $0x4] sm:$0xf]  ;;  %v1497_v2 = vld [vmem:[%s2459_s0 + $0x8] sm:$0xf] }
   0x2   :  { %v1502_v3 = vld [vmem:[%s2459_s0 + $0xc] sm:$0xf]  ;;  %v1229_v4 = vld [vmem:[%s2459_s0 + $0x50] sm:$0xf]  ;;  %v1230_v5 = vld [vmem:[%s2459_s0 + $0x54] sm:$0xf] }
   0x3   :  { %v1513_v6 = vld [vmem:[%s2459_s0 + $0x58] sm:$0xf]  ;;  %v1518_v7 = vld [vmem:[%s2459_s0 + $0x5c] sm:$0xf]  ;;  %v41_v8 = vmax.bf16 %v1229_v4, %v8_v0  ;;  %v42_v9 = vmax.bf16 %v1230_v5, %v9_v1  ;;  %v62_v12 = vshrl.u32 %v8_v0, 16  ;;  %v65_v14 = vshll.u32 %v8_v0, 16  ;;  %vm1542_vm2 = vmor %vm58_vm0, %vm59_vm1 }
   0x4   :  { %v43_v10 = vmax.bf16 %v1513_v6, %v1497_v2  ;;  %v44_v11 = vmax.bf16 %v1518_v7, %v1502_v3  ;;  %v1527_v13 = vld [vmem:[%s2459_s0 + $0x10] sm:$0xf]  ;;  %v71_v15 = vshll.u32 %v9_v1, 16  ;;  %v75_v16 = vshrl.u32 %v9_v1, 16  ;;  %v1245_v22 = vld [vmem:[%s2459_s0 + $0xa0] sm:$0xf] }
   0x5   :  { %v81_v17 = vshll.u32 %v1497_v2, 16  ;;  %v64_v18 = vrot.slane %v62_v12, 4  ;;  %v85_v19 = vshrl.u32 %v1497_v2, 16  ;;  %v91_v20 = vshll.u32 %v1502_v3, 16  ;;  %v1246_v27 = vld [vmem:[%s2459_s0 + $0xa4] sm:$0xf] }
   0x6   :  { %v95_v21 = vshrl.u32 %v1502_v3, 16  ;;  %v67_v23 = vrot.slane %v65_v14, 5  ;;  %v73_v24 = vrot.slane %v71_v15, 5  ;;  %v77_v25 = vrot.slane %v75_v16, 4  ;;  %v1247_v40 = vld [vmem:[%s2459_s0 + $0xa8] sm:$0xf] }
   0x7   :  { %v83_v26 = vrot.slane %v81_v17, 5  ;;  %v87_v28 = vrot.slane %v85_v19, 4  ;;  %v93_v29 = vrot.slane %v91_v20, 5  ;;  %v101_v31 = vshll.u32 %v1527_v13, 16  ;;  %v1248_v58 = vld [vmem:[%s2459_s0 + $0xac] sm:$0xf] }
   0x8   :  { %v97_v30 = vrot.slane %v95_v21, 4  ;;  %v68_v32 = vor.u32 %v67_v23, %v64_v18  ;;  %v78_v33 = vor.u32 %v77_v25, %v73_v24  ;;  %v325_v34 = vshrl.u32 %v1245_v22, 16  ;;  %v1261_v61 = vld [vmem:[%s2459_s0 + $0xf0] sm:$0xf]  ;;  %v1262_v62 = vld [vmem:[%s2459_s0 + $0xf4] sm:$0xf] }
   0x9   :  { %v328_v35 = vshll.u32 %v1245_v22, 16  ;;  %v88_v37 = vor.u32 %v87_v28, %v83_v26  ;;  %v1546_v39 = vrot.slane %v101_v31, 5  ;;  %v334_v41 = vshll.u32 %v1246_v27, 16  ;;  %v1263_v5 = vld [vmem:[%s2459_s0 + $0xf8] sm:$0xf] }
   0xa   :  { %v98_v38 = vor.u32 %v97_v30, %v93_v29  ;;  %v69_v42 = vrot.slane %v68_v32, 4  ;;  %v79_v43 = vrot.slane %v78_v33, 4  ;;  %v327_v44 = vrot.slane %v325_v34, 4  ;;  %v1586_v16 = vld [vmem:[%s2459_s0 + $0x60] sm:$0xf] }
   0xb   :  { %v330_v45 = vrot.slane %v328_v35, 5  ;;  %v89_v46 = vrot.slane %v88_v37, 4  ;;  %v336_v48 = vrot.slane %v334_v41, 5  ;;  %v338_v49 = vshrl.u32 %v1246_v27, 16  ;;  %v1591_v21 = vld [vmem:[%s2459_s0 + $0x64] sm:$0xf] }
   0xc   :  { %v99_v47 = vrot.slane %v98_v38, 4  ;;  %v74_v50 = vsel %vm1542_vm2, %v69_v42, %v73_v24  ;;  %v84_v51 = vsel %vm1542_vm2, %v79_v43, %v83_v26  ;;  %v344_v53 = vshll.u32 %v1247_v40, 16  ;;  %v1596_v26 = vld [vmem:[%s2459_s0 + $0x14] sm:$0xf]  ;;  %v1601_v30 = vld [vmem:[%s2459_s0 + $0x18] sm:$0xf] }
   0xd   :  { %v331_v52 = vor.u32 %v330_v45, %v327_v44  ;;  %v1557_v54 = vsel %vm1542_vm2, %v89_v46, %v93_v29  ;;  %v241_v56 = vmax.bf16 %v74_v50, %v41_v8  ;;  %v242_v57 = vmax.bf16 %v84_v51, %v42_v9  ;;  %v1264_v8 = vld [vmem:[%s2459_s0 + $0xfc] sm:$0xf]  ;;  %v1249_v45 = vld [vmem:[%s2459_s0 + $0xb0] sm:$0xf] }
   0xe   :  { %v1562_v55 = vsel %vm1542_vm2, %v99_v47, %v1546_v39  ;;  %v243_v59 = vmax.bf16 %v1557_v54, %v43_v10  ;;  %v340_v0 = vrot.slane %v338_v49, 4  ;;  %v346_v9 = vrot.slane %v344_v53, 5 }
   0xf   :  { %v244_v60 = vmax.bf16 %v1562_v55, %v44_v11  ;;  %v332_v63 = vrot.slane %v331_v52, 4  ;;  %v274_v1 = vmax.bf16 %v1245_v22, %v241_v56  ;;  %v275_v4 = vmax.bf16 %v1246_v27, %v242_v57 }
  0x10   :  { %v348_v10 = vshrl.u32 %v1247_v40, 16  ;;  %v276_v11 = vmax.bf16 %v1247_v40, %v243_v59  ;;  %v341_v15 = vor.u32 %v340_v0, %v336_v48  ;;  %v354_v20 = vshll.u32 %v1248_v58, 16 }
  0x11   :  { %v277_v12 = vmax.bf16 %v1248_v58, %v244_v60  ;;  %v337_v14 = vsel %vm1542_vm2, %v332_v63, %v336_v48  ;;  %v307_v17 = vmax.bf16 %v1261_v61, %v274_v1  ;;  %v308_v18 = vmax.bf16 %v1262_v62, %v275_v4  ;;  %v1633_v4 = vld [vmem:[%s2459_s0 + $0x68] sm:$0xf] }
  0x12   :  { %v350_v19 = vrot.slane %v348_v10, 4  ;;  %v309_v22 = vmax.bf16 %v1263_v5, %v276_v11  ;;  %v342_v24 = vrot.slane %v341_v15, 4  ;;  %v358_v25 = vshrl.u32 %v1248_v58, 16 }
  0x13   :  { %v310_v23 = vmax.bf16 %v1264_v8, %v277_v12  ;;  %v356_v28 = vrot.slane %v354_v20, 5  ;;  %v504_v29 = vmax.bf16 %v337_v14, %v307_v17  ;;  %v45_v31 = vmax.bf16 %v1586_v16, %v1527_v13  ;;  %v1650_v14 = vld [vmem:[%s2459_s0 + $0x1c] sm:$0xf]  ;;  %v1265_v17 = vld [vmem:[%s2459_s0 + $0x100] sm:$0xf] }
  0x14   :  { %v351_v27 = vor.u32 %v350_v19, %v346_v9  ;;  %v347_v32 = vsel %vm1542_vm2, %v342_v24, %v346_v9  ;;  %v360_v33 = vrot.slane %v358_v25, 4  ;;  %v46_v34 = vmax.bf16 %v1591_v21, %v1596_v26  ;;  %v1640_v9 = vld [vmem:[%s2459_s0 + $0x6c] sm:$0xf]  ;;  %v1266_v25 = vld [vmem:[%s2459_s0 + $0x104] sm:$0xf] }
  0x15   :  { %v105_v35 = vshrl.u32 %v1527_v13, 16  ;;  %v505_v37 = vmax.bf16 %v347_v32, %v308_v18  ;;  %v522_v38 = vmax.bf16 %v504_v29, %v1497_v2  ;;  %v111_v40 = vshll.u32 %v1596_v26, 16  ;;  %v1250_v2 = vld [vmem:[%s2459_s0 + $0xb4] sm:$0xf] }
  0x16   :  { %v115_v41 = vshrl.u32 %v1596_v26, 16  ;;  %v361_v42 = vor.u32 %v360_v33, %v356_v28  ;;  %v121_v44 = vshll.u32 %v1601_v30, 16  ;;  %v352_v46 = vrot.slane %v351_v27, 4 }
  0x17   :  { %v107_v43 = vrot.slane %v105_v35, 4  ;;  %v523_v47 = vmax.bf16 %v505_v37, %v1502_v3  ;;  %v540_v48 = vmax.bf16 %v1513_v6, %v522_v38  ;;  %v113_v49 = vrot.slane %v111_v40, 5  ;;  %v1251_v38 = vld [vmem:[%s2459_s0 + $0xb8] sm:$0xf] }
  0x18   :  { %v117_v50 = vrot.slane %v115_v41, 4  ;;  %v1623_v52 = vrot.slane %v121_v44, 5  ;;  %v357_v53 = vsel %vm1542_vm2, %v352_v46, %v356_v28  ;;  %v362_v56 = vrot.slane %v361_v42, 4 }
  0x19   :  { %v108_v51 = vor.u32 %v107_v43, %v1546_v39  ;;  %v541_v57 = vmax.bf16 %v1518_v7, %v523_v47  ;;  %v585_v3 = vmax.bf16 %v540_v48, %v1557_v54  ;;  %v364_v6 = vshll.u32 %v1249_v45, 16  ;;  %v1252_v43 = vld [vmem:[%s2459_s0 + $0xbc] sm:$0xf] }
  0x1a   :  { %v118_v58 = vor.u32 %v117_v50, %v113_v49  ;;  %v368_v60 = vshrl.u32 %v1249_v45, 16  ;;  %v374_v61 = vshll.u32 %v1250_v2, 16  ;;  %v378_v62 = vshrl.u32 %v1250_v2, 16 }
  0x1b   :  { %v109_v59 = vrot.slane %v108_v51, 4  ;;  %v586_v63 = vmax.bf16 %v541_v57, %v1562_v55  ;;  %v366_v39 = vrot.slane %v364_v6, 5  ;;  %v506_v1 = vmax.bf16 %v357_v53, %v309_v22  ;;  %v1658_v22 = vld [vmem:[%s2459_s0 + $0x20] sm:$0xf] }
  0x1c   :  { %v119_v0 = vrot.slane %v118_v58, 4  ;;  %v370_v54 = vrot.slane %v368_v60, 4  ;;  %v376_v5 = vrot.slane %v374_v61, 5  ;;  %v380_v8 = vrot.slane %v378_v62, 4  ;;  %v1697_v62 = vld [vmem:[%s2459_s0 + $0x74] sm:$0xf] }
  0x1d   :  { %v114_v7 = vsel %vm1542_vm2, %v109_v59, %v113_v49  ;;  %v1447_v55 = vcombine.low %v585_v3, %v586_v63  ;;  %v367_v12 = vsel %vm1542_vm2, %v362_v56, %v366_v39  ;;  %v524_v27 = vmax.bf16 %v506_v1, %v1527_v13  ;;  %v1692_v56 = vld [vmem:[%s2459_s0 + $0x70] sm:$0xf]  ;;  %v1709_v1 = vld [vmem:[%s2459_s0 + $0x24] sm:$0xf] }
  0x1e   :  { %v124_v10 = vsel %vm1542_vm2, %v119_v0, %v1623_v52  ;;  %v245_v11 = vmax.bf16 %v114_v7, %v45_v31  ;;  %v371_v18 = vor.u32 %v370_v54, %v366_v39  ;;  %v381_v19 = vor.u32 %v380_v8, %v376_v5 }
  0x1f   :  { %v246_v15 = vmax.bf16 %v124_v10, %v46_v34  ;;  %v507_v20 = vmax.bf16 %v367_v12, %v310_v23  ;;  %1371 = vst [vmem:[%s2460_s1] sm:$0xff] %v1447_v55   ;;  %v47_v28 = vmax.bf16 %v1633_v4, %v1601_v30  ;;  %v48_v23 = vmax.bf16 %v1640_v9, %v1650_v14  ;;  %v1267_v12 = vld [vmem:[%s2459_s0 + $0x108] sm:$0xf] }
  0x20   :  { %v278_v24 = vmax.bf16 %v1249_v45, %v245_v11  ;;  %v125_v32 = vshrl.u32 %v1601_v30, 16  ;;  %v131_v33 = vshll.u32 %v1650_v14, 16  ;;  %v542_v35 = vmax.bf16 %v1586_v16, %v524_v27 }
  0x21   :  { %v279_v29 = vmax.bf16 %v1250_v2, %v246_v15  ;;  %v525_v31 = vmax.bf16 %v507_v20, %v1596_v26  ;;  %v135_v37 = vshrl.u32 %v1650_v14, 16  ;;  %v141_v13 = vshll.u32 %v1658_v22, 16  ;;  %v1268_v20 = vld [vmem:[%s2459_s0 + $0x10c] sm:$0xf] }
  0x22   :  { %v311_v34 = vmax.bf16 %v1265_v17, %v278_v24  ;;  %v127_v42 = vrot.slane %v125_v32, 4  ;;  %v133_v26 = vrot.slane %v131_v33, 5  ;;  %v587_v44 = vmax.bf16 %v542_v35, %v114_v7  ;;  %v1254_v35 = vld [vmem:[%s2459_s0 + $0xc4] sm:$0xf] }
  0x23   :  { %v312_v40 = vmax.bf16 %v1266_v25, %v279_v29  ;;  %v543_v41 = vmax.bf16 %v1591_v21, %v525_v31  ;;  %v137_v45 = vrot.slane %v135_v37, 4  ;;  %v1684_v16 = vrot.slane %v141_v13, 5 }
  0x24   :  { %v372_v46 = vrot.slane %v371_v18, 4  ;;  %v128_v48 = vor.u32 %v127_v42, %v1623_v52  ;;  %v382_v49 = vrot.slane %v381_v19, 4  ;;  %v384_v50 = vshll.u32 %v1251_v38, 16 }
  0x25   :  { %v588_v47 = vmax.bf16 %v543_v41, %v124_v10  ;;  %v138_v2 = vor.u32 %v137_v45, %v133_v26  ;;  %v388_v51 = vshrl.u32 %v1251_v38, 16  ;;  %v394_v53 = vshll.u32 %v1252_v43, 16  ;;  %v1719_v10 = vld [vmem:[%s2459_s0 + $0x28] sm:$0xf] }
  0x26   :  { %v377_v21 = vsel %vm1542_vm2, %v372_v46, %v376_v5  ;;  %v129_v3 = vrot.slane %v128_v48, 4  ;;  %v386_v58 = vrot.slane %v384_v50, 5  ;;  %v398_v6 = vshrl.u32 %v1252_v43, 16  ;;  %v1747_v46 = vld [vmem:[%s2459_s0 + $0x78] sm:$0xf] }
  0x27   :  { %v1448_v57 = vcombine.low %v587_v44, %v588_v47  ;;  %v139_v59 = vrot.slane %v138_v2, 4  ;;  %v390_v60 = vrot.slane %v388_v51, 4  ;;  %v396_v52 = vrot.slane %v394_v53, 5 }
  0x28   :  { %v508_v61 = vmax.bf16 %v377_v21, %v311_v34  ;;  %v134_v63 = vsel %vm1542_vm2, %v129_v3, %v133_v26  ;;  %v387_v0 = vsel %vm1542_vm2, %v382_v49, %v386_v58  ;;  %v400_v39 = vrot.slane %v398_v6, 4  ;;  %v1764_v6 = vld [vmem:[%s2459_s0 + $0x7c] sm:$0xf] }
  0x29   :  { %1449 = vst [vmem:[%s2460_s1 + $0x8] sm:$0xff] %v1448_v57   ;;  %v49_v7 = vmax.bf16 %v1692_v56, %v1658_v22  ;;  %v144_v54 = vsel %vm1542_vm2, %v139_v59, %v1684_v16  ;;  %v247_v5 = vmax.bf16 %v134_v63, %v47_v28  ;;  %v391_v8 = vor.u32 %v390_v60, %v386_v58  ;;  %v1759_v58 = vld [vmem:[%s2459_s0 + $0x2c] sm:$0xf] }
  0x2a   :  { %v509_v55 = vmax.bf16 %v387_v0, %v312_v40  ;;  %v248_v11 = vmax.bf16 %v144_v54, %v48_v23  ;;  %v401_v15 = vor.u32 %v400_v39, %v396_v52  ;;  %v526_v17 = vmax.bf16 %v508_v61, %v1601_v30  ;;  %v1269_v39 = vld [vmem:[%s2459_s0 + $0x110] sm:$0xf] }
  0x2b   :  { %v50_v18 = vmax.bf16 %v1697_v62, %v1709_v1  ;;  %v280_v19 = vmax.bf16 %v1251_v38, %v247_v5  ;;  %v145_v25 = vshrl.u32 %v1658_v22, 16  ;;  %v151_v27 = vshll.u32 %v1709_v1, 16 }
  0x2c   :  { %v527_v24 = vmax.bf16 %v509_v55, %v1650_v14  ;;  %v281_v28 = vmax.bf16 %v1252_v43, %v248_v11  ;;  %v544_v23 = vmax.bf16 %v1633_v4, %v526_v17  ;;  %v155_v29 = vshrl.u32 %v1709_v1, 16  ;;  %v1253_v14 = vld [vmem:[%s2459_s0 + $0xc0] sm:$0xf]  ;;  %v1779_v55 = vld [vmem:[%s2459_s0 + $0x30] sm:$0xf] }
  0x2d   :  { %v161_v30 = vshll.u32 %v1719_v10, 16  ;;  %v313_v31 = vmax.bf16 %v1267_v12, %v280_v19  ;;  %v147_v33 = vrot.slane %v145_v25, 4  ;;  %v153_v34 = vrot.slane %v151_v27, 5 }
  0x2e   :  { %v545_v32 = vmax.bf16 %v1640_v9, %v527_v24  ;;  %v314_v37 = vmax.bf16 %v1268_v20, %v281_v28  ;;  %v589_v13 = vmax.bf16 %v544_v23, %v134_v63  ;;  %v157_v4 = vrot.slane %v155_v29, 4  ;;  %v1255_v23 = vld [vmem:[%s2459_s0 + $0xc8] sm:$0xf] }
  0x2f   :  { %v163_v38 = vrot.slane %v161_v30, 5  ;;  %v148_v41 = vor.u32 %v147_v33, %v1684_v16  ;;  %v392_v42 = vrot.slane %v391_v8, 4  ;;  %v402_v26 = vrot.slane %v401_v15, 4 }
  0x30   :  { %v590_v40 = vmax.bf16 %v545_v32, %v144_v54  ;;  %v158_v9 = vor.u32 %v157_v4, %v153_v34  ;;  %v404_v43 = vshll.u32 %v1253_v14, 16  ;;  %v408_v44 = vshrl.u32 %v1253_v14, 16 }
  0x31   :  { %v414_v45 = vshll.u32 %v1254_v35, 16  ;;  %v149_v48 = vrot.slane %v148_v41, 4  ;;  %v397_v49 = vsel %vm1542_vm2, %v392_v42, %v396_v52  ;;  %v418_v50 = vshrl.u32 %v1254_v35, 16 }
  0x32   :  { %v1450_v47 = vcombine.low %v589_v13, %v590_v40  ;;  %v159_v2 = vrot.slane %v158_v9, 4  ;;  %v406_v21 = vrot.slane %v404_v43, 5  ;;  %v410_v16 = vrot.slane %v408_v44, 4 }
  0x33   :  { %v416_v51 = vrot.slane %v414_v45, 5  ;;  %v154_v53 = vsel %vm1542_vm2, %v149_v48, %v153_v34  ;;  %v420_v57 = vrot.slane %v418_v50, 4  ;;  %v510_v3 = vmax.bf16 %v397_v49, %v313_v31  ;;  %v1806_v49 = vld [vmem:[%s2459_s0 + $0x80] sm:$0xf]  ;;  %v1811_v50 = vld [vmem:[%s2459_s0 + $0x84] sm:$0xf] }
  0x34   :  { %1451 = vst [vmem:[%s2460_s1 + $0x10] sm:$0xff] %v1450_v47   ;;  %v51_v59 = vmax.bf16 %v1747_v46, %v1719_v10  ;;  %v164_v60 = vsel %vm1542_vm2, %v159_v2, %v163_v38  ;;  %v249_v52 = vmax.bf16 %v154_v53, %v49_v7  ;;  %v407_v61 = vsel %vm1542_vm2, %v402_v26, %v406_v21  ;;  %v1270_v7 = vld [vmem:[%s2459_s0 + $0x114] sm:$0xf] }
  0x35   :  { %v411_v63 = vor.u32 %v410_v16, %v406_v21  ;;  %v250_v0 = vmax.bf16 %v164_v60, %v50_v18  ;;  %v421_v54 = vor.u32 %v420_v57, %v416_v51  ;;  %v511_v5 = vmax.bf16 %v407_v61, %v314_v37 }
  0x36   :  { %v528_v8 = vmax.bf16 %v510_v3, %v1658_v22  ;;  %v282_v11 = vmax.bf16 %v1253_v14, %v249_v52  ;;  %v52_v12 = vmax.bf16 %v1764_v6, %v1759_v58  ;;  %v165_v15 = vshrl.u32 %v1719_v10, 16  ;;  %v1271_v3 = vld [vmem:[%s2459_s0 + $0x118] sm:$0xf] }
  0x37   :  { %v171_v17 = vshll.u32 %v1759_v58, 16  ;;  %v283_v18 = vmax.bf16 %v1254_v35, %v250_v0  ;;  %v529_v22 = vmax.bf16 %v511_v5, %v1709_v1  ;;  %v175_v20 = vshrl.u32 %v1759_v58, 16  ;;  %v1272_v0 = vld [vmem:[%s2459_s0 + $0x11c] sm:$0xf] }
  0x38   :  { %v546_v19 = vmax.bf16 %v1692_v56, %v528_v8  ;;  %v315_v24 = vmax.bf16 %v1269_v39, %v282_v11  ;;  %v167_v25 = vrot.slane %v165_v15, 4  ;;  %v181_v28 = vshll.u32 %v1779_v55, 16  ;;  %v1256_v56 = vld [vmem:[%s2459_s0 + $0xcc] sm:$0xf] }
  0x39   :  { %v173_v27 = vrot.slane %v171_v17, 5  ;;  %v316_v29 = vmax.bf16 %v1270_v7, %v283_v18  ;;  %v547_v30 = vmax.bf16 %v1697_v62, %v529_v22  ;;  %v177_v32 = vrot.slane %v175_v20, 4  ;;  %v1257_v22 = vld [vmem:[%s2459_s0 + $0xd0] sm:$0xf] }
  0x3a   :  { %v591_v31 = vmax.bf16 %v546_v19, %v154_v53  ;;  %v168_v1 = vor.u32 %v167_v25, %v163_v38  ;;  %v183_v33 = vrot.slane %v181_v28, 5  ;;  %v412_v34 = vrot.slane %v411_v63, 4  ;;  %v1823_v53 = vld [vmem:[%s2459_s0 + $0x34] sm:$0xf] }
  0x3b   :  { %v422_v14 = vrot.slane %v421_v54, 4  ;;  %v592_v35 = vmax.bf16 %v547_v30, %v164_v60  ;;  %v178_v37 = vor.u32 %v177_v32, %v173_v27  ;;  %v424_v13 = vshll.u32 %v1255_v23, 16 }
  0x3c   :  { %v428_v4 = vshrl.u32 %v1255_v23, 16  ;;  %v169_v40 = vrot.slane %v168_v1, 4  ;;  %v417_v41 = vsel %vm1542_vm2, %v412_v34, %v416_v51  ;;  %v434_v42 = vshll.u32 %v1256_v56, 16 }
  0x3d   :  { %v438_v62 = vshrl.u32 %v1256_v56, 16  ;;  %v1452_v26 = vcombine.low %v591_v31, %v592_v35  ;;  %v179_v9 = vrot.slane %v178_v37, 4  ;;  %v426_v43 = vrot.slane %v424_v13, 5 }
  0x3e   :  { %v430_v44 = vrot.slane %v428_v4, 4  ;;  %v174_v38 = vsel %vm1542_vm2, %v169_v40, %v173_v27  ;;  %v436_v45 = vrot.slane %v434_v42, 5  ;;  %v512_v48 = vmax.bf16 %v417_v41, %v315_v24 }
  0x3f   :  { %v440_v47 = vrot.slane %v438_v62, 4  ;;  %1453 = vst [vmem:[%s2460_s1 + $0x18] sm:$0xff] %v1452_v26   ;;  %v184_v2 = vsel %vm1542_vm2, %v179_v9, %v183_v33  ;;  %v251_v21 = vmax.bf16 %v174_v38, %v51_v59  ;;  %v427_v16 = vsel %vm1542_vm2, %v422_v14, %v426_v43  ;;  %v1832_v59 = vld [vmem:[%s2459_s0 + $0x38] sm:$0xf]  ;;  %v1868_v62 = vld [vmem:[%s2459_s0 + $0x8c] sm:$0xf] }
  0x40   :  { %v431_v51 = vor.u32 %v430_v44, %v426_v43  ;;  %v252_v57 = vmax.bf16 %v184_v2, %v52_v12  ;;  %v513_v52 = vmax.bf16 %v427_v16, %v316_v29  ;;  %v530_v61 = vmax.bf16 %v512_v48, %v1719_v10  ;;  %v57_v16 = vld [vmem:[%s2459_s0 + $0x40] sm:$0x1] }
  0x41   :  { %v441_v60 = vor.u32 %v440_v47, %v436_v45  ;;  %v284_v63 = vmax.bf16 %v1255_v23, %v251_v21  ;;  %v53_v39 = vmax.bf16 %v1806_v49, %v1779_v55  ;;  %v54_v54 = vmax.bf16 %v1811_v50, %v1823_v53  ;;  %v1273_v47 = vld [vmem:[%s2459_s0 + $0x120] sm:$0xf] }
  0x42   :  { %v185_v5 = vshrl.u32 %v1779_v55, 16  ;;  %v285_v8 = vmax.bf16 %v1256_v56, %v252_v57  ;;  %v531_v10 = vmax.bf16 %v513_v52, %v1759_v58  ;;  %v548_v11 = vmax.bf16 %v1747_v46, %v530_v61  ;;  %v1258_v46 = vld [vmem:[%s2459_s0 + $0xd4] sm:$0xf]  ;;  %v1274_v52 = vld [vmem:[%s2459_s0 + $0x124] sm:$0xf] }
  0x43   :  { %v191_v7 = vshll.u32 %v1823_v53, 16  ;;  %v317_v12 = vmax.bf16 %v1271_v3, %v284_v63  ;;  %v195_v17 = vshrl.u32 %v1823_v53, 16  ;;  %v201_v18 = vshll.u32 %v1832_v59, 16 }
  0x44   :  { %v187_v15 = vrot.slane %v185_v5, 4  ;;  %v318_v19 = vmax.bf16 %v1272_v0, %v285_v8  ;;  %v549_v20 = vmax.bf16 %v1764_v6, %v531_v10  ;;  %v593_v24 = vmax.bf16 %v548_v11, %v174_v38  ;;  %v1878_v38 = vld [vmem:[%s2459_s0 + $0x3c] sm:$0xf]  ;;  %v1259_v10 = vld [vmem:[%s2459_s0 + $0xd8] sm:$0xf] }
  0x45   :  { %v193_v25 = vrot.slane %v191_v7, 5  ;;  %v197_v27 = vrot.slane %v195_v17, 4  ;;  %v1854_v28 = vrot.slane %v201_v18, 5  ;;  %v432_v23 = vrot.slane %v431_v51, 4 }
  0x46   :  { %v188_v58 = vor.u32 %v187_v15, %v183_v33  ;;  %v594_v29 = vmax.bf16 %v549_v20, %v184_v2  ;;  %v442_v30 = vrot.slane %v441_v60, 4  ;;  %v444_v31 = vshll.u32 %v1257_v22, 16  ;;  %v1861_v33 = vld [vmem:[%s2459_s0 + $0x88] sm:$0xf] }
  0x47   :  { %v448_v32 = vshrl.u32 %v1257_v22, 16  ;;  %v198_v1 = vor.u32 %v197_v27, %v193_v25  ;;  %v437_v6 = vsel %vm1542_vm2, %v432_v23, %v436_v45  ;;  %v454_v34 = vshll.u32 %v1258_v46, 16 }
  0x48   :  { %v189_v56 = vrot.slane %v188_v58, 4  ;;  %v1454_v14 = vcombine.low %v593_v24, %v594_v29  ;;  %v446_v35 = vrot.slane %v444_v31, 5  ;;  %v458_v13 = vshrl.u32 %v1258_v46, 16 }
  0x49   :  { %v450_v37 = vrot.slane %v448_v32, 4  ;;  %v199_v40 = vrot.slane %v198_v1, 4  ;;  %v456_v41 = vrot.slane %v454_v34, 5  ;;  %v514_v42 = vmax.bf16 %v437_v6, %v317_v12 }
  0x4a   :  { %v194_v4 = vsel %vm1542_vm2, %v189_v56, %v193_v25  ;;  %1455 = vst [vmem:[%s2460_s1 + $0x20] sm:$0xff] %v1454_v14   ;;  %v447_v9 = vsel %vm1542_vm2, %v442_v30, %v446_v35  ;;  %v460_v44 = vrot.slane %v458_v13, 4  ;;  %v55_v21 = vmax.bf16 %v1861_v33, %v1832_v59 }
  0x4b   :  { %v253_v26 = vmax.bf16 %v194_v4, %v53_v39  ;;  %v451_v43 = vor.u32 %v450_v37, %v446_v35  ;;  %v204_v45 = vsel %vm1542_vm2, %v199_v40, %v1854_v28  ;;  %v515_v48 = vmax.bf16 %v447_v9, %v318_v19  ;;  %v1277_v37 = vld [vmem:[%s2459_s0 + $0xe0] sm:$0x1]  ;;  %v1275_v9 = vld [vmem:[%s2459_s0 + $0x128] sm:$0xf] }
  0x4c   :  { %v532_v2 = vmax.bf16 %v514_v42, %v1779_v55  ;;  %v254_v51 = vmax.bf16 %v204_v45, %v54_v54  ;;  %v461_v3 = vor.u32 %v460_v44, %v456_v41  ;;  %v56_v60 = vmax.bf16 %v1868_v62, %v1878_v38 }
  0x4d   :  { %v286_v57 = vmax.bf16 %v1257_v22, %v253_v26  ;;  %v533_v61 = vmax.bf16 %v515_v48, %v1823_v53  ;;  %v205_v63 = vshrl.u32 %v1832_v59, 16  ;;  %v211_v0 = vshll.u32 %v1878_v38, 16  ;;  %v1276_v48 = vld [vmem:[%s2459_s0 + $0x12c] sm:$0xf] }
  0x4e   :  { %v550_v55 = vmax.bf16 %v1806_v49, %v532_v2  ;;  %v287_v39 = vmax.bf16 %v1258_v46, %v254_v51  ;;  %v215_v54 = vshrl.u32 %v1878_v38, 16  ;;  %v221_v8 = vshll.u32 %v57_v16, 16  ;;  %v1260_v49 = vld [vmem:[%s2459_s0 + $0xdc] sm:$0xf]  ;;  %v521_v16 = vld [vmem:[%s2459_s0 + $0x44] sm:$0xf] }
  0x4f   :  { %v319_v5 = vmax.bf16 %v1273_v47, %v286_v57  ;;  %v551_v11 = vmax.bf16 %v1811_v50, %v533_v61  ;;  %v207_v12 = vrot.slane %v205_v63, 4  ;;  %v213_v53 = vrot.slane %v211_v0, 5  ;;  %v1913_v50 = vld [vmem:[%s2459_s0 + $0x40] sm:$0xf]  ;;  %v1953_v63 = vld [vmem:[%s2459_s0 + $0x190] sm:$0xf] }
  0x50   :  { %v595_v7 = vmax.bf16 %v550_v55, %v194_v4  ;;  %v320_v15 = vmax.bf16 %v1274_v52, %v287_v39  ;;  %v217_v17 = vrot.slane %v215_v54, 4  ;;  %v223_v18 = vrot.slane %v221_v8, 5  ;;  %v1959_v8 = vld [vmem:[%s2459_s0 + $0x140] sm:$0xf] }
  0x51   :  { %v452_v22 = vrot.slane %v451_v43, 4  ;;  %v596_v19 = vmax.bf16 %v551_v11, %v204_v45  ;;  %v208_v20 = vor.u32 %v207_v12, %v1854_v28  ;;  %v462_v24 = vrot.slane %v461_v3, 4  ;;  %v1964_v12 = vld [vmem:[%s2459_s0 + $0x194] sm:$0xf] }
  0x52   :  { %v464_v25 = vshll.u32 %v1259_v10, 16  ;;  %v218_v46 = vor.u32 %v217_v17, %v213_v53  ;;  %v468_v27 = vshrl.u32 %v1259_v10, 16  ;;  %v478_v23 = vshrl.u32 %v1260_v49, 16 }
  0x53   :  { %v457_v58 = vsel %vm1542_vm2, %v452_v22, %v456_v41  ;;  %v1456_v29 = vcombine.low %v595_v7, %v596_v19  ;;  %v209_v30 = vrot.slane %v208_v20, 4  ;;  %v558_v6 = vshll.u32 %v1913_v50, 16  ;;  %v1979_v22 = vld [vmem:[%s2459_s0 + $0x19c] sm:$0xf] }
  0x54   :  { %v466_v31 = vrot.slane %v464_v25, 5  ;;  %v516_v32 = vmax.bf16 %v457_v58, %v319_v5  ;;  %v219_v56 = vrot.slane %v218_v46, 4  ;;  %v470_v1 = vrot.slane %v468_v27, 4  ;;  %v1281_v58 = vld [vmem:[%s2459_s0 + $0x144] sm:$0xf] }
  0x55   :  { %v480_v28 = vrot.slane %v478_v23, 4  ;;  %1457 = vst [vmem:[%s2460_s1 + $0x28] sm:$0xff] %v1456_v29   ;;  %v214_v34 = vsel %vm1542_vm2, %v209_v30, %v213_v53  ;;  %v474_v13 = vshll.u32 %v1260_v49, 16  ;;  %v560_v44 = vrot.slane %v558_v6, 5  ;;  %v1969_v53 = vld [vmem:[%s2459_s0 + $0x198] sm:$0xf] }
  0x56   :  { %v467_v14 = vsel %vm1542_vm2, %v462_v24, %v466_v31  ;;  %v534_v35 = vmax.bf16 %v516_v32, %v1832_v59  ;;  %v224_v4 = vsel %vm1542_vm2, %v219_v56, %v223_v18  ;;  %v255_v40 = vmax.bf16 %v214_v34, %v55_v21  ;;  %v1990_v27 = vld [vmem:[%s2459_s0 + $0x148] sm:$0xf]  ;;  %v1279_v23 = vld [vmem:[%s2459_s0 + $0x94] sm:$0xf] }
  0x57   :  { %v471_v41 = vor.u32 %v470_v1, %v466_v31  ;;  %v517_v42 = vmax.bf16 %v467_v14, %v320_v15  ;;  %v256_v26 = vmax.bf16 %v224_v4, %v56_v60  ;;  %v476_v59 = vrot.slane %v474_v13, 5  ;;  %v1278_v15 = vld [vmem:[%s2459_s0 + $0x90] sm:$0xf] }
  0x58   :  { %v552_v43 = vmax.bf16 %v1861_v33, %v534_v35  ;;  %v288_v45 = vmax.bf16 %v1259_v10, %v255_v40  ;;  %v484_v21 = vshll.u32 %v1277_v37, 16  ;;  %v561_v57 = vsel %vm1542_vm2, %v219_v56, %v560_v44  ;;  %v2013_v40 = vld [vmem:[%s2459_s0 + $0x150] sm:$0xf] }
  0x59   :  { %v535_v47 = vmax.bf16 %v517_v42, %v1878_v38  ;;  %v472_v2 = vrot.slane %v471_v41, 4  ;;  %v289_v51 = vmax.bf16 %v1260_v49, %v256_v26  ;;  %v481_v3 = vor.u32 %v480_v28, %v476_v59  ;;  %v556_v38 = vld [vmem:[%s2459_s0 + $0x48] sm:$0x1] }
  0x5a   :  { %v597_v33 = vmax.bf16 %v552_v43, %v214_v34  ;;  %v321_v60 = vmax.bf16 %v1275_v9, %v288_v45  ;;  %v486_v55 = vrot.slane %v484_v21, 5  ;;  %v562_v5 = vshrl.u32 %v1913_v50, 16 }
  0x5b   :  { %v553_v52 = vmax.bf16 %v1868_v62, %v535_v47  ;;  %v477_v61 = vsel %vm1542_vm2, %v472_v2, %v476_v59  ;;  %v322_v0 = vmax.bf16 %v1276_v48, %v289_v51  ;;  %v482_v39 = vrot.slane %v481_v3, 4  ;;  %v1313_v59 = vld [vmem:[%s2459_s0 + $0x1e0] sm:$0xf] }
  0x5c   :  { %v568_v54 = vshll.u32 %v521_v16, 16  ;;  %v518_v10 = vmax.bf16 %v477_v61, %v321_v60  ;;  %v572_v11 = vshrl.u32 %v521_v16, 16  ;;  %v578_v7 = vshll.u32 %v556_v38, 16  ;;  %v1314_v60 = vld [vmem:[%s2459_s0 + $0x1e4] sm:$0xf] }
  0x5d   :  { %v598_v62 = vmax.bf16 %v561_v57, %v553_v52  ;;  %v487_v49 = vsel %vm1542_vm2, %v482_v39, %v486_v55  ;;  %v564_v17 = vrot.slane %v562_v5, 4  ;;  %v651_v19 = vmax.bf16 %v1953_v63, %v1959_v8 }
  0x5e   :  { %v570_v18 = vrot.slane %v568_v54, 5  ;;  %v519_v24 = vmax.bf16 %v487_v49, %v322_v0  ;;  %v536_v25 = vmax.bf16 %v1913_v50, %v518_v10  ;;  %v574_v46 = vrot.slane %v572_v11, 4  ;;  %v1998_v50 = vld [vmem:[%s2459_s0 + $0x14c] sm:$0xf]  ;;  %v1315_v11 = vld [vmem:[%s2459_s0 + $0x1e8] sm:$0xf] }
  0x5f   :  { %v1458_v20 = vcombine.low %v597_v33, %v598_v62  ;;  %v565_v29 = vor.u32 %v564_v17, %v560_v44  ;;  %v580_v30 = vrot.slane %v578_v7, 5  ;;  %v652_v31 = vmax.bf16 %v1964_v12, %v1281_v58 }
  0x60   :  { %v653_v32 = vmax.bf16 %v1969_v53, %v1990_v27  ;;  %v537_v56 = vmax.bf16 %v521_v16, %v519_v24  ;;  %v554_v1 = vmax.bf16 %v1278_v15, %v536_v25  ;;  %v575_v28 = vor.u32 %v574_v46, %v570_v18  ;;  %v1329_v25 = vld [vmem:[%s2459_s0 + $0x230] sm:$0xf] }
  0x61   :  { %1459 = vst [vmem:[%s2460_s1 + $0x30] sm:$0xff] %v1458_v20   ;;  %v654_v6 = vmax.bf16 %v1979_v22, %v1998_v50  ;;  %v566_v34 = vrot.slane %v565_v29, 4  ;;  %v669_v14 = vshrl.u32 %v1959_v8, 16  ;;  %v672_v35 = vshll.u32 %v1959_v8, 16 }
  0x62   :  { %v678_v37 = vshll.u32 %v1281_v58, 16  ;;  %v555_v13 = vmax.bf16 %v1279_v23, %v537_v56  ;;  %v576_v4 = vrot.slane %v575_v28, 4  ;;  %v682_v41 = vshrl.u32 %v1281_v58, 16 }
  0x63   :  { %v688_v42 = vshll.u32 %v1990_v27, 16  ;;  %v571_v26 = vsel %vm1542_vm2, %v566_v34, %v570_v18  ;;  %v671_v9 = vrot.slane %v669_v14, 4  ;;  %v674_v43 = vrot.slane %v672_v35, 5 }
  0x64   :  { %v680_v44 = vrot.slane %v678_v37, 5  ;;  %v581_v45 = vsel %vm1542_vm2, %v576_v4, %v580_v30  ;;  %v599_v47 = vmax.bf16 %v571_v26, %v554_v1  ;;  %v684_v48 = vrot.slane %v682_v41, 4  ;;  %v1330_v30 = vld [vmem:[%s2459_s0 + $0x234] sm:$0xf]  ;;  %v2065_v41 = vld [vmem:[%s2459_s0 + $0x1a0] sm:$0xf] }
  0x65   :  { %v690_v2 = vrot.slane %v688_v42, 5  ;;  %v600_v21 = vmax.bf16 %v581_v45, %v555_v13  ;;  %v675_v16 = vor.u32 %v674_v43, %v671_v9  ;;  %v692_v51 = vshrl.u32 %v1990_v27, 16  ;;  %v1331_v26 = vld [vmem:[%s2459_s0 + $0x238] sm:$0xf] }
  0x66   :  { %v698_v57 = vshll.u32 %v1998_v50, 16  ;;  %v685_v33 = vor.u32 %v684_v48, %v680_v44  ;;  %v702_v3 = vshrl.u32 %v1998_v50, 16  ;;  %v708_v38 = vshll.u32 %v2013_v40, 16 }
  0x67   :  { %v932_v52 = vshrl.u32 %v1313_v59, 16  ;;  %v1460_v61 = vcombine.low %v599_v47, %v600_v21  ;;  %v676_v55 = vrot.slane %v675_v16, 4  ;;  %v694_v63 = vrot.slane %v692_v51, 4  ;;  %v2081_v16 = vld [vmem:[%s2459_s0 + $0x154] sm:$0xf] }
  0x68   :  { %v700_v0 = vrot.slane %v698_v57, 5  ;;  %v686_v39 = vrot.slane %v685_v33, 4  ;;  %v704_v5 = vrot.slane %v702_v3, 4  ;;  %v2030_v54 = vrot.slane %v708_v38, 5  ;;  %v2086_v51 = vld [vmem:[%s2459_s0 + $0x1a4] sm:$0xf] }
  0x69   :  { %v934_v8 = vrot.slane %v932_v52, 4  ;;  %1461 = vst [vmem:[%s2460_s1 + $0x38] sm:$0xff] %v1460_v61   ;;  %v681_v62 = vsel %vm1542_vm2, %v676_v55, %v680_v44  ;;  %v695_v10 = vor.u32 %v694_v63, %v690_v2  ;;  %v935_v7 = vshll.u32 %v1313_v59, 16  ;;  %v2095_v52 = vld [vmem:[%s2459_s0 + $0x158] sm:$0xf] }
  0x6a   :  { %v941_v12 = vshll.u32 %v1314_v60, 16  ;;  %v691_v49 = vsel %vm1542_vm2, %v686_v39, %v690_v2  ;;  %v705_v15 = vor.u32 %v704_v5, %v700_v0  ;;  %v848_v17 = vmax.bf16 %v681_v62, %v651_v19 }
  0x6b   :  { %v945_v18 = vshrl.u32 %v1314_v60, 16  ;;  %v696_v20 = vrot.slane %v695_v10, 4  ;;  %v849_v24 = vmax.bf16 %v691_v49, %v652_v31  ;;  %v937_v46 = vrot.slane %v935_v7, 5  ;;  %v1316_v31 = vld [vmem:[%s2459_s0 + $0x1ec] sm:$0xf] }
  0x6c   :  { %v943_v58 = vrot.slane %v941_v12, 5  ;;  %v706_v23 = vrot.slane %v705_v15, 4  ;;  %v881_v29 = vmax.bf16 %v1313_v59, %v848_v17  ;;  %v951_v1 = vshll.u32 %v1315_v11, 16  ;;  %v1317_v49 = vld [vmem:[%s2459_s0 + $0x1f0] sm:$0xf] }
  0x6d   :  { %v947_v56 = vrot.slane %v945_v18, 4  ;;  %v2050_v19 = vsel %vm1542_vm2, %v696_v20, %v700_v0  ;;  %v882_v28 = vmax.bf16 %v1314_v60, %v849_v24  ;;  %v938_v34 = vor.u32 %v937_v46, %v934_v8  ;;  %v1318_v20 = vld [vmem:[%s2459_s0 + $0x1f4] sm:$0xf] }
  0x6e   :  { %v955_v14 = vshrl.u32 %v1315_v11, 16  ;;  %v711_v35 = vsel %vm1542_vm2, %v706_v23, %v2030_v54  ;;  %v850_v37 = vmax.bf16 %v2050_v19, %v653_v32  ;;  %v914_v13 = vmax.bf16 %v1329_v25, %v881_v29  ;;  %v1332_v32 = vld [vmem:[%s2459_s0 + $0x23c] sm:$0xf] }
  0x6f   :  { %v948_v4 = vor.u32 %v947_v56, %v943_v58  ;;  %v851_v42 = vmax.bf16 %v711_v35, %v654_v6  ;;  %v915_v9 = vmax.bf16 %v1330_v30, %v882_v28  ;;  %v939_v43 = vrot.slane %v938_v34, 4 }
  0x70   :  { %v953_v44 = vrot.slane %v951_v1, 5  ;;  %v883_v59 = vmax.bf16 %v1315_v11, %v850_v37  ;;  %v957_v47 = vrot.slane %v955_v14, 4  ;;  %v961_v48 = vshll.u32 %v1316_v31, 16 }
  0x71   :  { %v949_v45 = vrot.slane %v948_v4, 4  ;;  %v884_v2 = vmax.bf16 %v1316_v31, %v851_v42  ;;  %v944_v21 = vsel %vm1542_vm2, %v939_v43, %v943_v58  ;;  %v965_v6 = vshrl.u32 %v1316_v31, 16 }
  0x72   :  { %v655_v57 = vmax.bf16 %v2065_v41, %v2013_v40  ;;  %v916_v33 = vmax.bf16 %v1331_v26, %v883_v59  ;;  %v958_v38 = vor.u32 %v957_v47, %v953_v44  ;;  %v963_v60 = vrot.slane %v961_v48, 5  ;;  %v2142_v47 = vld [vmem:[%s2459_s0 + $0x15c] sm:$0xf]  ;;  %v2147_v48 = vld [vmem:[%s2459_s0 + $0x160] sm:$0xf] }
  0x73   :  { %v954_v3 = vsel %vm1542_vm2, %v949_v45, %v953_v44  ;;  %v917_v61 = vmax.bf16 %v1332_v32, %v884_v2  ;;  %v967_v55 = vrot.slane %v965_v6, 4  ;;  %v1111_v63 = vmax.bf16 %v944_v21, %v914_v13  ;;  %v1333_v2 = vld [vmem:[%s2459_s0 + $0x240] sm:$0xf]  ;;  %v1334_v21 = vld [vmem:[%s2459_s0 + $0x244] sm:$0xf] }
  0x74   :  { %v1112_v0 = vmax.bf16 %v954_v3, %v915_v9  ;;  %v656_v39 = vmax.bf16 %v2086_v51, %v2081_v16  ;;  %v712_v5 = vshrl.u32 %v2013_v40, 16  ;;  %v718_v8 = vshll.u32 %v2081_v16, 16 }
  0x75   :  { %v722_v62 = vshrl.u32 %v2081_v16, 16  ;;  %v968_v10 = vor.u32 %v967_v55, %v963_v60  ;;  %v1129_v11 = vmax.bf16 %v1990_v27, %v1111_v63  ;;  %v728_v12 = vshll.u32 %v2095_v52, 16 }
  0x76   :  { %v1130_v7 = vmax.bf16 %v1998_v50, %v1112_v0  ;;  %v714_v15 = vrot.slane %v712_v5, 4  ;;  %v720_v17 = vrot.slane %v718_v8, 5  ;;  %v959_v24 = vrot.slane %v958_v38, 4 }
  0x77   :  { %v724_v18 = vrot.slane %v722_v62, 4  ;;  %v1147_v25 = vmax.bf16 %v1969_v53, %v1129_v11  ;;  %v2113_v46 = vrot.slane %v728_v12, 5  ;;  %v969_v50 = vrot.slane %v968_v10, 4  ;;  %v1319_v11 = vld [vmem:[%s2459_s0 + $0x1f8] sm:$0xf] }
  0x78   :  { %v1148_v27 = vmax.bf16 %v1979_v22, %v1130_v7  ;;  %v715_v58 = vor.u32 %v714_v15, %v2030_v54  ;;  %v964_v29 = vsel %vm1542_vm2, %v959_v24, %v963_v60  ;;  %v971_v30 = vshll.u32 %v1317_v49, 16  ;;  %v2122_v54 = vld [vmem:[%s2459_s0 + $0x1a8] sm:$0xf] }
  0x79   :  { %v725_v23 = vor.u32 %v724_v18, %v720_v17  ;;  %v1192_v56 = vmax.bf16 %v1147_v25, %v2050_v19  ;;  %v975_v31 = vshrl.u32 %v1317_v49, 16  ;;  %v981_v28 = vshll.u32 %v1318_v20, 16  ;;  %v2127_v19 = vld [vmem:[%s2459_s0 + $0x1ac] sm:$0xf] }
  0x7a   :  { %v1193_v1 = vmax.bf16 %v1148_v27, %v711_v35  ;;  %v716_v34 = vrot.slane %v715_v58, 4  ;;  %v973_v53 = vrot.slane %v971_v30, 5  ;;  %v985_v37 = vshrl.u32 %v1318_v20, 16 }
  0x7b   :  { %v726_v14 = vrot.slane %v725_v23, 4  ;;  %v977_v13 = vrot.slane %v975_v31, 4  ;;  %v983_v4 = vrot.slane %v981_v28, 5  ;;  %v1113_v42 = vmax.bf16 %v964_v29, %v916_v33 }
  0x7c   :  { %v1462_v22 = vcombine.low %v1192_v56, %v1193_v1  ;;  %v721_v35 = vsel %vm1542_vm2, %v716_v34, %v720_v17  ;;  %v974_v9 = vsel %vm1542_vm2, %v969_v50, %v973_v53  ;;  %v987_v43 = vrot.slane %v985_v37, 4  ;;  %v2177_v50 = vld [vmem:[%s2459_s0 + $0x1b0] sm:$0xf]  ;;  %v2194_v37 = vld [vmem:[%s2459_s0 + $0x1b4] sm:$0xf] }
  0x7d   :  { %v731_v26 = vsel %vm1542_vm2, %v726_v14, %v2113_v46  ;;  %v852_v44 = vmax.bf16 %v721_v35, %v655_v57  ;;  %v978_v32 = vor.u32 %v977_v13, %v973_v53  ;;  %v1114_v45 = vmax.bf16 %v974_v9, %v917_v61  ;;  %v2189_v53 = vld [vmem:[%s2459_s0 + $0x164] sm:$0xf]  ;;  %v1335_v9 = vld [vmem:[%s2459_s0 + $0x248] sm:$0xf] }
  0x7e   :  { %1463 = vst [vmem:[%s2460_s1 + $0x40] sm:$0xff] %v1462_v22   ;;  %v853_v59 = vmax.bf16 %v731_v26, %v656_v39  ;;  %v988_v6 = vor.u32 %v987_v43, %v983_v4  ;;  %v1131_v57 = vmax.bf16 %v2013_v40, %v1113_v42  ;;  %v657_v33 = vmax.bf16 %v2122_v54, %v2095_v52 }
  0x7f   :  { %v658_v3 = vmax.bf16 %v2127_v19, %v2142_v47  ;;  %v885_v38 = vmax.bf16 %v1317_v49, %v852_v44  ;;  %v1132_v61 = vmax.bf16 %v2081_v16, %v1114_v45  ;;  %v732_v55 = vshrl.u32 %v2095_v52, 16  ;;  %v1320_v16 = vld [vmem:[%s2459_s0 + $0x1fc] sm:$0xf] }
  0x80   :  { %v886_v60 = vmax.bf16 %v1318_v20, %v853_v59  ;;  %v1149_v63 = vmax.bf16 %v2065_v41, %v1131_v57  ;;  %v738_v0 = vshll.u32 %v2142_v47, 16  ;;  %v742_v39 = vshrl.u32 %v2142_v47, 16 }
  0x81   :  { %v748_v40 = vshll.u32 %v2147_v48, 16  ;;  %v918_v5 = vmax.bf16 %v1333_v2, %v885_v38  ;;  %v1150_v62 = vmax.bf16 %v2086_v51, %v1132_v61  ;;  %v734_v10 = vrot.slane %v732_v55, 4  ;;  %v1336_v2 = vld [vmem:[%s2459_s0 + $0x24c] sm:$0xf] }
  0x82   :  { %v919_v8 = vmax.bf16 %v1334_v21, %v886_v60  ;;  %v1194_v41 = vmax.bf16 %v1149_v63, %v721_v35  ;;  %v740_v7 = vrot.slane %v738_v0, 5  ;;  %v744_v12 = vrot.slane %v742_v39, 4  ;;  %v1321_v0 = vld [vmem:[%s2459_s0 + $0x200] sm:$0xf] }
  0x83   :  { %v750_v49 = vrot.slane %v748_v40, 5  ;;  %v1195_v15 = vmax.bf16 %v1150_v62, %v731_v26  ;;  %v735_v17 = vor.u32 %v734_v10, %v2113_v46  ;;  %v979_v18 = vrot.slane %v978_v32, 4  ;;  %v2209_v32 = vld [vmem:[%s2459_s0 + $0x168] sm:$0xf] }
  0x84   :  { %v989_v20 = vrot.slane %v988_v6, 4  ;;  %v745_v24 = vor.u32 %v744_v12, %v740_v7  ;;  %v991_v51 = vshll.u32 %v1319_v11, 16  ;;  %v995_v25 = vshrl.u32 %v1319_v11, 16 }
  0x85   :  { %v1001_v27 = vshll.u32 %v1320_v16, 16  ;;  %v1464_v58 = vcombine.low %v1194_v41, %v1195_v15  ;;  %v736_v23 = vrot.slane %v735_v17, 4  ;;  %v984_v29 = vsel %vm1542_vm2, %v979_v18, %v983_v4 }
  0x86   :  { %v1005_v30 = vshrl.u32 %v1320_v16, 16  ;;  %v746_v56 = vrot.slane %v745_v24, 4  ;;  %v993_v1 = vrot.slane %v991_v51, 5  ;;  %v997_v46 = vrot.slane %v995_v25, 4 }
  0x87   :  { %v1003_v31 = vrot.slane %v1001_v27, 5  ;;  %1465 = vst [vmem:[%s2460_s1 + $0x48] sm:$0xff] %v1464_v58   ;;  %v741_v28 = vsel %vm1542_vm2, %v736_v23, %v740_v7  ;;  %v1115_v14 = vmax.bf16 %v984_v29, %v918_v5  ;;  %v659_v22 = vmax.bf16 %v2177_v50, %v2147_v48  ;;  %v2236_v29 = vld [vmem:[%s2459_s0 + $0x1b8] sm:$0xf] }
  0x88   :  { %v1007_v34 = vrot.slane %v1005_v30, 4  ;;  %v751_v13 = vsel %vm1542_vm2, %v746_v56, %v750_v49  ;;  %v854_v4 = vmax.bf16 %v741_v28, %v657_v33  ;;  %v994_v42 = vsel %vm1542_vm2, %v989_v20, %v993_v1  ;;  %v2241_v30 = vld [vmem:[%s2459_s0 + $0x1bc] sm:$0xf] }
  0x89   :  { %v998_v35 = vor.u32 %v997_v46, %v993_v1  ;;  %v855_v26 = vmax.bf16 %v751_v13, %v658_v3  ;;  %v1116_v44 = vmax.bf16 %v994_v42, %v919_v8  ;;  %v1133_v59 = vmax.bf16 %v2095_v52, %v1115_v14  ;;  %v1337_v14 = vld [vmem:[%s2459_s0 + $0x250] sm:$0xf] }
  0x8a   :  { %v1008_v43 = vor.u32 %v1007_v34, %v1003_v31  ;;  %v887_v45 = vmax.bf16 %v1319_v11, %v854_v4  ;;  %v660_v21 = vmax.bf16 %v2194_v37, %v2189_v53  ;;  %v752_v6 = vshrl.u32 %v2147_v48, 16 }
  0x8b   :  { %v758_v57 = vshll.u32 %v2189_v53, 16  ;;  %v888_v33 = vmax.bf16 %v1320_v16, %v855_v26  ;;  %v1134_v52 = vmax.bf16 %v2142_v47, %v1116_v44  ;;  %v1151_v3 = vmax.bf16 %v2122_v54, %v1133_v59  ;;  %v1322_v54 = vld [vmem:[%s2459_s0 + $0x204] sm:$0xf]  ;;  %v1338_v26 = vld [vmem:[%s2459_s0 + $0x254] sm:$0xf] }
  0x8c   :  { %v762_v38 = vshrl.u32 %v2189_v53, 16  ;;  %v920_v60 = vmax.bf16 %v1335_v9, %v887_v45  ;;  %v754_v61 = vrot.slane %v752_v6, 4  ;;  %v768_v63 = vshll.u32 %v2209_v32, 16 }
  0x8d   :  { %v760_v55 = vrot.slane %v758_v57, 5  ;;  %v921_v39 = vmax.bf16 %v1336_v2, %v888_v33  ;;  %v1152_v40 = vmax.bf16 %v2127_v19, %v1134_v52  ;;  %v1196_v5 = vmax.bf16 %v1151_v3, %v741_v28  ;;  %v2253_v28 = vld [vmem:[%s2459_s0 + $0x16c] sm:$0xf]  ;;  %v1323_v52 = vld [vmem:[%s2459_s0 + $0x208] sm:$0xf] }
  0x8e   :  { %v764_v8 = vrot.slane %v762_v38, 4  ;;  %v755_v47 = vor.u32 %v754_v61, %v750_v49  ;;  %v770_v62 = vrot.slane %v768_v63, 5  ;;  %v999_v10 = vrot.slane %v998_v35, 4 }
  0x8f   :  { %v1009_v11 = vrot.slane %v1008_v43, 4  ;;  %v1197_v16 = vmax.bf16 %v1152_v40, %v751_v13  ;;  %v1011_v7 = vshll.u32 %v1321_v0, 16  ;;  %v1015_v12 = vshrl.u32 %v1321_v0, 16 }
  0x90   :  { %v765_v41 = vor.u32 %v764_v8, %v760_v55  ;;  %v756_v15 = vrot.slane %v755_v47, 4  ;;  %v1004_v17 = vsel %vm1542_vm2, %v999_v10, %v1003_v31  ;;  %v1021_v18 = vshll.u32 %v1322_v54, 16 }
  0x91   :  { %v1025_v19 = vshrl.u32 %v1322_v54, 16  ;;  %v1466_v20 = vcombine.low %v1196_v5, %v1197_v16  ;;  %v1013_v51 = vrot.slane %v1011_v7, 5  ;;  %v1017_v25 = vrot.slane %v1015_v12, 4 }
  0x92   :  { %v766_v24 = vrot.slane %v765_v41, 4  ;;  %v761_v49 = vsel %vm1542_vm2, %v756_v15, %v760_v55  ;;  %v1023_v27 = vrot.slane %v1021_v18, 5  ;;  %v1117_v23 = vmax.bf16 %v1004_v17, %v920_v60 }
  0x93   :  { %v1027_v58 = vrot.slane %v1025_v19, 4  ;;  %1467 = vst [vmem:[%s2460_s1 + $0x50] sm:$0xff] %v1466_v20   ;;  %v856_v1 = vmax.bf16 %v761_v49, %v659_v22  ;;  %v1014_v46 = vsel %vm1542_vm2, %v1009_v11, %v1013_v51  ;;  %v1018_v31 = vor.u32 %v1017_v25, %v1013_v51  ;;  %v2262_v22 = vld [vmem:[%s2459_s0 + $0x170] sm:$0xf]  ;;  %v2298_v19 = vld [vmem:[%s2459_s0 + $0x1c4] sm:$0xf] }
  0x94   :  { %v771_v56 = vsel %vm1542_vm2, %v766_v24, %v770_v62  ;;  %v1118_v4 = vmax.bf16 %v1014_v46, %v921_v39  ;;  %v1135_v42 = vmax.bf16 %v2147_v48, %v1117_v23  ;;  %v661_v9 = vmax.bf16 %v2236_v29, %v2209_v32 }
  0x95   :  { %v857_v34 = vmax.bf16 %v771_v56, %v660_v21  ;;  %v1028_v13 = vor.u32 %v1027_v58, %v1023_v27  ;;  %v889_v35 = vmax.bf16 %v1321_v0, %v856_v1  ;;  %v662_v43 = vmax.bf16 %v2241_v30, %v2253_v28  ;;  %v1339_v58 = vld [vmem:[%s2459_s0 + $0x258] sm:$0xf] }
  0x96   :  { %v772_v44 = vshrl.u32 %v2209_v32, 16  ;;  %v1136_v48 = vmax.bf16 %v2189_v53, %v1118_v4  ;;  %v1153_v45 = vmax.bf16 %v2177_v50, %v1135_v42  ;;  %v778_v2 = vshll.u32 %v2253_v28, 16  ;;  %v1324_v50 = vld [vmem:[%s2459_s0 + $0x20c] sm:$0xf]  ;;  %v2320_v1 = vld [vmem:[%s2459_s0 + $0x178] sm:$0xf] }
  0x97   :  { %v890_v59 = vmax.bf16 %v1322_v54, %v857_v34  ;;  %v922_v21 = vmax.bf16 %v1337_v14, %v889_v35  ;;  %v782_v57 = vshrl.u32 %v2253_v28, 16  ;;  %v788_v33 = vshll.u32 %v2262_v22, 16  ;;  %v1340_v4 = vld [vmem:[%s2459_s0 + $0x25c] sm:$0xf] }
  0x98   :  { %v774_v6 = vrot.slane %v772_v44, 4  ;;  %v1154_v38 = vmax.bf16 %v2194_v37, %v1136_v48  ;;  %v1198_v60 = vmax.bf16 %v1153_v45, %v761_v49  ;;  %v780_v61 = vrot.slane %v778_v2, 5  ;;  %v2308_v49 = vld [vmem:[%s2459_s0 + $0x174] sm:$0xf]  ;;  %v1325_v48 = vld [vmem:[%s2459_s0 + $0x210] sm:$0xf] }
  0x99   :  { %v923_v3 = vmax.bf16 %v1338_v26, %v890_v59  ;;  %v784_v55 = vrot.slane %v782_v57, 4  ;;  %v2284_v63 = vrot.slane %v788_v33, 5  ;;  %v1019_v0 = vrot.slane %v1018_v31, 4 }
  0x9a   :  { %v775_v53 = vor.u32 %v774_v6, %v770_v62  ;;  %v1199_v39 = vmax.bf16 %v1154_v38, %v771_v56  ;;  %v1029_v40 = vrot.slane %v1028_v13, 4  ;;  %v1031_v5 = vshll.u32 %v1323_v52, 16  ;;  %v2291_v62 = vld [vmem:[%s2459_s0 + $0x1c0] sm:$0xf] }
  0x9b   :  { %v1035_v8 = vshrl.u32 %v1323_v52, 16  ;;  %v785_v47 = vor.u32 %v784_v55, %v780_v61  ;;  %v1024_v37 = vsel %vm1542_vm2, %v1019_v0, %v1023_v27  ;;  %v1041_v10 = vshll.u32 %v1324_v50, 16  ;;  %v2350_v0 = vld [vmem:[%s2459_s0 + $0x1c8] sm:$0xf] }
  0x9c   :  { %v776_v54 = vrot.slane %v775_v53, 4  ;;  %v1468_v11 = vcombine.low %v1198_v60, %v1199_v39  ;;  %v1033_v16 = vrot.slane %v1031_v5, 5  ;;  %v1045_v7 = vshrl.u32 %v1324_v50, 16 }
  0x9d   :  { %v1037_v41 = vrot.slane %v1035_v8, 4  ;;  %v786_v15 = vrot.slane %v785_v47, 4  ;;  %v1043_v17 = vrot.slane %v1041_v10, 5  ;;  %v1119_v18 = vmax.bf16 %v1024_v37, %v922_v21  ;;  %v2355_v10 = vld [vmem:[%s2459_s0 + $0x1cc] sm:$0xf] }
  0x9e   :  { %v781_v12 = vsel %vm1542_vm2, %v776_v54, %v780_v61  ;;  %1469 = vst [vmem:[%s2460_s1 + $0x58] sm:$0xff] %v1468_v11   ;;  %v1034_v24 = vsel %vm1542_vm2, %v1029_v40, %v1033_v16  ;;  %v1047_v25 = vrot.slane %v1045_v7, 4  ;;  %v663_v46 = vmax.bf16 %v2291_v62, %v2262_v22  ;;  %v2367_v7 = vld [vmem:[%s2459_s0 + $0x17c] sm:$0xf] }
  0x9f   :  { %v858_v20 = vmax.bf16 %v781_v12, %v661_v9  ;;  %v1038_v51 = vor.u32 %v1037_v41, %v1033_v16  ;;  %v791_v27 = vsel %vm1542_vm2, %v786_v15, %v2284_v63  ;;  %v1120_v23 = vmax.bf16 %v1034_v24, %v923_v3  ;;  %v1312_v24 = vld [vmem:[%s2459_s0 + $0x180] sm:$0x1] }
  0xa0   :  { %v1137_v56 = vmax.bf16 %v2209_v32, %v1119_v18  ;;  %v859_v31 = vmax.bf16 %v791_v27, %v662_v43  ;;  %v1048_v14 = vor.u32 %v1047_v25, %v1043_v17  ;;  %v664_v13 = vmax.bf16 %v2298_v19, %v2308_v49  ;;  %v1341_v25 = vld [vmem:[%s2459_s0 + $0x260] sm:$0xf] }
  0xa1   :  { %v891_v34 = vmax.bf16 %v1323_v52, %v858_v20  ;;  %v1138_v32 = vmax.bf16 %v2253_v28, %v1120_v23  ;;  %v792_v35 = vshrl.u32 %v2262_v22, 16  ;;  %v798_v26 = vshll.u32 %v2308_v49, 16 }
  0xa2   :  { %v1155_v42 = vmax.bf16 %v2236_v29, %v1137_v56  ;;  %v892_v9 = vmax.bf16 %v1324_v50, %v859_v31  ;;  %v802_v43 = vshrl.u32 %v2308_v49, 16  ;;  %v808_v59 = vshll.u32 %v2320_v1, 16  ;;  %v1326_v29 = vld [vmem:[%s2459_s0 + $0x214] sm:$0xf] }
  0xa3   :  { %v924_v44 = vmax.bf16 %v1339_v58, %v891_v34  ;;  %v1156_v45 = vmax.bf16 %v2241_v30, %v1138_v32  ;;  %v794_v28 = vrot.slane %v792_v35, 4  ;;  %v800_v21 = vrot.slane %v798_v26, 5 }
  0xa4   :  { %v1200_v2 = vmax.bf16 %v1155_v42, %v781_v12  ;;  %v925_v6 = vmax.bf16 %v1340_v4, %v892_v9  ;;  %v804_v57 = vrot.slane %v802_v43, 4  ;;  %v2342_v33 = vrot.slane %v808_v59, 5 }
  0xa5   :  { %v1039_v52 = vrot.slane %v1038_v51, 4  ;;  %v1201_v3 = vmax.bf16 %v1156_v45, %v791_v27  ;;  %v795_v38 = vor.u32 %v794_v28, %v2284_v63  ;;  %v1049_v60 = vrot.slane %v1048_v14, 4  ;;  %v2401_v45 = vld [vmem:[%s2459_s0 + $0x180] sm:$0xf] }
  0xa6   :  { %v1051_v61 = vshll.u32 %v1325_v48, 16  ;;  %v805_v50 = vor.u32 %v804_v57, %v800_v21  ;;  %v1055_v53 = vshrl.u32 %v1325_v48, 16  ;;  %v1061_v55 = vshll.u32 %v1326_v29, 16 }
  0xa7   :  { %v1044_v30 = vsel %vm1542_vm2, %v1039_v52, %v1043_v17  ;;  %v1470_v39 = vcombine.low %v1200_v2, %v1201_v3  ;;  %v796_v40 = vrot.slane %v795_v38, 4  ;;  %v1065_v8 = vshrl.u32 %v1326_v29, 16 }
  0xa8   :  { %v1053_v5 = vrot.slane %v1051_v61, 5  ;;  %v806_v54 = vrot.slane %v805_v50, 4  ;;  %v1057_v47 = vrot.slane %v1055_v53, 4  ;;  %v1063_v63 = vrot.slane %v1061_v55, 5 }
  0xa9   :  { %v1121_v37 = vmax.bf16 %v1044_v30, %v924_v44  ;;  %1471 = vst [vmem:[%s2460_s1 + $0x60] sm:$0xff] %v1470_v39   ;;  %v801_v11 = vsel %vm1542_vm2, %v796_v40, %v800_v21  ;;  %v1067_v41 = vrot.slane %v1065_v8, 4  ;;  %v665_v12 = vmax.bf16 %v2350_v0, %v2320_v1  ;;  %v1327_v44 = vld [vmem:[%s2459_s0 + $0x218] sm:$0xf] }
  0xaa   :  { %v1054_v16 = vsel %vm1542_vm2, %v1049_v60, %v1053_v5  ;;  %v811_v15 = vsel %vm1542_vm2, %v806_v54, %v2342_v33  ;;  %v860_v17 = vmax.bf16 %v801_v11, %v663_v46  ;;  %v1058_v18 = vor.u32 %v1057_v47, %v1053_v5  ;;  %v1342_v46 = vld [vmem:[%s2459_s0 + $0x264] sm:$0xf]  ;;  %v1345_v5 = vld [vmem:[%s2459_s0 + $0x220] sm:$0x1] }
  0xab   :  { %v1122_v20 = vmax.bf16 %v1054_v16, %v925_v6  ;;  %v861_v51 = vmax.bf16 %v811_v15, %v664_v13  ;;  %v1068_v27 = vor.u32 %v1067_v41, %v1063_v63  ;;  %v1139_v58 = vmax.bf16 %v2262_v22, %v1121_v37  ;;  %v1343_v16 = vld [vmem:[%s2459_s0 + $0x268] sm:$0xf] }
  0xac   :  { %v666_v23 = vmax.bf16 %v2355_v10, %v2367_v7  ;;  %v893_v56 = vmax.bf16 %v1325_v48, %v860_v17  ;;  %v812_v34 = vshrl.u32 %v2320_v1, 16  ;;  %v818_v14 = vshll.u32 %v2367_v7, 16 }
  0xad   :  { %v1140_v31 = vmax.bf16 %v2308_v49, %v1122_v20  ;;  %v894_v13 = vmax.bf16 %v1326_v29, %v861_v51  ;;  %v1157_v4 = vmax.bf16 %v2291_v62, %v1139_v58  ;;  %v822_v32 = vshrl.u32 %v2367_v7, 16  ;;  %v1328_v49 = vld [vmem:[%s2459_s0 + $0x21c] sm:$0xf] }
  0xae   :  { %v828_v22 = vshll.u32 %v1312_v24, 16  ;;  %v926_v42 = vmax.bf16 %v1341_v25, %v893_v56  ;;  %v814_v26 = vrot.slane %v812_v34, 4  ;;  %v820_v9 = vrot.slane %v818_v14, 5  ;;  %v1350_v14 = vld [vmem:[%s2459_s0 + $0x188] sm:$0x1] }
  0xaf   :  { %v1158_v35 = vmax.bf16 %v2298_v19, %v1140_v31  ;;  %v927_v43 = vmax.bf16 %v1342_v46, %v894_v13  ;;  %v1202_v59 = vmax.bf16 %v1157_v4, %v801_v11  ;;  %v824_v48 = vrot.slane %v822_v32, 4 }
  0xb0   :  { %v830_v62 = vrot.slane %v828_v22, 5  ;;  %v815_v2 = vor.u32 %v814_v26, %v2342_v33  ;;  %v1059_v28 = vrot.slane %v1058_v18, 4  ;;  %v1069_v21 = vrot.slane %v1068_v27, 4 }
  0xb1   :  { %v1203_v19 = vmax.bf16 %v1158_v35, %v811_v15  ;;  %v825_v29 = vor.u32 %v824_v48, %v820_v9  ;;  %v1071_v6 = vshll.u32 %v1327_v44, 16  ;;  %v1075_v57 = vshrl.u32 %v1327_v44, 16 }
  0xb2   :  { %v1085_v52 = vshrl.u32 %v1328_v49, 16  ;;  %v816_v38 = vrot.slane %v815_v2, 4  ;;  %v1064_v60 = vsel %vm1542_vm2, %v1059_v28, %v1063_v63  ;;  %v1165_v61 = vshll.u32 %v2401_v45, 16  ;;  %v1349_v28 = vld [vmem:[%s2459_s0 + $0x1d4] sm:$0xf] }
  0xb3   :  { %v1472_v3 = vcombine.low %v1202_v59, %v1203_v19  ;;  %v826_v50 = vrot.slane %v825_v29, 4  ;;  %v1073_v30 = vrot.slane %v1071_v6, 5  ;;  %v1077_v53 = vrot.slane %v1075_v57, 4 }
  0xb4   :  { %v1087_v55 = vrot.slane %v1085_v52, 4  ;;  %v821_v33 = vsel %vm1542_vm2, %v816_v38, %v820_v9  ;;  %v1123_v39 = vmax.bf16 %v1064_v60, %v926_v42  ;;  %v1167_v40 = vrot.slane %v1165_v61, 5  ;;  %v1348_v9 = vld [vmem:[%s2459_s0 + $0x1d0] sm:$0xf] }
  0xb5   :  { %1473 = vst [vmem:[%s2460_s1 + $0x68] sm:$0xff] %v1472_v3   ;;  %v1081_v8 = vshll.u32 %v1328_v49, 16  ;;  %v831_v54 = vsel %vm1542_vm2, %v826_v50, %v830_v62  ;;  %v862_v47 = vmax.bf16 %v821_v33, %v665_v12  ;;  %v1074_v63 = vsel %vm1542_vm2, %v1069_v21, %v1073_v30  ;;  %v1344_v12 = vld [vmem:[%s2459_s0 + $0x26c] sm:$0xf] }
  0xb6   :  { %v1078_v37 = vor.u32 %v1077_v53, %v1073_v30  ;;  %v863_v11 = vmax.bf16 %v831_v54, %v666_v23  ;;  %v1124_v41 = vmax.bf16 %v1074_v63, %v927_v43  ;;  %v1141_v15 = vmax.bf16 %v2320_v1, %v1123_v39  ;;  %v1347_v1 = vld [vmem:[%s2459_s0 + $0x184] sm:$0xf] }
  0xb7   :  { %v1168_v17 = vsel %vm1542_vm2, %v826_v50, %v1167_v40  ;;  %v895_v18 = vmax.bf16 %v1327_v44, %v862_v47  ;;  %v1083_v24 = vrot.slane %v1081_v8, 5  ;;  %v1091_v51 = vshll.u32 %v1345_v5, 16 }
  0xb8   :  { %v1079_v20 = vrot.slane %v1078_v37, 4  ;;  %v896_v25 = vmax.bf16 %v1328_v49, %v863_v11  ;;  %v1142_v27 = vmax.bf16 %v2367_v7, %v1124_v41  ;;  %v1159_v58 = vmax.bf16 %v2350_v0, %v1141_v15 }
  0xb9   :  { %v1169_v23 = vshrl.u32 %v2401_v45, 16  ;;  %v928_v56 = vmax.bf16 %v1343_v16, %v895_v18  ;;  %v1088_v31 = vor.u32 %v1087_v55, %v1083_v24  ;;  %v1093_v34 = vrot.slane %v1091_v51, 5 }
  0xba   :  { %v1084_v46 = vsel %vm1542_vm2, %v1079_v20, %v1083_v24  ;;  %v1160_v7 = vmax.bf16 %v2355_v10, %v1142_v27  ;;  %v1204_v13 = vmax.bf16 %v1159_v58, %v821_v33  ;;  %v929_v0 = vmax.bf16 %v1344_v12, %v896_v25 }
  0xbb   :  { %v1171_v4 = vrot.slane %v1169_v23, 4  ;;  %v1089_v32 = vrot.slane %v1088_v31, 4  ;;  %v1125_v22 = vmax.bf16 %v1084_v46, %v928_v56  ;;  %v1175_v42 = vshll.u32 %v1347_v1, 16 }
  0xbc   :  { %v1179_v35 = vshrl.u32 %v1347_v1, 16  ;;  %v1205_v26 = vmax.bf16 %v1168_v17, %v1160_v7  ;;  %v1185_v49 = vshll.u32 %v1350_v14, 16 }
  0xbd   :  { %v1172_v44 = vor.u32 %v1171_v4, %v1167_v40  ;;  %v1094_v43 = vsel %vm1542_vm2, %v1089_v32, %v1093_v34  ;;  %v1143_v59 = vmax.bf16 %v2401_v45, %v1125_v22  ;;  %v1177_v10 = vrot.slane %v1175_v42, 5 }
  0xbe   :  { %v1181_v48 = vrot.slane %v1179_v35, 4  ;;  %v1474_v62 = vcombine.low %v1204_v13, %v1205_v26  ;;  %v1126_v19 = vmax.bf16 %v1094_v43, %v929_v0  ;;  %v1187_v6 = vrot.slane %v1185_v49, 5 }
  0xbf   :  { %v1173_v2 = vrot.slane %v1172_v44, 4  ;;  %v1161_v21 = vmax.bf16 %v1348_v9, %v1143_v59 }
  0xc0   :  { %v1182_v29 = vor.u32 %v1181_v48, %v1177_v10  ;;  %1475 = vst [vmem:[%s2460_s1 + $0x70] sm:$0xff] %v1474_v62   ;;  %v1144_v57 = vmax.bf16 %v1347_v1, %v1126_v19 }
  0xc1   :  { %v1178_v45 = vsel %vm1542_vm2, %v1173_v2, %v1177_v10 }
  0xc2   :  { %v1183_v52 = vrot.slane %v1182_v29, 4  ;;  %v1162_v3 = vmax.bf16 %v1349_v28, %v1144_v57  ;;  %v1206_v38 = vmax.bf16 %v1178_v45, %v1161_v21 }
  0xc4   :  { %v1188_v60 = vsel %vm1542_vm2, %v1183_v52, %v1187_v6 }
  0xc5   :  { %v1207_v61 = vmax.bf16 %v1188_v60, %v1162_v3 }
  0xc7   :  { %v1476_v50 = vcombine.low %v1206_v38, %v1207_v61 }
  0xc9   :  { %1477 = vst [vmem:[%s2460_s1 + $0x78] sm:$0xff] %v1476_v50  }

// kernel: _lambda_.13
= control target key start
LH: loop header
LB: loop body
LE: loop exit
PB: predicated region body
PF: predicated region fallthrough
CT: control target
= control target key end

     0   :  { %v625_v1 = vmov 0   ;;  %s798_s1 = inlined_call_operand.vmem [shape: bf16[128,128], index: 1, kind: input, shape index: {}]   ;;  %s799_s4 = inlined_call_operand.<no memory space> [shape: f32[1,1], index: 4, kind: input, shape index: {}]   ;;  %s800_s0 = inlined_call_operand.vmem [shape: bf16[2,1,72,128], index: 0, kind: input, shape index: {}]   ;;  %s801_s2 = inlined_call_operand.vmem [shape: f32[1,128], index: 2, kind: input, shape index: {}]   ;;  %s802_s3 = inlined_call_operand.vmem [shape: f32[1,128], index: 3, kind: input, shape index: {}]   ;;  %s803_s5 = inlined_call_operand.vmem [shape: bf16[128,128], index: 5, kind: output, shape index: {}]  }
   0x1   :  { %v609_v0 = vld [vmem:[%s798_s1] sm:$0xff]   ;;  %608 = vset.pattern.permute.xlu0 %v625_v1  ;;  %v10_v2 = vstv %s799_s4  ;;  %v610_v3 = vld [vmem:[%s798_s1 + $0x8] sm:$0xff]   ;;  %v611_v4 = vld [vmem:[%s798_s1 + $0x10] sm:$0xff]  }
   0x2   :  { %11 = vst [vmem:[#allocation2] sm:$0x1] %v10_v2  ;;  %559 = vmatprep.subr.bf16.mxu0 %v609_v0  ;;  %591 = vmatprep.subr.bf16.mxu1 %v609_v0  ;;  %v612_v5 = vld [vmem:[%s798_s1 + $0x18] sm:$0xff]   ;;  %v617_v6 = vld [vmem:[%s800_s0] sm:$0xff]   ;;  %v614_v9 = vld [vmem:[%s798_s1 + $0x28] sm:$0xff]  }
   0x3   :  { %560 = vmatpush3.bf16.msra.mxu0 %v609_v0  ;;  %599 = vmatpush3.bf16.msra.mxu1 %v609_v0  ;;  %v618_v7 = vld [vmem:[%s800_s0 + $0x24] sm:$0xff]   ;;  %v615_v11 = vld [vmem:[%s798_s1 + $0x30] sm:$0xff]   ;;  %v616_v12 = vld [vmem:[%s798_s1 + $0x38] sm:$0xff]  }
   0x4   :  { %561 = vmatprep.subr.bf16.mxu0 %v610_v3  ;;  %592 = vmatprep.subr.bf16.mxu1 %v610_v3  ;;  %v613_v8 = vld [vmem:[%s798_s1 + $0x20] sm:$0xff]   ;;  %v619_v13 = vld [vmem:[%s800_s0 + $0x8] sm:$0xff]   ;;  %v621_v15 = vld [vmem:[%s800_s0 + $0x10] sm:$0xff]  }
   0x5   :  { %575 = vmatprep.mubr.bf16.mxu0 %v617_v6  ;;  %583 = vmatprep.mubr.bf16.mxu1 %v618_v7  ;;  %v620_v14 = vld [vmem:[%s800_s0 + $0x2c] sm:$0xff]   ;;  %v622_v16 = vld [vmem:[%s800_s0 + $0x34] sm:$0xff]   ;;  %v624_v18 = vld [vmem:[%s800_s0 + $0x3c] sm:$0xff]  }
   0x6   :  { %v623_v17 = vld [vmem:[%s800_s0 + $0x18] sm:$0xff]   ;;  %v710_v19 = vld [vmem:[%s801_s2] ss:$0 sm:$0xff] }
   0x7   :  { %562 = vmatpush3.bf16.msra.mxu0 %v610_v3  ;;  %600 = vmatpush3.bf16.msra.mxu1 %v610_v3  ;;  %v715_v21 = vld [vmem:[%s802_s3] ss:$0 sm:$0xff] }
   0x8   :  { %563 = vmatprep.subr.bf16.mxu0 %v611_v4  ;;  %593 = vmatprep.subr.bf16.mxu1 %v611_v4 }
   0x9   :  { %v463_v10 = vld [vmem:[#allocation2] ss:$0 sm:$0xff] }
   0xa   :  { %318 = vperm.xlu0 %608, %v463_v10  }
   0xb   :  { %564 = vmatpush3.bf16.msra.mxu0 %v611_v4  ;;  %601 = vmatpush3.bf16.msra.mxu1 %v611_v4 }
   0xc   :  { %565 = vmatprep.subr.bf16.mxu0 %v612_v5  ;;  %594 = vmatprep.subr.bf16.mxu1 %v612_v5 }
   0xf   :  { %566 = vmatpush3.bf16.msra.mxu0 %v612_v5  ;;  %602 = vmatpush3.bf16.msra.mxu1 %v612_v5 }
  0x10   :  { %567 = vmatprep.subr.bf16.mxu0 %v613_v8  ;;  %595 = vmatprep.subr.bf16.mxu1 %v613_v8 }
  0x13   :  { %568 = vmatpush3.bf16.msra.mxu0 %v613_v8  ;;  %603 = vmatpush3.bf16.msra.mxu1 %v613_v8 }
  0x14   :  { %569 = vmatprep.subr.bf16.mxu0 %v614_v9  ;;  %596 = vmatprep.subr.bf16.mxu1 %v614_v9 }
  0x17   :  { %570 = vmatpush3.bf16.msra.mxu0 %v614_v9  ;;  %604 = vmatpush3.bf16.msra.mxu1 %v614_v9 }
  0x18   :  { %571 = vmatprep.subr.bf16.mxu0 %v615_v11  ;;  %597 = vmatprep.subr.bf16.mxu1 %v615_v11 }
  0x1b   :  { %572 = vmatpush3.bf16.msra.mxu0 %v615_v11  ;;  %605 = vmatpush3.bf16.msra.mxu1 %v615_v11 }
  0x1c   :  { %573 = vmatprep.subr.bf16.mxu0 %v616_v12  ;;  %598 = vmatprep.subr.bf16.mxu1 %v616_v12 }
  0x1f   :  { %574 = vmatpush3.bf16.msra.mxu0 %v616_v12  ;;  %606 = vmatpush3.bf16.msra.mxu1 %v616_v12 }
  0x22   :  { %576 = vmatmul.mubr.bf16.vlgmr.msra.gmra.mrb[0].mxu0 %v619_v13  ;;  %584 = vmatmul.mubr.bf16.vlgmr.msra.gmra.mrb[0].mxu1 %v620_v14 }
  0x23   :  { %579 = vmatprep.mubr.bf16.mxu0 %v621_v15  ;;  %587 = vmatprep.mubr.bf16.mxu1 %v622_v16 }
  0x2a   :  { %580 = vmatmul.mubr.bf16.gmra.mrb[4].mxu0 %v623_v17  ;;  %588 = vmatmul.mubr.bf16.gmra.mrb[4].mxu1 %v624_v18 }
  0x89   :  { %v731_v43 = vpop.permute.xlu0 %318 }
  0xf5   :  { %v577_v20 = vpop.f32.mrb[0].mxu0  ;;  %v585_v22 = vpop.f32.mrb[0].mxu1 }
  0xf6   :  { %v258_v23 = vmul.f32 %v577_v20, %v710_v19  ;;  %v266_v24 = vmul.f32 %v585_v22, %v710_v19  ;;  %v186_v25 = vpop.f32.mrb[1].mxu0  ;;  %v218_v26 = vpop.f32.mrb[1].mxu1 }
  0xf7   :  { %v256_v27 = vmul.f32 %v710_v19, %v186_v25  ;;  %v264_v28 = vmul.f32 %v710_v19, %v218_v26  ;;  %v578_v29 = vpop.f32.mrb[2].mxu0  ;;  %v586_v30 = vpop.f32.mrb[2].mxu1 }
  0xf8   :  { %v281_v31 = vadd.f32 %v715_v21, %v258_v23  ;;  %v289_v32 = vadd.f32 %v715_v21, %v266_v24  ;;  %v259_v33 = vmul.f32 %v578_v29, %v710_v19  ;;  %v189_v34 = vpop.f32.mrb[3].mxu0  ;;  %v221_v35 = vpop.f32.mrb[3].mxu1  ;;  %v267_v37 = vmul.f32 %v586_v30, %v710_v19 }
  0xf9   :  { %v279_v36 = vadd.f32 %v715_v21, %v256_v27  ;;  %v257_v38 = vmul.f32 %v710_v19, %v189_v34  ;;  %v265_v39 = vmul.f32 %v710_v19, %v221_v35  ;;  %v287_v40 = vadd.f32 %v715_v21, %v264_v28 }
  0xfa   :  { %v282_v41 = vadd.f32 %v715_v21, %v259_v33  ;;  %vm298_vm0 = vcmp.ge.f32.partialorder %v281_v31, 0.0  ;;  %vm306_vm1 = vcmp.ge.f32.partialorder %v289_v32, 0.0  ;;  %v290_v44 = vadd.f32 %v715_v21, %v267_v37 }
  0xfb   :  { %v280_v42 = vadd.f32 %v715_v21, %v257_v38  ;;  %vm296_vm2 = vcmp.ge.f32.partialorder %v279_v36, 0.0  ;;  %v288_v45 = vadd.f32 %v715_v21, %v265_v39  ;;  %vm304_vm3 = vcmp.ge.f32.partialorder %v287_v40, 0.0 }
  0xfc   :  { %vm299_vm4 = vcmp.ge.f32.partialorder %v282_v41, 0.0  ;;  %v321_v51 = vmul.f32 %v731_v43, %v279_v36  ;;  %v323_v56 = vmul.f32 %v731_v43, %v281_v31  ;;  %v324_v61 = vmul.f32 %v731_v43, %v282_v41 }
  0xfd   :  { %v581_v46 = vpop.f32.mrb[4].mxu0  ;;  %v589_v47 = vpop.f32.mrb[4].mxu1  ;;  %v322_v55 = vmul.f32 %v731_v43, %v280_v42  ;;  %vm297_vm5 = vcmp.ge.f32.partialorder %v280_v42, 0.0  ;;  %vm305_vm6 = vcmp.ge.f32.partialorder %v288_v45, 0.0  ;;  %v329_v0 = vmul.f32 %v731_v43, %v287_v40 }
  0xfe   :  { %v262_v48 = vmul.f32 %v581_v46, %v710_v19  ;;  %v202_v49 = vpop.f32.mrb[5].mxu0  ;;  %v234_v50 = vpop.f32.mrb[5].mxu1  ;;  %v270_v52 = vmul.f32 %v589_v47, %v710_v19  ;;  %v330_v1 = vmul.f32 %v731_v43, %v288_v45  ;;  %v331_v3 = vmul.f32 %v731_v43, %v289_v32 }
  0xff   :  { %v260_v53 = vmul.f32 %v710_v19, %v202_v49  ;;  %v582_v54 = vpop.f32.mrb[6].mxu0  ;;  %v590_v57 = vpop.f32.mrb[6].mxu1  ;;  %v268_v59 = vmul.f32 %v710_v19, %v234_v50  ;;  %v332_v4 = vmul.f32 %v731_v43, %v290_v44  ;;  %vm307_vm8 = vcmp.ge.f32.partialorder %v290_v44, 0.0 }
 0x100   :  { %v285_v58 = vadd.f32 %v715_v21, %v262_v48  ;;  %v263_v60 = vmul.f32 %v582_v54, %v710_v19  ;;  %v205_v62 = vpop.f32.mrb[7].mxu0  ;;  %v237_v63 = vpop.f32.mrb[7].mxu1  ;;  %v293_v5 = vadd.f32 %v715_v21, %v270_v52  ;;  %v337_v7 = vsel %vm296_vm2, %v279_v36, %v321_v51 }
 0x101   :  { %v283_v6 = vadd.f32 %v715_v21, %v260_v53  ;;  %v291_v8 = vadd.f32 %v715_v21, %v268_v59  ;;  %v338_v10 = vsel %vm297_vm5, %v280_v42, %v322_v55  ;;  %v340_v11 = vsel %vm299_vm4, %v282_v41, %v324_v61 }
 0x102   :  { %vm302_vm7 = vcmp.ge.f32.partialorder %v285_v58, 0.0  ;;  %v327_v2 = vmul.f32 %v731_v43, %v285_v58  ;;  %v286_v9 = vadd.f32 %v715_v21, %v263_v60  ;;  %v339_v13 = vsel %vm298_vm0, %v281_v31, %v323_v56 }
 0x103   :  { %v345_v14 = vsel %vm304_vm3, %v287_v40, %v329_v0  ;;  %v346_v15 = vsel %vm305_vm6, %v288_v45, %v330_v1  ;;  %v347_v17 = vsel %vm306_vm1, %v289_v32, %v331_v3  ;;  %v348_v18 = vsel %vm307_vm8, %v290_v44, %v332_v4 }
 0x104   :  { %v343_v12 = vsel %vm302_vm7, %v285_v58, %v327_v2  ;;  %vm303_vm9 = vcmp.ge.f32.partialorder %v286_v9, 0.0  ;;  %v328_v16 = vmul.f32 %v731_v43, %v286_v9  ;;  %v499_v20 = vpack.c.bf16 %v338_v10, %v337_v7 }
 0x105   :  { %v504_v22 = vpack.c.bf16 %v340_v11, %v339_v13  ;;  %v519_v23 = vpack.c.bf16 %v346_v15, %v345_v14  ;;  %v524_v24 = vpack.c.bf16 %v348_v18, %v347_v17  ;;  %v271_v26 = vmul.f32 %v590_v57, %v710_v19 }
 0x106   :  { %v344_v25 = vsel %vm303_vm9, %v286_v9, %v328_v16  ;;  %v261_v27 = vmul.f32 %v710_v19, %v205_v62  ;;  %v269_v28 = vmul.f32 %v710_v19, %v237_v63  ;;  %v335_v29 = vmul.f32 %v731_v43, %v293_v5  ;;  %500 = vst [vmem:[%s803_s5] sm:$0xff] %v499_v20  }
 0x107   :  { %536 = vst [vmem:[%s803_s5 + $0x8] sm:$0xff] %v504_v22   ;;  %v514_v30 = vpack.c.bf16 %v344_v25, %v343_v12  ;;  %539 = vst [vmem:[%s803_s5 + $0x20] sm:$0xff] %v519_v23   ;;  %v325_v19 = vmul.f32 %v731_v43, %v283_v6  ;;  %v294_v31 = vadd.f32 %v715_v21, %v271_v26  ;;  %vm310_vm10 = vcmp.ge.f32.partialorder %v293_v5, 0.0 }
 0x108   :  { %540 = vst [vmem:[%s803_s5 + $0x28] sm:$0xff] %v524_v24   ;;  %v284_v32 = vadd.f32 %v715_v21, %v261_v27  ;;  %v292_v33 = vadd.f32 %v715_v21, %v269_v28  ;;  %vm300_vm11 = vcmp.ge.f32.partialorder %v283_v6, 0.0  ;;  %vm308_vm12 = vcmp.ge.f32.partialorder %v291_v8, 0.0 }
 0x109   :  { %v333_v34 = vmul.f32 %v731_v43, %v291_v8  ;;  %538 = vst [vmem:[%s803_s5 + $0x18] sm:$0xff] %v514_v30   ;;  %vm311_vm13 = vcmp.ge.f32.partialorder %v294_v31, 0.0  ;;  %v336_v35 = vmul.f32 %v731_v43, %v294_v31  ;;  %v351_v38 = vsel %vm310_vm10, %v293_v5, %v335_v29 }
 0x10a   :  { %vm301_vm14 = vcmp.ge.f32.partialorder %v284_v32, 0.0  ;;  %v326_v36 = vmul.f32 %v731_v43, %v284_v32  ;;  %vm309_vm15 = vcmp.ge.f32.partialorder %v292_v33, 0.0  ;;  %v334_v37 = vmul.f32 %v731_v43, %v292_v33 }
 0x10b   :  { %v341_v21 = vsel %vm300_vm11, %v283_v6, %v325_v19  ;;  %v352_v39 = vsel %vm311_vm13, %v294_v31, %v336_v35  ;;  %v349_v41 = vsel %vm308_vm12, %v291_v8, %v333_v34 }
 0x10c   :  { %v342_v40 = vsel %vm301_vm14, %v284_v32, %v326_v36  ;;  %v534_v42 = vpack.c.bf16 %v352_v39, %v351_v38  ;;  %v350_v45 = vsel %vm309_vm15, %v292_v33, %v334_v37 }
 0x10d   :  { %v509_v44 = vpack.c.bf16 %v342_v40, %v341_v21  ;;  %v529_v46 = vpack.c.bf16 %v350_v45, %v349_v41 }
 0x10e   :  { %542 = vst [vmem:[%s803_s5 + $0x38] sm:$0xff] %v534_v42  }
 0x10f   :  { %537 = vst [vmem:[%s803_s5 + $0x10] sm:$0xff] %v509_v44   ;;  %541 = vst [vmem:[%s803_s5 + $0x30] sm:$0xff] %v529_v46  }

// kernel: _lambda_.11
= control target key start
LH: loop header
LB: loop body
LE: loop exit
PB: predicated region body
PF: predicated region fallthrough
CT: control target
= control target key end

     0   :  { %vm100_vm0 = vsmask.f32 7424  ;;  %vm180_vm1 = vcmask 1046528   ;;  %s4482_s1 = inlined_call_operand.vmem [shape: bf16[1152,128], index: 1, kind: input, shape index: {}]   ;;  %s4483_s0 = inlined_call_operand.vmem [shape: bf16[2,1,176,128], index: 0, kind: input, shape index: {}]   ;;  %s4484_s4 = inlined_call_operand.<no memory space> [shape: f32[1,1], index: 4, kind: input, shape index: {}]   ;;  %s4485_s2 = inlined_call_operand.vmem [shape: f32[1,128], index: 2, kind: input, shape index: {}]   ;;  %s4486_s3 = inlined_call_operand.vmem [shape: f32[1,128], index: 3, kind: input, shape index: {}]   ;;  %s4487_s5 = inlined_call_operand.vmem [shape: bf16[256,128], index: 5, kind: output, shape index: {}]  }
   0x1   :  { %v3091_v0 = vld [vmem:[%s4482_s1 + $0x40] sm:$0xff]   ;;  %v3093_v2 = vld [vmem:[%s4482_s1 + $0x48] sm:$0xff]   ;;  %v3095_v4 = vld [vmem:[%s4482_s1 + $0x50] sm:$0xff]  }
   0x2   :  { %v3092_v1 = vld [vmem:[%s4482_s1] sm:$0xff]   ;;  %2553 = vmatprep.subr.bf16.mxu0 %v3091_v0  ;;  %3073 = vmatprep.subr.bf16.mxu1 %v3091_v0  ;;  %v3094_v3 = vld [vmem:[%s4482_s1 + $0x8] sm:$0xff]   ;;  %v3096_v5 = vld [vmem:[%s4482_s1 + $0x10] sm:$0xff]  }
   0x3   :  { %2554 = vmatpush3.bf16.msra.mxu0 %v3092_v1  ;;  %3081 = vmatpush3.bf16.msra.mxu1 %v3092_v1  ;;  %v3097_v6 = vld [vmem:[%s4482_s1 + $0x58] sm:$0xff]   ;;  %v3099_v8 = vld [vmem:[%s4482_s1 + $0x60] sm:$0xff]   ;;  %v3101_v10 = vld [vmem:[%s4482_s1 + $0x68] sm:$0xff]  }
   0x4   :  { %2555 = vmatprep.subr.bf16.mxu0 %v3093_v2  ;;  %3074 = vmatprep.subr.bf16.mxu1 %v3093_v2  ;;  %v3098_v7 = vld [vmem:[%s4482_s1 + $0x18] sm:$0xff]   ;;  %v3100_v9 = vld [vmem:[%s4482_s1 + $0x20] sm:$0xff]   ;;  %v25_v13 = vld [vmem:[%s4483_s0 + $0x8] sm:$0xf] }
   0x5   :  { %v23_v11 = vld [vmem:[%s4483_s0] sm:$0xf]  ;;  %v3270_v12 = vld [vmem:[%s4483_s0 + $0x4] sm:$0xf]  ;;  %v3278_v14 = vld [vmem:[%s4483_s0 + $0xc] sm:$0xf] }
   0x6   :  { %v2261_v15 = vcombine.low %v23_v11, %v3270_v12  ;;  %v3282_v16 = vcombine.low %v25_v13, %v3278_v14  ;;  %v3287_v17 = vld [vmem:[%s4483_s0 + $0x78] sm:$0xff]   ;;  %v3102_v18 = vld [vmem:[%s4482_s1 + $0x28] sm:$0xff]   ;;  %v3295_v21 = vld [vmem:[%s4483_s0 + $0x80] sm:$0xff]  }
   0x7   :  { %2556 = vmatpush3.bf16.msra.mxu0 %v3094_v3  ;;  %3082 = vmatpush3.bf16.msra.mxu1 %v3094_v3  ;;  %v3103_v22 = vld [vmem:[%s4482_s1 + $0x70] sm:$0xff]   ;;  %v388_v24 = vshll.u32 %v3287_v17, 16  ;;  %v392_v25 = vshrl.u32 %v3287_v17, 16  ;;  %v396_v27 = vshll.u32 %v3295_v21, 16  ;;  %v3105_v33 = vld [vmem:[%s4482_s1 + $0x78] sm:$0xff]   ;;  %v3111_v39 = vld [vmem:[%s4482_s1 + $0xc0] sm:$0xff]  }
   0x8   :  { %2557 = vmatprep.subr.bf16.mxu0 %v3095_v4  ;;  %3075 = vmatprep.subr.bf16.mxu1 %v3095_v4  ;;  %v102_v19 = vshrl.u32 %v2261_v15, 16  ;;  %v104_v20 = vshll.u32 %v2261_v15, 16  ;;  %v109_v23 = vshll.u32 %v3282_v16, 16  ;;  %v3104_v30 = vld [vmem:[%s4482_s1 + $0x30] sm:$0xff]   ;;  %v3106_v35 = vld [vmem:[%s4482_s1 + $0x38] sm:$0xff]   ;;  %v113_v37 = vshrl.u32 %v3282_v16, 16 }
   0x9   :  { %v3304_v29 = vrot.slane %v388_v24, 1  ;;  %v398_v32 = vrot.slane %v396_v27, 1  ;;  %v27_v40 = vld [vmem:[%s4483_s0 + $0x10] sm:$0xf]  ;;  %v28_v41 = vld [vmem:[%s4483_s0 + $0x14] sm:$0xf] }
   0xa   :  { %v106_v26 = vrot.slane %v104_v20, 1  ;;  %v111_v28 = vrot.slane %v109_v23, 1  ;;  %v400_v42 = vshrl.u32 %v3295_v21, 16  ;;  %v3331_v43 = vcombine.low %v27_v40, %v28_v41  ;;  %v3336_v44 = vld [vmem:[%s4483_s0 + $0x88] sm:$0xff]   ;;  %v3114_v45 = vld [vmem:[%s4482_s1 + $0x140] sm:$0xff]   ;;  %v3363_v58 = vld [vmem:[%s4483_s0 + $0x18] sm:$0xff]  }
   0xb   :  { %2558 = vmatpush3.bf16.msra.mxu0 %v3096_v5  ;;  %3083 = vmatpush3.bf16.msra.mxu1 %v3096_v5  ;;  %v394_v34 = vor.u32 %v392_v25, %v3304_v29  ;;  %v3112_v46 = vld [vmem:[%s4482_s1 + $0x80] sm:$0xff]   ;;  %v404_v49 = vshll.u32 %v3336_v44, 16  ;;  %v3113_v50 = vld [vmem:[%s4482_s1 + $0xc8] sm:$0xff]   ;;  %v408_v59 = vshrl.u32 %v3336_v44, 16  ;;  %v3373_v61 = vld [vmem:[%s4483_s0 + $0x90] sm:$0xff]   ;;  %v125_v63 = vshll.u32 %v3363_v58, 16 }
   0xc   :  { %2559 = vmatprep.subr.bf16.mxu0 %v3097_v6  ;;  %3076 = vmatprep.subr.bf16.mxu1 %v3097_v6  ;;  %v107_v31 = vor.u32 %v106_v26, %v102_v19  ;;  %v115_v47 = vor.u32 %v113_v37, %v111_v28  ;;  %v117_v48 = vshll.u32 %v3331_v43, 16  ;;  %v402_v51 = vor.u32 %v400_v42, %v398_v32  ;;  %v3116_v52 = vld [vmem:[%s4482_s1 + $0x100] sm:$0xff]   ;;  %v3115_v56 = vld [vmem:[%s4482_s1 + $0x88] sm:$0xff]   ;;  %v3119_v62 = vld [vmem:[%s4482_s1 + $0xd0] sm:$0xff]  }
   0xd   :  { %v3319_v38 = vsel %vm100_vm0, %v394_v34, %v398_v32  ;;  %v406_v54 = vrot.slane %v404_v49, 1  ;;  %v121_v55 = vshrl.u32 %v3331_v43, 16  ;;  %v412_v1 = vshll.u32 %v3373_v61, 16  ;;  %v3126_v2 = vld [vmem:[%s4482_s1 + $0x148] sm:$0xff]   ;;  %v3120_v3 = vld [vmem:[%s4482_s1 + $0x90] sm:$0xff]   ;;  %v3122_v19 = vld [vmem:[%s4482_s1 + $0x98] sm:$0xff]  }
   0xe   :  { %v112_v36 = vsel %vm100_vm0, %v107_v31, %v111_v28  ;;  %1236 = vmatprep.mubr.bf16.mxu1 %v3319_v38  ;;  %v119_v53 = vrot.slane %v117_v48, 1  ;;  %v127_v4 = vrot.slane %v125_v63, 1  ;;  %v416_v11 = vshrl.u32 %v3373_v61, 16  ;;  %v3125_v23 = vld [vmem:[%s4482_s1 + $0xe0] sm:$0xff]   ;;  %v3136_v28 = vld [vmem:[%s4482_s1 + $0x150] sm:$0xff]   ;;  %v3129_v31 = vld [vmem:[%s4482_s1 + $0xe8] sm:$0xff]  }
   0xf   :  { %2560 = vmatpush3.bf16.msra.mxu0 %v3098_v7  ;;  %3084 = vmatpush3.bf16.msra.mxu1 %v3098_v7  ;;  %v3368_v60 = vsel %vm100_vm0, %v402_v51, %v406_v54  ;;  %v410_v5 = vor.u32 %v408_v59, %v406_v54  ;;  %v414_v6 = vrot.slane %v412_v1, 1  ;;  %v3128_v7 = vld [vmem:[%s4482_s1 + $0x108] sm:$0xff]   ;;  %v3133_v40 = vld [vmem:[%s4482_s1 + $0xf0] sm:$0xff]   ;;  %v3145_v48 = vld [vmem:[%s4482_s1 + $0x118] sm:$0xff]  }
  0x10   :  { %2561 = vmatprep.subr.bf16.mxu0 %v3099_v8  ;;  %3077 = vmatprep.subr.bf16.mxu1 %v3099_v8  ;;  %v3358_v57 = vsel %vm100_vm0, %v115_v47, %v119_v53  ;;  %v123_v0 = vor.u32 %v121_v55, %v119_v53  ;;  %v3121_v8 = vld [vmem:[%s4482_s1 + $0xd8] sm:$0xff]   ;;  %v3130_v34 = vld [vmem:[%s4482_s1 + $0xa8] sm:$0xff]   ;;  %v3134_v49 = vld [vmem:[%s4482_s1 + $0xb0] sm:$0xff]  }
  0x11   :  { %1140 = vmatprep.mubr.bf16.mxu0 %v112_v36  ;;  %v3400_v13 = vsel %vm100_vm0, %v410_v5, %v414_v6  ;;  %v3424_v26 = vor.u32 %v416_v11, %v414_v6  ;;  %v3138_v36 = vld [vmem:[%s4482_s1 + $0x110] sm:$0xff]   ;;  %v3450_v37 = vld [vmem:[%s4483_s0 + $0x28] sm:$0xff]   ;;  %v3137_v55 = vld [vmem:[%s4482_s1 + $0xb8] sm:$0xff]  }
  0x12   :  { %v141_v41 = vshll.u32 %v3450_v37, 16  ;;  %v145_v53 = vshrl.u32 %v3450_v37, 16  ;;  %v3149_v59 = vld [vmem:[%s4482_s1 + $0x160] sm:$0xff]   ;;  %v3148_v11 = vld [vmem:[%s4482_s1 + $0x188] sm:$0xff]  }
  0x13   :  { %2562 = vmatpush3.bf16.msra.mxu0 %v3100_v9  ;;  %3085 = vmatpush3.bf16.msra.mxu1 %v3100_v9  ;;  %v3395_v9 = vsel %vm100_vm0, %v123_v0, %v127_v4  ;;  %v3150_v63 = vld [vmem:[%s4482_s1 + $0x120] sm:$0xff]  }
  0x14   :  { %2563 = vmatprep.subr.bf16.mxu0 %v3101_v10  ;;  %3078 = vmatprep.subr.bf16.mxu1 %v3101_v10  ;;  %v129_v10 = vshrl.u32 %v3363_v58, 16  ;;  %v143_v47 = vrot.slane %v141_v41, 1  ;;  %v3157_v41 = vld [vmem:[%s4482_s1 + $0x190] sm:$0xff]  }
  0x16   :  { %v131_v24 = vor.u32 %v129_v10, %v127_v4  ;;  %v147_v0 = vor.u32 %v145_v53, %v143_v47  ;;  %v3142_v4 = vld [vmem:[%s4482_s1 + $0x180] sm:$0xff]   ;;  %v3156_v10 = vld [vmem:[%s4482_s1 + $0x128] sm:$0xff]  }
  0x17   :  { %2564 = vmatpush3.bf16.msra.mxu0 %v3102_v18  ;;  %3086 = vmatpush3.bf16.msra.mxu1 %v3102_v18  ;;  %v3410_v18 = vld [vmem:[%s4483_s0 + $0x98] ss:$0 sps:$4 sm:$0x11]  }
  0x18   :  { %2565 = vmatprep.subr.bf16.mxu0 %v3103_v22  ;;  %3079 = vmatprep.subr.bf16.mxu1 %v3103_v22  ;;  %v420_v22 = vshll.u32 %v3410_v18, 16 }
  0x1a   :  { %v422_v27 = vrot.slane %v420_v22, 1  ;;  %v3539_v22 = vrot.slane %v3331_v43, 1 }
  0x1b   :  { %2566 = vmatpush3.bf16.msra.mxu0 %v3104_v30  ;;  %3087 = vmatpush3.bf16.msra.mxu1 %v3104_v30  ;;  %v3127_v30 = vld [vmem:[%s4482_s1 + $0xa0] sm:$0xff]  }
  0x1c   :  { %2567 = vmatprep.subr.bf16.mxu0 %v3105_v33  ;;  %3080 = vmatprep.subr.bf16.mxu1 %v3105_v33 }
  0x1f   :  { %2568 = vmatpush3.bf16.msra.mxu0 %v3106_v35  ;;  %3088 = vmatpush3.bf16.msra.mxu1 %v3106_v35  ;;  %v423_v35 = vsel %vm100_vm0, %v3424_v26, %v422_v27 }
  0x20   :  { %2665 = vmatprep.subr.bf16.mxu1 %v3111_v39  ;;  %2777 = vmatprep.subr.bf16.mxu0 %v3114_v45  ;;  %v40_v39 = vld [vmem:[%s4483_s0] sm:$0xe]  ;;  %v3465_v45 = vld [vmem:[%s4483_s0 + $0x30] sm:$0xff]  }
  0x21   :  { %v2270_v51 = vcombine.low %v40_v39, %v3270_v12  ;;  %v149_v54 = vshll.u32 %v3465_v45, 16  ;;  %v3141_v12 = vld [vmem:[%s4482_s1 + $0x1c0] sm:$0xff]   ;;  %v153_v6 = vshrl.u32 %v3465_v45, 16 }
  0x22   :  { %1141 = vmatmul.mubr.bf16.vlgmr.msra.gmra.mrb[0].mxu0 %v2261_v15  ;;  %1237 = vmatmul.mubr.bf16.vlgmr.msra.gmra.mrb[0].mxu1 %v3287_v17  ;;  %v3405_v15 = vld [vmem:[%s4483_s0 + $0x20] sm:$0xff]  }
  0x23   :  { %2666 = vmatpush3.bf16.msra.mxu1 %v3112_v46  ;;  %2778 = vmatpush3.bf16.msra.mxu0 %v3116_v52  ;;  %v133_v20 = vshll.u32 %v3405_v15, 16  ;;  %v137_v33 = vshrl.u32 %v3405_v15, 16  ;;  %v3144_v46 = vld [vmem:[%s4482_s1 + $0x158] sm:$0xff]   ;;  %v151_v1 = vrot.slane %v149_v54, 1 }
  0x24   :  { %2667 = vmatprep.subr.bf16.mxu1 %v3113_v50  ;;  %1148 = vmatprep.mubr.bf16.mxu0 %v3358_v57  ;;  %v3135_v50 = vld [vmem:[%s4482_s1 + $0xf8] sm:$0xff]  }
  0x25   :  { %1244 = vmatprep.mubr.bf16.mxu1 %v3368_v60  ;;  %2779 = vmatprep.subr.bf16.mxu0 %v3126_v2  ;;  %v135_v25 = vrot.slane %v133_v20, 1  ;;  %v3505_v2 = vld [vmem:[%s4483_s0 + $0x38] sm:$0xff]   ;;  %v3515_v5 = vsel %vm100_vm0, %v147_v0, %v151_v1  ;;  %v3617_v0 = vld [vmem:[%s4483_s0 + $0x6c] sm:$0xf] }
  0x26   :  { %v2277_v20 = vld [vmem:[%s4483_s0 + $0x58] sm:$0xf] }
  0x27   :  { %2668 = vmatpush3.bf16.msra.mxu1 %v3115_v56  ;;  %2780 = vmatpush3.bf16.msra.mxu0 %v3128_v7  ;;  %v3436_v32 = vsel %vm100_vm0, %v131_v24, %v135_v25  ;;  %v139_v42 = vor.u32 %v137_v33, %v135_v25  ;;  %v182_v56 = vrot.slane %v3282_v16, 1  ;;  %v157_v7 = vshll.u32 %v3505_v2, 16  ;;  %v3155_v24 = vld [vmem:[%s4482_s1 + $0x1d0] sm:$0xff]   ;;  %v2279_v33 = vld [vmem:[%s4483_s0 + $0x60] sm:$0xf]  ;;  %v3163_v54 = vld [vmem:[%s4482_s1 + $0x198] sm:$0xff]  }
  0x28   :  { %2669 = vmatprep.subr.bf16.mxu1 %v3119_v62  ;;  %2781 = vmatprep.subr.bf16.mxu0 %v3136_v28  ;;  %v181_v62 = vrot.slane %v2270_v51, 1  ;;  %v155_v25 = vor.u32 %v153_v6, %v151_v1  ;;  %v3159_v28 = vld [vmem:[%s4482_s1 + $0x170] sm:$0xff]   ;;  %v3170_v1 = vld [vmem:[%s4482_s1 + $0x1a0] sm:$0xff]   ;;  %v188_v6 = vrot.slane %v3405_v15, 1 }
  0x29   :  { %v3481_v52 = vsel %vm100_vm0, %v139_v42, %v143_v47  ;;  %v159_v27 = vrot.slane %v157_v7, 1  ;;  %v3162_v42 = vld [vmem:[%s4482_s1 + $0x1d8] sm:$0xff]  }
  0x2a   :  { %1149 = vmatmul.mubr.bf16.gmra.mrb[4].mxu0 %v3282_v16  ;;  %1245 = vmatmul.mubr.bf16.gmra.mrb[4].mxu1 %v3295_v21  ;;  %v3165_v47 = vld [vmem:[%s4482_s1 + $0x178] sm:$0xff]  }
  0x2b   :  { %2670 = vmatpush3.bf16.msra.mxu1 %v3120_v3  ;;  %1156 = vmatprep.mubr.bf16.mxu0 %v3395_v9  ;;  %v3154_v3 = vld [vmem:[%s4482_s1 + $0x168] sm:$0xff]  }
  0x2c   :  { %2671 = vmatprep.subr.bf16.mxu1 %v3121_v8  ;;  %1252 = vmatprep.mubr.bf16.mxu1 %v3400_v13  ;;  %v3147_v8 = vld [vmem:[%s4482_s1 + $0x1c8] sm:$0xff]  }
  0x2d   :  { %2782 = vmatpush3.bf16.msra.mxu0 %v3138_v36  ;;  %v3566_v36 = vsel %vm100_vm0, %v155_v25, %v159_v27 }
  0x2e   :  { %2783 = vmatprep.subr.bf16.mxu0 %v3144_v46  ;;  %v3582_v46 = vrot.slane %v3363_v58, 1 }
  0x2f   :  { %2672 = vmatpush3.bf16.msra.mxu1 %v3122_v19  ;;  %v3532_v19 = vld [vmem:[%s4483_s0 + $0x40] ss:$0 sps:$4 sm:$0x11]  }
  0x30   :  { %2673 = vmatprep.subr.bf16.mxu1 %v3125_v23  ;;  %v3544_v23 = vld [vmem:[%s4483_s0 + $0x5c] sm:$0xf]  ;;  %v165_v39 = vshll.u32 %v3532_v19, 16 }
  0x31   :  { %2784 = vmatpush3.bf16.msra.mxu0 %v3145_v48 }
  0x32   :  { %1157 = vmatmul.mubr.bf16.gmra.mrb[8].mxu0 %v3331_v43  ;;  %1253 = vmatmul.mubr.bf16.gmra.mrb[8].mxu1 %v3336_v44  ;;  %v167_v53 = vrot.slane %v165_v39, 1 }
  0x33   :  { %2674 = vmatpush3.bf16.msra.mxu1 %v3127_v30  ;;  %1164 = vmatprep.mubr.bf16.mxu0 %v3436_v32  ;;  %v3160_v30 = vld [vmem:[%s4482_s1 + $0x130] sm:$0xff]  }
  0x34   :  { %2675 = vmatprep.subr.bf16.mxu1 %v3129_v31  ;;  %1260 = vmatprep.mubr.bf16.mxu1 %v423_v35  ;;  %v161_v31 = vshrl.u32 %v3505_v2, 16  ;;  %v3563_v35 = vcombine.low %v2277_v20, %v3544_v23  ;;  %v3175_v20 = vld [vmem:[%s4482_s1 + $0x1f0] sm:$0xff]  }
  0x35   :  { %2785 = vmatprep.subr.bf16.mxu0 %v3149_v59 }
  0x36   :  { %2786 = vmatpush3.bf16.msra.mxu0 %v3150_v63  ;;  %v3596_v51 = vor.u32 %v161_v31, %v159_v27  ;;  %v2281_v63 = vld [vmem:[%s4483_s0 + $0x68] sm:$0xf]  ;;  %v3178_v31 = vld [vmem:[%s4482_s1 + $0x1f8] sm:$0xff]  }
  0x37   :  { %2676 = vmatpush3.bf16.msra.mxu1 %v3130_v34  ;;  %2787 = vmatprep.subr.bf16.mxu0 %v3154_v3  ;;  %v185_v34 = vsel %vm180_vm1, %v182_v56, %v3539_v22  ;;  %v3625_v3 = vld [vmem:[%s4482_s1 + $0x200] sm:$0xff]  }
  0x38   :  { %2677 = vmatprep.subr.bf16.mxu1 %v3133_v40  ;;  %v3572_v40 = vld [vmem:[%s4483_s0 + $0x64] sm:$0xf] }
  0x39   :  { %v3590_v48 = vcombine.low %v2279_v33, %v3572_v40  ;;  %v190_v33 = vrot.slane %v3450_v37, 1 }
  0x3a   :  { %1165 = vmatmul.mubr.bf16.gmra.mrb[12].mxu0 %v3363_v58  ;;  %1261 = vmatmul.mubr.bf16.gmra.mrb[12].mxu1 %v3373_v61 }
  0x3b   :  { %2678 = vmatpush3.bf16.msra.mxu1 %v3134_v49  ;;  %1172 = vmatprep.mubr.bf16.mxu0 %v3481_v52  ;;  %v359_v49 = vshll.u32 %v3563_v35, 16  ;;  %v368_v25 = vshrl.u32 %v3590_v48, 16 }
  0x3c   :  { %2679 = vmatprep.subr.bf16.mxu1 %v3135_v50  ;;  %1301 = vmatprep.mubr.bf16.mxu1 %v3282_v16  ;;  %v183_v16 = vsel %vm180_vm1, %v181_v62, %v182_v56  ;;  %v3166_v50 = vld [vmem:[%s4482_s1 + $0x138] sm:$0xff]   ;;  %v357_v56 = vshrl.u32 %v3563_v35, 16  ;;  %v364_v62 = vshll.u32 %v3590_v48, 16 }
  0x3d   :  { %2788 = vmatpush3.bf16.msra.mxu0 %v3156_v10  ;;  %v361_v59 = vrot.slane %v359_v49, 1  ;;  %v3638_v10 = vcombine.low %v2281_v63, %v3617_v0 }
  0x3e   :  { %2789 = vmatprep.subr.bf16.mxu0 %v3159_v28 }
  0x3f   :  { %2680 = vmatpush3.bf16.msra.mxu1 %v3137_v55  ;;  %v3169_v55 = vld [vmem:[%s4482_s1 + $0x1e0] sm:$0xff]   ;;  %v362_v7 = vor.u32 %v361_v59, %v357_v56  ;;  %v372_v28 = vshll.u32 %v3638_v10, 16 }
  0x40   :  { %2889 = vmatprep.subr.bf16.mxu1 %v3141_v12  ;;  %v3608_v12 = vsel %vm180_vm1, %v3539_v22, %v3582_v46 }
  0x41   :  { %2790 = vmatpush3.bf16.msra.mxu0 %v3160_v30  ;;  %v3176_v30 = vld [vmem:[%s4482_s1 + $0x1b0] sm:$0xff]  }
  0x42   :  { %1173 = vmatmul.mubr.bf16.gmra.mrb[16].mxu0 %v3405_v15  ;;  %1302 = vmatmul.mubr.bf16.vlgmr.msra.gmra.mrb[16].mxu1 %v183_v16  ;;  %v3172_v16 = vld [vmem:[%s4482_s1 + $0x1e8] sm:$0xff]  }
  0x43   :  { %2890 = vmatpush3.bf16.msra.mxu1 %v3142_v4  ;;  %1180 = vmatprep.mubr.bf16.mxu0 %v3515_v5  ;;  %v168_v4 = vsel %vm100_vm0, %v3596_v51, %v167_v53 }
  0x44   :  { %1309 = vmatprep.mubr.bf16.mxu1 %v3331_v43  ;;  %2891 = vmatprep.subr.bf16.mxu1 %v3147_v8  ;;  %v366_v8 = vrot.slane %v364_v62, 1 }
  0x45   :  { %2791 = vmatprep.subr.bf16.mxu0 %v3165_v47  ;;  %v376_v47 = vshrl.u32 %v3638_v10, 16 }
  0x46   :  { %2792 = vmatpush3.bf16.msra.mxu0 %v3166_v50  ;;  %v367_v27 = vsel %vm100_vm0, %v362_v7, %v366_v8  ;;  %v370_v39 = vor.u32 %v368_v25, %v366_v8  ;;  %v3674_v50 = vsel %vm180_vm1, %v188_v6, %v190_v33  ;;  %v2294_v25 = vld [vmem:[%s4483_s0 + $0x58] sm:$0xe] }
  0x47   :  { %2892 = vmatpush3.bf16.msra.mxu1 %v3148_v11  ;;  %3025 = vmatprep.subr.bf16.mxu0 %v3625_v3  ;;  %v3173_v11 = vld [vmem:[%s4482_s1 + $0x1a8] sm:$0xff]  }
  0x48   :  { %2893 = vmatprep.subr.bf16.mxu1 %v3155_v24  ;;  %v3648_v24 = vsel %vm180_vm1, %v3582_v46, %v188_v6  ;;  %v3708_v6 = vld [vmem:[%s4483_s0 + $0x40] sm:$0xff]  }
  0x4a   :  { %1181 = vmatmul.mubr.bf16.gmra.mrb[20].mxu0 %v3450_v37  ;;  %1310 = vmatmul.mubr.bf16.gmra.mrb[20].mxu1 %v185_v34  ;;  %v3665_v34 = vld [vmem:[%s4483_s0 + $0x70] sm:$0xff]  }
  0x4b   :  { %1188 = vmatprep.mubr.bf16.mxu0 %v3566_v36  ;;  %1317 = vmatprep.mubr.bf16.mxu1 %v3363_v58  ;;  %v380_v49 = vshll.u32 %v3665_v34, 16  ;;  %v384_v63 = vshrl.u32 %v3665_v34, 16 }
  0x4c   :  { %2894 = vmatpush3.bf16.msra.mxu1 %v3157_v41  ;;  %v374_v41 = vrot.slane %v372_v28, 1  ;;  %v436_v28 = vrot.slane %v3590_v48, 1 }
  0x4d   :  { %2895 = vmatprep.subr.bf16.mxu1 %v3162_v42  ;;  %v3179_v42 = vld [vmem:[%s4482_s1 + $0x1b8] sm:$0xff]   ;;  %v382_v56 = vrot.slane %v380_v49, 1 }
  0x4e   :  { %v3677_v53 = vsel %vm100_vm0, %v370_v39, %v374_v41  ;;  %v3185_v39 = vld [vmem:[%s4482_s1 + $0x228] sm:$0xff]   ;;  %v3188_v49 = vld [vmem:[%s4482_s1 + $0x238] sm:$0xff]  }
  0x50   :  { %2896 = vmatpush3.bf16.msra.mxu1 %v3163_v54  ;;  %v192_v54 = vrot.slane %v3465_v45, 1 }
  0x51   :  { %2897 = vmatprep.subr.bf16.mxu1 %v3169_v55  ;;  %v378_v55 = vor.u32 %v376_v47, %v374_v41  ;;  %v442_v41 = vrot.slane %v3287_v17, 1 }
  0x52   :  { %1189 = vmatmul.mubr.bf16.gmra.mrb[24].mxu0 %v3465_v45  ;;  %1318 = vmatmul.mubr.bf16.gmra.mrb[24].mxu1 %v3608_v12  ;;  %v3685_v59 = vsel %vm180_vm1, %v190_v33, %v192_v54 }
  0x53   :  { %1196 = vmatprep.mubr.bf16.mxu0 %v168_v4  ;;  %1325 = vmatprep.mubr.bf16.mxu1 %v3405_v15  ;;  %v3688_v62 = vsel %vm100_vm0, %v378_v55, %v382_v56  ;;  %v44_v4 = vld [vmem:[%s4483_s0 + $0x8] sm:$0xe]  ;;  %v446_v55 = vrot.slane %v3336_v44, 1 }
  0x54   :  { %2898 = vmatpush3.bf16.msra.mxu1 %v3170_v1  ;;  %v386_v1 = vor.u32 %v384_v63, %v382_v56  ;;  %v2273_v8 = vcombine.low %v44_v4, %v3278_v14  ;;  %v2312_v14 = vcombine.low %v2294_v25, %v3544_v23  ;;  %v3177_v23 = vld [vmem:[%s4482_s1 + $0x210] sm:$0xff]   ;;  %v3796_v56 = vrot.slane %v3708_v6, 1  ;;  %v3182_v4 = vld [vmem:[%s4483_s0 + $0x48] ss:$0 sps:$4 sm:$0x11]  }
  0x55   :  { %2899 = vmatprep.subr.bf16.mxu1 %v3172_v16  ;;  %v216_v63 = vshll.u32 %v3708_v6, 16 }
  0x56   :  { %v3712_v7 = vsel %vm100_vm0, %v386_v1, %v3304_v29 }
  0x58   :  { %2900 = vmatpush3.bf16.msra.mxu1 %v3173_v11  ;;  %v196_v11 = vrot.slane %v3532_v19, 1  ;;  %v435_v19 = vrot.slane %v2312_v14, 1  ;;  %v220_v14 = vshrl.u32 %v3708_v6, 16 }
  0x59   :  { %2901 = vmatprep.subr.bf16.mxu1 %v3175_v20  ;;  %v233_v20 = vrot.slane %v2273_v8, 1  ;;  %v218_v8 = vrot.slane %v216_v63, 1 }
  0x5a   :  { %1197 = vmatmul.mubr.bf16.gmra.mrb[28].mxu0 %v3505_v2  ;;  %1326 = vmatmul.mubr.bf16.gmra.mrb[28].mxu1 %v3648_v24 }
  0x5b   :  { %1204 = vmatprep.mubr.bf16.mxu0 %v367_v27  ;;  %1333 = vmatprep.mubr.bf16.mxu1 %v3450_v37  ;;  %v234_v27 = vsel %vm180_vm1, %v233_v20, %v3539_v22  ;;  %v3739_v22 = vrot.slane %v3638_v10, 1  ;;  %v219_v25 = vsel %vm100_vm0, %v3596_v51, %v218_v8  ;;  %v450_v51 = vrot.slane %v3410_v18, 1 }
  0x5c   :  { %2902 = vmatpush3.bf16.msra.mxu1 %v3176_v30  ;;  %v437_v30 = vsel %vm180_vm1, %v435_v19, %v436_v28 }
  0x5d   :  { %2903 = vmatprep.subr.bf16.mxu1 %v3178_v31  ;;  %v3174_v31 = vld [vmem:[%s4482_s1 + $0x208] sm:$0xff]  }
  0x60   :  { %2904 = vmatpush3.bf16.msra.mxu1 %v3179_v42  ;;  %v3186_v42 = vld [vmem:[%s4482_s1 + $0x230] sm:$0xff]  }
  0x62   :  { %1205 = vmatmul.mubr.bf16.gmra.mrb[32].mxu0 %v3563_v35  ;;  %1334 = vmatmul.mubr.bf16.gmra.mrb[32].mxu1 %v3674_v50  ;;  %v3696_v35 = vrot.slane %v3505_v2, 1 }
  0x63   :  { %1212 = vmatprep.mubr.bf16.mxu0 %v3677_v53  ;;  %1341 = vmatprep.mubr.bf16.mxu1 %v3465_v45 }
  0x64   :  { %v3703_v16 = vsel %vm180_vm1, %v192_v54, %v3696_v35  ;;  %v197_v29 = vsel %vm180_vm1, %v3696_v35, %v196_v11  ;;  %v3805_v1 = vsel %vm180_vm1, %v3696_v35, %v3796_v56  ;;  %v237_v11 = vrot.slane %v3182_v4, 1  ;;  %v2298_v35 = vld [vmem:[%s4483_s0 + $0x60] sm:$0xe] }
  0x65   :  { %v2315_v19 = vcombine.low %v2298_v35, %v3572_v40  ;;  %v3189_v40 = vld [vmem:[%s4483_s0 + $0xa0] ss:$0 sps:$4 sm:$0x11]  }
  0x6a   :  { %1213 = vmatmul.mubr.bf16.gmra.mrb[36].mxu0 %v3590_v48  ;;  %1342 = vmatmul.mubr.bf16.gmra.mrb[36].mxu1 %v3685_v59 }
  0x6b   :  { %1220 = vmatprep.mubr.bf16.mxu0 %v3688_v62  ;;  %1349 = vmatprep.mubr.bf16.mxu1 %v3505_v2 }
  0x72   :  { %1221 = vmatmul.mubr.bf16.gmra.mrb[40].mxu0 %v3638_v10  ;;  %1350 = vmatmul.mubr.bf16.gmra.mrb[40].mxu1 %v3703_v16 }
  0x73   :  { %1228 = vmatprep.mubr.bf16.mxu0 %v3712_v7  ;;  %1357 = vmatprep.mubr.bf16.mxu1 %v3708_v6 }
  0x7a   :  { %1229 = vmatmul.mubr.bf16.gmra.mrb[44].mxu0 %v3665_v34  ;;  %1358 = vmatmul.mubr.bf16.gmra.mrb[44].mxu1 %v197_v29  ;;  %v3826_v29 = vld [vmem:[%s4483_s0 + $0x98] sm:$0xff]  }
  0x7b   :  { %1365 = vmatprep.mubr.bf16.mxu1 %v3590_v48  ;;  %1462 = vmatprep.mubr.bf16.mxu0 %v234_v27  ;;  %v439_v48 = vsel %vm180_vm1, %v436_v28, %v3739_v22  ;;  %v238_v27 = vsel %vm180_vm1, %v3796_v56, %v237_v11  ;;  %v222_v28 = vor.u32 %v220_v14, %v218_v8 }
  0x82   :  { %1366 = vmatmul.mubr.bf16.gmra.mrb[48].mxu1 %v437_v30  ;;  %1463 = vmatmul.mubr.bf16.vlgmr.msra.gmra.mrb[48].mxu0 %v3358_v57  ;;  %v3180_v57 = vld [vmem:[%s4482_s1 + $0x218] sm:$0xff]  }
  0x83   :  { %3026 = vmatpush3.bf16.msra.mxu0 %v3625_v3  ;;  %1373 = vmatprep.mubr.bf16.mxu1 %v3638_v10  ;;  %v3184_v3 = vld [vmem:[%s4482_s1 + $0x220] sm:$0xff]  }
  0x84   :  { %1470 = vmatprep.mubr.bf16.mxu0 %v3608_v12  ;;  %3027 = vmatprep.subr.bf16.mxu0 %v3174_v31  ;;  %v3754_v12 = vrot.slane %v3665_v34, 1 }
  0x86   :  { %v3762_v33 = vsel %vm180_vm1, %v3739_v22, %v3754_v12  ;;  %v3777_v47 = vsel %vm180_vm1, %v3754_v12, %v442_v41 }
  0x87   :  { %3028 = vmatpush3.bf16.msra.mxu0 %v3174_v31  ;;  %v487_v31 = vrot.slane %v2315_v19, 1 }
  0x88   :  { %3029 = vmatprep.subr.bf16.mxu0 %v3177_v23 }
  0x8a   :  { %1374 = vmatmul.mubr.bf16.gmra.mrb[52].mxu1 %v439_v48  ;;  %1471 = vmatmul.mubr.bf16.gmra.mrb[52].mxu0 %v3395_v9 }
  0x8b   :  { %1381 = vmatprep.mubr.bf16.mxu1 %v3665_v34  ;;  %1478 = vmatprep.mubr.bf16.mxu0 %v3648_v24 }
  0x8c   :  { %3030 = vmatpush3.bf16.msra.mxu0 %v3177_v23 }
  0x8d   :  { %3031 = vmatprep.subr.bf16.mxu0 %v3180_v57 }
  0x90   :  { %3032 = vmatpush3.bf16.msra.mxu0 %v3180_v57  ;;  %v488_v57 = vsel %vm180_vm1, %v487_v31, %v3739_v22 }
  0x91   :  { %3033 = vmatprep.subr.bf16.mxu0 %v3184_v3 }
  0x92   :  { %1382 = vmatmul.mubr.bf16.gmra.mrb[56].mxu1 %v3762_v33  ;;  %1479 = vmatmul.mubr.bf16.gmra.mrb[56].mxu0 %v3436_v32 }
  0x93   :  { %1389 = vmatprep.mubr.bf16.mxu1 %v3287_v17  ;;  %1486 = vmatprep.mubr.bf16.mxu0 %v3674_v50  ;;  %v444_v17 = vrot.slane %v3295_v21, 1 }
  0x94   :  { %3034 = vmatpush3.bf16.msra.mxu0 %v3184_v3 }
  0x95   :  { %3035 = vmatprep.subr.bf16.mxu0 %v3185_v39  ;;  %v3788_v54 = vsel %vm180_vm1, %v442_v41, %v444_v17 }
  0x98   :  { %3036 = vmatpush3.bf16.msra.mxu0 %v3185_v39 }
  0x99   :  { %3037 = vmatprep.subr.bf16.mxu0 %v3186_v42 }
  0x9a   :  { %1390 = vmatmul.mubr.bf16.gmra.mrb[60].mxu1 %v3777_v47  ;;  %1487 = vmatmul.mubr.bf16.gmra.mrb[60].mxu0 %v3481_v52 }
  0x9b   :  { %1397 = vmatprep.mubr.bf16.mxu1 %v3295_v21  ;;  %1494 = vmatprep.mubr.bf16.mxu0 %v3685_v59  ;;  %v3799_v21 = vsel %vm180_vm1, %v444_v17, %v446_v55  ;;  %v474_v17 = vshrl.u32 %v3826_v29, 16 }
  0x9c   :  { %3038 = vmatpush3.bf16.msra.mxu0 %v3186_v42  ;;  %v48_v42 = vld [vmem:[%s4483_s0 + $0x10] sm:$0xe] }
  0x9d   :  { %3039 = vmatprep.subr.bf16.mxu0 %v3188_v49 }
  0xa0   :  { %3040 = vmatpush3.bf16.msra.mxu0 %v3188_v49 }
  0xa2   :  { %1398 = vmatmul.mubr.bf16.gmra.mrb[64].mxu1 %v3788_v54  ;;  %1495 = vmatmul.mubr.bf16.gmra.mrb[64].mxu0 %v3515_v5 }
  0xa3   :  { %1405 = vmatprep.mubr.bf16.mxu1 %v3336_v44  ;;  %1502 = vmatprep.mubr.bf16.mxu0 %v3703_v16  ;;  %v448_v44 = vrot.slane %v3373_v61, 1 }
  0xa5   :  { %v3819_v20 = vsel %vm180_vm1, %v446_v55, %v448_v44  ;;  %v451_v23 = vsel %vm180_vm1, %v448_v44, %v450_v51  ;;  %v478_v55 = vshll.u32 %v3189_v40, 16 }
  0xa7   :  { %v480_v8 = vrot.slane %v478_v55, 1 }
  0xaa   :  { %1406 = vmatmul.mubr.bf16.gmra.mrb[68].mxu1 %v3799_v21  ;;  %1503 = vmatmul.mubr.bf16.gmra.mrb[68].mxu0 %v3566_v36 }
  0xab   :  { %1413 = vmatprep.mubr.bf16.mxu1 %v3373_v61  ;;  %1510 = vmatprep.mubr.bf16.mxu0 %v3805_v1  ;;  %v224_v61 = vshll.u32 %v3182_v4, 16  ;;  %v3195_v4 = vld [vmem:[%s4483_s0 + $0x14] sm:$0xf] }
  0xad   :  { %v226_v30 = vrot.slane %v224_v61, 1 }
  0xaf   :  { %v227_v48 = vsel %vm100_vm0, %v222_v28, %v226_v30 }
  0xb2   :  { %1414 = vmatmul.mubr.bf16.gmra.mrb[72].mxu1 %v3819_v20  ;;  %1511 = vmatmul.mubr.bf16.gmra.mrb[72].mxu0 %v219_v25 }
  0xb3   :  { %1421 = vmatprep.mubr.bf16.mxu1 %v3826_v29  ;;  %1518 = vmatprep.mubr.bf16.mxu0 %v238_v27 }
  0xba   :  { %1422 = vmatmul.mubr.bf16.gmra.mrb[76].mxu1 %v451_v23  ;;  %1519 = vmatmul.mubr.bf16.gmra.mrb[76].mxu0 %v227_v48 }
  0xbb   :  { %1526 = vmatprep.mubr.bf16.mxu0 %v488_v57  ;;  %1623 = vmatprep.mubr.bf16.mxu1 %v3395_v9  ;;  %v3862_v9 = vld [vmem:[%s4483_s0 + $0x48] sm:$0xff]  }
  0xbc   :  { %v252_v18 = vshll.u32 %v3862_v9, 16 }
  0xc2   :  { %1527 = vmatmul.mubr.bf16.gmra.mrb[80].mxu0 %v3677_v53  ;;  %1624 = vmatmul.mubr.bf16.vlgmr.msra.gmra.mrb[80].mxu1 %v3331_v43  ;;  %v10_v43 = vstv %s4484_s4  ;;  %v256_v53 = vshrl.u32 %v3862_v9, 16 }
  0xc3   :  { %1534 = vmatprep.mubr.bf16.mxu0 %v3762_v33  ;;  %1631 = vmatprep.mubr.bf16.mxu1 %v3436_v32  ;;  %11 = vst [vmem:[#allocation2] sm:$0x1] %v10_v43  ;;  %v3869_v32 = vrot.slane %v3826_v29, 1  ;;  %v491_v33 = vrot.slane %v3189_v40, 1 }
  0xca   :  { %1535 = vmatmul.mubr.bf16.gmra.mrb[84].mxu0 %v3688_v62  ;;  %1632 = vmatmul.mubr.bf16.gmra.mrb[84].mxu1 %v3363_v58  ;;  %v2393_v58 = vld [vmem:[#allocation2] ss:$0 sm:$0xff] }
  0xcb   :  { %1542 = vmatprep.mubr.bf16.mxu0 %v3777_v47  ;;  %1639 = vmatprep.mubr.bf16.mxu1 %v3481_v52  ;;  %v3874_v52 = vld [vmem:[%s4483_s0 + $0x50] ss:$0 sps:$4 sm:$0x11]  }
  0xcc   :  { %v260_v22 = vshll.u32 %v3874_v52, 16 }
  0xce   :  { %v262_v41 = vrot.slane %v260_v22, 1 }
  0xd2   :  { %1543 = vmatmul.mubr.bf16.gmra.mrb[88].mxu0 %v3712_v7  ;;  %1640 = vmatmul.mubr.bf16.gmra.mrb[88].mxu1 %v3405_v15  ;;  %v3200_v15 = vmov 0  }
  0xd3   :  { %1550 = vmatprep.mubr.bf16.mxu0 %v3788_v54  ;;  %1647 = vmatprep.mubr.bf16.mxu1 %v3515_v5  ;;  %v470_v5 = vshll.u32 %v3826_v29, 16 }
  0xd4   :  { %3090 = vset.pattern.permute.xlu0 %v3200_v15 }
  0xd5   :  { %2030 = vperm.xlu0 %3090, %v2393_v58   ;;  %v472_v3 = vrot.slane %v470_v5, 1 }
  0xd7   :  { %v3895_v49 = vsel %vm100_vm0, %v3424_v26, %v472_v3  ;;  %v3906_v26 = vor.u32 %v474_v17, %v472_v3 }
  0xd9   :  { %v481_v30 = vsel %vm100_vm0, %v3906_v26, %v480_v8  ;;  %v2302_v8 = vld [vmem:[%s4483_s0 + $0x68] sm:$0xe] }
  0xda   :  { %1551 = vmatmul.mubr.bf16.gmra.mrb[92].mxu0 %v3319_v38  ;;  %1648 = vmatmul.mubr.bf16.gmra.mrb[92].mxu1 %v3450_v37  ;;  %v254_v37 = vrot.slane %v252_v18, 1 }
  0xdb   :  { %1558 = vmatprep.mubr.bf16.mxu0 %v3799_v21  ;;  %1655 = vmatprep.mubr.bf16.mxu1 %v3566_v36  ;;  %v3879_v36 = vsel %vm180_vm1, %v448_v44, %v3869_v32  ;;  %v2276_v44 = vcombine.low %v48_v42, %v3195_v4 }
  0xdc   :  { %v258_v39 = vor.u32 %v256_v53, %v254_v37 }
  0xdd   :  { %v269_v11 = vrot.slane %v2276_v44, 1 }
  0xde   :  { %v263_v63 = vsel %vm100_vm0, %v258_v39, %v262_v41 }
  0xdf   :  { %v270_v23 = vsel %vm180_vm1, %v269_v11, %v3582_v46 }
  0xe2   :  { %1559 = vmatmul.mubr.bf16.gmra.mrb[96].mxu0 %v3368_v60  ;;  %1656 = vmatmul.mubr.bf16.gmra.mrb[96].mxu1 %v3465_v45  ;;  %v255_v45 = vsel %vm100_vm0, %v222_v28, %v254_v37 }
  0xe3   :  { %1566 = vmatprep.mubr.bf16.mxu0 %v3819_v20  ;;  %1663 = vmatprep.mubr.bf16.mxu1 %v219_v25 }
  0xea   :  { %1567 = vmatmul.mubr.bf16.gmra.mrb[100].mxu0 %v3400_v13  ;;  %1664 = vmatmul.mubr.bf16.gmra.mrb[100].mxu1 %v3505_v2  ;;  %v492_v2 = vsel %vm180_vm1, %v3869_v32, %v491_v33 }
  0xeb   :  { %1574 = vmatprep.mubr.bf16.mxu0 %v3879_v36  ;;  %1671 = vmatprep.mubr.bf16.mxu1 %v255_v45 }
  0xf2   :  { %1575 = vmatmul.mubr.bf16.gmra.mrb[104].mxu0 %v3895_v49  ;;  %1672 = vmatmul.mubr.bf16.gmra.mrb[104].mxu1 %v3708_v6 }
  0xf3   :  { %1582 = vmatprep.mubr.bf16.mxu0 %v492_v2  ;;  %1679 = vmatprep.mubr.bf16.mxu1 %v263_v63 }
  0xf5   :  { %v2641_v35 = vpop.f32.mrb[0].mxu1  ;;  %v2569_v25 = vpop.f32.mrb[0].mxu0 }
  0xf6   :  { %v2642_v14 = vpop.f32.mrb[1].mxu1  ;;  %v2570_v61 = vpop.f32.mrb[1].mxu0 }
  0xf7   :  { %v3908_v27 = vadd.f32 %v2642_v14, %v2641_v35  ;;  %v2644_v19 = vpop.f32.mrb[2].mxu1  ;;  %v3910_v51 = vadd.f32 %v2570_v61, %v2569_v25  ;;  %v2572_v28 = vpop.f32.mrb[2].mxu0 }
  0xf8   :  { %v2645_v6 = vpop.f32.mrb[3].mxu1  ;;  %v2573_v31 = vpop.f32.mrb[3].mxu0 }
  0xf9   :  { %v3916_v48 = vadd.f32 %v2645_v6, %v2644_v19  ;;  %v3918_v57 = vadd.f32 %v2573_v31, %v2572_v28  ;;  %v273_v6 = vrot.slane %v3874_v52, 1 }
  0xfa   :  { %1583 = vmatmul.mubr.bf16.gmra.mrb[108].mxu0 %v481_v30  ;;  %1680 = vmatmul.mubr.bf16.gmra.mrb[108].mxu1 %v3862_v9  ;;  %v3196_v30 = vld [vmem:[%s4483_s0 + $0x78] sm:$0xff]  }
  0xfb   :  { %1687 = vmatprep.mubr.bf16.mxu1 %v3688_v62  ;;  %3041 = vmatprep.mubr.bf16.mxu0 %v270_v23 }
  0xfd   :  { %v2647_v43 = vpop.f32.mrb[4].mxu1  ;;  %v2575_v58 = vpop.f32.mrb[4].mxu0 }
  0xfe   :  { %v2648_v15 = vpop.f32.mrb[5].mxu1  ;;  %v2576_v18 = vpop.f32.mrb[5].mxu0 }
  0xff   :  { %v3922_v37 = vadd.f32 %v2648_v15, %v2647_v43  ;;  %v2650_v5 = vpop.f32.mrb[6].mxu1  ;;  %v3924_v45 = vadd.f32 %v2576_v18, %v2575_v58  ;;  %v2578_v46 = vpop.f32.mrb[6].mxu0 }
 0x100   :  { %v2651_v40 = vpop.f32.mrb[7].mxu1  ;;  %v2579_v53 = vpop.f32.mrb[7].mxu0 }
 0x101   :  { %v3926_v22 = vadd.f32 %v2651_v40, %v2650_v5  ;;  %v3928_v3 = vadd.f32 %v2579_v53, %v2578_v46 }
 0x102   :  { %1688 = vmatmul.mubr.bf16.gmra.mrb[112].mxu1 %v3638_v10  ;;  %3042 = vmatmul.mubr.bf16.vlgmr.msra.gmra.mrb[112].mxu0 %v3648_v24  ;;  %v271_v24 = vrot.slane %v3862_v9, 1  ;;  %v2318_v9 = vcombine.low %v2302_v8, %v3617_v0 }
 0x103   :  { %1695 = vmatprep.mubr.bf16.mxu1 %v3712_v7  ;;  %3045 = vmatprep.mubr.bf16.mxu0 %v3674_v50 }
 0x104   :  { %v523_v31 = vrot.slane %v2318_v9, 1  ;;  %v274_v46 = vsel %vm180_vm1, %v271_v24, %v273_v6 }
 0x105   :  { %v2653_v62 = vpop.f32.mrb[8].mxu1  ;;  %v2581_v33 = vpop.f32.mrb[8].mxu0 }
 0x106   :  { %v2654_v39 = vpop.f32.mrb[9].mxu1  ;;  %v2582_v41 = vpop.f32.mrb[9].mxu0 }
 0x107   :  { %v3934_v42 = vadd.f32 %v2654_v39, %v2653_v62  ;;  %v2656_v17 = vpop.f32.mrb[10].mxu1  ;;  %v3936_v55 = vadd.f32 %v2582_v41, %v2581_v33  ;;  %v2584_v2 = vpop.f32.mrb[10].mxu0  ;;  %v3197_v33 = vld [vmem:[%s4483_s0 + $0x80] sm:$0xff]  }
 0x108   :  { %v2657_v63 = vpop.f32.mrb[11].mxu1  ;;  %v2585_v4 = vpop.f32.mrb[11].mxu0 }
 0x109   :  { %v3938_v44 = vadd.f32 %v2657_v63, %v2656_v17  ;;  %v3940_v10 = vadd.f32 %v2585_v4, %v2584_v2 }
 0x10a   :  { %1696 = vmatmul.mubr.bf16.gmra.mrb[116].mxu1 %v3665_v34  ;;  %3046 = vmatmul.mubr.bf16.gmra.mrb[116].mxu0 %v3685_v59 }
 0x10b   :  { %1703 = vmatprep.mubr.bf16.mxu1 %v3319_v38  ;;  %3049 = vmatprep.mubr.bf16.mxu0 %v3703_v16  ;;  %v272_v16 = vsel %vm180_vm1, %v3796_v56, %v271_v24 }
 0x10d   :  { %v2659_v50 = vpop.f32.mrb[12].mxu1  ;;  %v2587_v7 = vpop.f32.mrb[12].mxu0 }
 0x10e   :  { %v2660_v11 = vpop.f32.mrb[13].mxu1  ;;  %v2588_v35 = vpop.f32.mrb[13].mxu0 }
 0x10f   :  { %v3950_v25 = vadd.f32 %v2660_v11, %v2659_v50  ;;  %v2662_v14 = vpop.f32.mrb[14].mxu1  ;;  %v3952_v34 = vadd.f32 %v2588_v35, %v2587_v7  ;;  %v2590_v59 = vpop.f32.mrb[14].mxu0 }
 0x110   :  { %v2663_v61 = vpop.f32.mrb[15].mxu1  ;;  %v2591_v38 = vpop.f32.mrb[15].mxu0 }
 0x111   :  { %v3957_v19 = vadd.f32 %v2663_v61, %v2662_v14  ;;  %v3959_v28 = vadd.f32 %v2591_v38, %v2590_v59  ;;  %v3198_v14 = vld [vmem:[%s4483_s0 + $0x88] sm:$0xff]  }
 0x112   :  { %1704 = vmatmul.mubr.bf16.gmra.mrb[120].mxu1 %v3196_v30  ;;  %3050 = vmatmul.mubr.bf16.gmra.mrb[120].mxu0 %v3805_v1 }
 0x113   :  { %1711 = vmatprep.mubr.bf16.mxu1 %v3368_v60  ;;  %3053 = vmatprep.mubr.bf16.mxu0 %v272_v16  ;;  %v524_v60 = vsel %vm180_vm1, %v523_v31, %v3754_v12  ;;  %v3987_v12 = vld [vmem:[%s4483_s0 + $0xa0] sm:$0xff]  }
 0x114   :  { %v506_v8 = vshll.u32 %v3987_v12, 16 }
 0x115   :  { %v2681_v56 = vpop.f32.mrb[16].mxu1  ;;  %v2593_v23 = vpop.f32.mrb[16].mxu0 }
 0x116   :  { %v2682_v0 = vpop.f32.mrb[17].mxu1  ;;  %v2594_v43 = vpop.f32.mrb[17].mxu0  ;;  %v508_v61 = vrot.slane %v506_v8, 1 }
 0x117   :  { %v2683_v58 = vadd.f32 %v2682_v0, %v2681_v56  ;;  %v2684_v15 = vpop.f32.mrb[18].mxu1  ;;  %v3967_v18 = vadd.f32 %v2594_v43, %v2593_v23  ;;  %v2596_v5 = vpop.f32.mrb[18].mxu0 }
 0x118   :  { %v2685_v40 = vpop.f32.mrb[19].mxu1  ;;  %v2597_v53 = vpop.f32.mrb[19].mxu0 }
 0x119   :  { %v3973_v1 = vadd.f32 %v2683_v58, %v3910_v51  ;;  %v2686_v52 = vadd.f32 %v2685_v40, %v2684_v15  ;;  %v3975_v62 = vadd.f32 %v2597_v53, %v2596_v5  ;;  %v3199_v5 = vld [vmem:[%s4483_s0 + $0x90] sm:$0xff]  }
 0x11a   :  { %1712 = vmatmul.mubr.bf16.gmra.mrb[124].mxu1 %v3197_v33  ;;  %3054 = vmatmul.mubr.bf16.gmra.mrb[124].mxu0 %v274_v46 }
 0x11b   :  { %v3981_v39 = vadd.f32 %v2686_v52, %v3918_v57  ;;  %1719 = vmatprep.mubr.bf16.mxu1 %v3400_v13  ;;  %3057 = vmatprep.mubr.bf16.mxu0 %v524_v60 }
 0x11d   :  { %v2687_v51 = vpop.f32.mrb[20].mxu1  ;;  %v2599_v41 = vpop.f32.mrb[20].mxu0 }
 0x11e   :  { %v2688_v17 = vpop.f32.mrb[21].mxu1  ;;  %v2600_v2 = vpop.f32.mrb[21].mxu0 }
 0x11f   :  { %v2689_v63 = vadd.f32 %v2688_v17, %v2687_v51  ;;  %v2690_v4 = vpop.f32.mrb[22].mxu1  ;;  %v3989_v24 = vadd.f32 %v2600_v2, %v2599_v41  ;;  %v2602_v50 = vpop.f32.mrb[22].mxu0 }
 0x120   :  { %v2691_v7 = vpop.f32.mrb[23].mxu1  ;;  %v2603_v57 = vpop.f32.mrb[23].mxu0 }
 0x121   :  { %v3993_v13 = vadd.f32 %v2689_v63, %v3924_v45  ;;  %v2692_v11 = vadd.f32 %v2691_v7, %v2690_v4  ;;  %v3995_v35 = vadd.f32 %v2603_v57, %v2602_v50  ;;  %v3194_v45 = vld [vmem:[%s4483_s0 + $0xa8] ss:$0 sps:$4 sm:$0x11]  }
 0x122   :  { %1720 = vmatmul.mubr.bf16.gmra.mrb[128].mxu1 %v3198_v14  ;;  %3058 = vmatmul.mubr.bf16.gmra.mrb[128].mxu0 %v3777_v47  ;;  %v514_v0 = vshll.u32 %v3194_v45, 16  ;;  %v527_v8 = vrot.slane %v3194_v45, 1 }
 0x123   :  { %v4002_v59 = vadd.f32 %v2692_v11, %v3928_v3  ;;  %1727 = vmatprep.mubr.bf16.mxu1 %v3895_v49  ;;  %3061 = vmatprep.mubr.bf16.mxu0 %v3788_v54  ;;  %v509_v49 = vsel %vm100_vm0, %v3906_v26, %v508_v61  ;;  %v510_v54 = vshrl.u32 %v3987_v12, 16 }
 0x124   :  { %v516_v40 = vrot.slane %v514_v0, 1 }
 0x125   :  { %v2693_v38 = vpop.f32.mrb[24].mxu1  ;;  %v2605_v16 = vpop.f32.mrb[24].mxu0  ;;  %v512_v26 = vor.u32 %v510_v54, %v508_v61 }
 0x126   :  { %v2694_v9 = vpop.f32.mrb[25].mxu1  ;;  %v2606_v30 = vpop.f32.mrb[25].mxu0 }
 0x127   :  { %v2695_v6 = vadd.f32 %v2694_v9, %v2693_v38  ;;  %v2696_v31 = vpop.f32.mrb[26].mxu1  ;;  %v4009_v56 = vadd.f32 %v2606_v30, %v2605_v16  ;;  %v2608_v47 = vpop.f32.mrb[26].mxu0 }
 0x128   :  { %v2697_v3 = vpop.f32.mrb[27].mxu1  ;;  %v2609_v23 = vpop.f32.mrb[27].mxu0 }
 0x129   :  { %v4015_v43 = vadd.f32 %v2695_v6, %v3936_v55  ;;  %v2698_v58 = vadd.f32 %v2697_v3, %v2696_v31  ;;  %v4017_v15 = vadd.f32 %v2609_v23, %v2608_v47  ;;  %v525_v55 = vrot.slane %v3987_v12, 1 }
 0x12a   :  { %1728 = vmatmul.mubr.bf16.gmra.mrb[132].mxu1 %v3199_v5  ;;  %3062 = vmatmul.mubr.bf16.gmra.mrb[132].mxu0 %v3799_v21 }
 0x12b   :  { %v4024_v46 = vadd.f32 %v2698_v58, %v3940_v10  ;;  %1735 = vmatprep.mubr.bf16.mxu1 %v509_v49  ;;  %3065 = vmatprep.mubr.bf16.mxu0 %v3819_v20  ;;  %v517_v10 = vsel %vm100_vm0, %v512_v26, %v516_v40  ;;  %v526_v20 = vsel %vm180_vm1, %v3869_v32, %v525_v55 }
 0x12c   :  { %v528_v30 = vsel %vm180_vm1, %v525_v55, %v527_v8 }
 0x12d   :  { %v2699_v53 = vpop.f32.mrb[28].mxu1  ;;  %v2611_v60 = vpop.f32.mrb[28].mxu0 }
 0x12e   :  { %v2700_v52 = vpop.f32.mrb[29].mxu1  ;;  %v2612_v33 = vpop.f32.mrb[29].mxu0 }
 0x12f   :  { %v2701_v51 = vadd.f32 %v2700_v52, %v2699_v53  ;;  %v2702_v41 = vpop.f32.mrb[30].mxu1  ;;  %v4028_v17 = vadd.f32 %v2612_v33, %v2611_v60  ;;  %v2614_v2 = vpop.f32.mrb[30].mxu0 }
 0x130   :  { %v2703_v21 = vpop.f32.mrb[31].mxu1  ;;  %v2615_v63 = vpop.f32.mrb[31].mxu0 }
 0x131   :  { %v4034_v4 = vadd.f32 %v2701_v51, %v3952_v34  ;;  %v2704_v50 = vadd.f32 %v2703_v21, %v2702_v41  ;;  %v4036_v7 = vadd.f32 %v2615_v63, %v2614_v2 }
 0x132   :  { %1736 = vmatmul.mubr.bf16.gmra.mrb[136].mxu1 %v3826_v29  ;;  %3066 = vmatmul.mubr.bf16.gmra.mrb[136].mxu0 %v3879_v36 }
 0x133   :  { %v4041_v57 = vadd.f32 %v2704_v50, %v3959_v28  ;;  %1743 = vmatprep.mubr.bf16.mxu1 %v517_v10  ;;  %3069 = vmatprep.mubr.bf16.mxu0 %v526_v20 }
 0x135   :  { %v2705_v11 = vpop.f32.mrb[32].mxu1  ;;  %v2617_v14 = vpop.f32.mrb[32].mxu0 }
 0x136   :  { %v2706_v61 = vpop.f32.mrb[33].mxu1  ;;  %v2618_v32 = vpop.f32.mrb[33].mxu0 }
 0x137   :  { %v2707_v38 = vadd.f32 %v2706_v61, %v2705_v11  ;;  %v2708_v34 = vpop.f32.mrb[34].mxu1  ;;  %v4043_v16 = vadd.f32 %v2618_v32, %v2617_v14  ;;  %v2620_v9 = vpop.f32.mrb[34].mxu0 }
 0x138   :  { %v2709_v29 = vpop.f32.mrb[35].mxu1  ;;  %v2621_v6 = vpop.f32.mrb[35].mxu0 }
 0x139   :  { %v4047_v36 = vadd.f32 %v2707_v38, %v3967_v18  ;;  %v2710_v28 = vadd.f32 %v2709_v29, %v2708_v34  ;;  %v2622_v31 = vadd.f32 %v2621_v6, %v2620_v9 }
 0x13a   :  { %1744 = vmatmul.mubr.bf16.gmra.mrb[140].mxu1 %v3987_v12  ;;  %3070 = vmatmul.mubr.bf16.gmra.mrb[140].mxu0 %v528_v30 }
 0x13b   :  { %v4051_v45 = vadd.f32 %v2710_v28, %v3975_v62 }
 0x13d   :  { %v2711_v47 = vpop.f32.mrb[36].mxu1  ;;  %v2623_v3 = vpop.f32.mrb[36].mxu0 }
 0x13e   :  { %v2712_v23 = vpop.f32.mrb[37].mxu1  ;;  %v2624_v49 = vpop.f32.mrb[37].mxu0 }
 0x13f   :  { %v2713_v54 = vadd.f32 %v2712_v23, %v2711_v47  ;;  %v2714_v0 = vpop.f32.mrb[38].mxu1  ;;  %v2625_v58 = vadd.f32 %v2624_v49, %v2623_v3  ;;  %v2626_v5 = vpop.f32.mrb[38].mxu0 }
 0x140   :  { %v2715_v26 = vpop.f32.mrb[39].mxu1  ;;  %v2627_v40 = vpop.f32.mrb[39].mxu0 }
 0x141   :  { %v4054_v18 = vadd.f32 %v2713_v54, %v3989_v24  ;;  %v2716_v55 = vadd.f32 %v2715_v26, %v2714_v0  ;;  %v2628_v53 = vadd.f32 %v2627_v40, %v2626_v5 }
 0x143   :  { %v4057_v12 = vadd.f32 %v2716_v55, %v3995_v35 }
 0x145   :  { %v2717_v62 = vpop.f32.mrb[40].mxu1  ;;  %v2629_v60 = vpop.f32.mrb[40].mxu0 }
 0x146   :  { %v2718_v52 = vpop.f32.mrb[41].mxu1  ;;  %v2630_v33 = vpop.f32.mrb[41].mxu0 }
 0x147   :  { %v2719_v51 = vadd.f32 %v2718_v52, %v2717_v62  ;;  %v2720_v41 = vpop.f32.mrb[42].mxu1  ;;  %v4059_v2 = vadd.f32 %v2630_v33, %v2629_v60  ;;  %v2632_v21 = vpop.f32.mrb[42].mxu0 }
 0x148   :  { %v2721_v63 = vpop.f32.mrb[43].mxu1  ;;  %v2633_v10 = vpop.f32.mrb[43].mxu0 }
 0x149   :  { %v4062_v20 = vadd.f32 %v2719_v51, %v4009_v56  ;;  %v2722_v24 = vadd.f32 %v2721_v63, %v2720_v41  ;;  %v2634_v50 = vadd.f32 %v2633_v10, %v2632_v21 }
 0x14b   :  { %v4065_v8 = vadd.f32 %v2722_v24, %v4017_v15 }
 0x14d   :  { %v2723_v35 = vpop.f32.mrb[44].mxu1  ;;  %v2635_v11 = vpop.f32.mrb[44].mxu0 }
 0x14e   :  { %v2724_v14 = vpop.f32.mrb[45].mxu1  ;;  %v2636_v61 = vpop.f32.mrb[45].mxu0 }
 0x14f   :  { %v2725_v32 = vadd.f32 %v2724_v14, %v2723_v35  ;;  %v2726_v38 = vpop.f32.mrb[46].mxu1  ;;  %v4067_v34 = vadd.f32 %v2636_v61, %v2635_v11  ;;  %v2638_v9 = vpop.f32.mrb[46].mxu0 }
 0x150   :  { %v2727_v30 = vpop.f32.mrb[47].mxu1  ;;  %v2639_v29 = vpop.f32.mrb[47].mxu0 }
 0x151   :  { %v4070_v6 = vadd.f32 %v2725_v32, %v4028_v17  ;;  %v2728_v56 = vadd.f32 %v2727_v30, %v2726_v38  ;;  %v4072_v28 = vadd.f32 %v2639_v29, %v2638_v9 }
 0x153   :  { %v4075_v15 = vadd.f32 %v2728_v56, %v4036_v7 }
 0x155   :  { %v2729_v47 = vpop.f32.mrb[48].mxu1  ;;  %v2793_v3 = vpop.f32.mrb[48].mxu0 }
 0x156   :  { %v2730_v23 = vpop.f32.mrb[49].mxu1  ;;  %v2794_v49 = vpop.f32.mrb[49].mxu0 }
 0x157   :  { %v2731_v54 = vadd.f32 %v2730_v23, %v2729_v47  ;;  %v2795_v0 = vadd.f32 %v2794_v49, %v2793_v3  ;;  %v2732_v5 = vpop.f32.mrb[50].mxu1  ;;  %v2796_v26 = vpop.f32.mrb[50].mxu0 }
 0x158   :  { %v2733_v40 = vpop.f32.mrb[51].mxu1  ;;  %v2797_v55 = vpop.f32.mrb[51].mxu0 }
 0x159   :  { %v4078_v62 = vadd.f32 %v2731_v54, %v4043_v16  ;;  %v4081_v17 = vadd.f32 %v2795_v0, %v3973_v1  ;;  %v2734_v60 = vadd.f32 %v2733_v40, %v2732_v5  ;;  %v2798_v52 = vadd.f32 %v2797_v55, %v2796_v26 }
 0x15b   :  { %v4083_v7 = vadd.f32 %v2734_v60, %v2622_v31  ;;  %v4086_v33 = vadd.f32 %v2798_v52, %v3981_v39 }
 0x15d   :  { %v2735_v51 = vpop.f32.mrb[52].mxu1  ;;  %v2799_v41 = vpop.f32.mrb[52].mxu0 }
 0x15e   :  { %v2736_v21 = vpop.f32.mrb[53].mxu1  ;;  %v2800_v63 = vpop.f32.mrb[53].mxu0 }
 0x15f   :  { %v2737_v10 = vadd.f32 %v2736_v21, %v2735_v51  ;;  %v2801_v24 = vadd.f32 %v2800_v63, %v2799_v41  ;;  %v2738_v35 = vpop.f32.mrb[54].mxu1  ;;  %v2802_v11 = vpop.f32.mrb[54].mxu0 }
 0x160   :  { %v2739_v16 = vpop.f32.mrb[55].mxu1  ;;  %v2803_v14 = vpop.f32.mrb[55].mxu0 }
 0x161   :  { %v4088_v61 = vadd.f32 %v2737_v10, %v2625_v58  ;;  %v4091_v1 = vadd.f32 %v2801_v24, %v3993_v13  ;;  %v2740_v31 = vadd.f32 %v2739_v16, %v2738_v35  ;;  %v2804_v32 = vadd.f32 %v2803_v14, %v2802_v11 }
 0x163   :  { %v4093_v38 = vadd.f32 %v2740_v31, %v2628_v53  ;;  %v4096_v39 = vadd.f32 %v2804_v32, %v4002_v59 }
 0x165   :  { %v2741_v9 = vpop.f32.mrb[56].mxu1  ;;  %v2805_v30 = vpop.f32.mrb[56].mxu0 }
 0x166   :  { %v2742_v29 = vpop.f32.mrb[57].mxu1  ;;  %v2806_v56 = vpop.f32.mrb[57].mxu0 }
 0x167   :  { %v2743_v47 = vadd.f32 %v2742_v29, %v2741_v9  ;;  %v2807_v3 = vadd.f32 %v2806_v56, %v2805_v30  ;;  %v2744_v23 = vpop.f32.mrb[58].mxu1  ;;  %v2808_v49 = vpop.f32.mrb[58].mxu0 }
 0x168   :  { %v2745_v58 = vpop.f32.mrb[59].mxu1  ;;  %v2809_v54 = vpop.f32.mrb[59].mxu0 }
 0x169   :  { %v4099_v13 = vadd.f32 %v2743_v47, %v4059_v2  ;;  %v4102_v0 = vadd.f32 %v2807_v3, %v4015_v43  ;;  %v2746_v53 = vadd.f32 %v2745_v58, %v2744_v23  ;;  %v2810_v5 = vadd.f32 %v2809_v54, %v2808_v49 }
 0x16b   :  { %v4104_v59 = vadd.f32 %v2746_v53, %v2634_v50  ;;  %v4107_v26 = vadd.f32 %v2810_v5, %v4024_v46 }
 0x16d   :  { %v2747_v40 = vpop.f32.mrb[60].mxu1  ;;  %v2811_v55 = vpop.f32.mrb[60].mxu0 }
 0x16e   :  { %v2748_v60 = vpop.f32.mrb[61].mxu1  ;;  %v2812_v52 = vpop.f32.mrb[61].mxu0 }
 0x16f   :  { %v2749_v51 = vadd.f32 %v2748_v60, %v2747_v40  ;;  %v2813_v41 = vadd.f32 %v2812_v52, %v2811_v55  ;;  %v2750_v21 = vpop.f32.mrb[62].mxu1  ;;  %v2814_v63 = vpop.f32.mrb[62].mxu0 }
 0x170   :  { %v2751_v2 = vpop.f32.mrb[63].mxu1  ;;  %v2815_v10 = vpop.f32.mrb[63].mxu0 }
 0x171   :  { %v4110_v43 = vadd.f32 %v2749_v51, %v4067_v34  ;;  %v4113_v24 = vadd.f32 %v2813_v41, %v4034_v4  ;;  %v2752_v50 = vadd.f32 %v2751_v2, %v2750_v21  ;;  %v2816_v35 = vadd.f32 %v2815_v10, %v2814_v63 }
 0x173   :  { %v4116_v46 = vadd.f32 %v2752_v50, %v4072_v28  ;;  %v4119_v11 = vadd.f32 %v2816_v35, %v4041_v57 }
 0x175   :  { %v2753_v16 = vpop.f32.mrb[64].mxu1  ;;  %v2817_v14 = vpop.f32.mrb[64].mxu0 }
 0x176   :  { %v2754_v31 = vpop.f32.mrb[65].mxu1  ;;  %v2818_v32 = vpop.f32.mrb[65].mxu0 }
 0x177   :  { %v2755_v9 = vadd.f32 %v2754_v31, %v2753_v16  ;;  %v2819_v30 = vadd.f32 %v2818_v32, %v2817_v14  ;;  %v2756_v29 = vpop.f32.mrb[66].mxu1  ;;  %v2820_v34 = vpop.f32.mrb[66].mxu0 }
 0x178   :  { %v2757_v56 = vpop.f32.mrb[67].mxu1  ;;  %v2821_v47 = vpop.f32.mrb[67].mxu0 }
 0x179   :  { %v4122_v4 = vadd.f32 %v2755_v9, %v3908_v27  ;;  %v4125_v3 = vadd.f32 %v2819_v30, %v4047_v36  ;;  %v2758_v28 = vadd.f32 %v2757_v56, %v2756_v29  ;;  %v2822_v23 = vadd.f32 %v2821_v47, %v2820_v34 }
 0x17b   :  { %v4128_v57 = vadd.f32 %v2758_v28, %v3916_v48  ;;  %v4131_v49 = vadd.f32 %v2822_v23, %v4051_v45 }
 0x17d   :  { %v2759_v58 = vpop.f32.mrb[68].mxu1  ;;  %v2823_v54 = vpop.f32.mrb[68].mxu0 }
 0x17e   :  { %v2760_v53 = vpop.f32.mrb[69].mxu1  ;;  %v2824_v5 = vpop.f32.mrb[69].mxu0 }
 0x17f   :  { %v2761_v40 = vadd.f32 %v2760_v53, %v2759_v58  ;;  %v2825_v55 = vadd.f32 %v2824_v5, %v2823_v54  ;;  %v2762_v60 = vpop.f32.mrb[70].mxu1  ;;  %v2826_v27 = vpop.f32.mrb[70].mxu0 }
 0x180   :  { %v2763_v52 = vpop.f32.mrb[71].mxu1  ;;  %v2827_v51 = vpop.f32.mrb[71].mxu0 }
 0x181   :  { %v4134_v36 = vadd.f32 %v2761_v40, %v3922_v37  ;;  %v4137_v41 = vadd.f32 %v2825_v55, %v4054_v18  ;;  %v2764_v48 = vadd.f32 %v2763_v52, %v2762_v60  ;;  %v2828_v21 = vadd.f32 %v2827_v51, %v2826_v27 }
 0x183   :  { %v4140_v45 = vadd.f32 %v2764_v48, %v3926_v22  ;;  %v4143_v63 = vadd.f32 %v2828_v21, %v4057_v12 }
 0x185   :  { %v2765_v2 = vpop.f32.mrb[72].mxu1  ;;  %v2829_v10 = vpop.f32.mrb[72].mxu0 }
 0x186   :  { %v2766_v50 = vpop.f32.mrb[73].mxu1  ;;  %v2830_v35 = vpop.f32.mrb[73].mxu0 }
 0x187   :  { %v2767_v16 = vadd.f32 %v2766_v50, %v2765_v2  ;;  %v2831_v14 = vadd.f32 %v2830_v35, %v2829_v10  ;;  %v2768_v31 = vpop.f32.mrb[74].mxu1  ;;  %v2832_v37 = vpop.f32.mrb[74].mxu0 }
 0x188   :  { %v2769_v32 = vpop.f32.mrb[75].mxu1  ;;  %v2833_v9 = vpop.f32.mrb[75].mxu0 }
 0x189   :  { %v4146_v18 = vadd.f32 %v2767_v16, %v3934_v42  ;;  %v4149_v30 = vadd.f32 %v2831_v14, %v4062_v20  ;;  %v2770_v22 = vadd.f32 %v2769_v32, %v2768_v31  ;;  %v2834_v29 = vadd.f32 %v2833_v9, %v2832_v37 }
 0x18b   :  { %v4152_v12 = vadd.f32 %v2770_v22, %v3938_v44  ;;  %v4155_v34 = vadd.f32 %v2834_v29, %v4065_v8 }
 0x18d   :  { %v2771_v56 = vpop.f32.mrb[76].mxu1  ;;  %v2835_v47 = vpop.f32.mrb[76].mxu0 }
 0x18e   :  { %v2772_v28 = vpop.f32.mrb[77].mxu1  ;;  %v2836_v23 = vpop.f32.mrb[77].mxu0 }
 0x18f   :  { %v2773_v58 = vadd.f32 %v2772_v28, %v2771_v56  ;;  %v2837_v54 = vadd.f32 %v2836_v23, %v2835_v47  ;;  %v2774_v53 = vpop.f32.mrb[78].mxu1  ;;  %v2838_v42 = vpop.f32.mrb[78].mxu0 }
 0x190   :  { %v2775_v5 = vpop.f32.mrb[79].mxu1  ;;  %v2839_v40 = vpop.f32.mrb[79].mxu0 }
 0x191   :  { %v4158_v20 = vadd.f32 %v2773_v58, %v3950_v25  ;;  %v4161_v55 = vadd.f32 %v2837_v54, %v4070_v6  ;;  %v2776_v44 = vadd.f32 %v2775_v5, %v2774_v53  ;;  %v2840_v60 = vadd.f32 %v2839_v40, %v2838_v42 }
 0x193   :  { %v4164_v8 = vadd.f32 %v2776_v44, %v3957_v19  ;;  %v4167_v27 = vadd.f32 %v2840_v60, %v4075_v15 }
 0x195   :  { %v2841_v52 = vpop.f32.mrb[80].mxu0  ;;  %v2905_v51 = vpop.f32.mrb[80].mxu1 }
 0x196   :  { %v2842_v48 = vpop.f32.mrb[81].mxu0  ;;  %v2906_v21 = vpop.f32.mrb[81].mxu1 }
 0x197   :  { %v2843_v2 = vadd.f32 %v2842_v48, %v2841_v52  ;;  %v2907_v10 = vadd.f32 %v2906_v21, %v2905_v51  ;;  %v2844_v50 = vpop.f32.mrb[82].mxu0  ;;  %v2908_v25 = vpop.f32.mrb[82].mxu1 }
 0x198   :  { %v2845_v35 = vpop.f32.mrb[83].mxu0  ;;  %v2909_v16 = vpop.f32.mrb[83].mxu1 }
 0x199   :  { %v4170_v6 = vadd.f32 %v2843_v2, %v4078_v62  ;;  %v2846_v14 = vadd.f32 %v2845_v35, %v2844_v50  ;;  %v2910_v31 = vadd.f32 %v2909_v16, %v2908_v25  ;;  %v4173_v19 = vadd.f32 %v2907_v10, %v4081_v17 }
 0x19b   :  { %v4176_v15 = vadd.f32 %v2846_v14, %v4083_v7  ;;  %v4179_v37 = vadd.f32 %v2910_v31, %v4086_v33 }
 0x19d   :  { %v2847_v32 = vpop.f32.mrb[84].mxu0  ;;  %v2911_v9 = vpop.f32.mrb[84].mxu1 }
 0x19e   :  { %v2848_v22 = vpop.f32.mrb[85].mxu0  ;;  %v2912_v29 = vpop.f32.mrb[85].mxu1 }
 0x19f   :  { %v2849_v56 = vadd.f32 %v2848_v22, %v2847_v32  ;;  %v2913_v47 = vadd.f32 %v2912_v29, %v2911_v9  ;;  %v2850_v28 = vpop.f32.mrb[86].mxu0  ;;  %v2914_v62 = vpop.f32.mrb[86].mxu1 }
 0x1a0   :  { %v2851_v23 = vpop.f32.mrb[87].mxu0  ;;  %v2915_v58 = vpop.f32.mrb[87].mxu1 }
 0x1a1   :  { %v4182_v54 = vadd.f32 %v2849_v56, %v4088_v61  ;;  %v2852_v17 = vadd.f32 %v2851_v23, %v2850_v28  ;;  %v2916_v53 = vadd.f32 %v2915_v58, %v2914_v62  ;;  %v4185_v7 = vadd.f32 %v2913_v47, %v4091_v1 }
 0x1a3   :  { %v4188_v33 = vadd.f32 %v2852_v17, %v4093_v38  ;;  %v4191_v42 = vadd.f32 %v2916_v53, %v4096_v39 }
 0x1a5   :  { %v2853_v5 = vpop.f32.mrb[88].mxu0  ;;  %v2917_v40 = vpop.f32.mrb[88].mxu1 }
 0x1a6   :  { %v2854_v44 = vpop.f32.mrb[89].mxu0  ;;  %v2918_v60 = vpop.f32.mrb[89].mxu1 }
 0x1a7   :  { %v2855_v52 = vadd.f32 %v2854_v44, %v2853_v5  ;;  %v2919_v51 = vadd.f32 %v2918_v60, %v2917_v40  ;;  %v2856_v48 = vpop.f32.mrb[90].mxu0  ;;  %v2920_v61 = vpop.f32.mrb[90].mxu1 }
 0x1a8   :  { %v2857_v21 = vpop.f32.mrb[91].mxu0  ;;  %v2921_v2 = vpop.f32.mrb[91].mxu1 }
 0x1a9   :  { %v4194_v10 = vadd.f32 %v2855_v52, %v4099_v13  ;;  %v2858_v1 = vadd.f32 %v2857_v21, %v2856_v48  ;;  %v2922_v50 = vadd.f32 %v2921_v2, %v2920_v61  ;;  %v4197_v38 = vadd.f32 %v2919_v51, %v4102_v0 }
 0x1ab   :  { %v4200_v39 = vadd.f32 %v2858_v1, %v4104_v59  ;;  %v4203_v25 = vadd.f32 %v2922_v50, %v4107_v26 }
 0x1ad   :  { %v2859_v35 = vpop.f32.mrb[92].mxu0  ;;  %v2923_v16 = vpop.f32.mrb[92].mxu1 }
 0x1ae   :  { %v2860_v14 = vpop.f32.mrb[93].mxu0  ;;  %v2924_v31 = vpop.f32.mrb[93].mxu1 }
 0x1af   :  { %v2861_v32 = vadd.f32 %v2860_v14, %v2859_v35  ;;  %v2925_v9 = vadd.f32 %v2924_v31, %v2923_v16  ;;  %v2862_v22 = vpop.f32.mrb[94].mxu0  ;;  %v2926_v13 = vpop.f32.mrb[94].mxu1 }
 0x1b0   :  { %v2863_v29 = vpop.f32.mrb[95].mxu0  ;;  %v2927_v56 = vpop.f32.mrb[95].mxu1 }
 0x1b1   :  { %v4206_v47 = vadd.f32 %v2861_v32, %v4110_v43  ;;  %v2864_v0 = vadd.f32 %v2863_v29, %v2862_v22  ;;  %v2928_v28 = vadd.f32 %v2927_v56, %v2926_v13  ;;  %v4209_v59 = vadd.f32 %v2925_v9, %v4113_v24 }
 0x1b3   :  { %v4212_v26 = vadd.f32 %v2864_v0, %v4116_v46  ;;  %v4215_v62 = vadd.f32 %v2928_v28, %v4119_v11 }
 0x1b5   :  { %v2865_v23 = vpop.f32.mrb[96].mxu0  ;;  %v2929_v58 = vpop.f32.mrb[96].mxu1 }
 0x1b6   :  { %v2866_v17 = vpop.f32.mrb[97].mxu0  ;;  %v2930_v53 = vpop.f32.mrb[97].mxu1 }
 0x1b7   :  { %v2867_v5 = vadd.f32 %v2866_v17, %v2865_v23  ;;  %v2931_v40 = vadd.f32 %v2930_v53, %v2929_v58  ;;  %v2868_v44 = vpop.f32.mrb[98].mxu0  ;;  %v2932_v43 = vpop.f32.mrb[98].mxu1 }
 0x1b8   :  { %v2869_v60 = vpop.f32.mrb[99].mxu0  ;;  %v2933_v52 = vpop.f32.mrb[99].mxu1 }
 0x1b9   :  { %v4218_v51 = vadd.f32 %v2867_v5, %v4122_v4  ;;  %v2870_v24 = vadd.f32 %v2869_v60, %v2868_v44  ;;  %v2934_v48 = vadd.f32 %v2933_v52, %v2932_v43  ;;  %v4221_v46 = vadd.f32 %v2931_v40, %v4125_v3 }
 0x1bb   :  { %v4224_v11 = vadd.f32 %v2870_v24, %v4128_v57  ;;  %v4227_v61 = vadd.f32 %v2934_v48, %v4131_v49 }
 0x1bd   :  { %v2871_v21 = vpop.f32.mrb[100].mxu0  ;;  %v2935_v2 = vpop.f32.mrb[100].mxu1 }
 0x1be   :  { %v2872_v1 = vpop.f32.mrb[101].mxu0  ;;  %v2936_v50 = vpop.f32.mrb[101].mxu1 }
 0x1bf   :  { %v2873_v35 = vadd.f32 %v2872_v1, %v2871_v21  ;;  %v2937_v16 = vadd.f32 %v2936_v50, %v2935_v2  ;;  %v2874_v14 = vpop.f32.mrb[102].mxu0  ;;  %v2938_v4 = vpop.f32.mrb[102].mxu1 }
 0x1c0   :  { %v2875_v31 = vpop.f32.mrb[103].mxu0  ;;  %v2939_v32 = vpop.f32.mrb[103].mxu1 }
 0x1c1   :  { %v4230_v9 = vadd.f32 %v2873_v35, %v4134_v36  ;;  %v2876_v3 = vadd.f32 %v2875_v31, %v2874_v14  ;;  %v2940_v22 = vadd.f32 %v2939_v32, %v2938_v4  ;;  %v4233_v57 = vadd.f32 %v2937_v16, %v4137_v41 }
 0x1c3   :  { %v4236_v49 = vadd.f32 %v2876_v3, %v4140_v45  ;;  %v4239_v13 = vadd.f32 %v2940_v22, %v4143_v63  ;;  %v4268_v3 = vld [vmem:[%s4485_s2] ss:$0 sm:$0xff] }
 0x1c5   :  { %v2877_v29 = vpop.f32.mrb[104].mxu0  ;;  %v2941_v56 = vpop.f32.mrb[104].mxu1 }
 0x1c6   :  { %v2878_v0 = vpop.f32.mrb[105].mxu0  ;;  %v2942_v28 = vpop.f32.mrb[105].mxu1 }
 0x1c7   :  { %v2879_v23 = vadd.f32 %v2878_v0, %v2877_v29  ;;  %v2943_v58 = vadd.f32 %v2942_v28, %v2941_v56  ;;  %v2880_v17 = vpop.f32.mrb[106].mxu0  ;;  %v2944_v36 = vpop.f32.mrb[106].mxu1 }
 0x1c8   :  { %v2881_v53 = vpop.f32.mrb[107].mxu0  ;;  %v2945_v5 = vpop.f32.mrb[107].mxu1 }
 0x1c9   :  { %v4242_v40 = vadd.f32 %v2879_v23, %v4146_v18  ;;  %v2882_v41 = vadd.f32 %v2881_v53, %v2880_v17  ;;  %v2946_v44 = vadd.f32 %v2945_v5, %v2944_v36  ;;  %v4245_v45 = vadd.f32 %v2943_v58, %v4149_v30  ;;  %v4281_v5 = vpop.permute.xlu0 %2030 }
 0x1cb   :  { %v4248_v63 = vadd.f32 %v2882_v41, %v4152_v12  ;;  %v4251_v43 = vadd.f32 %v2946_v44, %v4155_v34 }
 0x1cd   :  { %v2883_v60 = vpop.f32.mrb[108].mxu0  ;;  %v2947_v52 = vpop.f32.mrb[108].mxu1 }
 0x1ce   :  { %v2884_v24 = vpop.f32.mrb[109].mxu0  ;;  %v2948_v48 = vpop.f32.mrb[109].mxu1 }
 0x1cf   :  { %v2885_v21 = vadd.f32 %v2884_v24, %v2883_v60  ;;  %v2949_v2 = vadd.f32 %v2948_v48, %v2947_v52  ;;  %v2886_v1 = vpop.f32.mrb[110].mxu0  ;;  %v2950_v18 = vpop.f32.mrb[110].mxu1 }
 0x1d0   :  { %v2887_v50 = vpop.f32.mrb[111].mxu0  ;;  %v2951_v35 = vpop.f32.mrb[111].mxu1 }
 0x1d1   :  { %v4254_v16 = vadd.f32 %v2885_v21, %v4158_v20  ;;  %v2888_v30 = vadd.f32 %v2887_v50, %v2886_v1  ;;  %v2952_v14 = vadd.f32 %v2951_v35, %v2950_v18  ;;  %v4257_v12 = vadd.f32 %v2949_v2, %v4161_v55  ;;  %v4274_v55 = vld [vmem:[%s4486_s3] ss:$0 sm:$0xff] }
 0x1d3   :  { %v4260_v34 = vadd.f32 %v2888_v30, %v4164_v8  ;;  %v4263_v4 = vadd.f32 %v2952_v14, %v4167_v27 }
 0x1d5   :  { %v2953_v31 = vpop.f32.mrb[112].mxu1  ;;  %v3043_v32 = vpop.f32.mrb[112].mxu0 }
 0x1d6   :  { %v1795_v20 = vadd.f32 %v3043_v32, %v4185_v7  ;;  %v2954_v22 = vpop.f32.mrb[113].mxu1  ;;  %v1786_v29 = vpop.f32.mrb[113].mxu0 }
 0x1d7   :  { %v2955_v8 = vadd.f32 %v2954_v22, %v2953_v31  ;;  %v1787_v27 = vadd.f32 %v1786_v29, %v4173_v19  ;;  %v2956_v56 = vpop.f32.mrb[114].mxu1  ;;  %v3044_v0 = vpop.f32.mrb[114].mxu0 }
 0x1d8   :  { %v1922_v28 = vmul.f32 %v4268_v3, %v1795_v20  ;;  %v1798_v23 = vadd.f32 %v3044_v0, %v4191_v42  ;;  %v2957_v58 = vpop.f32.mrb[115].mxu1  ;;  %v1789_v17 = vpop.f32.mrb[115].mxu0 }
 0x1d9   :  { %v1920_v7 = vmul.f32 %v4268_v3, %v1787_v27  ;;  %v2958_v36 = vadd.f32 %v2957_v58, %v2956_v56  ;;  %v1790_v53 = vadd.f32 %v1789_v17, %v4179_v37  ;;  %v4284_v41 = vadd.f32 %v2955_v8, %v4170_v6 }
 0x1da   :  { %v1961_v19 = vadd.f32 %v4274_v55, %v1922_v28  ;;  %v1923_v44 = vmul.f32 %v4268_v3, %v1798_v23 }
 0x1db   :  { %v1959_v60 = vadd.f32 %v4274_v55, %v1920_v7  ;;  %v1921_v42 = vmul.f32 %v4268_v3, %v1790_v53  ;;  %v4291_v52 = vadd.f32 %v2958_v36, %v4176_v15 }
 0x1dc   :  { %vm1994_vm2 = vcmp.ge.f32.partialorder %v1961_v19, 0.0  ;;  %v1962_v24 = vadd.f32 %v4274_v55, %v1923_v44  ;;  %v2035_v37 = vmul.f32 %v4281_v5, %v1961_v19 }
 0x1dd   :  { %vm1992_vm3 = vcmp.ge.f32.partialorder %v1959_v60, 0.0  ;;  %v1960_v6 = vadd.f32 %v4274_v55, %v1921_v42  ;;  %v2959_v48 = vpop.f32.mrb[116].mxu1  ;;  %v3047_v21 = vpop.f32.mrb[116].mxu0  ;;  %v2033_v2 = vmul.f32 %v4281_v5, %v1959_v60 }
 0x1de   :  { %vm1995_vm4 = vcmp.ge.f32.partialorder %v1962_v24, 0.0  ;;  %v1811_v1 = vadd.f32 %v3047_v21, %v4209_v59  ;;  %v2960_v18 = vpop.f32.mrb[117].mxu1  ;;  %v1802_v50 = vpop.f32.mrb[117].mxu0  ;;  %v2036_v15 = vmul.f32 %v4281_v5, %v1962_v24  ;;  %v2067_v35 = vsel %vm1994_vm2, %v1961_v19, %v2035_v37 }
 0x1df   :  { %vm1993_vm5 = vcmp.ge.f32.partialorder %v1960_v6, 0.0  ;;  %v2961_v30 = vadd.f32 %v2960_v18, %v2959_v48  ;;  %v1803_v14 = vadd.f32 %v1802_v50, %v4197_v38  ;;  %v2962_v31 = vpop.f32.mrb[118].mxu1  ;;  %v3048_v32 = vpop.f32.mrb[118].mxu0  ;;  %v2034_v20 = vmul.f32 %v4281_v5, %v1960_v6 }
 0x1e0   :  { %v1926_v22 = vmul.f32 %v4268_v3, %v1811_v1  ;;  %v1814_v29 = vadd.f32 %v3048_v32, %v4215_v62  ;;  %v2065_v8 = vsel %vm1992_vm3, %v1959_v60, %v2033_v2  ;;  %v2068_v59 = vsel %vm1995_vm4, %v1962_v24, %v2036_v15  ;;  %v2963_v27 = vpop.f32.mrb[119].mxu1  ;;  %v1805_v56 = vpop.f32.mrb[119].mxu0 }
 0x1e1   :  { %v1924_v0 = vmul.f32 %v4268_v3, %v1803_v14  ;;  %v2066_v28 = vsel %vm1993_vm5, %v1960_v6, %v2034_v20  ;;  %v2466_v23 = vpack.c.bf16 %v2068_v59, %v2067_v35  ;;  %v2964_v58 = vadd.f32 %v2963_v27, %v2962_v31 }
 0x1e2   :  { %v1965_v38 = vadd.f32 %v4274_v55, %v1926_v22  ;;  %v1927_v17 = vmul.f32 %v4268_v3, %v1814_v29  ;;  %v2461_v7 = vpack.c.bf16 %v2066_v28, %v2065_v8  ;;  %v1806_v36 = vadd.f32 %v1805_v56, %v4203_v25 }
 0x1e3   :  { %v1963_v62 = vadd.f32 %v4274_v55, %v1924_v0  ;;  %2538 = vst [vmem:[%s4487_s5 + $0x8] sm:$0xff] %v2466_v23   ;;  %v4314_v53 = vadd.f32 %v2961_v30, %v4182_v54  ;;  %v4317_v19 = vadd.f32 %v2964_v58, %v4188_v33 }
 0x1e4   :  { %vm1998_vm6 = vcmp.ge.f32.partialorder %v1965_v38, 0.0  ;;  %v2039_v44 = vmul.f32 %v4281_v5, %v1965_v38  ;;  %v1966_v60 = vadd.f32 %v4274_v55, %v1927_v17  ;;  %2462 = vst [vmem:[%s4487_s5] sm:$0xff] %v2461_v7   ;;  %v1925_v25 = vmul.f32 %v4268_v3, %v1806_v36 }
 0x1e5   :  { %vm1996_vm7 = vcmp.ge.f32.partialorder %v1963_v62, 0.0  ;;  %v2037_v42 = vmul.f32 %v4281_v5, %v1963_v62  ;;  %v2965_v24 = vpop.f32.mrb[120].mxu1  ;;  %v3051_v54 = vpop.f32.mrb[120].mxu0 }
 0x1e6   :  { %v2071_v37 = vsel %vm1998_vm6, %v1965_v38, %v2039_v44  ;;  %vm1999_vm8 = vcmp.ge.f32.partialorder %v1966_v60, 0.0  ;;  %v2040_v33 = vmul.f32 %v4281_v5, %v1966_v60  ;;  %v1964_v6 = vadd.f32 %v4274_v55, %v1925_v25  ;;  %v2966_v48 = vpop.f32.mrb[121].mxu1  ;;  %v1818_v21 = vpop.f32.mrb[121].mxu0 }
 0x1e7   :  { %v2069_v2 = vsel %vm1996_vm7, %v1963_v62, %v2037_v42  ;;  %v1827_v1 = vadd.f32 %v3051_v54, %v4233_v57  ;;  %v2967_v18 = vadd.f32 %v2966_v48, %v2965_v24  ;;  %v1819_v50 = vadd.f32 %v1818_v21, %v4221_v46  ;;  %v2968_v15 = vpop.f32.mrb[122].mxu1  ;;  %v3052_v35 = vpop.f32.mrb[122].mxu0 }
 0x1e8   :  { %v2072_v30 = vsel %vm1999_vm8, %v1966_v60, %v2040_v33  ;;  %vm1997_vm9 = vcmp.ge.f32.partialorder %v1964_v6, 0.0  ;;  %v2038_v14 = vmul.f32 %v4281_v5, %v1964_v6  ;;  %v1830_v31 = vadd.f32 %v3052_v35, %v4239_v13  ;;  %v2969_v32 = vpop.f32.mrb[123].mxu1  ;;  %v1821_v20 = vpop.f32.mrb[123].mxu0 }
 0x1e9   :  { %v2476_v22 = vpack.c.bf16 %v2072_v30, %v2071_v37  ;;  %v1930_v29 = vmul.f32 %v4268_v3, %v1827_v1  ;;  %v1928_v8 = vmul.f32 %v4268_v3, %v1819_v50  ;;  %v2970_v59 = vadd.f32 %v2969_v32, %v2968_v15 }
 0x1ea   :  { %v2070_v57 = vsel %vm1997_vm9, %v1964_v6, %v2038_v14  ;;  %v1931_v27 = vmul.f32 %v4268_v3, %v1830_v31  ;;  %v1822_v46 = vadd.f32 %v1821_v20, %v4227_v61  ;;  %v4337_v56 = vadd.f32 %v2967_v18, %v4194_v10 }
 0x1eb   :  { %2540 = vst [vmem:[%s4487_s5 + $0x18] sm:$0xff] %v2476_v22   ;;  %v2471_v13 = vpack.c.bf16 %v2070_v57, %v2069_v2  ;;  %v1969_v0 = vadd.f32 %v4274_v55, %v1930_v29  ;;  %v1967_v28 = vadd.f32 %v4274_v55, %v1928_v8  ;;  %v4345_v23 = vadd.f32 %v2970_v59, %v4200_v39 }
 0x1ec   :  { %v1970_v58 = vadd.f32 %v4274_v55, %v1931_v27  ;;  %v1929_v38 = vmul.f32 %v4268_v3, %v1822_v46 }
 0x1ed   :  { %2539 = vst [vmem:[%s4487_s5 + $0x10] sm:$0xff] %v2471_v13   ;;  %vm2002_vm10 = vcmp.ge.f32.partialorder %v1969_v0, 0.0  ;;  %v2043_v10 = vmul.f32 %v4281_v5, %v1969_v0  ;;  %vm2000_vm11 = vcmp.ge.f32.partialorder %v1967_v28, 0.0  ;;  %v2041_v61 = vmul.f32 %v4281_v5, %v1967_v28  ;;  %v2971_v17 = vpop.f32.mrb[124].mxu1  ;;  %v3055_v7 = vpop.f32.mrb[124].mxu0 }
 0x1ee   :  { %vm2003_vm12 = vcmp.ge.f32.partialorder %v1970_v58, 0.0  ;;  %v2044_v39 = vmul.f32 %v4281_v5, %v1970_v58  ;;  %v1968_v36 = vadd.f32 %v4274_v55, %v1929_v38  ;;  %v1843_v62 = vadd.f32 %v3055_v7, %v4257_v12  ;;  %v2972_v44 = vpop.f32.mrb[125].mxu1  ;;  %v1834_v60 = vpop.f32.mrb[125].mxu0 }
 0x1ef   :  { %v2075_v25 = vsel %vm2002_vm10, %v1969_v0, %v2043_v10  ;;  %v2073_v42 = vsel %vm2000_vm11, %v1967_v28, %v2041_v61  ;;  %v2973_v24 = vadd.f32 %v2972_v44, %v2971_v17  ;;  %v1835_v54 = vadd.f32 %v1834_v60, %v4245_v45  ;;  %v2974_v37 = vpop.f32.mrb[126].mxu1  ;;  %v3056_v33 = vpop.f32.mrb[126].mxu0 }
 0x1f0   :  { %v2076_v6 = vsel %vm2003_vm12, %v1970_v58, %v2044_v39  ;;  %vm2001_vm13 = vcmp.ge.f32.partialorder %v1968_v36, 0.0  ;;  %v2042_v48 = vmul.f32 %v4281_v5, %v1968_v36  ;;  %v1934_v21 = vmul.f32 %v4268_v3, %v1843_v62  ;;  %v2975_v2 = vpop.f32.mrb[127].mxu1  ;;  %v1837_v1 = vpop.f32.mrb[127].mxu0 }
 0x1f1   :  { %v2486_v18 = vpack.c.bf16 %v2076_v6, %v2075_v25  ;;  %v1932_v12 = vmul.f32 %v4268_v3, %v1835_v54  ;;  %v1846_v50 = vadd.f32 %v3056_v33, %v4263_v4  ;;  %v2976_v15 = vadd.f32 %v2975_v2, %v2974_v37 }
 0x1f2   :  { %v2074_v35 = vsel %vm2001_vm13, %v1968_v36, %v2042_v48  ;;  %v1973_v30 = vadd.f32 %v4274_v55, %v1934_v21  ;;  %v1838_v45 = vadd.f32 %v1837_v1, %v4251_v43  ;;  %v1714_v14 = vadd.f32 %v2973_v24, %v4206_v47 }
 0x1f3   :  { %2542 = vst [vmem:[%s4487_s5 + $0x28] sm:$0xff] %v2486_v18   ;;  %v2481_v31 = vpack.c.bf16 %v2074_v35, %v2073_v42  ;;  %v1971_v32 = vadd.f32 %v4274_v55, %v1932_v12  ;;  %v1935_v20 = vmul.f32 %v4268_v3, %v1846_v50  ;;  %v4371_v22 = vadd.f32 %v2976_v15, %v4212_v26 }
 0x1f4   :  { %vm2006_vm14 = vcmp.ge.f32.partialorder %v1973_v30, 0.0  ;;  %v2047_v4 = vmul.f32 %v4281_v5, %v1973_v30  ;;  %v1933_v29 = vmul.f32 %v4268_v3, %v1838_v45 }
 0x1f5   :  { %2541 = vst [vmem:[%s4487_s5 + $0x20] sm:$0xff] %v2481_v31   ;;  %vm2004_vm15 = vcmp.ge.f32.partialorder %v1971_v32, 0.0  ;;  %v2045_v47 = vmul.f32 %v4281_v5, %v1971_v32  ;;  %v1974_v43 = vadd.f32 %v4274_v55, %v1935_v20  ;;  %v2977_v8 = vpop.f32.mrb[128].mxu1  ;;  %v3059_v59 = vpop.f32.mrb[128].mxu0 }
 0x1f6   :  { %v2079_v57 = vsel %vm2006_vm14, %v1973_v30, %v2047_v4  ;;  %v1972_v26 = vadd.f32 %v4274_v55, %v1933_v29  ;;  %v1859_v27 = vadd.f32 %v3059_v59, %v4314_v53  ;;  %v2978_v46 = vpop.f32.mrb[129].mxu1  ;;  %v1850_v13 = vpop.f32.mrb[129].mxu0 }
 0x1f7   :  { %v2077_v0 = vsel %vm2004_vm15, %v1971_v32, %v2045_v47  ;;  %vm2007_vm0 = vcmp.ge.f32.partialorder %v1974_v43, 0.0  ;;  %v2048_v28 = vmul.f32 %v4281_v5, %v1974_v43  ;;  %v2979_v58 = vadd.f32 %v2978_v46, %v2977_v8  ;;  %v2980_v38 = vpop.f32.mrb[130].mxu1  ;;  %v3060_v10 = vpop.f32.mrb[130].mxu0 }
 0x1f8   :  { %vm2005_vm1 = vcmp.ge.f32.partialorder %v1972_v26, 0.0  ;;  %v2046_v61 = vmul.f32 %v4281_v5, %v1972_v26  ;;  %v1938_v17 = vmul.f32 %v4268_v3, %v1859_v27  ;;  %v1851_v7 = vadd.f32 %v1850_v13, %v4284_v41  ;;  %v2981_v39 = vpop.f32.mrb[131].mxu1  ;;  %v1853_v36 = vpop.f32.mrb[131].mxu0 }
 0x1f9   :  { %v2080_v62 = vsel %vm2007_vm0, %v1974_v43, %v2048_v28  ;;  %v1862_v53 = vadd.f32 %v3060_v10, %v4317_v19  ;;  %v2982_v44 = vadd.f32 %v2981_v39, %v2980_v38  ;;  %v1854_v60 = vadd.f32 %v1853_v36, %v4291_v52 }
 0x1fa   :  { %v2496_v25 = vpack.c.bf16 %v2080_v62, %v2079_v57  ;;  %v2078_v42 = vsel %vm2005_vm1, %v1972_v26, %v2046_v61  ;;  %v1977_v24 = vadd.f32 %v4274_v55, %v1938_v17  ;;  %v1936_v54 = vmul.f32 %v4268_v3, %v1851_v7 }
 0x1fb   :  { %v2491_v37 = vpack.c.bf16 %v2078_v42, %v2077_v0  ;;  %v1939_v33 = vmul.f32 %v4268_v3, %v1862_v53  ;;  %v1937_v6 = vmul.f32 %v4268_v3, %v1854_v60  ;;  %v4393_v41 = vadd.f32 %v2979_v58, %v4218_v51 }
 0x1fc   :  { %2544 = vst [vmem:[%s4487_s5 + $0x38] sm:$0xff] %v2496_v25   ;;  %vm2010_vm2 = vcmp.ge.f32.partialorder %v1977_v24, 0.0  ;;  %v2051_v52 = vmul.f32 %v4281_v5, %v1977_v24  ;;  %v1975_v19 = vadd.f32 %v4274_v55, %v1936_v54  ;;  %v4401_v48 = vadd.f32 %v2982_v44, %v4224_v11 }
 0x1fd   :  { %2543 = vst [vmem:[%s4487_s5 + $0x30] sm:$0xff] %v2491_v37   ;;  %v1978_v21 = vadd.f32 %v4274_v55, %v1939_v33  ;;  %v1976_v51 = vadd.f32 %v4274_v55, %v1937_v6  ;;  %v2983_v2 = vpop.f32.mrb[132].mxu1  ;;  %v3063_v1 = vpop.f32.mrb[132].mxu0 }
 0x1fe   :  { %v2083_v18 = vsel %vm2010_vm2, %v1977_v24, %v2051_v52  ;;  %vm2008_vm3 = vcmp.ge.f32.partialorder %v1975_v19, 0.0  ;;  %v2049_v12 = vmul.f32 %v4281_v5, %v1975_v19  ;;  %v1875_v50 = vadd.f32 %v3063_v1, %v1714_v14  ;;  %v2984_v15 = vpop.f32.mrb[133].mxu1  ;;  %v1866_v35 = vpop.f32.mrb[133].mxu0 }
 0x1ff   :  { %vm2011_vm4 = vcmp.ge.f32.partialorder %v1978_v21, 0.0  ;;  %v2052_v11 = vmul.f32 %v4281_v5, %v1978_v21  ;;  %vm2009_vm5 = vcmp.ge.f32.partialorder %v1976_v51, 0.0  ;;  %v2050_v30 = vmul.f32 %v4281_v5, %v1976_v51  ;;  %v2986_v45 = vpop.f32.mrb[134].mxu1  ;;  %v3064_v31 = vpop.f32.mrb[134].mxu0 }
 0x200   :  { %v2081_v32 = vsel %vm2008_vm3, %v1975_v19, %v2049_v12  ;;  %v1942_v20 = vmul.f32 %v4268_v3, %v1875_v50  ;;  %v2985_v4 = vadd.f32 %v2984_v15, %v2983_v2  ;;  %v1867_v29 = vadd.f32 %v1866_v35, %v4337_v56  ;;  %v2987_v47 = vpop.f32.mrb[135].mxu1  ;;  %v1869_v43 = vpop.f32.mrb[135].mxu0 }
 0x201   :  { %v2084_v8 = vsel %vm2011_vm4, %v1978_v21, %v2052_v11  ;;  %v2082_v14 = vsel %vm2009_vm5, %v1976_v51, %v2050_v30  ;;  %v1878_v59 = vadd.f32 %v3064_v31, %v4371_v22  ;;  %v2988_v57 = vadd.f32 %v2987_v47, %v2986_v45 }
 0x202   :  { %v2506_v26 = vpack.c.bf16 %v2084_v8, %v2083_v18  ;;  %v2501_v27 = vpack.c.bf16 %v2082_v14, %v2081_v32  ;;  %v1981_v46 = vadd.f32 %v4274_v55, %v1942_v20  ;;  %v1940_v13 = vmul.f32 %v4268_v3, %v1867_v29 }
 0x203   :  { %v1943_v0 = vmul.f32 %v4268_v3, %v1878_v59  ;;  %v1870_v28 = vadd.f32 %v1869_v43, %v4345_v23  ;;  %v1730_v58 = vadd.f32 %v2985_v4, %v4230_v9  ;;  %v1733_v56 = vadd.f32 %v2988_v57, %v4236_v49 }
 0x204   :  { %2546 = vst [vmem:[%s4487_s5 + $0x48] sm:$0xff] %v2506_v26   ;;  %2545 = vst [vmem:[%s4487_s5 + $0x40] sm:$0xff] %v2501_v27   ;;  %vm2014_vm6 = vcmp.ge.f32.partialorder %v1981_v46, 0.0  ;;  %v2055_v22 = vmul.f32 %v4281_v5, %v1981_v46  ;;  %v1979_v38 = vadd.f32 %v4274_v55, %v1940_v13 }
 0x205   :  { %v1982_v10 = vadd.f32 %v4274_v55, %v1943_v0  ;;  %v1941_v23 = vmul.f32 %v4268_v3, %v1870_v28  ;;  %v2989_v9 = vpop.f32.mrb[136].mxu1  ;;  %v3067_v61 = vpop.f32.mrb[136].mxu0 }
 0x206   :  { %v2087_v49 = vsel %vm2014_vm6, %v1981_v46, %v2055_v22  ;;  %vm2012_vm7 = vcmp.ge.f32.partialorder %v1979_v38, 0.0  ;;  %v2053_v17 = vmul.f32 %v4281_v5, %v1979_v38  ;;  %v1891_v7 = vadd.f32 %v3067_v61, %v1730_v58  ;;  %v2990_v39 = vpop.f32.mrb[137].mxu1  ;;  %v1882_v36 = vpop.f32.mrb[137].mxu0 }
 0x207   :  { %vm2015_vm8 = vcmp.ge.f32.partialorder %v1982_v10, 0.0  ;;  %v2056_v62 = vmul.f32 %v4281_v5, %v1982_v10  ;;  %v1980_v53 = vadd.f32 %v4274_v55, %v1941_v23  ;;  %v2991_v44 = vadd.f32 %v2990_v39, %v2989_v9  ;;  %v2992_v60 = vpop.f32.mrb[138].mxu1  ;;  %v3068_v25 = vpop.f32.mrb[138].mxu0 }
 0x208   :  { %v2085_v42 = vsel %vm2012_vm7, %v1979_v38, %v2053_v17  ;;  %v1946_v24 = vmul.f32 %v4268_v3, %v1891_v7  ;;  %v1883_v54 = vadd.f32 %v1882_v36, %v4393_v41  ;;  %v1894_v37 = vadd.f32 %v3068_v25, %v1733_v56  ;;  %v2993_v33 = vpop.f32.mrb[139].mxu1  ;;  %v1885_v6 = vpop.f32.mrb[139].mxu0 }
 0x209   :  { %v2088_v52 = vsel %vm2015_vm8, %v1982_v10, %v2056_v62  ;;  %vm2013_vm9 = vcmp.ge.f32.partialorder %v1980_v53, 0.0  ;;  %v2054_v19 = vmul.f32 %v4281_v5, %v1980_v53  ;;  %v2994_v21 = vadd.f32 %v2993_v33, %v2992_v60 }
 0x20a   :  { %v2516_v51 = vpack.c.bf16 %v2088_v52, %v2087_v49  ;;  %v1985_v2 = vadd.f32 %v4274_v55, %v1946_v24  ;;  %v1944_v1 = vmul.f32 %v4268_v3, %v1883_v54  ;;  %v1947_v18 = vmul.f32 %v4268_v3, %v1894_v37 }
 0x20b   :  { %v2086_v12 = vsel %vm2013_vm9, %v1980_v53, %v2054_v19  ;;  %v1886_v50 = vadd.f32 %v1885_v6, %v4401_v48  ;;  %v1738_v41 = vadd.f32 %v2991_v44, %v4242_v40  ;;  %v1741_v15 = vadd.f32 %v2994_v21, %v4248_v63 }
 0x20c   :  { %2548 = vst [vmem:[%s4487_s5 + $0x58] sm:$0xff] %v2516_v51   ;;  %v2511_v35 = vpack.c.bf16 %v2086_v12, %v2085_v42  ;;  %v2059_v11 = vmul.f32 %v4281_v5, %v1985_v2  ;;  %v1983_v30 = vadd.f32 %v4274_v55, %v1944_v1  ;;  %vm2018_vm10 = vcmp.ge.f32.partialorder %v1985_v2, 0.0 }
 0x20d   :  { %v1986_v45 = vadd.f32 %v4274_v55, %v1947_v18  ;;  %v1945_v31 = vmul.f32 %v4268_v3, %v1886_v50  ;;  %v2995_v32 = vpop.f32.mrb[140].mxu1  ;;  %v3071_v48 = vpop.f32.mrb[140].mxu0 }
 0x20e   :  { %2547 = vst [vmem:[%s4487_s5 + $0x50] sm:$0xff] %v2511_v35   ;;  %v2057_v40 = vmul.f32 %v4281_v5, %v1983_v30  ;;  %v2996_v63 = vpop.f32.mrb[141].mxu1  ;;  %v1898_v20 = vpop.f32.mrb[141].mxu0  ;;  %v2091_v14 = vsel %vm2018_vm10, %v1985_v2, %v2059_v11  ;;  %vm2016_vm12 = vcmp.ge.f32.partialorder %v1983_v30, 0.0 }
 0x20f   :  { %vm2019_vm11 = vcmp.ge.f32.partialorder %v1986_v45, 0.0  ;;  %v2060_v4 = vmul.f32 %v4281_v5, %v1986_v45  ;;  %v1984_v29 = vadd.f32 %v4274_v55, %v1945_v31  ;;  %v2997_v47 = vadd.f32 %v2996_v63, %v2995_v32  ;;  %v2998_v43 = vpop.f32.mrb[142].mxu1  ;;  %v3072_v8 = vpop.f32.mrb[142].mxu0 }
 0x210   :  { %v1899_v59 = vadd.f32 %v1898_v20, %v1738_v41  ;;  %v2999_v57 = vpop.f32.mrb[143].mxu1  ;;  %v1901_v26 = vpop.f32.mrb[143].mxu0  ;;  %v2089_v22 = vsel %vm2016_vm12, %v1983_v30, %v2057_v40 }
 0x211   :  { %v2092_v27 = vsel %vm2019_vm11, %v1986_v45, %v2060_v4  ;;  %vm2017_vm13 = vcmp.ge.f32.partialorder %v1984_v29, 0.0  ;;  %v2058_v46 = vmul.f32 %v4281_v5, %v1984_v29  ;;  %v1746_v13 = vadd.f32 %v2997_v47, %v4254_v16 }
 0x212   :  { %v2526_v0 = vpack.c.bf16 %v2092_v27, %v2091_v14  ;;  %v1948_v28 = vmul.f32 %v4268_v3, %v1899_v59  ;;  %v3000_v58 = vadd.f32 %v2999_v57, %v2998_v43  ;;  %v1902_v56 = vadd.f32 %v1901_v26, %v1741_v15 }
 0x213   :  { %v2090_v38 = vsel %vm2017_vm13, %v1984_v29, %v2058_v46  ;;  %v1907_v10 = vadd.f32 %v3071_v48, %v1746_v13 }
 0x214   :  { %2550 = vst [vmem:[%s4487_s5 + $0x68] sm:$0xff] %v2526_v0   ;;  %v2521_v23 = vpack.c.bf16 %v2090_v38, %v2089_v22  ;;  %v1987_v9 = vadd.f32 %v4274_v55, %v1948_v28  ;;  %v1749_v61 = vadd.f32 %v3000_v58, %v4260_v34  ;;  %v1949_v49 = vmul.f32 %v4268_v3, %v1902_v56 }
 0x215   :  { %v1950_v16 = vmul.f32 %v4268_v3, %v1907_v10 }
 0x216   :  { %2549 = vst [vmem:[%s4487_s5 + $0x60] sm:$0xff] %v2521_v23   ;;  %v2061_v17 = vmul.f32 %v4281_v5, %v1987_v9  ;;  %v1910_v7 = vadd.f32 %v3072_v8, %v1749_v61  ;;  %v1988_v39 = vadd.f32 %v4274_v55, %v1949_v49  ;;  %vm2020_vm14 = vcmp.ge.f32.partialorder %v1987_v9, 0.0 }
 0x217   :  { %v1989_v36 = vadd.f32 %v4274_v55, %v1950_v16 }
 0x218   :  { %v1951_v62 = vmul.f32 %v4268_v3, %v1910_v7  ;;  %vm2021_vm15 = vcmp.ge.f32.partialorder %v1988_v39, 0.0  ;;  %v2062_v34 = vmul.f32 %v4281_v5, %v1988_v39  ;;  %v2093_v44 = vsel %vm2020_vm14, %v1987_v9, %v2061_v17 }
 0x219   :  { %v2063_v53 = vmul.f32 %v4281_v5, %v1989_v36  ;;  %vm2022_vm0 = vcmp.ge.f32.partialorder %v1989_v36, 0.0 }
 0x21a   :  { %v1990_v60 = vadd.f32 %v4274_v55, %v1951_v62  ;;  %v2094_v25 = vsel %vm2021_vm15, %v1988_v39, %v2062_v34 }
 0x21b   :  { %v2531_v42 = vpack.c.bf16 %v2094_v25, %v2093_v44  ;;  %v2095_v54 = vsel %vm2022_vm0, %v1989_v36, %v2063_v53 }
 0x21c   :  { %vm2023_vm1 = vcmp.ge.f32.partialorder %v1990_v60, 0.0  ;;  %v2064_v24 = vmul.f32 %v4281_v5, %v1990_v60 }
 0x21d   :  { %2551 = vst [vmem:[%s4487_s5 + $0x70] sm:$0xff] %v2531_v42  }
 0x21e   :  { %v2096_v3 = vsel %vm2023_vm1, %v1990_v60, %v2064_v24 }
 0x21f   :  { %v2536_v37 = vpack.c.bf16 %v2096_v3, %v2095_v54 }
 0x221   :  { %2552 = vst [vmem:[%s4487_s5 + $0x78] sm:$0xff] %v2536_v37  }

// kernel: _lambda_.12
= control target key start
LH: loop header
LB: loop body
LE: loop exit
PB: predicated region body
PF: predicated region fallthrough
CT: control target
= control target key end

     0   :  { %vm117_vm0 = vsmask.f32 7424  ;;  %vm197_vm1 = vcmask 1046528   ;;  %s5340_s1 = inlined_call_operand.vmem [shape: bf16[1152,128], index: 1, kind: input, shape index: {}]   ;;  %s5341_s0 = inlined_call_operand.vmem [shape: bf16[2,1,176,128], index: 0, kind: input, shape index: {}]   ;;  %s5342_s6 = inlined_call_operand.vmem [shape: bf16[128,128], index: 6, kind: input, shape index: {}]   ;;  %s5343_s5 = inlined_call_operand.vmem [shape: bf16[256,128], index: 5, kind: input, shape index: {}]   ;;  %s5344_s4 = inlined_call_operand.<no memory space> [shape: f32[1,1], index: 4, kind: input, shape index: {}]   ;;  %s5345_s9 = inlined_call_operand.<no memory space> [shape: f32[1,1], index: 9, kind: input, shape index: {}]   ;;  %s5346_s2 = inlined_call_operand.vmem [shape: f32[1,128], index: 2, kind: input, shape index: {}]   ;;  %s5347_s7 = inlined_call_operand.vmem [shape: f32[1,128], index: 7, kind: input, shape index: {}]   ;;  %s5348_s3 = inlined_call_operand.vmem [shape: f32[1,128], index: 3, kind: input, shape index: {}]   ;;  %s5349_s8 = inlined_call_operand.vmem [shape: f32[1,128], index: 8, kind: input, shape index: {}]   ;;  %s5350_s10 = inlined_call_operand.vmem [shape: bf16[256,128], index: 10, kind: output, shape index: {}]  }
   0x1   :  { %v3760_v0 = vld [vmem:[%s5340_s1 + $0x40] sm:$0xff]   ;;  %v3764_v4 = vld [vmem:[%s5340_s1 + $0x48] sm:$0xff]   ;;  %v3768_v8 = vld [vmem:[%s5340_s1 + $0x50] sm:$0xff]  }
   0x2   :  { %v3761_v1 = vld [vmem:[%s5340_s1 + $0xc0] sm:$0xff]   ;;  %3166 = vmatprep.subr.bf16.mxu0 %v3760_v0  ;;  %v3765_v5 = vld [vmem:[%s5340_s1 + $0xc8] sm:$0xff]   ;;  %v3769_v9 = vld [vmem:[%s5340_s1 + $0xd0] sm:$0xff]  }
   0x3   :  { %v3762_v2 = vld [vmem:[%s5340_s1] sm:$0xff]   ;;  %3278 = vmatprep.subr.bf16.mxu1 %v3761_v1  ;;  %v3766_v6 = vld [vmem:[%s5340_s1 + $0x8] sm:$0xff]   ;;  %v3770_v10 = vld [vmem:[%s5340_s1 + $0x10] sm:$0xff]  }
   0x4   :  { %v3763_v3 = vld [vmem:[%s5340_s1 + $0x80] sm:$0xff]   ;;  %3167 = vmatpush3.bf16.msra.mxu0 %v3762_v2  ;;  %v3767_v7 = vld [vmem:[%s5340_s1 + $0x88] sm:$0xff]   ;;  %v3771_v11 = vld [vmem:[%s5340_s1 + $0x90] sm:$0xff]  }
   0x5   :  { %3279 = vmatpush3.bf16.msra.mxu1 %v3763_v3  ;;  %3168 = vmatprep.subr.bf16.mxu0 %v3764_v4  ;;  %v3772_v12 = vld [vmem:[%s5340_s1 + $0x58] sm:$0xff]   ;;  %v3776_v16 = vld [vmem:[%s5340_s1 + $0x60] sm:$0xff]   ;;  %v3780_v20 = vld [vmem:[%s5340_s1 + $0x68] sm:$0xff]  }
   0x6   :  { %3280 = vmatprep.subr.bf16.mxu1 %v3765_v5  ;;  %v3773_v13 = vld [vmem:[%s5340_s1 + $0xd8] sm:$0xff]   ;;  %v3777_v17 = vld [vmem:[%s5340_s1 + $0xe0] sm:$0xff]   ;;  %v3781_v21 = vld [vmem:[%s5340_s1 + $0xe8] sm:$0xff]  }
   0x7   :  { %v3774_v14 = vld [vmem:[%s5340_s1 + $0x18] sm:$0xff]   ;;  %v3778_v18 = vld [vmem:[%s5340_s1 + $0x20] sm:$0xff]   ;;  %v3782_v22 = vld [vmem:[%s5340_s1 + $0x28] sm:$0xff]  }
   0x8   :  { %3169 = vmatpush3.bf16.msra.mxu0 %v3766_v6  ;;  %v3775_v15 = vld [vmem:[%s5340_s1 + $0x98] sm:$0xff]   ;;  %v3779_v19 = vld [vmem:[%s5340_s1 + $0xa0] sm:$0xff]   ;;  %v3783_v23 = vld [vmem:[%s5340_s1 + $0xa8] sm:$0xff]  }
   0x9   :  { %3281 = vmatpush3.bf16.msra.mxu1 %v3767_v7  ;;  %3170 = vmatprep.subr.bf16.mxu0 %v3768_v8  ;;  %v3784_v24 = vld [vmem:[%s5340_s1 + $0x70] sm:$0xff]   ;;  %v3788_v28 = vld [vmem:[%s5340_s1 + $0x78] sm:$0xff]   ;;  %v40_v32 = vld [vmem:[%s5341_s0] sm:$0xf] }
   0xa   :  { %3282 = vmatprep.subr.bf16.mxu1 %v3769_v9  ;;  %v3785_v25 = vld [vmem:[%s5340_s1 + $0xf0] sm:$0xff]   ;;  %v3789_v29 = vld [vmem:[%s5340_s1 + $0xf8] sm:$0xff]   ;;  %v41_v33 = vld [vmem:[%s5341_s0 + $0x4] sm:$0xf] }
   0xb   :  { %v3786_v26 = vld [vmem:[%s5340_s1 + $0x30] sm:$0xff]   ;;  %v3790_v30 = vld [vmem:[%s5340_s1 + $0x38] sm:$0xff]   ;;  %v42_v34 = vld [vmem:[%s5341_s0 + $0x8] sm:$0xf]  ;;  %v2847_v36 = vcombine.low %v40_v32, %v41_v33 }
   0xc   :  { %3171 = vmatpush3.bf16.msra.mxu0 %v3770_v10  ;;  %v3787_v27 = vld [vmem:[%s5340_s1 + $0xb0] sm:$0xff]   ;;  %v3791_v31 = vld [vmem:[%s5340_s1 + $0xb8] sm:$0xff]   ;;  %v4053_v35 = vld [vmem:[%s5341_s0 + $0xc] sm:$0xf] }
   0xd   :  { %3283 = vmatpush3.bf16.msra.mxu1 %v3771_v11  ;;  %3172 = vmatprep.subr.bf16.mxu0 %v3772_v12  ;;  %v57_v37 = vld [vmem:[%s5341_s0] sm:$0xe]  ;;  %v2848_v38 = vcombine.low %v42_v34, %v4053_v35  ;;  %v119_v41 = vshrl.u32 %v2847_v36, 16  ;;  %v121_v42 = vshll.u32 %v2847_v36, 16  ;;  %v44_v47 = vld [vmem:[%s5341_s0 + $0x10] sm:$0xf] }
   0xe   :  { %3284 = vmatprep.subr.bf16.mxu1 %v3773_v13  ;;  %v2856_v39 = vcombine.low %v57_v37, %v41_v33  ;;  %v3795_v40 = vld [vmem:[%s5340_s1 + $0x140] sm:$0xff]   ;;  %v45_v50 = vld [vmem:[%s5341_s0 + $0x14] sm:$0xf]  ;;  %v4080_v55 = vld [vmem:[%s5341_s0 + $0x18] sm:$0xff]  }
   0xf   :  { %v3798_v43 = vld [vmem:[%s5340_s1 + $0x1c0] sm:$0xff]   ;;  %v126_v44 = vshll.u32 %v2848_v38, 16  ;;  %1318 = vmatprep.mubr.bf16.mxu1 %v2848_v38  ;;  %v199_v46 = vrot.slane %v2848_v38, 1  ;;  %v130_v48 = vshrl.u32 %v2848_v38, 16  ;;  %v123_v49 = vrot.slane %v121_v42, 1  ;;  %v3801_v0 = vld [vmem:[%s5340_s1 + $0x148] sm:$0xff]  }
  0x10   :  { %3173 = vmatpush3.bf16.msra.mxu0 %v3774_v14  ;;  %v198_v45 = vrot.slane %v2856_v39, 1  ;;  %v3799_v51 = vld [vmem:[%s5340_s1 + $0x180] sm:$0xff]   ;;  %v4075_v54 = vcombine.low %v44_v47, %v45_v50  ;;  %v142_v63 = vshll.u32 %v4080_v55, 16  ;;  %v3802_v2 = vld [vmem:[%s5340_s1 + $0x108] sm:$0xff]   ;;  %v3807_v10 = vld [vmem:[%s5340_s1 + $0x150] sm:$0xff]   ;;  %v4120_v11 = vrot.slane %v4080_v55, 1 }
  0x11   :  { %3285 = vmatpush3.bf16.msra.mxu1 %v3775_v15  ;;  %3174 = vmatprep.subr.bf16.mxu0 %v3776_v16  ;;  %v128_v52 = vrot.slane %v126_v44, 1  ;;  %v124_v56 = vor.u32 %v123_v49, %v119_v41  ;;  %v3796_v57 = vld [vmem:[%s5340_s1 + $0x100] sm:$0xff]   ;;  %v3804_v3 = vld [vmem:[%s5340_s1 + $0x1c8] sm:$0xff]   ;;  %v3808_v12 = vld [vmem:[%s5340_s1 + $0x110] sm:$0xff]   ;;  %v146_v14 = vshrl.u32 %v4080_v55, 16 }
  0x12   :  { %3286 = vmatprep.subr.bf16.mxu1 %v3777_v17  ;;  %v200_v53 = vsel %vm197_vm1, %v198_v45, %v199_v46  ;;  %v134_v59 = vshll.u32 %v4075_v54, 16  ;;  %v4088_v60 = vrot.slane %v4075_v54, 1  ;;  %v138_v61 = vshrl.u32 %v4075_v54, 16  ;;  %v4111_v8 = vld [vmem:[%s5341_s0 + $0x20] sm:$0xff]   ;;  %v3805_v9 = vld [vmem:[%s5340_s1 + $0x188] sm:$0xff]   ;;  %v3810_v16 = vld [vmem:[%s5340_s1 + $0x1d0] sm:$0xff]  }
  0x13   :  { %v132_v58 = vor.u32 %v130_v48, %v128_v52  ;;  %v129_v62 = vsel %vm117_vm0, %v124_v56, %v128_v52  ;;  %v144_v7 = vrot.slane %v142_v63, 1  ;;  %v150_v15 = vshll.u32 %v4111_v8, 16  ;;  %v4180_v34 = vld [vmem:[%s5341_s0 + $0x30] sm:$0xff]   ;;  %v3825_v37 = vld [vmem:[%s5340_s1 + $0x1e0] sm:$0xff]   ;;  %v4207_v44 = vld [vmem:[%s5341_s0 + $0x38] sm:$0xff]  }
  0x14   :  { %3175 = vmatpush3.bf16.msra.mxu0 %v3778_v18  ;;  %1157 = vmatprep.mubr.bf16.mxu0 %v129_v62  ;;  %v136_v1 = vrot.slane %v134_v59, 1  ;;  %v202_v5 = vsel %vm197_vm1, %v199_v46, %v4088_v60  ;;  %v4138_v17 = vsel %vm197_vm1, %v4088_v60, %v4120_v11  ;;  %v3811_v18 = vld [vmem:[%s5340_s1 + $0x190] sm:$0xff]   ;;  %v166_v41 = vshll.u32 %v4180_v34, 16  ;;  %v3826_v42 = vld [vmem:[%s5340_s1 + $0x1a0] sm:$0xff]   ;;  %v3828_v45 = vld [vmem:[%s5340_s1 + $0x168] sm:$0xff]  }
  0x15   :  { %3287 = vmatpush3.bf16.msra.mxu1 %v3779_v19  ;;  %3176 = vmatprep.subr.bf16.mxu0 %v3780_v20  ;;  %v148_v19 = vor.u32 %v146_v14, %v144_v7  ;;  %v152_v20 = vrot.slane %v150_v15, 1  ;;  %v3829_v48 = vld [vmem:[%s5340_s1 + $0x128] sm:$0xff]   ;;  %v209_v50 = vrot.slane %v4180_v34, 1  ;;  %v2863_v62 = vld [vmem:[%s5341_s0 + $0x58] sm:$0xf]  ;;  %v3835_v63 = vld [vmem:[%s5340_s1 + $0x130] sm:$0xff]  }
  0x16   :  { %3288 = vmatprep.subr.bf16.mxu1 %v3781_v21  ;;  %v4103_v4 = vsel %vm117_vm0, %v132_v58, %v136_v1  ;;  %v140_v6 = vor.u32 %v138_v61, %v136_v1  ;;  %v4146_v21 = vld [vmem:[%s5341_s0 + $0x28] sm:$0xff]   ;;  %v168_v47 = vrot.slane %v166_v41, 1  ;;  %v3834_v58 = vld [vmem:[%s5340_s1 + $0x170] sm:$0xff]   ;;  %v4243_v61 = vrot.slane %v4207_v44, 1  ;;  %v3840_v15 = vld [vmem:[%s5340_s1 + $0x178] sm:$0xff]  }
  0x17   :  { %v162_v39 = vshrl.u32 %v4146_v21, 16  ;;  %v3831_v49 = vld [vmem:[%s5340_s1 + $0x1e8] sm:$0xff]  }
  0x18   :  { %3177 = vmatpush3.bf16.msra.mxu0 %v3782_v22  ;;  %v4127_v13 = vsel %vm117_vm0, %v140_v6, %v144_v7  ;;  %v3813_v22 = vld [vmem:[%s5340_s1 + $0x158] sm:$0xff]   ;;  %v3832_v56 = vld [vmem:[%s5340_s1 + $0x1a8] sm:$0xff]   ;;  %v2865_v6 = vld [vmem:[%s5341_s0 + $0x60] sm:$0xf] }
  0x19   :  { %3289 = vmatpush3.bf16.msra.mxu1 %v3783_v23  ;;  %3178 = vmatprep.subr.bf16.mxu0 %v3784_v24  ;;  %v3814_v23 = vld [vmem:[%s5340_s1 + $0x118] sm:$0xff]   ;;  %v205_v24 = vrot.slane %v4111_v8, 1  ;;  %v3838_v7 = vld [vmem:[%s5340_s1 + $0x1b0] sm:$0xff]  }
  0x1a   :  { %3290 = vmatprep.subr.bf16.mxu1 %v3785_v25  ;;  %v154_v25 = vshrl.u32 %v4111_v8, 16 }
  0x1c   :  { %3179 = vmatpush3.bf16.msra.mxu0 %v3786_v26  ;;  %v4159_v26 = vsel %vm117_vm0, %v148_v19, %v152_v20  ;;  %v156_v32 = vor.u32 %v154_v25, %v152_v20  ;;  %v4292_v19 = vld [vmem:[%s5341_s0 + $0x40] sm:$0xff]  }
  0x1d   :  { %3291 = vmatpush3.bf16.msra.mxu1 %v3787_v27  ;;  %3180 = vmatprep.subr.bf16.mxu0 %v3788_v28  ;;  %v158_v27 = vshll.u32 %v4146_v21, 16  ;;  %v3817_v28 = vld [vmem:[%s5340_s1 + $0x1d8] sm:$0xff]  }
  0x1e   :  { %3292 = vmatprep.subr.bf16.mxu1 %v3789_v29  ;;  %v3818_v29 = vld [vmem:[%s5340_s1 + $0x198] sm:$0xff]  }
  0x1f   :  { %v160_v33 = vrot.slane %v158_v27, 1  ;;  %v3844_v27 = vld [vmem:[%s5340_s1 + $0x1f8] sm:$0xff]  }
  0x20   :  { %3181 = vmatpush3.bf16.msra.mxu0 %v3790_v30  ;;  %v4172_v30 = vsel %vm197_vm1, %v4120_v11, %v205_v24 }
  0x21   :  { %3293 = vmatpush3.bf16.msra.mxu1 %v3791_v31  ;;  %3390 = vmatprep.subr.bf16.mxu0 %v3795_v40  ;;  %v3822_v31 = vld [vmem:[%s5340_s1 + $0x160] sm:$0xff]   ;;  %v4193_v40 = vsel %vm117_vm0, %v156_v32, %v160_v33  ;;  %v164_v46 = vor.u32 %v162_v39, %v160_v33  ;;  %v4315_v32 = vld [vmem:[%s5341_s0 + $0x6c] sm:$0xf]  ;;  %v3845_v33 = vld [vmem:[%s5340_s1 + $0x1b8] sm:$0xff]  }
  0x22   :  { %3502 = vmatprep.subr.bf16.mxu1 %v3798_v43  ;;  %v4329_v39 = vld [vmem:[%s5340_s1 + $0x200] sm:$0xff]  }
  0x23   :  { %1158 = vmatmul.mubr.bf16.vlgmr.msra.gmra.mrb[0].mxu0 %v2847_v36  ;;  %v3823_v36 = vld [vmem:[%s5340_s1 + $0x120] sm:$0xff]   ;;  %v4223_v52 = vsel %vm117_vm0, %v164_v46, %v168_v47 }
  0x24   :  { %1319 = vmatmul.mubr.bf16.vlgmr.msra.gmra.mrb[0].mxu1 %v200_v53  ;;  %3391 = vmatpush3.bf16.msra.mxu0 %v3796_v57  ;;  %v174_v53 = vshll.u32 %v4207_v44, 16  ;;  %v4233_v57 = vld [vmem:[%s5341_s0 + $0x40] ss:$0 sps:$4 sm:$0x11]  }
  0x25   :  { %1326 = vmatprep.mubr.bf16.mxu1 %v4075_v54  ;;  %3503 = vmatpush3.bf16.msra.mxu1 %v3799_v51  ;;  %v170_v51 = vshrl.u32 %v4180_v34, 16  ;;  %v213_v25 = vrot.slane %v4233_v57, 1 }
  0x26   :  { %1165 = vmatprep.mubr.bf16.mxu0 %v4103_v4  ;;  %3392 = vmatprep.subr.bf16.mxu0 %v3801_v0  ;;  %v176_v1 = vrot.slane %v174_v53, 1 }
  0x27   :  { %3504 = vmatprep.subr.bf16.mxu1 %v3804_v3  ;;  %v172_v0 = vor.u32 %v170_v51, %v168_v47  ;;  %v2864_v3 = vld [vmem:[%s5341_s0 + $0x5c] sm:$0xf] }
  0x28   :  { %3393 = vmatpush3.bf16.msra.mxu0 %v3802_v2  ;;  %v3837_v2 = vld [vmem:[%s5340_s1 + $0x1f0] sm:$0xff]   ;;  %v4275_v14 = vcombine.low %v2863_v62, %v2864_v3 }
  0x29   :  { %3505 = vmatpush3.bf16.msra.mxu1 %v3805_v9  ;;  %3394 = vmatprep.subr.bf16.mxu0 %v3807_v10  ;;  %v4269_v9 = vld [vmem:[%s5341_s0 + $0x64] sm:$0xf]  ;;  %v4272_v10 = vsel %vm117_vm0, %v172_v0, %v176_v1  ;;  %v2884_v0 = vld [vmem:[%s5341_s0 + $0x60] sm:$0xe] }
  0x2a   :  { %3506 = vmatprep.subr.bf16.mxu1 %v3810_v16  ;;  %v3841_v16 = vld [vmem:[%s5340_s1 + $0x138] sm:$0xff]   ;;  %v4295_v20 = vcombine.low %v2865_v6, %v4269_v9 }
  0x2b   :  { %1166 = vmatmul.mubr.bf16.gmra.mrb[4].mxu0 %v2848_v38  ;;  %v207_v38 = vrot.slane %v4146_v21, 1 }
  0x2c   :  { %1327 = vmatmul.mubr.bf16.gmra.mrb[4].mxu1 %v202_v5  ;;  %1173 = vmatprep.mubr.bf16.mxu0 %v4127_v13  ;;  %v178_v5 = vshrl.u32 %v4207_v44, 16  ;;  %v385_v62 = vshrl.u32 %v4295_v20, 16 }
  0x2d   :  { %1334 = vmatprep.mubr.bf16.mxu1 %v4080_v55  ;;  %3395 = vmatpush3.bf16.msra.mxu0 %v3808_v12  ;;  %v4202_v43 = vsel %vm197_vm1, %v205_v24, %v207_v38  ;;  %v4240_v59 = vsel %vm197_vm1, %v207_v38, %v209_v50  ;;  %v182_v12 = vshll.u32 %v4233_v57, 16  ;;  %v376_v24 = vshll.u32 %v4275_v14, 16 }
  0x2e   :  { %3507 = vmatpush3.bf16.msra.mxu1 %v3811_v18  ;;  %3396 = vmatprep.subr.bf16.mxu0 %v3813_v22  ;;  %v4287_v18 = vsel %vm197_vm1, %v209_v50, %v4243_v61  ;;  %v4297_v22 = vor.u32 %v178_v5, %v176_v1  ;;  %v2901_v5 = vcombine.low %v2884_v0, %v4269_v9  ;;  %v4439_v0 = vld [vmem:[%s5341_s0 + $0x90] sm:$0xff]  }
  0x2f   :  { %3508 = vmatprep.subr.bf16.mxu1 %v3817_v28  ;;  %v374_v28 = vshrl.u32 %v4275_v14, 16 }
  0x31   :  { %3397 = vmatpush3.bf16.msra.mxu0 %v3814_v23  ;;  %v184_v23 = vrot.slane %v182_v12, 1  ;;  %v504_v12 = vrot.slane %v2901_v5, 1  ;;  %v429_v5 = vshll.u32 %v4439_v0, 16 }
  0x32   :  { %3509 = vmatpush3.bf16.msra.mxu1 %v3818_v29  ;;  %3398 = vmatprep.subr.bf16.mxu0 %v3822_v31  ;;  %v2880_v29 = vld [vmem:[%s5341_s0 + $0x58] sm:$0xe]  ;;  %v2867_v31 = vld [vmem:[%s5341_s0 + $0x68] sm:$0xf] }
  0x33   :  { %1174 = vmatmul.mubr.bf16.gmra.mrb[8].mxu0 %v4075_v54  ;;  %3510 = vmatprep.subr.bf16.mxu1 %v3825_v37  ;;  %v381_v37 = vshll.u32 %v4295_v20, 16  ;;  %v185_v41 = vsel %vm117_vm0, %v4297_v22, %v184_v23  ;;  %v2898_v47 = vcombine.low %v2880_v29, %v2864_v3 }
  0x34   :  { %1335 = vmatmul.mubr.bf16.gmra.mrb[8].mxu1 %v4138_v17  ;;  %1181 = vmatprep.mubr.bf16.mxu0 %v4159_v26 }
  0x35   :  { %1342 = vmatprep.mubr.bf16.mxu1 %v4111_v8  ;;  %3399 = vmatpush3.bf16.msra.mxu0 %v3823_v36  ;;  %v61_v36 = vld [vmem:[%s5341_s0 + $0x8] sm:$0xe]  ;;  %v383_v51 = vrot.slane %v381_v37, 1  ;;  %v452_v53 = vrot.slane %v2898_v47, 1  ;;  %v4402_v37 = vld [vmem:[%s5341_s0 + $0x80] sm:$0xff]  }
  0x36   :  { %3511 = vmatpush3.bf16.msra.mxu1 %v3826_v42  ;;  %3400 = vmatprep.subr.bf16.mxu0 %v3828_v45  ;;  %v2859_v38 = vcombine.low %v61_v36, %v4053_v35  ;;  %v378_v42 = vrot.slane %v376_v24, 1  ;;  %v4336_v45 = vld [vmem:[%s5342_s6] sm:$0xff]   ;;  %v214_v35 = vsel %vm197_vm1, %v4243_v61, %v213_v25  ;;  %v4382_v25 = vld [vmem:[%s5341_s0 + $0x78] sm:$0xff]  }
  0x37   :  { %3512 = vmatprep.subr.bf16.mxu1 %v3831_v49  ;;  %v387_v6 = vor.u32 %v385_v62, %v383_v51  ;;  %v405_v29 = vshll.u32 %v4382_v25, 16 }
  0x38   :  { %v250_v46 = vrot.slane %v2859_v38, 1  ;;  %v379_v50 = vor.u32 %v378_v42, %v374_v28  ;;  %v459_v38 = vrot.slane %v4382_v25, 1  ;;  %v413_v42 = vshll.u32 %v4402_v37, 16 }
  0x39   :  { %3401 = vmatpush3.bf16.msra.mxu0 %v3829_v48  ;;  %v4344_v48 = vcombine.low %v2867_v31, %v4315_v32  ;;  %v407_v36 = vrot.slane %v405_v29, 1 }
  0x3a   :  { %3513 = vmatpush3.bf16.msra.mxu1 %v3832_v56  ;;  %3402 = vmatprep.subr.bf16.mxu0 %v3834_v58  ;;  %v4348_v49 = vsel %vm197_vm1, %v250_v46, %v4088_v60  ;;  %v453_v56 = vrot.slane %v4295_v20, 1  ;;  %v384_v58 = vsel %vm117_vm0, %v379_v50, %v383_v51  ;;  %v415_v47 = vrot.slane %v413_v42, 1  ;;  %v4421_v50 = vld [vmem:[%s5341_s0 + $0x88] sm:$0xff]  }
  0x3b   :  { %1182 = vmatmul.mubr.bf16.gmra.mrb[12].mxu0 %v4080_v55  ;;  %3514 = vmatprep.subr.bf16.mxu1 %v3837_v2  ;;  %v389_v57 = vshll.u32 %v4344_v48, 16  ;;  %v455_v60 = vrot.slane %v4344_v48, 1  ;;  %v393_v3 = vshrl.u32 %v4344_v48, 16  ;;  %v461_v51 = vrot.slane %v4402_v37, 1 }
  0x3c   :  { %1343 = vmatmul.mubr.bf16.gmra.mrb[12].mxu1 %v4172_v30  ;;  %1189 = vmatprep.mubr.bf16.mxu0 %v4193_v40  ;;  %v454_v1 = vsel %vm197_vm1, %v452_v53, %v453_v56 }
  0x3d   :  { %1350 = vmatprep.mubr.bf16.mxu1 %v4146_v21  ;;  %3403 = vmatpush3.bf16.msra.mxu0 %v3835_v63  ;;  %v4358_v63 = vld [vmem:[%s5341_s0 + $0x70] sm:$0xff]   ;;  %v391_v2 = vrot.slane %v389_v57, 1  ;;  %v456_v23 = vsel %vm197_vm1, %v453_v56, %v455_v60  ;;  %v417_v56 = vshrl.u32 %v4402_v37, 16  ;;  %v421_v57 = vshll.u32 %v4421_v50, 16 }
  0x3e   :  { %3515 = vmatpush3.bf16.msra.mxu1 %v3838_v7  ;;  %3404 = vmatprep.subr.bf16.mxu0 %v3840_v15  ;;  %v397_v7 = vshll.u32 %v4358_v63, 16  ;;  %v4371_v15 = vsel %vm197_vm1, %v504_v12, %v455_v60  ;;  %v431_v12 = vrot.slane %v429_v5, 1  ;;  %v237_v5 = vshrl.u32 %v4292_v19, 16 }
  0x3f   :  { %3516 = vmatprep.subr.bf16.mxu1 %v3844_v27  ;;  %v395_v9 = vor.u32 %v393_v3, %v391_v2  ;;  %v4386_v27 = vrot.slane %v4358_v63, 1  ;;  %v419_v62 = vor.u32 %v417_v56, %v415_v47  ;;  %v425_v3 = vshrl.u32 %v4421_v50, 16  ;;  %v3849_v56 = vld [vmem:[%s5340_s1 + $0x208] sm:$0xff]  }
  0x40   :  { %v399_v24 = vrot.slane %v397_v7, 1 }
  0x41   :  { %3405 = vmatpush3.bf16.msra.mxu0 %v3841_v16  ;;  %v4374_v16 = vsel %vm117_vm0, %v387_v6, %v391_v2  ;;  %v4397_v31 = vsel %vm197_vm1, %v455_v60, %v4386_v27  ;;  %v4416_v46 = vsel %vm197_vm1, %v4386_v27, %v459_v38  ;;  %v423_v60 = vrot.slane %v421_v57, 1  ;;  %v3852_v57 = vld [vmem:[%s5342_s6 + $0x10] sm:$0xff]  }
  0x42   :  { %3517 = vmatpush3.bf16.msra.mxu1 %v3845_v33  ;;  %3662 = vmatprep.subr.bf16.mxu0 %v4329_v39  ;;  %v4389_v28 = vsel %vm117_vm0, %v395_v9, %v399_v24  ;;  %v4460_v9 = vrot.slane %v4439_v0, 1 }
  0x43   :  { %1190 = vmatmul.mubr.bf16.gmra.mrb[16].mxu0 %v4111_v8  ;;  %3710 = vmatprep.subr.bf16.mxu1 %v4336_v45  ;;  %v4445_v2 = vsel %vm117_vm0, %v419_v62, %v423_v60  ;;  %v427_v7 = vor.u32 %v425_v3, %v423_v60  ;;  %v3863_v62 = vld [vmem:[%s5340_s1 + $0x230] sm:$0xff]   ;;  %v3868_v60 = vld [vmem:[%s5342_s6 + $0x38] sm:$0xff]  }
  0x44   :  { %1351 = vmatmul.mubr.bf16.gmra.mrb[16].mxu1 %v4202_v43  ;;  %1197 = vmatprep.mubr.bf16.mxu0 %v4223_v52  ;;  %v3865_v3 = vld [vmem:[%s5340_s1 + $0x238] sm:$0xff]  }
  0x45   :  { %1358 = vmatprep.mubr.bf16.mxu1 %v4180_v34 }
  0x4b   :  { %1198 = vmatmul.mubr.bf16.gmra.mrb[20].mxu0 %v4146_v21 }
  0x4c   :  { %1359 = vmatmul.mubr.bf16.gmra.mrb[20].mxu1 %v4240_v59  ;;  %1205 = vmatprep.mubr.bf16.mxu0 %v4272_v10 }
  0x4d   :  { %1366 = vmatprep.mubr.bf16.mxu1 %v4207_v44 }
  0x53   :  { %1206 = vmatmul.mubr.bf16.gmra.mrb[24].mxu0 %v4180_v34 }
  0x54   :  { %1367 = vmatmul.mubr.bf16.gmra.mrb[24].mxu1 %v4287_v18  ;;  %1213 = vmatprep.mubr.bf16.mxu0 %v185_v41  ;;  %v409_v41 = vshrl.u32 %v4382_v25, 16 }
  0x55   :  { %1374 = vmatprep.mubr.bf16.mxu1 %v4292_v19 }
  0x5b   :  { %1214 = vmatmul.mubr.bf16.gmra.mrb[28].mxu0 %v4207_v44 }
  0x5c   :  { %1375 = vmatmul.mubr.bf16.gmra.mrb[28].mxu1 %v214_v35  ;;  %1221 = vmatprep.mubr.bf16.mxu0 %v384_v58  ;;  %v411_v35 = vor.u32 %v409_v41, %v407_v36  ;;  %v4434_v58 = vsel %vm197_vm1, %v459_v38, %v461_v51 }
  0x5d   :  { %1382 = vmatprep.mubr.bf16.mxu1 %v4295_v20 }
  0x5e   :  { %v4427_v53 = vsel %vm117_vm0, %v411_v35, %v415_v47 }
  0x63   :  { %1222 = vmatmul.mubr.bf16.gmra.mrb[32].mxu0 %v4275_v14  ;;  %v401_v14 = vshrl.u32 %v4358_v63, 16 }
  0x64   :  { %1383 = vmatmul.mubr.bf16.gmra.mrb[32].mxu1 %v454_v1  ;;  %1229 = vmatprep.mubr.bf16.mxu0 %v4374_v16  ;;  %v463_v1 = vrot.slane %v4421_v50, 1 }
  0x65   :  { %1390 = vmatprep.mubr.bf16.mxu1 %v4344_v48  ;;  %v403_v33 = vor.u32 %v401_v14, %v399_v24  ;;  %v4463_v24 = vsel %vm117_vm0, %v427_v7, %v431_v12  ;;  %v433_v14 = vshrl.u32 %v4439_v0, 16 }
  0x66   :  { %v4452_v6 = vsel %vm197_vm1, %v461_v51, %v463_v1  ;;  %v3850_v51 = vld [vmem:[%s5342_s6 + $0x8] sm:$0xff]  }
  0x67   :  { %v4477_v38 = vor.u32 %v433_v14, %v431_v12 }
  0x6b   :  { %1230 = vmatmul.mubr.bf16.gmra.mrb[36].mxu0 %v4295_v20  ;;  %v4408_v20 = vsel %vm117_vm0, %v403_v33, %v407_v36  ;;  %v4470_v33 = vsel %vm197_vm1, %v463_v1, %v4460_v9  ;;  %v4475_v36 = vld [vmem:[%s5341_s0 + $0x98] sm:$0xff]   ;;  %v4548_v1 = vld [vmem:[%s5341_s0 + $0x48] sm:$0xff]  }
  0x6c   :  { %1391 = vmatmul.mubr.bf16.gmra.mrb[36].mxu1 %v456_v23  ;;  %1237 = vmatprep.mubr.bf16.mxu0 %v4389_v28  ;;  %v3842_v23 = vld [vmem:[%s5341_s0 + $0x98] ss:$0 sps:$4 sm:$0x11]   ;;  %v269_v7 = vshll.u32 %v4548_v1, 16 }
  0x6d   :  { %1398 = vmatprep.mubr.bf16.mxu1 %v4358_v63  ;;  %v437_v29 = vshll.u32 %v3842_v23, 16  ;;  %v467_v42 = vrot.slane %v3842_v23, 1 }
  0x6e   :  { %v271_v23 = vrot.slane %v269_v7, 1 }
  0x6f   :  { %v439_v41 = vrot.slane %v437_v29, 1  ;;  %v468_v47 = vsel %vm197_vm1, %v4460_v9, %v467_v42 }
  0x71   :  { %v440_v35 = vsel %vm117_vm0, %v4477_v38, %v439_v41 }
  0x73   :  { %1238 = vmatmul.mubr.bf16.gmra.mrb[40].mxu0 %v4344_v48 }
  0x74   :  { %1399 = vmatmul.mubr.bf16.gmra.mrb[40].mxu1 %v4397_v31  ;;  %1245 = vmatprep.mubr.bf16.mxu0 %v4408_v20 }
  0x75   :  { %1406 = vmatprep.mubr.bf16.mxu1 %v4382_v25 }
  0x7b   :  { %1246 = vmatmul.mubr.bf16.gmra.mrb[44].mxu0 %v4358_v63 }
  0x7c   :  { %1407 = vmatmul.mubr.bf16.gmra.mrb[44].mxu1 %v4416_v46  ;;  %1253 = vmatprep.mubr.bf16.mxu0 %v4427_v53 }
  0x7d   :  { %1414 = vmatprep.mubr.bf16.mxu1 %v4402_v37 }
  0x83   :  { %1254 = vmatmul.mubr.bf16.gmra.mrb[48].mxu0 %v4382_v25 }
  0x84   :  { %1415 = vmatmul.mubr.bf16.gmra.mrb[48].mxu1 %v4434_v58  ;;  %1261 = vmatprep.mubr.bf16.mxu0 %v4445_v2 }
  0x85   :  { %1422 = vmatprep.mubr.bf16.mxu1 %v4421_v50 }
  0x8b   :  { %1262 = vmatmul.mubr.bf16.gmra.mrb[52].mxu0 %v4402_v37 }
  0x8c   :  { %1423 = vmatmul.mubr.bf16.gmra.mrb[52].mxu1 %v4452_v6  ;;  %1269 = vmatprep.mubr.bf16.mxu0 %v4463_v24 }
  0x8d   :  { %1430 = vmatprep.mubr.bf16.mxu1 %v4439_v0 }
  0x93   :  { %1270 = vmatmul.mubr.bf16.gmra.mrb[56].mxu0 %v4421_v50 }
  0x94   :  { %1431 = vmatmul.mubr.bf16.gmra.mrb[56].mxu1 %v4470_v33  ;;  %1277 = vmatprep.mubr.bf16.mxu0 %v440_v35 }
  0x95   :  { %1438 = vmatprep.mubr.bf16.mxu1 %v4475_v36 }
  0x9b   :  { %1278 = vmatmul.mubr.bf16.gmra.mrb[60].mxu0 %v4439_v0 }
  0x9c   :  { %1439 = vmatmul.mubr.bf16.gmra.mrb[60].mxu1 %v468_v47  ;;  %1479 = vmatprep.mubr.bf16.mxu0 %v4348_v49  ;;  %v3864_v49 = vld [vmem:[%s5342_s6 + $0x30] sm:$0xff]  }
  0x9d   :  { %1640 = vmatprep.mubr.bf16.mxu1 %v4127_v13 }
  0xa3   :  { %1480 = vmatmul.mubr.bf16.vlgmr.msra.gmra.mrb[64].mxu0 %v4103_v4  ;;  %v3853_v4 = vld [vmem:[%s5340_s1 + $0x218] sm:$0xff]  }
  0xa4   :  { %1641 = vmatmul.mubr.bf16.vlgmr.msra.gmra.mrb[64].mxu1 %v4075_v54  ;;  %3663 = vmatpush3.bf16.msra.mxu0 %v4329_v39  ;;  %v3851_v54 = vld [vmem:[%s5340_s1 + $0x210] sm:$0xff]   ;;  %v3862_v39 = vld [vmem:[%s5342_s6 + $0x28] sm:$0xff]  }
  0xa5   :  { %3711 = vmatpush3.bf16.msra.mxu1 %v4336_v45  ;;  %1648 = vmatprep.mubr.bf16.mxu1 %v4159_v26  ;;  %v3856_v45 = vld [vmem:[%s5342_s6 + $0x18] sm:$0xff]  }
  0xa6   :  { %3712 = vmatprep.subr.bf16.mxu1 %v3850_v51  ;;  %1487 = vmatprep.mubr.bf16.mxu0 %v4138_v17  ;;  %v3860_v17 = vld [vmem:[%s5342_s6 + $0x20] sm:$0xff]  }
  0xa7   :  { %3664 = vmatprep.subr.bf16.mxu0 %v3849_v56 }
  0xa8   :  { %3665 = vmatpush3.bf16.msra.mxu0 %v3849_v56 }
  0xa9   :  { %3713 = vmatpush3.bf16.msra.mxu1 %v3850_v51  ;;  %3666 = vmatprep.subr.bf16.mxu0 %v3851_v54 }
  0xaa   :  { %3714 = vmatprep.subr.bf16.mxu1 %v3852_v57 }
  0xab   :  { %1488 = vmatmul.mubr.bf16.gmra.mrb[68].mxu0 %v4127_v13  ;;  %v3861_v13 = vld [vmem:[%s5340_s1 + $0x228] sm:$0xff]  }
  0xac   :  { %1649 = vmatmul.mubr.bf16.gmra.mrb[68].mxu1 %v4080_v55  ;;  %1495 = vmatprep.mubr.bf16.mxu0 %v4172_v30  ;;  %v3859_v55 = vld [vmem:[%s5340_s1 + $0x220] sm:$0xff]  }
  0xad   :  { %1656 = vmatprep.mubr.bf16.mxu1 %v4193_v40  ;;  %3715 = vmatpush3.bf16.msra.mxu1 %v3852_v57 }
  0xae   :  { %3716 = vmatprep.subr.bf16.mxu1 %v3856_v45  ;;  %3667 = vmatpush3.bf16.msra.mxu0 %v3851_v54 }
  0xaf   :  { %3668 = vmatprep.subr.bf16.mxu0 %v3853_v4 }
  0xb1   :  { %3717 = vmatpush3.bf16.msra.mxu1 %v3856_v45 }
  0xb2   :  { %3718 = vmatprep.subr.bf16.mxu1 %v3860_v17  ;;  %3669 = vmatpush3.bf16.msra.mxu0 %v3853_v4 }
  0xb3   :  { %3670 = vmatprep.subr.bf16.mxu0 %v3859_v55  ;;  %1496 = vmatmul.mubr.bf16.gmra.mrb[72].mxu0 %v4159_v26 }
  0xb4   :  { %1657 = vmatmul.mubr.bf16.gmra.mrb[72].mxu1 %v4111_v8  ;;  %1503 = vmatprep.mubr.bf16.mxu0 %v4202_v43  ;;  %v233_v8 = vshll.u32 %v4292_v19, 16 }
  0xb5   :  { %1664 = vmatprep.mubr.bf16.mxu1 %v4223_v52  ;;  %3719 = vmatpush3.bf16.msra.mxu1 %v3860_v17 }
  0xb6   :  { %3720 = vmatprep.subr.bf16.mxu1 %v3862_v39  ;;  %3671 = vmatpush3.bf16.msra.mxu0 %v3859_v55  ;;  %v235_v26 = vrot.slane %v233_v8, 1  ;;  %v4613_v55 = vld [vmem:[%s5341_s0 + $0xa0] sm:$0xff]  }
  0xb7   :  { %3672 = vmatprep.subr.bf16.mxu0 %v3861_v13 }
  0xb8   :  { %v239_v12 = vor.u32 %v237_v5, %v235_v26 }
  0xb9   :  { %3721 = vmatpush3.bf16.msra.mxu1 %v3862_v39 }
  0xba   :  { %3722 = vmatprep.subr.bf16.mxu1 %v3864_v49  ;;  %3673 = vmatpush3.bf16.msra.mxu0 %v3861_v13  ;;  %v272_v14 = vsel %vm117_vm0, %v239_v12, %v271_v23 }
  0xbb   :  { %3674 = vmatprep.subr.bf16.mxu0 %v3863_v62  ;;  %1504 = vmatmul.mubr.bf16.gmra.mrb[76].mxu0 %v4193_v40  ;;  %v4563_v40 = vld [vmem:[%s5341_s0 + $0x50] ss:$0 sps:$4 sm:$0x11]  }
  0xbc   :  { %1665 = vmatmul.mubr.bf16.gmra.mrb[76].mxu1 %v4146_v21  ;;  %1511 = vmatprep.mubr.bf16.mxu0 %v4240_v59  ;;  %v236_v21 = vsel %vm117_vm0, %v4297_v22, %v235_v26  ;;  %v4568_v22 = vrot.slane %v4292_v19, 1  ;;  %v277_v29 = vshll.u32 %v4563_v40, 16 }
  0xbd   :  { %1672 = vmatprep.mubr.bf16.mxu1 %v4272_v10  ;;  %3723 = vmatpush3.bf16.msra.mxu1 %v3864_v49 }
  0xbe   :  { %3724 = vmatprep.subr.bf16.mxu1 %v3868_v60  ;;  %3675 = vmatpush3.bf16.msra.mxu0 %v3863_v62  ;;  %v4577_v41 = vsel %vm197_vm1, %v4243_v61, %v4568_v22  ;;  %v279_v35 = vrot.slane %v277_v29, 1 }
  0xbf   :  { %3676 = vmatprep.subr.bf16.mxu0 %v3865_v3 }
  0xc1   :  { %3725 = vmatpush3.bf16.msra.mxu1 %v3868_v60 }
  0xc2   :  { %3677 = vmatpush3.bf16.msra.mxu0 %v3865_v3  ;;  %v3889_v3 = vmov 0  }
  0xc3   :  { %1512 = vmatmul.mubr.bf16.gmra.mrb[80].mxu0 %v4223_v52  ;;  %v3855_v52 = vld [vmem:[%s5341_s0 + $0x48] ss:$0 sps:$4 sm:$0x11]   ;;  %3759 = vset.pattern.permute.xlu0 %v3889_v3 }
  0xc4   :  { %1673 = vmatmul.mubr.bf16.gmra.mrb[80].mxu1 %v4180_v34  ;;  %1519 = vmatprep.mubr.bf16.mxu0 %v4287_v18  ;;  %v273_v34 = vshrl.u32 %v4548_v1, 16  ;;  %v254_v47 = vrot.slane %v3855_v52, 1 }
  0xc5   :  { %1680 = vmatprep.mubr.bf16.mxu1 %v236_v21 }
  0xc6   :  { %v275_v42 = vor.u32 %v273_v34, %v271_v23  ;;  %v255_v61 = vsel %vm197_vm1, %v4568_v22, %v254_v47 }
  0xc8   :  { %v280_v51 = vsel %vm117_vm0, %v275_v42, %v279_v35 }
  0xcb   :  { %1520 = vmatmul.mubr.bf16.gmra.mrb[84].mxu0 %v4272_v10 }
  0xcc   :  { %1681 = vmatmul.mubr.bf16.gmra.mrb[84].mxu1 %v4207_v44  ;;  %1527 = vmatprep.mubr.bf16.mxu0 %v4577_v41  ;;  %v241_v44 = vshll.u32 %v3855_v52, 16 }
  0xcd   :  { %1688 = vmatprep.mubr.bf16.mxu1 %v272_v14 }
  0xce   :  { %v243_v56 = vrot.slane %v241_v44, 1 }
  0xd0   :  { %v244_v57 = vsel %vm117_vm0, %v239_v12, %v243_v56  ;;  %v523_v12 = vshll.u32 %v4613_v55, 16 }
  0xd2   :  { %v525_v47 = vrot.slane %v523_v12, 1 }
  0xd3   :  { %1528 = vmatmul.mubr.bf16.gmra.mrb[88].mxu0 %v236_v21 }
  0xd4   :  { %1689 = vmatmul.mubr.bf16.gmra.mrb[88].mxu1 %v4292_v19  ;;  %1535 = vmatprep.mubr.bf16.mxu0 %v255_v61 }
  0xd5   :  { %1696 = vmatprep.mubr.bf16.mxu1 %v280_v51 }
  0xdb   :  { %1536 = vmatmul.mubr.bf16.gmra.mrb[92].mxu0 %v244_v57 }
  0xdc   :  { %1697 = vmatmul.mubr.bf16.gmra.mrb[92].mxu1 %v4548_v1  ;;  %1543 = vmatprep.mubr.bf16.mxu0 %v4371_v15 }
  0xdd   :  { %1704 = vmatprep.mubr.bf16.mxu1 %v4389_v28 }
  0xe3   :  { %1544 = vmatmul.mubr.bf16.gmra.mrb[96].mxu0 %v4374_v16 }
  0xe4   :  { %1705 = vmatmul.mubr.bf16.gmra.mrb[96].mxu1 %v4344_v48  ;;  %1551 = vmatprep.mubr.bf16.mxu0 %v4397_v31 }
  0xe5   :  { %1712 = vmatprep.mubr.bf16.mxu1 %v4408_v20 }
  0xeb   :  { %1552 = vmatmul.mubr.bf16.gmra.mrb[100].mxu0 %v4389_v28  ;;  %v487_v28 = vshll.u32 %v4475_v36, 16 }
  0xec   :  { %1713 = vmatmul.mubr.bf16.gmra.mrb[100].mxu1 %v4358_v63  ;;  %1559 = vmatprep.mubr.bf16.mxu0 %v4416_v46  ;;  %v15_v63 = vstv %s5344_s4 }
  0xed   :  { %1720 = vmatprep.mubr.bf16.mxu1 %v4427_v53  ;;  %16 = vst [vmem:[#allocation2] sm:$0x1] %v15_v63  ;;  %v489_v17 = vrot.slane %v487_v28, 1 }
  0xef   :  { %v4626_v7 = vsel %vm117_vm0, %v4477_v38, %v489_v17  ;;  %v4637_v38 = vld [vmem:[%s5341_s0 + $0xa8] ss:$0 sps:$4 sm:$0x11]  }
  0xf3   :  { %1560 = vmatmul.mubr.bf16.gmra.mrb[104].mxu0 %v4408_v20 }
  0xf4   :  { %1721 = vmatmul.mubr.bf16.gmra.mrb[104].mxu1 %v4382_v25  ;;  %1567 = vmatprep.mubr.bf16.mxu0 %v4434_v58  ;;  %v2979_v21 = vld [vmem:[#allocation2] ss:$0 sm:$0xff] }
  0xf5   :  { %1728 = vmatprep.mubr.bf16.mxu1 %v4445_v2  ;;  %2047 = vperm.xlu0 %3759, %v2979_v21  }
  0xf6   :  { %v3182_v31 = vpop.f32.mrb[0].mxu0 }
  0xf7   :  { %v3294_v10 = vpop.f32.mrb[0].mxu1  ;;  %v3183_v54 = vpop.f32.mrb[1].mxu0 }
  0xf8   :  { %v3295_v19 = vpop.f32.mrb[1].mxu1  ;;  %v3184_v45 = vadd.f32 %v3183_v54, %v3182_v31  ;;  %v3185_v20 = vpop.f32.mrb[2].mxu0 }
  0xf9   :  { %v3296_v48 = vadd.f32 %v3295_v19, %v3294_v10  ;;  %v3297_v15 = vpop.f32.mrb[2].mxu1  ;;  %v3186_v4 = vpop.f32.mrb[3].mxu0 }
  0xfa   :  { %v3298_v16 = vpop.f32.mrb[3].mxu1  ;;  %v3187_v13 = vadd.f32 %v3186_v4, %v3185_v20 }
  0xfb   :  { %v3299_v25 = vadd.f32 %v3298_v16, %v3297_v15  ;;  %v4615_v39 = vadd.f32 %v3296_v48, %v3184_v45  ;;  %1568 = vmatmul.mubr.bf16.gmra.mrb[108].mxu0 %v4427_v53  ;;  %v491_v53 = vshrl.u32 %v4475_v36, 16  ;;  %v4646_v15 = vrot.slane %v4475_v36, 1 }
  0xfc   :  { %1729 = vmatmul.mubr.bf16.gmra.mrb[108].mxu1 %v4402_v37  ;;  %v17_v37 = vstv %s5345_s9  ;;  %1575 = vmatprep.mubr.bf16.mxu0 %v4452_v6  ;;  %v527_v16 = vshrl.u32 %v4613_v55, 16 }
  0xfd   :  { %1736 = vmatprep.mubr.bf16.mxu1 %v4463_v24  ;;  %v4621_v62 = vadd.f32 %v3299_v25, %v3187_v13  ;;  %18 = vst [vmem:[#allocation3] sm:$0x1] %v17_v37  ;;  %v4632_v35 = vor.u32 %v491_v53, %v489_v17  ;;  %v4656_v4 = vsel %vm197_vm1, %v4460_v9, %v4646_v15  ;;  %v3867_v17 = vld [vmem:[%s5341_s0 + $0xa0] ss:$0 sps:$4 sm:$0x11]  }
  0xfe   :  { %v3188_v23 = vpop.f32.mrb[4].mxu0  ;;  %v529_v13 = vor.u32 %v527_v16, %v525_v47 }
  0xff   :  { %v3300_v49 = vpop.f32.mrb[4].mxu1  ;;  %v3189_v34 = vpop.f32.mrb[5].mxu0  ;;  %v526_v63 = vsel %vm117_vm0, %v4632_v35, %v525_v47 }
 0x100   :  { %v3301_v8 = vpop.f32.mrb[5].mxu1  ;;  %v3190_v29 = vadd.f32 %v3189_v34, %v3188_v23  ;;  %v3191_v52 = vpop.f32.mrb[6].mxu0 }
 0x101   :  { %v3302_v60 = vadd.f32 %v3301_v8, %v3300_v49  ;;  %v3303_v26 = vpop.f32.mrb[6].mxu1  ;;  %v3192_v42 = vpop.f32.mrb[7].mxu0 }
 0x102   :  { %v3304_v5 = vpop.f32.mrb[7].mxu1  ;;  %v3193_v44 = vadd.f32 %v3192_v42, %v3191_v52  ;;  %v495_v52 = vshll.u32 %v3867_v17, 16 }
 0x103   :  { %v3305_v14 = vadd.f32 %v3304_v5, %v3303_v26  ;;  %v4639_v51 = vadd.f32 %v3302_v60, %v3190_v29  ;;  %1576 = vmatmul.mubr.bf16.gmra.mrb[112].mxu0 %v4445_v2  ;;  %v531_v2 = vshll.u32 %v4637_v38, 16  ;;  %v508_v5 = vrot.slane %v3867_v17, 1 }
 0x104   :  { %1737 = vmatmul.mubr.bf16.gmra.mrb[112].mxu1 %v4421_v50  ;;  %v3006_v56 = vld [vmem:[#allocation3] ss:$0 sm:$0xff]  ;;  %1583 = vmatprep.mubr.bf16.mxu0 %v4470_v33  ;;  %v497_v16 = vrot.slane %v495_v52, 1 }
 0x105   :  { %1744 = vmatprep.mubr.bf16.mxu1 %v4626_v7  ;;  %v4642_v57 = vadd.f32 %v3305_v14, %v3193_v44  ;;  %2616 = vperm.xlu0 %3759, %v3006_v56   ;;  %v533_v49 = vrot.slane %v531_v2, 1  ;;  %v65_v14 = vld [vmem:[%s5341_s0 + $0x10] sm:$0xe]  ;;  %v509_v47 = vsel %vm197_vm1, %v4646_v15, %v508_v5  ;;  %v3888_v44 = vld [vmem:[%s5341_s0 + $0x14] sm:$0xf]  ;;  %v3871_v2 = vld [vmem:[%s5343_s5] sm:$0xff]  }
 0x106   :  { %v3194_v28 = vpop.f32.mrb[8].mxu0  ;;  %v498_v17 = vsel %vm117_vm0, %v4632_v35, %v497_v16  ;;  %v3873_v35 = vld [vmem:[%s5343_s5 + $0x10] sm:$0xff]  }
 0x107   :  { %v3306_v61 = vpop.f32.mrb[8].mxu1  ;;  %v3195_v25 = vpop.f32.mrb[9].mxu0  ;;  %v534_v53 = vsel %vm117_vm0, %v529_v13, %v533_v49 }
 0x108   :  { %v3307_v50 = vpop.f32.mrb[9].mxu1  ;;  %v3196_v54 = vadd.f32 %v3195_v25, %v3194_v28  ;;  %v3197_v45 = vpop.f32.mrb[10].mxu0 }
 0x109   :  { %v3308_v10 = vadd.f32 %v3307_v50, %v3306_v61  ;;  %v3309_v19 = vpop.f32.mrb[10].mxu1  ;;  %v3198_v20 = vpop.f32.mrb[11].mxu0  ;;  %v2862_v61 = vcombine.low %v65_v14, %v3888_v44 }
 0x10a   :  { %v3310_v48 = vpop.f32.mrb[11].mxu1  ;;  %v3199_v37 = vadd.f32 %v3198_v20, %v3197_v45 }
 0x10b   :  { %v3311_v31 = vadd.f32 %v3310_v48, %v3309_v19  ;;  %v4661_v8 = vadd.f32 %v3308_v10, %v3196_v54  ;;  %1584 = vmatmul.mubr.bf16.gmra.mrb[116].mxu0 %v4463_v24 }
 0x10c   :  { %1745 = vmatmul.mubr.bf16.gmra.mrb[116].mxu1 %v4439_v0  ;;  %1591 = vmatprep.mubr.bf16.mxu0 %v4656_v4 }
 0x10d   :  { %1752 = vmatprep.mubr.bf16.mxu1 %v526_v63  ;;  %v4664_v26 = vadd.f32 %v3311_v31, %v3199_v37  ;;  %v286_v31 = vrot.slane %v2862_v61, 1  ;;  %v3874_v61 = vld [vmem:[%s5343_s5 + $0x18] sm:$0xff]  }
 0x10e   :  { %v3200_v12 = vpop.f32.mrb[12].mxu0 }
 0x10f   :  { %v3312_v60 = vpop.f32.mrb[12].mxu1  ;;  %v3201_v34 = vpop.f32.mrb[13].mxu0  ;;  %v287_v49 = vsel %vm197_vm1, %v286_v31, %v4120_v11 }
 0x110   :  { %v3313_v0 = vpop.f32.mrb[13].mxu1  ;;  %v3202_v24 = vadd.f32 %v3201_v34, %v3200_v12  ;;  %v3203_v29 = vpop.f32.mrb[14].mxu0 }
 0x111   :  { %v3314_v3 = vadd.f32 %v3313_v0, %v3312_v60  ;;  %v3315_v21 = vpop.f32.mrb[14].mxu1  ;;  %v3204_v42 = vpop.f32.mrb[15].mxu0 }
 0x112   :  { %v3316_v9 = vpop.f32.mrb[15].mxu1  ;;  %v3205_v56 = vadd.f32 %v3204_v42, %v3203_v29 }
 0x113   :  { %v3317_v23 = vadd.f32 %v3316_v9, %v3315_v21  ;;  %v4677_v50 = vadd.f32 %v3314_v3, %v3202_v24  ;;  %1592 = vmatmul.mubr.bf16.gmra.mrb[120].mxu0 %v4626_v7  ;;  %v3872_v21 = vld [vmem:[%s5343_s5 + $0x8] sm:$0xff]  }
 0x114   :  { %1753 = vmatmul.mubr.bf16.gmra.mrb[120].mxu1 %v4475_v36  ;;  %1599 = vmatprep.mubr.bf16.mxu0 %v509_v47 }
 0x115   :  { %1760 = vmatprep.mubr.bf16.mxu1 %v534_v53  ;;  %v4680_v19 = vadd.f32 %v3317_v23, %v3205_v56 }
 0x116   :  { %v3206_v25 = vpop.f32.mrb[16].mxu0 }
 0x117   :  { %v3318_v10 = vpop.f32.mrb[16].mxu1  ;;  %v3207_v45 = vpop.f32.mrb[17].mxu0 }
 0x118   :  { %v3319_v36 = vpop.f32.mrb[17].mxu1  ;;  %v3208_v20 = vadd.f32 %v3207_v45, %v3206_v25  ;;  %v3209_v7 = vpop.f32.mrb[18].mxu0 }
 0x119   :  { %v3320_v48 = vadd.f32 %v3319_v36, %v3318_v10  ;;  %v3321_v63 = vpop.f32.mrb[18].mxu1  ;;  %v3210_v13 = vpop.f32.mrb[19].mxu0 }
 0x11a   :  { %v3322_v28 = vpop.f32.mrb[19].mxu1  ;;  %v3211_v60 = vadd.f32 %v3210_v13, %v3209_v7  ;;  %v3876_v7 = vld [vmem:[%s5343_s5 + $0x28] sm:$0xff]  }
 0x11b   :  { %v3323_v54 = vadd.f32 %v3322_v28, %v3321_v63  ;;  %v4690_v37 = vadd.f32 %v3320_v48, %v3208_v20  ;;  %1600 = vmatmul.mubr.bf16.gmra.mrb[124].mxu0 %v498_v17  ;;  %v3875_v48 = vld [vmem:[%s5343_s5 + $0x20] sm:$0xff]  }
 0x11c   :  { %1761 = vmatmul.mubr.bf16.gmra.mrb[124].mxu1 %v4613_v55  ;;  %3678 = vmatprep.mubr.bf16.mxu0 %v287_v49 }
 0x11d   :  { %3726 = vmatprep.mubr.bf16.mxu1 %v3871_v2  ;;  %v4695_v9 = vadd.f32 %v3323_v54, %v3211_v60  ;;  %v3877_v60 = vld [vmem:[%s5343_s5 + $0x30] sm:$0xff]  }
 0x11e   :  { %v3212_v12 = vpop.f32.mrb[20].mxu0 }
 0x11f   :  { %v3324_v0 = vpop.f32.mrb[20].mxu1  ;;  %v3213_v14 = vpop.f32.mrb[21].mxu0 }
 0x120   :  { %v3325_v3 = vpop.f32.mrb[21].mxu1  ;;  %v3214_v34 = vadd.f32 %v3213_v14, %v3212_v12  ;;  %v3215_v24 = vpop.f32.mrb[22].mxu0 }
 0x121   :  { %v3326_v5 = vadd.f32 %v3325_v3, %v3324_v0  ;;  %v3327_v53 = vpop.f32.mrb[22].mxu1  ;;  %v3216_v29 = vpop.f32.mrb[23].mxu0  ;;  %v288_v3 = vrot.slane %v4548_v1, 1 }
 0x122   :  { %v3328_v11 = vpop.f32.mrb[23].mxu1  ;;  %v3217_v42 = vadd.f32 %v3216_v29, %v3215_v24  ;;  %v3878_v29 = vld [vmem:[%s5343_s5 + $0x38] sm:$0xff]  }
 0x123   :  { %v3329_v23 = vadd.f32 %v3328_v11, %v3327_v53  ;;  %v4700_v52 = vadd.f32 %v3326_v5, %v3214_v34  ;;  %3679 = vmatmul.mubr.bf16.vlgmr.msra.gmra.mrb[128].mxu0 %v4172_v30  ;;  %v2888_v5 = vld [vmem:[%s5341_s0 + $0x68] sm:$0xe] }
 0x124   :  { %3727 = vmatmul.mubr.bf16.vlgmr.msra.gmra.mrb[128].mxu1 %v3872_v21  ;;  %3682 = vmatprep.mubr.bf16.mxu0 %v4202_v43 }
 0x125   :  { %3730 = vmatprep.mubr.bf16.mxu1 %v3873_v35  ;;  %v4706_v56 = vadd.f32 %v3329_v23, %v3217_v42  ;;  %v2904_v23 = vcombine.low %v2888_v5, %v4315_v32  ;;  %v3880_v32 = vld [vmem:[%s5343_s5 + $0x40] sm:$0xff]  }
 0x126   :  { %v3218_v16 = vpop.f32.mrb[24].mxu0 }
 0x127   :  { %v3330_v47 = vpop.f32.mrb[24].mxu1  ;;  %v3219_v28 = vpop.f32.mrb[25].mxu0 }
 0x128   :  { %v3331_v44 = vpop.f32.mrb[25].mxu1  ;;  %v3220_v30 = vadd.f32 %v3219_v28, %v3218_v16  ;;  %v3221_v31 = vpop.f32.mrb[26].mxu0 }
 0x129   :  { %v3332_v10 = vadd.f32 %v3331_v44, %v3330_v47  ;;  %v3333_v36 = vpop.f32.mrb[26].mxu1  ;;  %v3222_v25 = vpop.f32.mrb[27].mxu0 }
 0x12a   :  { %v3334_v63 = vpop.f32.mrb[27].mxu1  ;;  %v3223_v45 = vadd.f32 %v3222_v25, %v3221_v31 }
 0x12b   :  { %v3335_v2 = vadd.f32 %v3334_v63, %v3333_v36  ;;  %v4712_v54 = vadd.f32 %v3332_v10, %v3220_v30  ;;  %3683 = vmatmul.mubr.bf16.gmra.mrb[132].mxu0 %v4240_v59  ;;  %v540_v10 = vrot.slane %v2904_v23, 1 }
 0x12c   :  { %3731 = vmatmul.mubr.bf16.gmra.mrb[132].mxu1 %v3874_v61  ;;  %3686 = vmatprep.mubr.bf16.mxu0 %v4287_v18  ;;  %v289_v18 = vsel %vm197_vm1, %v4568_v22, %v288_v3  ;;  %v290_v22 = vrot.slane %v4563_v40, 1 }
 0x12d   :  { %3734 = vmatprep.mubr.bf16.mxu1 %v3875_v48  ;;  %v4718_v17 = vadd.f32 %v3335_v2, %v3223_v45  ;;  %v541_v30 = vsel %vm197_vm1, %v540_v10, %v4386_v27 }
 0x12e   :  { %v3224_v21 = vpop.f32.mrb[28].mxu0  ;;  %v291_v2 = vsel %vm197_vm1, %v288_v3, %v290_v22 }
 0x12f   :  { %v3336_v20 = vpop.f32.mrb[28].mxu1  ;;  %v3225_v53 = vpop.f32.mrb[29].mxu0 }
 0x130   :  { %v3337_v43 = vpop.f32.mrb[29].mxu1  ;;  %v3226_v35 = vadd.f32 %v3225_v53, %v3224_v21  ;;  %v3227_v11 = vpop.f32.mrb[30].mxu0 }
 0x131   :  { %v3338_v13 = vadd.f32 %v3337_v43, %v3336_v20  ;;  %v3339_v49 = vpop.f32.mrb[30].mxu1  ;;  %v3228_v12 = vpop.f32.mrb[31].mxu0  ;;  %v3881_v20 = vld [vmem:[%s5343_s5 + $0x48] sm:$0xff]  }
 0x132   :  { %v3340_v0 = vpop.f32.mrb[31].mxu1  ;;  %v3229_v1 = vadd.f32 %v3228_v12, %v3227_v11 }
 0x133   :  { %v3341_v59 = vadd.f32 %v3340_v0, %v3339_v49  ;;  %v4731_v14 = vadd.f32 %v3338_v13, %v3226_v35  ;;  %3687 = vmatmul.mubr.bf16.gmra.mrb[136].mxu0 %v4577_v41  ;;  %v3882_v49 = vld [vmem:[%s5343_s5 + $0x50] sm:$0xff]  }
 0x134   :  { %3735 = vmatmul.mubr.bf16.gmra.mrb[136].mxu1 %v3876_v7  ;;  %3690 = vmatprep.mubr.bf16.mxu0 %v289_v18  ;;  %v3883_v18 = vld [vmem:[%s5343_s5 + $0x58] sm:$0xff]  }
 0x135   :  { %3738 = vmatprep.mubr.bf16.mxu1 %v3877_v60  ;;  %v4737_v42 = vadd.f32 %v3341_v59, %v3229_v1 }
 0x136   :  { %v3230_v36 = vpop.f32.mrb[32].mxu0 }
 0x137   :  { %v3342_v34 = vpop.f32.mrb[32].mxu1  ;;  %v3231_v48 = vpop.f32.mrb[33].mxu0 }
 0x138   :  { %v3343_v24 = vpop.f32.mrb[33].mxu1  ;;  %v3232_v63 = vadd.f32 %v3231_v48, %v3230_v36  ;;  %v3233_v16 = vpop.f32.mrb[34].mxu0  ;;  %v3885_v48 = vld [vmem:[%s5343_s5 + $0x68] sm:$0xff]  }
 0x139   :  { %v3344_v47 = vadd.f32 %v3343_v24, %v3342_v34  ;;  %v3345_v44 = vpop.f32.mrb[34].mxu1  ;;  %v3234_v28 = vpop.f32.mrb[35].mxu0  ;;  %v3884_v24 = vld [vmem:[%s5343_s5 + $0x60] sm:$0xff]  }
 0x13a   :  { %v3346_v61 = vpop.f32.mrb[35].mxu1  ;;  %v3235_v31 = vadd.f32 %v3234_v28, %v3233_v16  ;;  %v3886_v28 = vld [vmem:[%s5343_s5 + $0x70] sm:$0xff]  }
 0x13b   :  { %v3347_v41 = vadd.f32 %v3346_v61, %v3345_v44  ;;  %v4746_v40 = vadd.f32 %v3344_v47, %v3232_v63  ;;  %3691 = vmatmul.mubr.bf16.gmra.mrb[140].mxu0 %v291_v2 }
 0x13c   :  { %3739 = vmatmul.mubr.bf16.gmra.mrb[140].mxu1 %v3878_v29  ;;  %3694 = vmatprep.mubr.bf16.mxu0 %v541_v30 }
 0x13d   :  { %3742 = vmatprep.mubr.bf16.mxu1 %v3880_v32  ;;  %v4751_v43 = vadd.f32 %v3347_v41, %v3235_v31  ;;  %v542_v31 = vrot.slane %v4613_v55, 1  ;;  %v3887_v55 = vld [vmem:[%s5343_s5 + $0x78] sm:$0xff]  }
 0x13e   :  { %v3236_v60 = vpop.f32.mrb[36].mxu0 }
 0x13f   :  { %v3348_v25 = vpop.f32.mrb[36].mxu1  ;;  %v3237_v3 = vpop.f32.mrb[37].mxu0 }
 0x140   :  { %v3349_v45 = vpop.f32.mrb[37].mxu1  ;;  %v3238_v21 = vadd.f32 %v3237_v3, %v3236_v60  ;;  %v3239_v59 = vpop.f32.mrb[38].mxu0 }
 0x141   :  { %v3350_v7 = vadd.f32 %v3349_v45, %v3348_v25  ;;  %v3351_v13 = vpop.f32.mrb[38].mxu1  ;;  %v3240_v5 = vpop.f32.mrb[39].mxu0 }
 0x142   :  { %v3352_v27 = vpop.f32.mrb[39].mxu1  ;;  %v3241_v35 = vadd.f32 %v3240_v5, %v3239_v59  ;;  %v544_v5 = vrot.slane %v4637_v38, 1 }
 0x143   :  { %v3353_v0 = vadd.f32 %v3352_v27, %v3351_v13  ;;  %v4756_v53 = vadd.f32 %v3350_v7, %v3238_v21  ;;  %3695 = vmatmul.mubr.bf16.gmra.mrb[144].mxu0 %v4416_v46 }
 0x144   :  { %3743 = vmatmul.mubr.bf16.gmra.mrb[144].mxu1 %v3881_v20  ;;  %3698 = vmatprep.mubr.bf16.mxu0 %v4434_v58 }
 0x145   :  { %3746 = vmatprep.mubr.bf16.mxu1 %v3882_v49  ;;  %v4762_v23 = vadd.f32 %v3353_v0, %v3241_v35  ;;  %v543_v49 = vsel %vm197_vm1, %v4646_v15, %v542_v31 }
 0x146   :  { %v3242_v47 = vpop.f32.mrb[40].mxu0 }
 0x147   :  { %v3354_v11 = vpop.f32.mrb[40].mxu1  ;;  %v3243_v22 = vpop.f32.mrb[41].mxu0 }
 0x148   :  { %v3355_v12 = vpop.f32.mrb[41].mxu1  ;;  %v3244_v46 = vadd.f32 %v3243_v22, %v3242_v47  ;;  %v3245_v32 = vpop.f32.mrb[42].mxu0 }
 0x149   :  { %v3356_v1 = vadd.f32 %v3355_v12, %v3354_v11  ;;  %v3357_v34 = vpop.f32.mrb[42].mxu1  ;;  %v3246_v61 = vpop.f32.mrb[43].mxu0 }
 0x14a   :  { %v3358_v29 = vpop.f32.mrb[43].mxu1  ;;  %v3247_v36 = vadd.f32 %v3246_v61, %v3245_v32 }
 0x14b   :  { %v3359_v44 = vadd.f32 %v3358_v29, %v3357_v34  ;;  %v4768_v10 = vadd.f32 %v3356_v1, %v3244_v46  ;;  %3699 = vmatmul.mubr.bf16.gmra.mrb[148].mxu0 %v4452_v6 }
 0x14c   :  { %3747 = vmatmul.mubr.bf16.gmra.mrb[148].mxu1 %v3883_v18  ;;  %3702 = vmatprep.mubr.bf16.mxu0 %v4470_v33 }
 0x14d   :  { %3750 = vmatprep.mubr.bf16.mxu1 %v3884_v24  ;;  %v4774_v63 = vadd.f32 %v3359_v44, %v3247_v36 }
 0x14e   :  { %v3248_v25 = vpop.f32.mrb[44].mxu0 }
 0x14f   :  { %v3360_v41 = vpop.f32.mrb[44].mxu1  ;;  %v3249_v45 = vpop.f32.mrb[45].mxu0 }
 0x150   :  { %v3361_v58 = vpop.f32.mrb[45].mxu1  ;;  %v3250_v20 = vadd.f32 %v3249_v45, %v3248_v25  ;;  %v3251_v7 = vpop.f32.mrb[46].mxu0 }
 0x151   :  { %v3362_v16 = vadd.f32 %v3361_v58, %v3360_v41  ;;  %v3363_v2 = vpop.f32.mrb[46].mxu1  ;;  %v3252_v13 = vpop.f32.mrb[47].mxu0 }
 0x152   :  { %v3364_v30 = vpop.f32.mrb[47].mxu1  ;;  %v3253_v33 = vadd.f32 %v3252_v13, %v3251_v7 }
 0x153   :  { %v3365_v6 = vadd.f32 %v3364_v30, %v3363_v2  ;;  %v4783_v27 = vadd.f32 %v3362_v16, %v3250_v20  ;;  %3703 = vmatmul.mubr.bf16.gmra.mrb[152].mxu0 %v4656_v4  ;;  %v545_v4 = vsel %vm197_vm1, %v542_v31, %v544_v5 }
 0x154   :  { %3751 = vmatmul.mubr.bf16.gmra.mrb[152].mxu1 %v3885_v48  ;;  %3706 = vmatprep.mubr.bf16.mxu0 %v543_v49 }
 0x155   :  { %3754 = vmatprep.mubr.bf16.mxu1 %v3886_v28  ;;  %v4789_v3 = vadd.f32 %v3365_v6, %v3253_v33 }
 0x156   :  { %v3254_v15 = vpop.f32.mrb[48].mxu0 }
 0x157   :  { %v3366_v60 = vpop.f32.mrb[48].mxu1  ;;  %v3255_v12 = vpop.f32.mrb[49].mxu0 }
 0x158   :  { %v3367_v0 = vpop.f32.mrb[49].mxu1  ;;  %v3256_v18 = vadd.f32 %v3255_v12, %v3254_v15  ;;  %v3257_v1 = vpop.f32.mrb[50].mxu0 }
 0x159   :  { %v3368_v21 = vadd.f32 %v3367_v0, %v3366_v60  ;;  %v3369_v59 = vpop.f32.mrb[50].mxu1  ;;  %v3258_v34 = vpop.f32.mrb[51].mxu0 }
 0x15a   :  { %v3370_v35 = vpop.f32.mrb[51].mxu1  ;;  %v3259_v29 = vadd.f32 %v3258_v34, %v3257_v1 }
 0x15b   :  { %v3371_v11 = vadd.f32 %v3370_v35, %v3369_v59  ;;  %v4793_v24 = vadd.f32 %v3368_v21, %v3256_v18  ;;  %3707 = vmatmul.mubr.bf16.gmra.mrb[156].mxu0 %v545_v4 }
 0x15c   :  { %3755 = vmatmul.mubr.bf16.gmra.mrb[156].mxu1 %v3887_v55 }
 0x15d   :  { %v4795_v22 = vadd.f32 %v3371_v11, %v3259_v29 }
 0x15e   :  { %v3260_v61 = vpop.f32.mrb[52].mxu0 }
 0x15f   :  { %v3372_v47 = vpop.f32.mrb[52].mxu1  ;;  %v3261_v41 = vpop.f32.mrb[53].mxu0 }
 0x160   :  { %v3373_v44 = vpop.f32.mrb[53].mxu1  ;;  %v3262_v58 = vadd.f32 %v3261_v41, %v3260_v61  ;;  %v3263_v48 = vpop.f32.mrb[54].mxu0 }
 0x161   :  { %v3374_v46 = vadd.f32 %v3373_v44, %v3372_v47  ;;  %v3375_v38 = vpop.f32.mrb[54].mxu1  ;;  %v3264_v16 = vpop.f32.mrb[55].mxu0 }
 0x162   :  { %v3376_v32 = vpop.f32.mrb[55].mxu1  ;;  %v3265_v28 = vadd.f32 %v3264_v16, %v3263_v48 }
 0x163   :  { %v3377_v36 = vadd.f32 %v3376_v32, %v3375_v38  ;;  %v4797_v2 = vadd.f32 %v3374_v46, %v3262_v58 }
 0x165   :  { %v4799_v25 = vadd.f32 %v3377_v36, %v3265_v28 }
 0x166   :  { %v3266_v7 = vpop.f32.mrb[56].mxu0 }
 0x167   :  { %v3378_v30 = vpop.f32.mrb[56].mxu1  ;;  %v3267_v49 = vpop.f32.mrb[57].mxu0 }
 0x168   :  { %v3379_v31 = vpop.f32.mrb[57].mxu1  ;;  %v3268_v33 = vadd.f32 %v3267_v49, %v3266_v7  ;;  %v3269_v60 = vpop.f32.mrb[58].mxu0 }
 0x169   :  { %v3380_v6 = vadd.f32 %v3379_v31, %v3378_v30  ;;  %v3381_v45 = vpop.f32.mrb[58].mxu1  ;;  %v3270_v0 = vpop.f32.mrb[59].mxu0 }
 0x16a   :  { %v3382_v20 = vpop.f32.mrb[59].mxu1  ;;  %v3271_v21 = vadd.f32 %v3270_v0, %v3269_v60 }
 0x16b   :  { %v3383_v13 = vadd.f32 %v3382_v20, %v3381_v45  ;;  %v4801_v55 = vadd.f32 %v3380_v6, %v3268_v33 }
 0x16d   :  { %v4803_v35 = vadd.f32 %v3383_v13, %v3271_v21 }
 0x16e   :  { %v3272_v18 = vpop.f32.mrb[60].mxu0 }
 0x16f   :  { %v3384_v59 = vpop.f32.mrb[60].mxu1  ;;  %v3273_v4 = vpop.f32.mrb[61].mxu0 }
 0x170   :  { %v3385_v5 = vpop.f32.mrb[61].mxu1  ;;  %v3274_v34 = vadd.f32 %v3273_v4, %v3272_v18  ;;  %v3275_v29 = vpop.f32.mrb[62].mxu0 }
 0x171   :  { %v3386_v15 = vadd.f32 %v3385_v5, %v3384_v59  ;;  %v3387_v11 = vpop.f32.mrb[62].mxu1  ;;  %v3276_v47 = vpop.f32.mrb[63].mxu0 }
 0x172   :  { %v3388_v12 = vpop.f32.mrb[63].mxu1  ;;  %v3277_v46 = vadd.f32 %v3276_v47, %v3275_v29 }
 0x173   :  { %v3389_v1 = vadd.f32 %v3388_v12, %v3387_v11  ;;  %v4805_v44 = vadd.f32 %v3386_v15, %v3274_v34 }
 0x175   :  { %v4807_v61 = vadd.f32 %v3389_v1, %v3277_v46 }
 0x176   :  { %v3406_v48 = vpop.f32.mrb[64].mxu0 }
 0x177   :  { %v3518_v38 = vpop.f32.mrb[64].mxu1  ;;  %v3407_v28 = vpop.f32.mrb[65].mxu0 }
 0x178   :  { %v3519_v32 = vpop.f32.mrb[65].mxu1  ;;  %v3408_v30 = vadd.f32 %v3407_v28, %v3406_v48  ;;  %v3409_v31 = vpop.f32.mrb[66].mxu0 }
 0x179   :  { %v3520_v36 = vadd.f32 %v3519_v32, %v3518_v38  ;;  %v3521_v41 = vpop.f32.mrb[66].mxu1  ;;  %v3410_v6 = vpop.f32.mrb[67].mxu0 }
 0x17a   :  { %v3522_v58 = vpop.f32.mrb[67].mxu1  ;;  %v1482_v45 = vadd.f32 %v3408_v30, %v4615_v39  ;;  %v3411_v20 = vadd.f32 %v3410_v6, %v3409_v31 }
 0x17b   :  { %v3523_v16 = vadd.f32 %v3522_v58, %v3521_v41 }
 0x17c   :  { %v1485_v49 = vadd.f32 %v3411_v20, %v4621_v62  ;;  %v4811_v0 = vadd.f32 %v3520_v36, %v1482_v45 }
 0x17e   :  { %v3412_v59 = vpop.f32.mrb[68].mxu0  ;;  %v4813_v15 = vadd.f32 %v3523_v16, %v1485_v49 }
 0x17f   :  { %v3524_v7 = vpop.f32.mrb[68].mxu1  ;;  %v3413_v11 = vpop.f32.mrb[69].mxu0 }
 0x180   :  { %v3525_v13 = vpop.f32.mrb[69].mxu1  ;;  %v3414_v12 = vadd.f32 %v3413_v11, %v3412_v59  ;;  %v3415_v18 = vpop.f32.mrb[70].mxu0 }
 0x181   :  { %v3526_v33 = vadd.f32 %v3525_v13, %v3524_v7  ;;  %v3527_v60 = vpop.f32.mrb[70].mxu1  ;;  %v3416_v1 = vpop.f32.mrb[71].mxu0 }
 0x182   :  { %v3528_v21 = vpop.f32.mrb[71].mxu1  ;;  %v1490_v39 = vadd.f32 %v3414_v12, %v4639_v51  ;;  %v3417_v4 = vadd.f32 %v3416_v1, %v3415_v18 }
 0x183   :  { %v3529_v5 = vadd.f32 %v3528_v21, %v3527_v60 }
 0x184   :  { %v1493_v62 = vadd.f32 %v3417_v4, %v4642_v57  ;;  %v4817_v38 = vadd.f32 %v3526_v33, %v1490_v39 }
 0x186   :  { %v3418_v36 = vpop.f32.mrb[72].mxu0  ;;  %v4819_v58 = vadd.f32 %v3529_v5, %v1493_v62 }
 0x187   :  { %v3530_v34 = vpop.f32.mrb[72].mxu1  ;;  %v3419_v48 = vpop.f32.mrb[73].mxu0 }
 0x188   :  { %v3531_v29 = vpop.f32.mrb[73].mxu1  ;;  %v3420_v16 = vadd.f32 %v3419_v48, %v3418_v36  ;;  %v3421_v28 = vpop.f32.mrb[74].mxu0 }
 0x189   :  { %v3532_v47 = vadd.f32 %v3531_v29, %v3530_v34  ;;  %v3533_v46 = vpop.f32.mrb[74].mxu1  ;;  %v3422_v30 = vpop.f32.mrb[75].mxu0 }
 0x18a   :  { %v3534_v32 = vpop.f32.mrb[75].mxu1  ;;  %v1498_v51 = vadd.f32 %v3420_v16, %v4661_v8  ;;  %v3423_v31 = vadd.f32 %v3422_v30, %v3421_v28 }
 0x18b   :  { %v3535_v41 = vadd.f32 %v3534_v32, %v3533_v46 }
 0x18c   :  { %v1501_v57 = vadd.f32 %v3423_v31, %v4664_v26  ;;  %v4823_v13 = vadd.f32 %v3532_v47, %v1498_v51 }
 0x18e   :  { %v3424_v33 = vpop.f32.mrb[76].mxu0  ;;  %v4825_v21 = vadd.f32 %v3535_v41, %v1501_v57 }
 0x18f   :  { %v3536_v6 = vpop.f32.mrb[76].mxu1  ;;  %v3425_v59 = vpop.f32.mrb[77].mxu0 }
 0x190   :  { %v3537_v45 = vpop.f32.mrb[77].mxu1  ;;  %v3426_v5 = vadd.f32 %v3425_v59, %v3424_v33  ;;  %v3427_v11 = vpop.f32.mrb[78].mxu0 }
 0x191   :  { %v3538_v20 = vadd.f32 %v3537_v45, %v3536_v6  ;;  %v3539_v7 = vpop.f32.mrb[78].mxu1  ;;  %v3428_v12 = vpop.f32.mrb[79].mxu0 }
 0x192   :  { %v3540_v49 = vpop.f32.mrb[79].mxu1  ;;  %v1506_v8 = vadd.f32 %v3426_v5, %v4677_v50  ;;  %v3429_v18 = vadd.f32 %v3428_v12, %v3427_v11 }
 0x193   :  { %v3541_v60 = vadd.f32 %v3540_v49, %v3539_v7 }
 0x194   :  { %v1509_v26 = vadd.f32 %v3429_v18, %v4680_v19  ;;  %v4829_v29 = vadd.f32 %v3538_v20, %v1506_v8 }
 0x196   :  { %v3430_v47 = vpop.f32.mrb[80].mxu0  ;;  %v4831_v32 = vadd.f32 %v3541_v60, %v1509_v26 }
 0x197   :  { %v3542_v1 = vpop.f32.mrb[80].mxu1  ;;  %v3431_v36 = vpop.f32.mrb[81].mxu0 }
 0x198   :  { %v3543_v39 = vpop.f32.mrb[81].mxu1  ;;  %v3432_v41 = vadd.f32 %v3431_v36, %v3430_v47  ;;  %v3433_v48 = vpop.f32.mrb[82].mxu0 }
 0x199   :  { %v3544_v4 = vadd.f32 %v3543_v39, %v3542_v1  ;;  %v3545_v34 = vpop.f32.mrb[82].mxu1  ;;  %v3434_v16 = vpop.f32.mrb[83].mxu0 }
 0x19a   :  { %v3546_v62 = vpop.f32.mrb[83].mxu1  ;;  %v1514_v50 = vadd.f32 %v3432_v41, %v4690_v37  ;;  %v3435_v28 = vadd.f32 %v3434_v16, %v3433_v48 }
 0x19b   :  { %v3547_v46 = vadd.f32 %v3546_v62, %v3545_v34 }
 0x19c   :  { %v1517_v19 = vadd.f32 %v3435_v28, %v4695_v9  ;;  %v4835_v45 = vadd.f32 %v3544_v4, %v1514_v50 }
 0x19e   :  { %v3436_v20 = vpop.f32.mrb[84].mxu0  ;;  %v4837_v49 = vadd.f32 %v3547_v46, %v1517_v19 }
 0x19f   :  { %v3548_v30 = vpop.f32.mrb[84].mxu1  ;;  %v3437_v33 = vpop.f32.mrb[85].mxu0 }
 0x1a0   :  { %v3549_v51 = vpop.f32.mrb[85].mxu1  ;;  %v3438_v60 = vadd.f32 %v3437_v33, %v3436_v20  ;;  %v3439_v59 = vpop.f32.mrb[86].mxu0 }
 0x1a1   :  { %v3550_v31 = vadd.f32 %v3549_v51, %v3548_v30  ;;  %v3551_v6 = vpop.f32.mrb[86].mxu1  ;;  %v3440_v5 = vpop.f32.mrb[87].mxu0 }
 0x1a2   :  { %v3552_v57 = vpop.f32.mrb[87].mxu1  ;;  %v1522_v37 = vadd.f32 %v3438_v60, %v4700_v52  ;;  %v3441_v11 = vadd.f32 %v3440_v5, %v3439_v59 }
 0x1a3   :  { %v3553_v7 = vadd.f32 %v3552_v57, %v3551_v6 }
 0x1a4   :  { %v1525_v9 = vadd.f32 %v3441_v11, %v4706_v56  ;;  %v4841_v39 = vadd.f32 %v3550_v31, %v1522_v37 }
 0x1a6   :  { %v3442_v4 = vpop.f32.mrb[88].mxu0  ;;  %v4843_v62 = vadd.f32 %v3553_v7, %v1525_v9 }
 0x1a7   :  { %v3554_v12 = vpop.f32.mrb[88].mxu1  ;;  %v3443_v47 = vpop.f32.mrb[89].mxu0 }
 0x1a8   :  { %v3555_v8 = vpop.f32.mrb[89].mxu1  ;;  %v3444_v46 = vadd.f32 %v3443_v47, %v3442_v4  ;;  %v3445_v36 = vpop.f32.mrb[90].mxu0 }
 0x1a9   :  { %v3556_v18 = vadd.f32 %v3555_v8, %v3554_v12  ;;  %v3557_v1 = vpop.f32.mrb[90].mxu1  ;;  %v3446_v41 = vpop.f32.mrb[91].mxu0 }
 0x1aa   :  { %v3558_v26 = vpop.f32.mrb[91].mxu1  ;;  %v1530_v52 = vadd.f32 %v3444_v46, %v4712_v54  ;;  %v3447_v48 = vadd.f32 %v3446_v41, %v3445_v36 }
 0x1ab   :  { %v3559_v34 = vadd.f32 %v3558_v26, %v3557_v1 }
 0x1ac   :  { %v1533_v56 = vadd.f32 %v3447_v48, %v4718_v17  ;;  %v4847_v51 = vadd.f32 %v3556_v18, %v1530_v52 }
 0x1ae   :  { %v3448_v31 = vpop.f32.mrb[92].mxu0  ;;  %v4849_v57 = vadd.f32 %v3559_v34, %v1533_v56 }
 0x1af   :  { %v3560_v16 = vpop.f32.mrb[92].mxu1  ;;  %v3449_v20 = vpop.f32.mrb[93].mxu0 }
 0x1b0   :  { %v3561_v50 = vpop.f32.mrb[93].mxu1  ;;  %v3450_v7 = vadd.f32 %v3449_v20, %v3448_v31  ;;  %v3451_v33 = vpop.f32.mrb[94].mxu0 }
 0x1b1   :  { %v3562_v28 = vadd.f32 %v3561_v50, %v3560_v16  ;;  %v3563_v30 = vpop.f32.mrb[94].mxu1  ;;  %v3452_v60 = vpop.f32.mrb[95].mxu0 }
 0x1b2   :  { %v3564_v19 = vpop.f32.mrb[95].mxu1  ;;  %v1538_v54 = vadd.f32 %v3450_v7, %v4731_v14  ;;  %v3453_v59 = vadd.f32 %v3452_v60, %v3451_v33 }
 0x1b3   :  { %v3565_v6 = vadd.f32 %v3564_v19, %v3563_v30 }
 0x1b4   :  { %v1541_v17 = vadd.f32 %v3453_v59, %v4737_v42  ;;  %v4853_v8 = vadd.f32 %v3562_v28, %v1538_v54 }
 0x1b6   :  { %v3454_v18 = vpop.f32.mrb[96].mxu0  ;;  %v4855_v26 = vadd.f32 %v3565_v6, %v1541_v17 }
 0x1b7   :  { %v3566_v5 = vpop.f32.mrb[96].mxu1  ;;  %v3455_v4 = vpop.f32.mrb[97].mxu0 }
 0x1b8   :  { %v3567_v37 = vpop.f32.mrb[97].mxu1  ;;  %v3456_v34 = vadd.f32 %v3455_v4, %v3454_v18  ;;  %v3457_v47 = vpop.f32.mrb[98].mxu0 }
 0x1b9   :  { %v3568_v11 = vadd.f32 %v3567_v37, %v3566_v5  ;;  %v3569_v12 = vpop.f32.mrb[98].mxu1  ;;  %v3458_v46 = vpop.f32.mrb[99].mxu0 }
 0x1ba   :  { %v3570_v9 = vpop.f32.mrb[99].mxu1  ;;  %v1546_v14 = vadd.f32 %v3456_v34, %v4746_v40  ;;  %v3459_v36 = vadd.f32 %v3458_v46, %v3457_v47 }
 0x1bb   :  { %v3571_v1 = vadd.f32 %v3570_v9, %v3569_v12 }
 0x1bc   :  { %v1549_v42 = vadd.f32 %v3459_v36, %v4751_v43  ;;  %v4859_v50 = vadd.f32 %v3568_v11, %v1546_v14 }
 0x1be   :  { %v3460_v28 = vpop.f32.mrb[100].mxu0  ;;  %v4861_v19 = vadd.f32 %v3571_v1, %v1549_v42 }
 0x1bf   :  { %v3572_v41 = vpop.f32.mrb[100].mxu1  ;;  %v3461_v31 = vpop.f32.mrb[101].mxu0 }
 0x1c0   :  { %v3573_v52 = vpop.f32.mrb[101].mxu1  ;;  %v3462_v6 = vadd.f32 %v3461_v31, %v3460_v28  ;;  %v3463_v20 = vpop.f32.mrb[102].mxu0 }
 0x1c1   :  { %v3574_v48 = vadd.f32 %v3573_v52, %v3572_v41  ;;  %v3575_v16 = vpop.f32.mrb[102].mxu1  ;;  %v3464_v7 = vpop.f32.mrb[103].mxu0 }
 0x1c2   :  { %v3576_v56 = vpop.f32.mrb[103].mxu1  ;;  %v1554_v40 = vadd.f32 %v3462_v6, %v4756_v53  ;;  %v3465_v33 = vadd.f32 %v3464_v7, %v3463_v20 }
 0x1c3   :  { %v3577_v30 = vadd.f32 %v3576_v56, %v3575_v16 }
 0x1c4   :  { %v1557_v43 = vadd.f32 %v3465_v33, %v4762_v23  ;;  %v4865_v37 = vadd.f32 %v3574_v48, %v1554_v40 }
 0x1c6   :  { %v3466_v11 = vpop.f32.mrb[104].mxu0  ;;  %v4867_v9 = vadd.f32 %v3577_v30, %v1557_v43 }
 0x1c7   :  { %v3578_v60 = vpop.f32.mrb[104].mxu1  ;;  %v3467_v18 = vpop.f32.mrb[105].mxu0 }
 0x1c8   :  { %v3579_v54 = vpop.f32.mrb[105].mxu1  ;;  %v3468_v1 = vadd.f32 %v3467_v18, %v3466_v11  ;;  %v3469_v4 = vpop.f32.mrb[106].mxu0 }
 0x1c9   :  { %v3580_v59 = vadd.f32 %v3579_v54, %v3578_v60  ;;  %v3581_v5 = vpop.f32.mrb[106].mxu1  ;;  %v3470_v34 = vpop.f32.mrb[107].mxu0 }
 0x1ca   :  { %v3582_v17 = vpop.f32.mrb[107].mxu1  ;;  %v1562_v53 = vadd.f32 %v3468_v1, %v4768_v10  ;;  %v3471_v47 = vadd.f32 %v3470_v34, %v3469_v4 }
 0x1cb   :  { %v3583_v12 = vadd.f32 %v3582_v17, %v3581_v5 }
 0x1cc   :  { %v1565_v23 = vadd.f32 %v3471_v47, %v4774_v63  ;;  %v4871_v52 = vadd.f32 %v3580_v59, %v1562_v53 }
 0x1ce   :  { %v3472_v48 = vpop.f32.mrb[108].mxu0  ;;  %v4873_v56 = vadd.f32 %v3583_v12, %v1565_v23 }
 0x1cf   :  { %v3584_v46 = vpop.f32.mrb[108].mxu1  ;;  %v3473_v28 = vpop.f32.mrb[109].mxu0 }
 0x1d0   :  { %v3585_v14 = vpop.f32.mrb[109].mxu1  ;;  %v3474_v30 = vadd.f32 %v3473_v28, %v3472_v48  ;;  %v3475_v31 = vpop.f32.mrb[110].mxu0 }
 0x1d1   :  { %v3586_v36 = vadd.f32 %v3585_v14, %v3584_v46  ;;  %v3587_v41 = vpop.f32.mrb[110].mxu1  ;;  %v3476_v6 = vpop.f32.mrb[111].mxu0 }
 0x1d2   :  { %v3588_v42 = vpop.f32.mrb[111].mxu1  ;;  %v1570_v10 = vadd.f32 %v3474_v30, %v4783_v27  ;;  %v3477_v20 = vadd.f32 %v3476_v6, %v3475_v31 }
 0x1d3   :  { %v3589_v16 = vadd.f32 %v3588_v42, %v3587_v41 }
 0x1d4   :  { %v1573_v63 = vadd.f32 %v3477_v20, %v4789_v3  ;;  %v4877_v54 = vadd.f32 %v3586_v36, %v1570_v10 }
 0x1d6   :  { %v3478_v59 = vpop.f32.mrb[112].mxu0  ;;  %v4879_v17 = vadd.f32 %v3589_v16, %v1573_v63 }
 0x1d7   :  { %v3590_v7 = vpop.f32.mrb[112].mxu1  ;;  %v3479_v11 = vpop.f32.mrb[113].mxu0 }
 0x1d8   :  { %v3591_v40 = vpop.f32.mrb[113].mxu1  ;;  %v3480_v12 = vadd.f32 %v3479_v11, %v3478_v59  ;;  %v3481_v18 = vpop.f32.mrb[114].mxu0 }
 0x1d9   :  { %v3592_v33 = vadd.f32 %v3591_v40, %v3590_v7  ;;  %v3593_v60 = vpop.f32.mrb[114].mxu1  ;;  %v3482_v1 = vpop.f32.mrb[115].mxu0 }
 0x1da   :  { %v3594_v43 = vpop.f32.mrb[115].mxu1  ;;  %v1578_v27 = vadd.f32 %v3480_v12, %v4793_v24  ;;  %v3483_v4 = vadd.f32 %v3482_v1, %v3481_v18 }
 0x1db   :  { %v3595_v5 = vadd.f32 %v3594_v43, %v3593_v60 }
 0x1dc   :  { %v1581_v3 = vadd.f32 %v3483_v4, %v4795_v22  ;;  %v4883_v14 = vadd.f32 %v3592_v33, %v1578_v27 }
 0x1de   :  { %v3484_v36 = vpop.f32.mrb[116].mxu0  ;;  %v4885_v42 = vadd.f32 %v3595_v5, %v1581_v3 }
 0x1df   :  { %v3596_v34 = vpop.f32.mrb[116].mxu1  ;;  %v3485_v48 = vpop.f32.mrb[117].mxu0 }
 0x1e0   :  { %v3597_v53 = vpop.f32.mrb[117].mxu1  ;;  %v3486_v16 = vadd.f32 %v3485_v48, %v3484_v36  ;;  %v3487_v28 = vpop.f32.mrb[118].mxu0 }
 0x1e1   :  { %v3598_v47 = vadd.f32 %v3597_v53, %v3596_v34  ;;  %v3599_v46 = vpop.f32.mrb[118].mxu1  ;;  %v3488_v30 = vpop.f32.mrb[119].mxu0 }
 0x1e2   :  { %v3600_v23 = vpop.f32.mrb[119].mxu1  ;;  %v1586_v24 = vadd.f32 %v3486_v16, %v4797_v2  ;;  %v3489_v31 = vadd.f32 %v3488_v30, %v3487_v28 }
 0x1e3   :  { %v3601_v41 = vadd.f32 %v3600_v23, %v3599_v46 }
 0x1e4   :  { %v1589_v22 = vadd.f32 %v3489_v31, %v4799_v25  ;;  %v4889_v40 = vadd.f32 %v3598_v47, %v1586_v24 }
 0x1e6   :  { %v3490_v33 = vpop.f32.mrb[120].mxu0  ;;  %v4891_v43 = vadd.f32 %v3601_v41, %v1589_v22 }
 0x1e7   :  { %v3602_v6 = vpop.f32.mrb[120].mxu1  ;;  %v3491_v59 = vpop.f32.mrb[121].mxu0 }
 0x1e8   :  { %v3603_v10 = vpop.f32.mrb[121].mxu1  ;;  %v3492_v5 = vadd.f32 %v3491_v59, %v3490_v33  ;;  %v3493_v11 = vpop.f32.mrb[122].mxu0  ;;  %v4914_v33 = vld [vmem:[%s5347_s7] ss:$0 sm:$0xff] }
 0x1e9   :  { %v3604_v20 = vadd.f32 %v3603_v10, %v3602_v6  ;;  %v3605_v7 = vpop.f32.mrb[122].mxu1  ;;  %v3494_v12 = vpop.f32.mrb[123].mxu0 }
 0x1ea   :  { %v3606_v63 = vpop.f32.mrb[123].mxu1  ;;  %v1594_v2 = vadd.f32 %v3492_v5, %v4801_v55  ;;  %v3495_v18 = vadd.f32 %v3494_v12, %v3493_v11 }
 0x1eb   :  { %v3607_v60 = vadd.f32 %v3606_v63, %v3605_v7 }
 0x1ec   :  { %v1597_v25 = vadd.f32 %v3495_v18, %v4803_v35  ;;  %v4895_v53 = vadd.f32 %v3604_v20, %v1594_v2  ;;  %v4906_v20 = vld [vmem:[%s5346_s2] ss:$0 sm:$0xff] }
 0x1ee   :  { %v3496_v47 = vpop.f32.mrb[124].mxu0  ;;  %v4897_v23 = vadd.f32 %v3607_v60, %v1597_v25 }
 0x1ef   :  { %v3608_v1 = vpop.f32.mrb[124].mxu1  ;;  %v3497_v36 = vpop.f32.mrb[125].mxu0 }
 0x1f0   :  { %v3609_v27 = vpop.f32.mrb[125].mxu1  ;;  %v3498_v41 = vadd.f32 %v3497_v36, %v3496_v47  ;;  %v3499_v48 = vpop.f32.mrb[126].mxu0 }
 0x1f1   :  { %v3610_v4 = vadd.f32 %v3609_v27, %v3608_v1  ;;  %v3611_v34 = vpop.f32.mrb[126].mxu1  ;;  %v3500_v16 = vpop.f32.mrb[127].mxu0 }
 0x1f2   :  { %v3612_v3 = vpop.f32.mrb[127].mxu1  ;;  %v1602_v55 = vadd.f32 %v3498_v41, %v4805_v44  ;;  %v3501_v28 = vadd.f32 %v3500_v16, %v3499_v48  ;;  %v4927_v1 = vpop.permute.xlu0 %2047 }
 0x1f3   :  { %v3613_v46 = vadd.f32 %v3612_v3, %v3611_v34 }
 0x1f4   :  { %v1605_v35 = vadd.f32 %v3501_v28, %v4807_v61  ;;  %v4901_v6 = vadd.f32 %v3610_v4, %v1602_v55  ;;  %v4919_v61 = vld [vmem:[%s5348_s3] ss:$0 sm:$0xff] }
 0x1f6   :  { %v3680_v22 = vpop.f32.mrb[128].mxu0  ;;  %v4908_v7 = vadd.f32 %v3613_v46, %v1605_v35 }
 0x1f7   :  { %v3728_v30 = vpop.f32.mrb[128].mxu1  ;;  %v1812_v63 = vadd.f32 %v3680_v22, %v4817_v38  ;;  %v1803_v44 = vpop.f32.mrb[129].mxu0 }
 0x1f8   :  { %v2340_v24 = vpop.f32.mrb[129].mxu1  ;;  %v1804_v60 = vadd.f32 %v1803_v44, %v4811_v0  ;;  %v3681_v59 = vpop.f32.mrb[130].mxu0  ;;  %v2476_v18 = vmul.f32 %v3728_v30, %v4914_v33 }
 0x1f9   :  { %v3729_v31 = vpop.f32.mrb[130].mxu1  ;;  %v1939_v5 = vmul.f32 %v4906_v20, %v1812_v63  ;;  %v1815_v11 = vadd.f32 %v3681_v59, %v4819_v58  ;;  %v1806_v12 = vpop.f32.mrb[131].mxu0  ;;  %v2474_v27 = vmul.f32 %v4914_v33, %v2340_v24  ;;  %v4957_v59 = vld [vmem:[%s5349_s8] ss:$0 sm:$0xff] }
 0x1fa   :  { %v2343_v10 = vpop.f32.mrb[131].mxu1  ;;  %v1937_v38 = vmul.f32 %v4906_v20, %v1804_v60  ;;  %v1807_v2 = vadd.f32 %v1806_v12, %v4813_v15  ;;  %v2477_v34 = vmul.f32 %v3729_v31, %v4914_v33 }
 0x1fb   :  { %v1978_v4 = vadd.f32 %v4919_v61, %v1939_v5  ;;  %v1940_v0 = vmul.f32 %v4906_v20, %v1815_v11  ;;  %v2475_v58 = vmul.f32 %v4914_v33, %v2343_v10 }
 0x1fc   :  { %v1976_v47 = vadd.f32 %v4919_v61, %v1937_v38  ;;  %v1938_v15 = vmul.f32 %v4906_v20, %v1807_v2 }
 0x1fd   :  { %vm2011_vm2 = vcmp.ge.f32.partialorder %v1978_v4, 0.0  ;;  %v1979_v48 = vadd.f32 %v4919_v61, %v1940_v0  ;;  %v2052_v16 = vmul.f32 %v4927_v1, %v1978_v4 }
 0x1fe   :  { %v1977_v30 = vadd.f32 %v4919_v61, %v1938_v15  ;;  %vm2009_vm3 = vcmp.ge.f32.partialorder %v1976_v47, 0.0  ;;  %v2050_v24 = vmul.f32 %v4927_v1, %v1976_v47  ;;  %v3684_v35 = vpop.f32.mrb[132].mxu0 }
 0x1ff   :  { %v3732_v25 = vpop.f32.mrb[132].mxu1  ;;  %vm2012_vm4 = vcmp.ge.f32.partialorder %v1979_v48, 0.0  ;;  %v2053_v10 = vmul.f32 %v4927_v1, %v1979_v48  ;;  %v1828_v22 = vadd.f32 %v3684_v35, %v4829_v29  ;;  %v1819_v63 = vpop.f32.mrb[133].mxu0  ;;  %v2084_v44 = vsel %vm2011_vm2, %v1978_v4, %v2052_v16 }
 0x200   :  { %v2356_v3 = vpop.f32.mrb[133].mxu1  ;;  %v4937_v46 = vmul.f32 %v3732_v25, %v4914_v33  ;;  %v2082_v60 = vsel %vm2009_vm3, %v1976_v47, %v2050_v24  ;;  %vm2010_vm5 = vcmp.ge.f32.partialorder %v1977_v30, 0.0  ;;  %v2051_v5 = vmul.f32 %v4927_v1, %v1977_v30  ;;  %v3685_v12 = vpop.f32.mrb[134].mxu0 }
 0x201   :  { %v4940_v36 = vmul.f32 %v4914_v33, %v2356_v3  ;;  %v3733_v41 = vpop.f32.mrb[134].mxu1  ;;  %v1820_v11 = vadd.f32 %v1819_v63, %v4823_v13  ;;  %v2506_v38 = vadd.f32 %v2474_v27, %v2082_v60  ;;  %v2085_v2 = vsel %vm2012_vm4, %v1979_v48, %v2053_v10  ;;  %v1822_v0 = vpop.f32.mrb[135].mxu0 }
 0x202   :  { %v4945_v55 = vmul.f32 %v3733_v41, %v4914_v33  ;;  %v2359_v28 = vpop.f32.mrb[135].mxu1  ;;  %v1943_v25 = vmul.f32 %v4906_v20, %v1828_v22  ;;  %v1831_v29 = vadd.f32 %v3685_v12, %v4831_v32  ;;  %v2509_v4 = vadd.f32 %v2477_v34, %v2085_v2  ;;  %v4979_v22 = vpop.permute.xlu0 %2616 }
 0x203   :  { %v4950_v31 = vmul.f32 %v4914_v33, %v2359_v28  ;;  %v2083_v3 = vsel %vm2010_vm5, %v1977_v30, %v2051_v5  ;;  %v1941_v47 = vmul.f32 %v4906_v20, %v1820_v11  ;;  %v1823_v15 = vadd.f32 %v1822_v0, %v4825_v21 }
 0x204   :  { %v2545_v16 = vadd.f32 %v4957_v59, %v2506_v38  ;;  %v1982_v13 = vadd.f32 %v4919_v61, %v1943_v25  ;;  %v2507_v28 = vadd.f32 %v2475_v58, %v2083_v3  ;;  %v1944_v27 = vmul.f32 %v4906_v20, %v1831_v29 }
 0x205   :  { %v2548_v32 = vadd.f32 %v4957_v59, %v2509_v4  ;;  %v1980_v34 = vadd.f32 %v4919_v61, %v1941_v47  ;;  %v1942_v30 = vmul.f32 %v4906_v20, %v1823_v15  ;;  %v2508_v24 = vadd.f32 %v2476_v18, %v2084_v44 }
 0x206   :  { %vm2578_vm6 = vcmp.ge.f32.partialorder %v2545_v16, 0.0  ;;  %v2546_v21 = vadd.f32 %v4957_v59, %v2507_v28  ;;  %v1983_v10 = vadd.f32 %v4919_v61, %v1944_v27  ;;  %vm2015_vm7 = vcmp.ge.f32.partialorder %v1982_v13, 0.0  ;;  %v3688_v5 = vpop.f32.mrb[136].mxu0 }
 0x207   :  { %v4965_v41 = vpop.f32.mrb[136].mxu1  ;;  %vm2581_vm8 = vcmp.ge.f32.partialorder %v2548_v32, 0.0  ;;  %v1981_v63 = vadd.f32 %v4919_v61, %v1942_v30  ;;  %v2056_v60 = vmul.f32 %v4927_v1, %v1982_v13  ;;  %vm2013_vm9 = vcmp.ge.f32.partialorder %v1980_v34, 0.0  ;;  %v1835_v11 = vpop.f32.mrb[137].mxu0 }
 0x208   :  { %v4970_v48 = vpop.f32.mrb[137].mxu1  ;;  %vm2579_vm10 = vcmp.ge.f32.partialorder %v2546_v21, 0.0  ;;  %v2054_v18 = vmul.f32 %v4927_v1, %v1980_v34  ;;  %vm2016_vm11 = vcmp.ge.f32.partialorder %v1983_v10, 0.0  ;;  %v2057_v44 = vmul.f32 %v4927_v1, %v1983_v10  ;;  %v3689_v29 = vpop.f32.mrb[138].mxu0 }
 0x209   :  { %v4975_v35 = vpop.f32.mrb[138].mxu1  ;;  %v2088_v12 = vsel %vm2015_vm7, %v1982_v13, %v2056_v60  ;;  %v2547_v38 = vadd.f32 %v4957_v59, %v2508_v24  ;;  %v2619_v2 = vmul.f32 %v4979_v22, %v2545_v16  ;;  %v2620_v25 = vmul.f32 %v4979_v22, %v2546_v21  ;;  %v1838_v15 = vpop.f32.mrb[139].mxu0 }
 0x20a   :  { %v4981_v58 = vpop.f32.mrb[139].mxu1  ;;  %v2512_v0 = vadd.f32 %v4937_v46, %v2088_v12  ;;  %v2086_v4 = vsel %vm2013_vm9, %v1980_v34, %v2054_v18  ;;  %v2089_v3 = vsel %vm2016_vm11, %v1983_v10, %v2057_v44  ;;  %v2622_v47 = vmul.f32 %v4979_v22, %v2548_v32 }
 0x20b   :  { %v2510_v28 = vadd.f32 %v4940_v36, %v2086_v4  ;;  %v2513_v27 = vadd.f32 %v4945_v55, %v2089_v3  ;;  %vm2580_vm12 = vcmp.ge.f32.partialorder %v2547_v38, 0.0  ;;  %v2621_v13 = vmul.f32 %v4979_v22, %v2547_v38 }
 0x20c   :  { %v2551_v24 = vadd.f32 %v4957_v59, %v2512_v0  ;;  %v2651_v60 = vsel %vm2578_vm6, %v2545_v16, %v2619_v2  ;;  %v2652_v46 = vsel %vm2579_vm10, %v2546_v21, %v2620_v25  ;;  %v2654_v34 = vsel %vm2581_vm8, %v2548_v32, %v2622_v47 }
 0x20d   :  { %v2549_v18 = vadd.f32 %v4957_v59, %v2510_v28  ;;  %v2552_v36 = vadd.f32 %v4957_v59, %v2513_v27  ;;  %v2653_v55 = vsel %vm2580_vm12, %v2547_v38, %v2621_v13  ;;  %v3074_v44 = vpack.c.bf16 %v2652_v46, %v2651_v60 }
 0x20e   :  { %vm2584_vm13 = vcmp.ge.f32.partialorder %v2551_v24, 0.0  ;;  %v2625_v4 = vmul.f32 %v4979_v22, %v2551_v24  ;;  %v3079_v0 = vpack.c.bf16 %v2654_v34, %v2653_v55  ;;  %v1844_v16 = vadd.f32 %v3688_v5, %v4841_v39  ;;  %v3692_v38 = vpop.f32.mrb[140].mxu0 }
 0x20f   :  { %v4995_v30 = vpop.f32.mrb[140].mxu1  ;;  %vm2582_vm14 = vcmp.ge.f32.partialorder %v2549_v18, 0.0  ;;  %v2623_v32 = vmul.f32 %v4979_v22, %v2549_v18  ;;  %vm2585_vm15 = vcmp.ge.f32.partialorder %v2552_v36, 0.0  ;;  %v2626_v21 = vmul.f32 %v4979_v22, %v2552_v36  ;;  %3075 = vst [vmem:[%s5350_s10] sm:$0xff] %v3074_v44   ;;  %v1851_v3 = vpop.f32.mrb[141].mxu0 }
 0x210   :  { %v5001_v10 = vpop.f32.mrb[141].mxu1  ;;  %v2657_v25 = vsel %vm2584_vm13, %v2551_v24, %v2625_v4  ;;  %3151 = vst [vmem:[%s5350_s10 + $0x8] sm:$0xff] %v3079_v0   ;;  %v1947_v39 = vmul.f32 %v4906_v20, %v1844_v16  ;;  %vm2014_vm0 = vcmp.ge.f32.partialorder %v1981_v63, 0.0  ;;  %v2055_v5 = vmul.f32 %v4927_v1, %v1981_v63  ;;  %v3693_v60 = vpop.f32.mrb[142].mxu0 }
 0x211   :  { %v5005_v12 = vpop.f32.mrb[142].mxu1  ;;  %v2655_v47 = vsel %vm2582_vm14, %v2549_v18, %v2623_v32  ;;  %v2658_v28 = vsel %vm2585_vm15, %v2552_v36, %v2626_v21  ;;  %v1836_v27 = vadd.f32 %v1835_v11, %v4835_v45  ;;  %v1847_v13 = vadd.f32 %v3689_v29, %v4843_v62  ;;  %v1854_v44 = vpop.f32.mrb[143].mxu0 }
 0x212   :  { %v5009_v2 = vpop.f32.mrb[143].mxu1  ;;  %v3089_v46 = vpack.c.bf16 %v2658_v28, %v2657_v25  ;;  %v1986_v24 = vadd.f32 %v4919_v61, %v1947_v39  ;;  %v2087_v34 = vsel %vm2014_vm0, %v1981_v63, %v2055_v5  ;;  %v1839_v55 = vadd.f32 %v1838_v15, %v4837_v49 }
 0x213   :  { %v2511_v4 = vadd.f32 %v4950_v31, %v2087_v34  ;;  %v1945_v0 = vmul.f32 %v4906_v20, %v1836_v27  ;;  %v1948_v16 = vmul.f32 %v4906_v20, %v1847_v13  ;;  %v2484_v18 = vmul.f32 %v4965_v41, %v4914_v33 }
 0x214   :  { %3153 = vst [vmem:[%s5350_s10 + $0x18] sm:$0xff] %v3089_v46   ;;  %v1946_v62 = vmul.f32 %v4906_v20, %v1839_v55  ;;  %vm2019_vm1 = vcmp.ge.f32.partialorder %v1986_v24, 0.0  ;;  %v2060_v49 = vmul.f32 %v4927_v1, %v1986_v24  ;;  %v2482_v31 = vmul.f32 %v4914_v33, %v4970_v48 }
 0x215   :  { %v2550_v11 = vadd.f32 %v4957_v59, %v2511_v4  ;;  %v1984_v41 = vadd.f32 %v4919_v61, %v1945_v0  ;;  %v1987_v29 = vadd.f32 %v4919_v61, %v1948_v16  ;;  %v2485_v15 = vmul.f32 %v4975_v35, %v4914_v33 }
 0x216   :  { %v1985_v32 = vadd.f32 %v4919_v61, %v1946_v62  ;;  %v2092_v21 = vsel %vm2019_vm1, %v1986_v24, %v2060_v49  ;;  %v1860_v25 = vadd.f32 %v3692_v38, %v4853_v8  ;;  %v2483_v48 = vmul.f32 %v4914_v33, %v4981_v58  ;;  %v5055_v27 = vpop.f32.mrb[144].mxu0 }
 0x217   :  { %v5030_v45 = vpop.f32.mrb[144].mxu1  ;;  %vm2583_vm2 = vcmp.ge.f32.partialorder %v2550_v11, 0.0  ;;  %v2624_v5 = vmul.f32 %v4979_v22, %v2550_v11  ;;  %v2516_v28 = vadd.f32 %v2484_v18, %v2092_v21  ;;  %vm2017_vm3 = vcmp.ge.f32.partialorder %v1984_v41, 0.0  ;;  %v5060_v8 = vpop.f32.mrb[145].mxu0 }
 0x218   :  { %v5039_v63 = vpop.f32.mrb[145].mxu1  ;;  %v2058_v35 = vmul.f32 %v4927_v1, %v1984_v41  ;;  %vm2020_vm4 = vcmp.ge.f32.partialorder %v1987_v29, 0.0  ;;  %v2061_v13 = vmul.f32 %v4927_v1, %v1987_v29  ;;  %v1951_v46 = vmul.f32 %v4906_v20, %v1860_v25  ;;  %v5064_v34 = vpop.f32.mrb[146].mxu0 }
 0x219   :  { %v5046_v36 = vpop.f32.mrb[146].mxu1  ;;  %v2656_v38 = vsel %vm2583_vm2, %v2550_v11, %v2624_v5  ;;  %v2555_v58 = vadd.f32 %v4957_v59, %v2516_v28  ;;  %vm2018_vm5 = vcmp.ge.f32.partialorder %v1985_v32, 0.0  ;;  %v2059_v24 = vmul.f32 %v4927_v1, %v1985_v32  ;;  %v5067_v18 = vpop.f32.mrb[147].mxu0 }
 0x21a   :  { %v5052_v39 = vpop.f32.mrb[147].mxu1  ;;  %v3084_v55 = vpack.c.bf16 %v2656_v38, %v2655_v47  ;;  %v2090_v4 = vsel %vm2017_vm3, %v1984_v41, %v2058_v35  ;;  %v2093_v0 = vsel %vm2020_vm4, %v1987_v29, %v2061_v13  ;;  %v1990_v16 = vadd.f32 %v4919_v61, %v1951_v46 }
 0x21b   :  { %vm2588_vm6 = vcmp.ge.f32.partialorder %v2555_v58, 0.0  ;;  %v2629_v62 = vmul.f32 %v4979_v22, %v2555_v58  ;;  %v2514_v49 = vadd.f32 %v2482_v31, %v2090_v4  ;;  %v2517_v21 = vadd.f32 %v2485_v15, %v2093_v0 }
 0x21c   :  { %3152 = vst [vmem:[%s5350_s10 + $0x10] sm:$0xff] %v3084_v55   ;;  %v2091_v25 = vsel %vm2018_vm5, %v1985_v32, %v2059_v24  ;;  %v1852_v47 = vadd.f32 %v1851_v3, %v4847_v51  ;;  %v1863_v41 = vadd.f32 %v3693_v60, %v4855_v26  ;;  %v1855_v29 = vadd.f32 %v1854_v44, %v4849_v57 }
 0x21d   :  { %v2661_v28 = vsel %vm2588_vm6, %v2555_v58, %v2629_v62  ;;  %v2553_v35 = vadd.f32 %v4957_v59, %v2514_v49  ;;  %v2556_v31 = vadd.f32 %v4957_v59, %v2517_v21  ;;  %v2515_v15 = vadd.f32 %v2483_v48, %v2091_v25 }
 0x21e   :  { %v1949_v46 = vmul.f32 %v4906_v20, %v1852_v47  ;;  %v1952_v32 = vmul.f32 %v4906_v20, %v1863_v41  ;;  %v1950_v51 = vmul.f32 %v4906_v20, %v1855_v29  ;;  %vm2023_vm7 = vcmp.ge.f32.partialorder %v1990_v16, 0.0  ;;  %v5091_v60 = vpop.f32.mrb[148].mxu0 }
 0x21f   :  { %v5070_v11 = vpop.f32.mrb[148].mxu1  ;;  %vm2586_vm8 = vcmp.ge.f32.partialorder %v2553_v35, 0.0  ;;  %v2627_v57 = vmul.f32 %v4979_v22, %v2553_v35  ;;  %vm2589_vm9 = vcmp.ge.f32.partialorder %v2556_v31, 0.0  ;;  %v2630_v3 = vmul.f32 %v4979_v22, %v2556_v31  ;;  %v5097_v24 = vpop.f32.mrb[149].mxu0 }
 0x220   :  { %v5078_v5 = vpop.f32.mrb[149].mxu1  ;;  %v2554_v44 = vadd.f32 %v4957_v59, %v2515_v15  ;;  %v1988_v48 = vadd.f32 %v4919_v61, %v1949_v46  ;;  %v1991_v38 = vadd.f32 %v4919_v61, %v1952_v32  ;;  %v1989_v58 = vadd.f32 %v4919_v61, %v1950_v51  ;;  %v5102_v49 = vpop.f32.mrb[150].mxu0 }
 0x221   :  { %v5082_v13 = vpop.f32.mrb[150].mxu1  ;;  %v2659_v55 = vsel %vm2586_vm8, %v2553_v35, %v2627_v57  ;;  %v2662_v4 = vsel %vm2589_vm9, %v2556_v31, %v2630_v3  ;;  %v2064_v0 = vmul.f32 %v4927_v1, %v1990_v16  ;;  %v2488_v62 = vmul.f32 %v4995_v30, %v4914_v33  ;;  %v5105_v47 = vpop.f32.mrb[151].mxu0 }
 0x222   :  { %v5087_v26 = vpop.f32.mrb[151].mxu1  ;;  %v3099_v21 = vpack.c.bf16 %v2662_v4, %v2661_v28  ;;  %vm2587_vm10 = vcmp.ge.f32.partialorder %v2554_v44, 0.0  ;;  %v2628_v25 = vmul.f32 %v4979_v22, %v2554_v44  ;;  %vm2021_vm11 = vcmp.ge.f32.partialorder %v1988_v48, 0.0 }
 0x223   :  { %v2096_v41 = vsel %vm2023_vm7, %v1990_v16, %v2064_v0  ;;  %v2062_v29 = vmul.f32 %v4927_v1, %v1988_v48  ;;  %v2486_v35 = vmul.f32 %v4914_v33, %v5001_v10  ;;  %vm2024_vm12 = vcmp.ge.f32.partialorder %v1991_v38, 0.0 }
 0x224   :  { %3155 = vst [vmem:[%s5350_s10 + $0x28] sm:$0xff] %v3099_v21   ;;  %v2660_v30 = vsel %vm2587_vm10, %v2554_v44, %v2628_v25  ;;  %v2520_v28 = vadd.f32 %v2488_v62, %v2096_v41  ;;  %v2065_v15 = vmul.f32 %v4927_v1, %v1991_v38  ;;  %v2489_v46 = vmul.f32 %v5005_v12, %v4914_v33 }
 0x225   :  { %v3094_v32 = vpack.c.bf16 %v2660_v30, %v2659_v55  ;;  %v2094_v51 = vsel %vm2021_vm11, %v1988_v48, %v2062_v29  ;;  %v1876_v10 = vadd.f32 %v5055_v27, %v4865_v37  ;;  %vm2022_vm13 = vcmp.ge.f32.partialorder %v1989_v58, 0.0 }
 0x226   :  { %v2559_v3 = vadd.f32 %v4957_v59, %v2520_v28  ;;  %v2518_v4 = vadd.f32 %v2486_v35, %v2094_v51  ;;  %v2097_v44 = vsel %vm2024_vm12, %v1991_v38, %v2065_v15  ;;  %v2063_v0 = vmul.f32 %v4927_v1, %v1989_v58  ;;  %v5137_v55 = vpop.f32.mrb[152].mxu0 }
 0x227   :  { %v5111_v31 = vpop.f32.mrb[152].mxu1  ;;  %3154 = vst [vmem:[%s5350_s10 + $0x20] sm:$0xff] %v3094_v32   ;;  %v2521_v12 = vadd.f32 %v2489_v46, %v2097_v44  ;;  %v1955_v48 = vmul.f32 %v4906_v20, %v1876_v10  ;;  %v2487_v37 = vmul.f32 %v4914_v33, %v5009_v2  ;;  %v1868_v27 = vadd.f32 %v5060_v8, %v4859_v50  ;;  %v5142_v41 = vpop.f32.mrb[153].mxu0 }
 0x228   :  { %v5119_v16 = vpop.f32.mrb[153].mxu1  ;;  %vm2592_vm14 = vcmp.ge.f32.partialorder %v2559_v3, 0.0  ;;  %v2633_v38 = vmul.f32 %v4979_v22, %v2559_v3  ;;  %v2557_v21 = vadd.f32 %v4957_v59, %v2518_v4  ;;  %v2095_v25 = vsel %vm2022_vm13, %v1989_v58, %v2063_v0  ;;  %v5147_v28 = vpop.f32.mrb[154].mxu0 }
 0x229   :  { %v5123_v57 = vpop.f32.mrb[154].mxu1  ;;  %v2560_v29 = vadd.f32 %v4957_v59, %v2521_v12  ;;  %v1994_v35 = vadd.f32 %v4919_v61, %v1955_v48  ;;  %v2519_v30 = vadd.f32 %v2487_v37, %v2095_v25  ;;  %v1953_v2 = vmul.f32 %v4906_v20, %v1868_v27  ;;  %v5152_v46 = vpop.f32.mrb[155].mxu0 }
 0x22a   :  { %v5127_v62 = vpop.f32.mrb[155].mxu1  ;;  %v2665_v50 = vsel %vm2592_vm14, %v2559_v3, %v2633_v38  ;;  %vm2590_vm15 = vcmp.ge.f32.partialorder %v2557_v21, 0.0  ;;  %v2631_v8 = vmul.f32 %v4979_v22, %v2557_v21  ;;  %v1879_v15 = vadd.f32 %v5064_v34, %v4867_v9 }
 0x22b   :  { %vm2593_vm0 = vcmp.ge.f32.partialorder %v2560_v29, 0.0  ;;  %v2634_v58 = vmul.f32 %v4979_v22, %v2560_v29  ;;  %v2558_v32 = vadd.f32 %v4957_v59, %v2519_v30  ;;  %v1992_v51 = vadd.f32 %v4919_v61, %v1953_v2 }
 0x22c   :  { %v2663_v4 = vsel %vm2590_vm15, %v2557_v21, %v2631_v8  ;;  %v1956_v3 = vmul.f32 %v4906_v20, %v1879_v15  ;;  %v1871_v44 = vadd.f32 %v5067_v18, %v4861_v19  ;;  %vm2027_vm1 = vcmp.ge.f32.partialorder %v1994_v35, 0.0 }
 0x22d   :  { %v2666_v9 = vsel %vm2593_vm0, %v2560_v29, %v2634_v58  ;;  %vm2591_vm2 = vcmp.ge.f32.partialorder %v2558_v32, 0.0  ;;  %v2632_v34 = vmul.f32 %v4979_v22, %v2558_v32  ;;  %v2068_v12 = vmul.f32 %v4927_v1, %v1994_v35 }
 0x22e   :  { %v3109_v37 = vpack.c.bf16 %v2666_v9, %v2665_v50  ;;  %v1995_v27 = vadd.f32 %v4919_v61, %v1956_v3  ;;  %v1954_v38 = vmul.f32 %v4906_v20, %v1871_v44  ;;  %v2492_v21 = vmul.f32 %v5030_v45, %v4914_v33  ;;  %v5175_v30 = vpop.f32.mrb[156].mxu0 }
 0x22f   :  { %v5157_v10 = vpop.f32.mrb[156].mxu1  ;;  %v2664_v18 = vsel %vm2591_vm2, %v2558_v32, %v2632_v34  ;;  %v2100_v25 = vsel %vm2027_vm1, %v1994_v35, %v2068_v12  ;;  %vm2025_vm3 = vcmp.ge.f32.partialorder %v1992_v51, 0.0  ;;  %v2066_v29 = vmul.f32 %v4927_v1, %v1992_v51  ;;  %v5183_v15 = vpop.f32.mrb[157].mxu0 }
 0x230   :  { %v5162_v0 = vpop.f32.mrb[157].mxu1  ;;  %3157 = vst [vmem:[%s5350_s10 + $0x38] sm:$0xff] %v3109_v37   ;;  %v3104_v2 = vpack.c.bf16 %v2664_v18, %v2663_v4  ;;  %v1993_v50 = vadd.f32 %v4919_v61, %v1954_v38  ;;  %v2524_v8 = vadd.f32 %v2492_v21, %v2100_v25  ;;  %v2490_v45 = vmul.f32 %v4914_v33, %v5039_v63  ;;  %v5188_v3 = vpop.f32.mrb[158].mxu0 }
 0x231   :  { %v5166_v48 = vpop.f32.mrb[158].mxu1  ;;  %v2098_v58 = vsel %vm2025_vm3, %v1992_v51, %v2066_v29  ;;  %vm2028_vm4 = vcmp.ge.f32.partialorder %v1995_v27, 0.0  ;;  %v2069_v35 = vmul.f32 %v4927_v1, %v1995_v27  ;;  %v2493_v32 = vmul.f32 %v5046_v36, %v4914_v33  ;;  %v5196_v51 = vpop.f32.mrb[159].mxu0 }
 0x232   :  { %v5172_v19 = vpop.f32.mrb[159].mxu1  ;;  %3156 = vst [vmem:[%s5350_s10 + $0x30] sm:$0xff] %v3104_v2   ;;  %v2563_v4 = vadd.f32 %v4957_v59, %v2524_v8  ;;  %v2522_v44 = vadd.f32 %v2490_v45, %v2098_v58  ;;  %v1892_v63 = vadd.f32 %v5091_v60, %v4877_v54  ;;  %vm2026_vm5 = vcmp.ge.f32.partialorder %v1993_v50, 0.0 }
 0x233   :  { %v2101_v9 = vsel %vm2028_vm4, %v1995_v27, %v2069_v35  ;;  %v2067_v34 = vmul.f32 %v4927_v1, %v1993_v50  ;;  %v2491_v36 = vmul.f32 %v4914_v33, %v5052_v39  ;;  %v1884_v12 = vadd.f32 %v5097_v24, %v4871_v52 }
 0x234   :  { %vm2596_vm6 = vcmp.ge.f32.partialorder %v2563_v4, 0.0  ;;  %v2637_v37 = vmul.f32 %v4979_v22, %v2563_v4  ;;  %v2561_v38 = vadd.f32 %v4957_v59, %v2522_v44  ;;  %v2525_v21 = vadd.f32 %v2493_v32, %v2101_v9 }
 0x235   :  { %v1959_v54 = vmul.f32 %v4906_v20, %v1892_v63  ;;  %v2099_v60 = vsel %vm2026_vm5, %v1993_v50, %v2067_v34  ;;  %v1957_v18 = vmul.f32 %v4906_v20, %v1884_v12  ;;  %v1895_v27 = vadd.f32 %v5102_v49, %v4879_v17 }
 0x236   :  { %v2669_v25 = vsel %vm2596_vm6, %v2563_v4, %v2637_v37  ;;  %vm2594_vm7 = vcmp.ge.f32.partialorder %v2561_v38, 0.0  ;;  %v2635_v39 = vmul.f32 %v4979_v22, %v2561_v38  ;;  %v2564_v52 = vadd.f32 %v4957_v59, %v2525_v21 }
 0x237   :  { %v1998_v24 = vadd.f32 %v4919_v61, %v1959_v54  ;;  %v2523_v29 = vadd.f32 %v2491_v36, %v2099_v60  ;;  %v1996_v2 = vadd.f32 %v4919_v61, %v1957_v18  ;;  %v1960_v8 = vmul.f32 %v4906_v20, %v1895_v27 }
 0x238   :  { %v2667_v45 = vsel %vm2594_vm7, %v2561_v38, %v2635_v39  ;;  %vm2597_vm8 = vcmp.ge.f32.partialorder %v2564_v52, 0.0  ;;  %v2638_v50 = vmul.f32 %v4979_v22, %v2564_v52  ;;  %v1887_v17 = vadd.f32 %v5105_v47, %v4873_v56 }
 0x239   :  { %v2562_v49 = vadd.f32 %v4957_v59, %v2523_v29  ;;  %v1999_v58 = vadd.f32 %v4919_v61, %v1960_v8  ;;  %vm2031_vm9 = vcmp.ge.f32.partialorder %v1998_v24, 0.0  ;;  %v2072_v35 = vmul.f32 %v4927_v1, %v1998_v24 }
 0x23a   :  { %v2670_v32 = vsel %vm2597_vm8, %v2564_v52, %v2638_v50  ;;  %v1958_v4 = vmul.f32 %v4906_v20, %v1887_v17  ;;  %v2496_v44 = vmul.f32 %v5070_v11, %v4914_v33  ;;  %vm2029_vm10 = vcmp.ge.f32.partialorder %v1996_v2, 0.0 }
 0x23b   :  { %v3119_v63 = vpack.c.bf16 %v2670_v32, %v2669_v25  ;;  %vm2595_vm11 = vcmp.ge.f32.partialorder %v2562_v49, 0.0  ;;  %v2636_v9 = vmul.f32 %v4979_v22, %v2562_v49  ;;  %v2104_v34 = vsel %vm2031_vm9, %v1998_v24, %v2072_v35 }
 0x23c   :  { %v1997_v56 = vadd.f32 %v4919_v61, %v1958_v4  ;;  %v2528_v47 = vadd.f32 %v2496_v44, %v2104_v34  ;;  %v2070_v36 = vmul.f32 %v4927_v1, %v1996_v2  ;;  %v2494_v12 = vmul.f32 %v4914_v33, %v5078_v5 }
 0x23d   :  { %3159 = vst [vmem:[%s5350_s10 + $0x48] sm:$0xff] %v3119_v63   ;;  %v2668_v37 = vsel %vm2595_vm11, %v2562_v49, %v2636_v9  ;;  %vm2032_vm12 = vcmp.ge.f32.partialorder %v1999_v58, 0.0  ;;  %v2073_v11 = vmul.f32 %v4927_v1, %v1999_v58  ;;  %v2497_v38 = vmul.f32 %v5082_v13, %v4914_v33 }
 0x23e   :  { %v3114_v21 = vpack.c.bf16 %v2668_v37, %v2667_v45  ;;  %v2567_v54 = vadd.f32 %v4957_v59, %v2528_v47  ;;  %v2102_v60 = vsel %vm2029_vm10, %v1996_v2, %v2070_v36  ;;  %v1908_v18 = vadd.f32 %v5137_v55, %v4889_v40 }
 0x23f   :  { %v2526_v5 = vadd.f32 %v2494_v12, %v2102_v60  ;;  %v2105_v27 = vsel %vm2032_vm12, %v1999_v58, %v2073_v11  ;;  %vm2030_vm13 = vcmp.ge.f32.partialorder %v1997_v56, 0.0  ;;  %v2071_v25 = vmul.f32 %v4927_v1, %v1997_v56 }
 0x240   :  { %3158 = vst [vmem:[%s5350_s10 + $0x40] sm:$0xff] %v3114_v21   ;;  %vm2600_vm14 = vcmp.ge.f32.partialorder %v2567_v54, 0.0  ;;  %v2641_v13 = vmul.f32 %v4979_v22, %v2567_v54  ;;  %v2529_v39 = vadd.f32 %v2497_v38, %v2105_v27  ;;  %v1963_v52 = vmul.f32 %v4906_v20, %v1908_v18 }
 0x241   :  { %v2565_v24 = vadd.f32 %v4957_v59, %v2526_v5  ;;  %v2103_v29 = vsel %vm2030_vm13, %v1997_v56, %v2071_v25  ;;  %v2495_v40 = vmul.f32 %v4914_v33, %v5087_v26  ;;  %v1900_v55 = vadd.f32 %v5142_v41, %v4883_v14 }
 0x242   :  { %v2673_v2 = vsel %vm2600_vm14, %v2567_v54, %v2641_v13  ;;  %v2568_v8 = vadd.f32 %v4957_v59, %v2529_v39  ;;  %v2002_v45 = vadd.f32 %v4919_v61, %v1963_v52  ;;  %v1911_v50 = vadd.f32 %v5147_v28, %v4891_v43 }
 0x243   :  { %vm2598_vm15 = vcmp.ge.f32.partialorder %v2565_v24, 0.0  ;;  %v2639_v17 = vmul.f32 %v4979_v22, %v2565_v24  ;;  %v2527_v49 = vadd.f32 %v2495_v40, %v2103_v29  ;;  %v1961_v58 = vmul.f32 %v4906_v20, %v1900_v55 }
 0x244   :  { %vm2601_vm0 = vcmp.ge.f32.partialorder %v2568_v8, 0.0  ;;  %v2642_v26 = vmul.f32 %v4979_v22, %v2568_v8  ;;  %v1964_v35 = vmul.f32 %v4906_v20, %v1911_v50  ;;  %v1903_v14 = vadd.f32 %v5152_v46, %v4885_v42 }
 0x245   :  { %v2671_v41 = vsel %vm2598_vm15, %v2565_v24, %v2639_v17  ;;  %v2566_v32 = vadd.f32 %v4957_v59, %v2527_v49  ;;  %v2000_v4 = vadd.f32 %v4919_v61, %v1961_v58  ;;  %vm2035_vm1 = vcmp.ge.f32.partialorder %v2002_v45, 0.0 }
 0x246   :  { %v2674_v43 = vsel %vm2601_vm0, %v2568_v8, %v2642_v26  ;;  %v2003_v28 = vadd.f32 %v4919_v61, %v1964_v35  ;;  %v1962_v44 = vmul.f32 %v4906_v20, %v1903_v14  ;;  %v2076_v63 = vmul.f32 %v4927_v1, %v2002_v45 }
 0x247   :  { %v3129_v9 = vpack.c.bf16 %v2674_v43, %v2673_v2  ;;  %vm2599_vm2 = vcmp.ge.f32.partialorder %v2566_v32, 0.0  ;;  %v2640_v34 = vmul.f32 %v4979_v22, %v2566_v32  ;;  %v2500_v42 = vmul.f32 %v5111_v31, %v4914_v33 }
 0x248   :  { %v2001_v46 = vadd.f32 %v4919_v61, %v1962_v44  ;;  %v2108_v56 = vsel %vm2035_vm1, %v2002_v45, %v2076_v63  ;;  %vm2033_vm3 = vcmp.ge.f32.partialorder %v2000_v4, 0.0  ;;  %v2074_v47 = vmul.f32 %v4927_v1, %v2000_v4 }
 0x249   :  { %3161 = vst [vmem:[%s5350_s10 + $0x58] sm:$0xff] %v3129_v9   ;;  %v2672_v36 = vsel %vm2599_vm2, %v2566_v32, %v2640_v34  ;;  %v2532_v12 = vadd.f32 %v2500_v42, %v2108_v56  ;;  %v2498_v37 = vmul.f32 %v4914_v33, %v5119_v16  ;;  %vm2036_vm4 = vcmp.ge.f32.partialorder %v2003_v28, 0.0 }
 0x24a   :  { %v3124_v11 = vpack.c.bf16 %v2672_v36, %v2671_v41  ;;  %v2106_v38 = vsel %vm2033_vm3, %v2000_v4, %v2074_v47  ;;  %v2077_v31 = vmul.f32 %v4927_v1, %v2003_v28  ;;  %v2501_v21 = vmul.f32 %v5123_v57, %v4914_v33 }
 0x24b   :  { %v2571_v54 = vadd.f32 %v4957_v59, %v2532_v12  ;;  %v2530_v60 = vadd.f32 %v2498_v37, %v2106_v38  ;;  %v1924_v18 = vadd.f32 %v5175_v30, %v4901_v6  ;;  %vm2034_vm5 = vcmp.ge.f32.partialorder %v2001_v46, 0.0 }
 0x24c   :  { %3160 = vst [vmem:[%s5350_s10 + $0x50] sm:$0xff] %v3124_v11   ;;  %v2109_v16 = vsel %vm2036_vm4, %v2003_v28, %v2077_v31  ;;  %v2075_v5 = vmul.f32 %v4927_v1, %v2001_v46  ;;  %v2499_v27 = vmul.f32 %v4914_v33, %v5127_v62  ;;  %v1916_v57 = vadd.f32 %v5183_v15, %v4895_v53 }
 0x24d   :  { %vm2604_vm6 = vcmp.ge.f32.partialorder %v2571_v54, 0.0  ;;  %v2645_v25 = vmul.f32 %v4979_v22, %v2571_v54  ;;  %v2569_v13 = vadd.f32 %v4957_v59, %v2530_v60  ;;  %v2533_v6 = vadd.f32 %v2501_v21, %v2109_v16 }
 0x24e   :  { %v1967_v30 = vmul.f32 %v4906_v20, %v1924_v18  ;;  %v2107_v39 = vsel %vm2034_vm5, %v2001_v46, %v2075_v5  ;;  %v1965_v52 = vmul.f32 %v4906_v20, %v1916_v57  ;;  %v1927_v24 = vadd.f32 %v5188_v3, %v4908_v7 }
 0x24f   :  { %v2677_v29 = vsel %vm2604_vm6, %v2571_v54, %v2645_v25  ;;  %vm2602_vm7 = vcmp.ge.f32.partialorder %v2569_v13, 0.0  ;;  %v2643_v62 = vmul.f32 %v4979_v22, %v2569_v13  ;;  %v2572_v53 = vadd.f32 %v4957_v59, %v2533_v6 }
 0x250   :  { %v2006_v15 = vadd.f32 %v4919_v61, %v1967_v30  ;;  %v2531_v40 = vadd.f32 %v2499_v27, %v2107_v39  ;;  %v2004_v55 = vadd.f32 %v4919_v61, %v1965_v52  ;;  %v1968_v2 = vmul.f32 %v4906_v20, %v1927_v24 }
 0x251   :  { %v2675_v8 = vsel %vm2602_vm7, %v2569_v13, %v2643_v62  ;;  %vm2605_vm8 = vcmp.ge.f32.partialorder %v2572_v53, 0.0  ;;  %v2646_v45 = vmul.f32 %v4979_v22, %v2572_v53  ;;  %v1919_v7 = vadd.f32 %v5196_v51, %v4897_v23 }
 0x252   :  { %v2570_v3 = vadd.f32 %v4957_v59, %v2531_v40  ;;  %v2007_v50 = vadd.f32 %v4919_v61, %v1968_v2  ;;  %vm2039_vm9 = vcmp.ge.f32.partialorder %v2006_v15, 0.0  ;;  %v2080_v17 = vmul.f32 %v4927_v1, %v2006_v15 }
 0x253   :  { %v2678_v49 = vsel %vm2605_vm8, %v2572_v53, %v2646_v45  ;;  %v1966_v58 = vmul.f32 %v4906_v20, %v1919_v7  ;;  %v2504_v26 = vmul.f32 %v5157_v10, %v4914_v33  ;;  %vm2037_vm10 = vcmp.ge.f32.partialorder %v2004_v55, 0.0 }
 0x254   :  { %v3139_v35 = vpack.c.bf16 %v2678_v49, %v2677_v29  ;;  %vm2603_vm11 = vcmp.ge.f32.partialorder %v2570_v3, 0.0  ;;  %v2644_v14 = vmul.f32 %v4979_v22, %v2570_v3  ;;  %v2112_v41 = vsel %vm2039_vm9, %v2006_v15, %v2080_v17 }
 0x255   :  { %v2005_v23 = vadd.f32 %v4919_v61, %v1966_v58  ;;  %v2536_v51 = vadd.f32 %v2504_v26, %v2112_v41  ;;  %v2078_v32 = vmul.f32 %v4927_v1, %v2004_v55  ;;  %v2502_v4 = vmul.f32 %v4914_v33, %v5162_v0 }
 0x256   :  { %3163 = vst [vmem:[%s5350_s10 + $0x68] sm:$0xff] %v3139_v35   ;;  %v2676_v20 = vsel %vm2603_vm11, %v2570_v3, %v2644_v14  ;;  %vm2040_vm12 = vcmp.ge.f32.partialorder %v2007_v50, 0.0  ;;  %v2081_v10 = vmul.f32 %v4927_v1, %v2007_v50  ;;  %v2505_v43 = vmul.f32 %v5166_v48, %v4914_v33 }
 0x257   :  { %v3134_v28 = vpack.c.bf16 %v2676_v20, %v2675_v8  ;;  %v2575_v61 = vadd.f32 %v4957_v59, %v2536_v51  ;;  %v2110_v44 = vsel %vm2037_vm10, %v2004_v55, %v2078_v32  ;;  %vm2038_vm13 = vcmp.ge.f32.partialorder %v2005_v23, 0.0 }
 0x258   :  { %v2534_v63 = vadd.f32 %v2502_v4, %v2110_v44  ;;  %v2113_v9 = vsel %vm2040_vm12, %v2007_v50, %v2081_v10  ;;  %v2079_v0 = vmul.f32 %v4927_v1, %v2005_v23  ;;  %v2503_v42 = vmul.f32 %v4914_v33, %v5172_v19 }
 0x259   :  { %3162 = vst [vmem:[%s5350_s10 + $0x60] sm:$0xff] %v3134_v28   ;;  %v2537_v34 = vadd.f32 %v2505_v43, %v2113_v9  ;;  %v2649_v56 = vmul.f32 %v4979_v22, %v2575_v61  ;;  %vm2608_vm14 = vcmp.ge.f32.partialorder %v2575_v61, 0.0 }
 0x25a   :  { %v2573_v48 = vadd.f32 %v4957_v59, %v2534_v63  ;;  %v2111_v46 = vsel %vm2038_vm13, %v2005_v23, %v2079_v0 }
 0x25b   :  { %v2576_v47 = vadd.f32 %v4957_v59, %v2537_v34  ;;  %v2535_v36 = vadd.f32 %v2503_v42, %v2111_v46  ;;  %v2681_v11 = vsel %vm2608_vm14, %v2575_v61, %v2649_v56 }
 0x25c   :  { %v2647_v12 = vmul.f32 %v4979_v22, %v2573_v48  ;;  %vm2606_vm0 = vcmp.ge.f32.partialorder %v2573_v48, 0.0 }
 0x25d   :  { %vm2609_vm15 = vcmp.ge.f32.partialorder %v2576_v47, 0.0  ;;  %v2650_v1 = vmul.f32 %v4979_v22, %v2576_v47  ;;  %v2574_v37 = vadd.f32 %v4957_v59, %v2535_v36 }
 0x25e   :  { %v2679_v31 = vsel %vm2606_vm0, %v2573_v48, %v2647_v12 }
 0x25f   :  { %v2682_v38 = vsel %vm2609_vm15, %v2576_v47, %v2650_v1  ;;  %vm2607_vm1 = vcmp.ge.f32.partialorder %v2574_v37, 0.0  ;;  %v2648_v33 = vmul.f32 %v4979_v22, %v2574_v37 }
 0x260   :  { %v3149_v19 = vpack.c.bf16 %v2682_v38, %v2681_v11 }
 0x261   :  { %v2680_v21 = vsel %vm2607_vm1, %v2574_v37, %v2648_v33 }
 0x262   :  { %3165 = vst [vmem:[%s5350_s10 + $0x78] sm:$0xff] %v3149_v19   ;;  %v3144_v54 = vpack.c.bf16 %v2680_v21, %v2679_v31 }
 0x264   :  { %3164 = vst [vmem:[%s5350_s10 + $0x70] sm:$0xff] %v3144_v54  }

// kernel: _lambda_.15
= control target key start
LH: loop header
LB: loop body
LE: loop exit
PB: predicated region body
PF: predicated region fallthrough
CT: control target
= control target key end

     0   :  { %v417_v1 = vmov 0   ;;  %s510_s1 = inlined_call_operand.vmem [shape: bf16[128,128], index: 1, kind: input, shape index: {}]   ;;  %s511_s4 = inlined_call_operand.<no memory space> [shape: f32[1,1], index: 4, kind: input, shape index: {}]   ;;  %s512_s0 = inlined_call_operand.vmem [shape: bf16[2,1,40,128], index: 0, kind: input, shape index: {}]   ;;  %s513_s2 = inlined_call_operand.vmem [shape: f32[1,128], index: 2, kind: input, shape index: {}]   ;;  %s514_s3 = inlined_call_operand.vmem [shape: f32[1,128], index: 3, kind: input, shape index: {}]   ;;  %s515_s5 = inlined_call_operand.vmem [shape: bf16[64,128], index: 5, kind: output, shape index: {}]  }
   0x1   :  { %v405_v0 = vld [vmem:[%s510_s1] sm:$0xff]   ;;  %404 = vset.pattern.permute.xlu0 %v417_v1  ;;  %v10_v2 = vstv %s511_s4  ;;  %v406_v3 = vld [vmem:[%s510_s1 + $0x8] sm:$0xff]   ;;  %v407_v4 = vld [vmem:[%s510_s1 + $0x10] sm:$0xff]  }
   0x2   :  { %11 = vst [vmem:[#allocation2] sm:$0x1] %v10_v2  ;;  %363 = vmatprep.subr.bf16.mxu0 %v405_v0  ;;  %387 = vmatprep.subr.bf16.mxu1 %v405_v0  ;;  %v408_v5 = vld [vmem:[%s510_s1 + $0x18] sm:$0xff]   ;;  %v413_v6 = vld [vmem:[%s512_s0] sm:$0xff]   ;;  %v410_v10 = vld [vmem:[%s510_s1 + $0x28] sm:$0xff]  }
   0x3   :  { %364 = vmatpush3.bf16.msra.mxu0 %v405_v0  ;;  %395 = vmatpush3.bf16.msra.mxu1 %v405_v0  ;;  %v414_v7 = vld [vmem:[%s512_s0 + $0x14] sm:$0xff]   ;;  %v409_v8 = vld [vmem:[%s510_s1 + $0x20] sm:$0xff]   ;;  %v415_v13 = vld [vmem:[%s512_s0 + $0x8] sm:$0xff]  }
   0x4   :  { %365 = vmatprep.subr.bf16.mxu0 %v406_v3  ;;  %388 = vmatprep.subr.bf16.mxu1 %v406_v3  ;;  %v411_v11 = vld [vmem:[%s510_s1 + $0x30] sm:$0xff]   ;;  %v412_v12 = vld [vmem:[%s510_s1 + $0x38] sm:$0xff]   ;;  %v309_v15 = vld [vmem:[%s513_s2] ss:$0 sm:$0xff] }
   0x5   :  { %379 = vmatprep.mubr.bf16.mxu0 %v413_v6  ;;  %383 = vmatprep.mubr.bf16.mxu1 %v414_v7  ;;  %v416_v14 = vld [vmem:[%s512_s0 + $0x1c] sm:$0xff]  }
   0x6   :  { %v310_v17 = vld [vmem:[%s514_s3] ss:$0 sm:$0xff] }
   0x7   :  { %366 = vmatpush3.bf16.msra.mxu0 %v406_v3  ;;  %396 = vmatpush3.bf16.msra.mxu1 %v406_v3 }
   0x8   :  { %367 = vmatprep.subr.bf16.mxu0 %v407_v4  ;;  %389 = vmatprep.subr.bf16.mxu1 %v407_v4 }
   0x9   :  { %v311_v9 = vld [vmem:[#allocation2] ss:$0 sm:$0xff] }
   0xa   :  { %230 = vperm.xlu0 %404, %v311_v9  }
   0xb   :  { %368 = vmatpush3.bf16.msra.mxu0 %v407_v4  ;;  %397 = vmatpush3.bf16.msra.mxu1 %v407_v4 }
   0xc   :  { %369 = vmatprep.subr.bf16.mxu0 %v408_v5  ;;  %390 = vmatprep.subr.bf16.mxu1 %v408_v5 }
   0xf   :  { %370 = vmatpush3.bf16.msra.mxu0 %v408_v5  ;;  %398 = vmatpush3.bf16.msra.mxu1 %v408_v5 }
  0x10   :  { %371 = vmatprep.subr.bf16.mxu0 %v409_v8  ;;  %391 = vmatprep.subr.bf16.mxu1 %v409_v8 }
  0x13   :  { %372 = vmatpush3.bf16.msra.mxu0 %v409_v8  ;;  %399 = vmatpush3.bf16.msra.mxu1 %v409_v8 }
  0x14   :  { %373 = vmatprep.subr.bf16.mxu0 %v410_v10  ;;  %392 = vmatprep.subr.bf16.mxu1 %v410_v10 }
  0x17   :  { %374 = vmatpush3.bf16.msra.mxu0 %v410_v10  ;;  %400 = vmatpush3.bf16.msra.mxu1 %v410_v10 }
  0x18   :  { %375 = vmatprep.subr.bf16.mxu0 %v411_v11  ;;  %393 = vmatprep.subr.bf16.mxu1 %v411_v11 }
  0x1b   :  { %376 = vmatpush3.bf16.msra.mxu0 %v411_v11  ;;  %401 = vmatpush3.bf16.msra.mxu1 %v411_v11 }
  0x1c   :  { %377 = vmatprep.subr.bf16.mxu0 %v412_v12  ;;  %394 = vmatprep.subr.bf16.mxu1 %v412_v12 }
  0x1f   :  { %378 = vmatpush3.bf16.msra.mxu0 %v412_v12  ;;  %402 = vmatpush3.bf16.msra.mxu1 %v412_v12 }
  0x22   :  { %380 = vmatmul.mubr.bf16.vlgmr.msra.gmra.mrb[0].mxu0 %v415_v13  ;;  %384 = vmatmul.mubr.bf16.vlgmr.msra.gmra.mrb[0].mxu1 %v416_v14 }
  0x89   :  { %v231_v37 = vpop.permute.xlu0 %230 }
  0xf5   :  { %v381_v16 = vpop.f32.mrb[0].mxu0  ;;  %v385_v18 = vpop.f32.mrb[0].mxu1 }
  0xf6   :  { %v194_v19 = vmul.f32 %v381_v16, %v309_v15  ;;  %v198_v20 = vmul.f32 %v385_v18, %v309_v15  ;;  %v154_v21 = vpop.f32.mrb[1].mxu0  ;;  %v170_v22 = vpop.f32.mrb[1].mxu1 }
  0xf7   :  { %v192_v23 = vmul.f32 %v309_v15, %v154_v21  ;;  %v196_v24 = vmul.f32 %v309_v15, %v170_v22  ;;  %v382_v25 = vpop.f32.mrb[2].mxu0  ;;  %v386_v26 = vpop.f32.mrb[2].mxu1 }
  0xf8   :  { %v209_v27 = vadd.f32 %v310_v17, %v194_v19  ;;  %v213_v28 = vadd.f32 %v310_v17, %v198_v20  ;;  %v195_v29 = vmul.f32 %v382_v25, %v309_v15  ;;  %v199_v30 = vmul.f32 %v386_v26, %v309_v15  ;;  %v157_v31 = vpop.f32.mrb[3].mxu0  ;;  %v173_v32 = vpop.f32.mrb[3].mxu1 }
  0xf9   :  { %v207_v33 = vadd.f32 %v310_v17, %v192_v23  ;;  %v211_v34 = vadd.f32 %v310_v17, %v196_v24  ;;  %v193_v35 = vmul.f32 %v309_v15, %v157_v31  ;;  %v197_v36 = vmul.f32 %v309_v15, %v173_v32 }
  0xfa   :  { %vm218_vm0 = vcmp.ge.f32.partialorder %v209_v27, 0.0  ;;  %vm222_vm1 = vcmp.ge.f32.partialorder %v213_v28, 0.0  ;;  %v210_v38 = vadd.f32 %v310_v17, %v195_v29  ;;  %v214_v39 = vadd.f32 %v310_v17, %v199_v30 }
  0xfb   :  { %vm216_vm2 = vcmp.ge.f32.partialorder %v207_v33, 0.0  ;;  %vm220_vm3 = vcmp.ge.f32.partialorder %v211_v34, 0.0  ;;  %v208_v40 = vadd.f32 %v310_v17, %v193_v35  ;;  %v212_v41 = vadd.f32 %v310_v17, %v197_v36 }
  0xfc   :  { %vm219_vm4 = vcmp.ge.f32.partialorder %v210_v38, 0.0  ;;  %vm223_vm5 = vcmp.ge.f32.partialorder %v214_v39, 0.0  ;;  %v233_v42 = vmul.f32 %v231_v37, %v207_v33  ;;  %v235_v43 = vmul.f32 %v231_v37, %v209_v27 }
  0xfd   :  { %vm217_vm6 = vcmp.ge.f32.partialorder %v208_v40, 0.0  ;;  %vm221_vm7 = vcmp.ge.f32.partialorder %v212_v41, 0.0  ;;  %v234_v44 = vmul.f32 %v231_v37, %v208_v40  ;;  %v236_v45 = vmul.f32 %v231_v37, %v210_v38 }
  0xfe   :  { %v237_v46 = vmul.f32 %v231_v37, %v211_v34  ;;  %v238_v47 = vmul.f32 %v231_v37, %v212_v41  ;;  %v239_v48 = vmul.f32 %v231_v37, %v213_v28  ;;  %v240_v49 = vmul.f32 %v231_v37, %v214_v39 }
  0xff   :  { %v241_v50 = vsel %vm216_vm2, %v207_v33, %v233_v42  ;;  %v242_v51 = vsel %vm217_vm6, %v208_v40, %v234_v44  ;;  %v243_v52 = vsel %vm218_vm0, %v209_v27, %v235_v43  ;;  %v244_v53 = vsel %vm219_vm4, %v210_v38, %v236_v45 }
 0x100   :  { %v245_v54 = vsel %vm220_vm3, %v211_v34, %v237_v46  ;;  %v246_v55 = vsel %vm221_vm7, %v212_v41, %v238_v47  ;;  %v247_v56 = vsel %vm222_vm1, %v213_v28, %v239_v48  ;;  %v248_v57 = vsel %vm223_vm5, %v214_v39, %v240_v49 }
 0x101   :  { %v331_v58 = vpack.c.bf16 %v242_v51, %v241_v50  ;;  %v336_v59 = vpack.c.bf16 %v244_v53, %v243_v52  ;;  %v341_v60 = vpack.c.bf16 %v246_v55, %v245_v54  ;;  %v346_v61 = vpack.c.bf16 %v248_v57, %v247_v56 }
 0x103   :  { %332 = vst [vmem:[%s515_s5] sm:$0xff] %v331_v58   ;;  %348 = vst [vmem:[%s515_s5 + $0x8] sm:$0xff] %v336_v59  }
 0x104   :  { %349 = vst [vmem:[%s515_s5 + $0x10] sm:$0xff] %v341_v60   ;;  %350 = vst [vmem:[%s515_s5 + $0x18] sm:$0xff] %v346_v61  }

// kernel: _lambda_.17
= control target key start
LH: loop header
LB: loop body
LE: loop exit
PB: predicated region body
PF: predicated region fallthrough
CT: control target
= control target key end

     0   :  { %10 = vsyncpa [#allocation3], 0  ;;  %v311_v3 = vmov 0.0|0.0   ;;  %vm312_vm0 = vmmov 0   ;;  %v313_v6 = vmov 0.0   ;;  %s430_s0 = inlined_call_operand.vmem [shape: bf16[2,16,128], index: 0, kind: input, shape index: {}]   ;;  %s431_s1 = inlined_call_operand.vmem [shape: f32[128,16], index: 1, kind: input, shape index: {}]   ;;  %s432_s2 = inlined_call_operand.vmem [shape: f32[1,16], index: 2, kind: input, shape index: {}]   ;;  %s433_s3 = inlined_call_operand.hbm [shape: f32[2,128], index: 3, kind: output, shape index: {0}]   ;;  %s434_s4 = inlined_call_operand.hbm [shape: f32[2,16], index: 4, kind: output, shape index: {1}]  }
   0x1   :  { %v49_v0 = vld [vmem:[%s431_s1] sm:$0xff]  ;;  %v50_v1 = vld [vmem:[%s431_s1 + $0x8] sm:$0xff]  ;;  %v51_v2 = vld [vmem:[%s431_s1 + $0x10] sm:$0xff]  ;;  %234 = vmatprep.subr.bf16.mxu0 %v311_v3  ;;  %231 = vmatprep.mubr.msk.f32.mxu0 %vm312_vm0, %v313_v6 }
   0x2   :  { %v235_v4 = vpack.c.bf16 %v50_v1, %v49_v0  ;;  %v52_v5 = vld [vmem:[%s431_s1 + $0x18] sm:$0xff]  ;;  %v53_v8 = vld [vmem:[%s431_s1 + $0x20] sm:$0xff]  ;;  %v54_v9 = vld [vmem:[%s431_s1 + $0x28] sm:$0xff] }
   0x3   :  { %v238_v7 = vpack.c.bf16 %v52_v5, %v51_v2  ;;  %v174_v10 = vld [vmem:[%s430_s0] sm:$0xff]   ;;  %v181_v11 = vld [vmem:[%s430_s0 + $0x8] sm:$0xff]  }
   0x4   :  { %236 = vmatpush3.bf16.msra.mxu0 %v235_v4  ;;  %v175_v12 = vunpack.c.l.bf16 %v174_v10  ;;  %v176_v13 = vunpack.c.h.bf16 %v174_v10  ;;  %v179_v14 = vunpack.c.l.bf16 %v181_v11 }
   0x5   :  { %237 = vmatprep.subr.bf16.mxu0 %v311_v3 }
   0x6   :  { %11 = vsyncpa [#allocation5], 0  ;;  %v241_v15 = vpack.c.bf16 %v54_v9, %v53_v8  ;;  %v180_v16 = vunpack.c.h.bf16 %v181_v11  ;;  %v55_v17 = vld [vmem:[%s431_s1 + $0x30] sm:$0xff]  ;;  %v56_v18 = vld [vmem:[%s431_s1 + $0x38] sm:$0xff]  ;;  %v26_v19 = vadd.f32 %v176_v13, %v175_v12  ;;  %vm45_vm1 = vcmask 1041409   ;;  %s314_s24 = smov [#allocation2]  }
   0x7   :  { %v244_v22 = vpack.c.bf16 %v56_v18, %v55_v17  ;;  %v57_v24 = vld [vmem:[%s431_s1 + $0x40] sm:$0xff]  ;;  %v58_v25 = vld [vmem:[%s431_s1 + $0x48] sm:$0xff]  ;;  %v59_v31 = vld [vmem:[%s431_s1 + $0x50] sm:$0xff]  ;;  %s150_s25 = sshll.u32 %s314_s24, 4  ;;  %s151_s25 = int_to_ptr.vmem [resolvable:$true] %s150_s25 }
   0x8   :  { %239 = vmatpush3.bf16.msra.mxu0 %v238_v7  ;;  %v33_v20 = vadd.f32 %v180_v16, %v179_v14  ;;  %v27_v21 = vrot.slane %v26_v19, 4  ;;  %v247_v29 = vpack.c.bf16 %v58_v25, %v57_v24  ;;  %v60_v32 = vld [vmem:[%s431_s1 + $0x58] sm:$0xff]  ;;  %v61_v38 = vld [vmem:[%s431_s1 + $0x60] sm:$0xff]  ;;  %v62_v39 = vld [vmem:[%s431_s1 + $0x68] sm:$0xff]  ;;  %s263_s26 = scalar_lea.vmem %s151_s25, 32  ;;  %p268_p1 = scmp.lt.s32.totalorder %s151_s25, %s151_s25 }
   0x9   :  { %240 = vmatprep.subr.bf16.mxu0 %v311_v3  ;;  %v250_v36 = vpack.c.bf16 %v60_v32, %v59_v31  ;;  %v253_v43 = vpack.c.bf16 %v62_v39, %v61_v38  ;;  %v63_v45 = vld [vmem:[%s431_s1 + $0x70] sm:$0xff]  ;;  %v64_v46 = vld [vmem:[%s431_s1 + $0x78] sm:$0xff]  ;;  %p264_p0 = scmp.ne.s32.totalorder %s151_s25, %s263_s26  ;;  %p269_p2 = scmp.lt.s32.totalorder %s263_s26, %s263_s26 }
   0xa   :  { %v34_v23 = vrot.slane %v33_v20, 4  ;;  %v28_v26 = vadd.f32 %v27_v21, %v26_v19  ;;  %v256_v48 = vpack.c.bf16 %v64_v46, %v63_v45 }
   0xb   :  { %p270_p3 = por %p269_p2, %p268_p1 }
   0xc   :  { %242 = vmatpush3.bf16.msra.mxu0 %v241_v15  ;;  %v35_v27 = vadd.f32 %v34_v23, %v33_v20  ;;  %v29_v28 = vrot.slane %v28_v26, 2 }
   0xd   :  { %243 = vmatprep.subr.bf16.mxu0 %v311_v3  ;;  %p271_p4 = pnand %p270_p3, %p264_p0 }
   0xe   :  { %v36_v30 = vrot.slane %v35_v27, 2  ;;  %v30_v33 = vadd.f32 %v29_v28, %v28_v26 }
  0x10   :  { %245 = vmatpush3.bf16.msra.mxu0 %v244_v22  ;;  %v37_v34 = vadd.f32 %v36_v30, %v35_v27  ;;  %v31_v35 = vrot.slane %v30_v33, 1 }
  0x11   :  { %246 = vmatprep.subr.bf16.mxu0 %v311_v3 }
  0x12   :  { %v38_v37 = vrot.slane %v37_v34, 1  ;;  %v32_v40 = vadd.f32 %v31_v35, %v30_v33 }
  0x14   :  { %248 = vmatpush3.bf16.msra.mxu0 %v247_v29  ;;  %v39_v41 = vadd.f32 %v38_v37, %v37_v34  ;;  %v41_v42 = vmul.f32 0.0625, %v32_v40 }
  0x15   :  { %249 = vmatprep.subr.bf16.mxu0 %v311_v3 }
  0x16   :  { %v42_v44 = vmul.f32 0.0625, %v39_v41 }
  0x18   :  { %251 = vmatpush3.bf16.msra.mxu0 %v250_v36  ;;  %v46_v47 = vsel %vm45_vm1, %v42_v44, %v41_v42 }
  0x19   :  { %252 = vmatprep.subr.bf16.mxu0 %v311_v3  ;;  %48 = vst [vmem:[#allocation2] sm:$0x3] %v46_v47 }
  0x1c   :  { %254 = vmatpush3.bf16.msra.mxu0 %v253_v43 }
  0x1d   :  { %255 = vmatprep.subr.bf16.mxu0 %v311_v3 }
  0x20   :  { %257 = vmatpush3.bf16.msra.mxu0 %v256_v48 }
  0x23   :  { %232 = vmatmul.mubr.f32.vlgmr.msra.gmra.mrb[0].mxu0 %v46_v47 }
  0x24   :  { %274 = shalt.err (!%p271_p4)
}
  0x25   :  { %s275_s28 = scalar_lea.hbm %s433_s3, 32 }
  0x26   :  { %p276_p5 = scmp.ne.s32.totalorder %s433_s3, %s275_s28  ;;  %p279_p6 = scmp.lt.u32.totalorder %s275_s28, %s433_s3 }
  0x28   :  { %p281_p7 = pnand %p279_p6, %p276_p5 }
  0x2a   :  { %284 = shalt.err (!%p281_p7)
}
  0x2b   :  { %153 = dma.vmem_to_hbm [thread:$0]  %s151_s25, 32, %s433_s3, [#allocation3]   ;;  %v172_v49 = vld [vmem:[%s432_s2] ss:$0 sm:$0xff]  ;;  %vm142_vm2 = vcmask 123904  }
  0x2c   :  { %s315_s10 = smov [#allocation4]  }
  0x2d   :  { %s160_s11 = sshll.u32 %s315_s10, 4  ;;  %s161_s11 = int_to_ptr.vmem [resolvable:$true] %s160_s11 }
  0x2e   :  { %s285_s12 = scalar_lea.vmem %s161_s11, 32  ;;  %p290_p9 = scmp.lt.s32.totalorder %s161_s11, %s161_s11 }
  0x2f   :  { %p286_p8 = scmp.ne.s32.totalorder %s161_s11, %s285_s12  ;;  %p291_p10 = scmp.lt.s32.totalorder %s285_s12, %s285_s12 }
  0x31   :  { %p292_p11 = por %p291_p10, %p290_p9 }
  0x33   :  { %p293_p12 = pnand %p292_p11, %p286_p8 }
  0xf6   :  { %v138_v50 = vpop.f32.mrb[0].mxu0 }
  0xf7   :  { %v139_v51 = vadd.f32 %v172_v49, %v138_v50  ;;  %v233_v52 = vpop.f32.mrb[1].mxu0 }
  0xf9   :  { %143 = vst.msk [vmem:[#allocation4] sm:$0x3] %vm142_vm2, %v139_v51 }
  0xfa   :  { %296 = shalt.err (!%p293_p12)
}
  0xfb   :  { %s297_s14 = scalar_lea.hbm %s434_s4, 32 }
  0xfc   :  { %p298_p13 = scmp.ne.s32.totalorder %s434_s4, %s297_s14  ;;  %p301_p0 = scmp.lt.u32.totalorder %s297_s14, %s434_s4 }
  0xfe   :  { %p303_p1 = pnand %p301_p0, %p298_p13 }
 0x100   :  { %306 = shalt.err (!%p303_p1)
}
 0x101   :  { %163 = dma.vmem_to_hbm [thread:$0]  %s161_s11, 32, %s434_s4, [#allocation5]  }
 0x102   :  { %307 = dma.done.wait [#allocation3], 32  }
 0x103   :  { %308 = vsyncadd [#allocation3], 4294967264 }
 0x104   :  { %309 = dma.done.wait [#allocation5], 32  }
 0x105   :  { %310 = vsyncadd [#allocation5], 4294967264 }
 0x106   :  { %170 = vsyncpa [#allocation3], 1 }
 0x107   :  { %171 = vsyncpa [#allocation5], 1 }

// kernel: _lambda_.14
= control target key start
LH: loop header
LB: loop body
LE: loop exit
PB: predicated region body
PF: predicated region fallthrough
CT: control target
= control target key end

     0   :  { %v2386_v1 = vmov 0   ;;  %vm100_vm0 = vsmask.f32 7424  ;;  %s3033_s1 = inlined_call_operand.vmem [shape: bf16[1152,128], index: 1, kind: input, shape index: {}]   ;;  %s3034_s4 = inlined_call_operand.<no memory space> [shape: f32[1,1], index: 4, kind: input, shape index: {}, may-alias: {4,12}]   ;;  %s3035_s12 = inlined_call_operand.<no memory space> [shape: f32[1,1], index: 12, kind: input, shape index: {}, may-alias: {4,12}]   ;;  %s3036_s0 = inlined_call_operand.vmem [shape: bf16[2,4,48,128], index: 0, kind: input, shape index: {}]   ;;  %s3037_s5 = inlined_call_operand.vmem [shape: bf16[128,128], index: 5, kind: input, shape index: {}]   ;;  %s3038_s9 = inlined_call_operand.vmem [shape: bf16[128,128], index: 9, kind: input, shape index: {}]   ;;  %s3039_s8 = inlined_call_operand.vmem [shape: bf16[64,128], index: 8, kind: input, shape index: {}]   ;;  %s3040_s2 = inlined_call_operand.vmem [shape: f32[1,128], index: 2, kind: input, shape index: {}]   ;;  %s3041_s3 = inlined_call_operand.vmem [shape: f32[1,128], index: 3, kind: input, shape index: {}]   ;;  %s3042_s6 = inlined_call_operand.vmem [shape: f32[1,128], index: 6, kind: input, shape index: {}]   ;;  %s3043_s10 = inlined_call_operand.vmem [shape: f32[1,128], index: 10, kind: input, shape index: {}]   ;;  %s3044_s7 = inlined_call_operand.vmem [shape: f32[1,128], index: 7, kind: input, shape index: {}]   ;;  %s3045_s11 = inlined_call_operand.vmem [shape: f32[1,128], index: 11, kind: input, shape index: {}]   ;;  %s3046_s13 = inlined_call_operand.vmem [shape: bf16[64,128], index: 13, kind: output, shape index: {}]  }
   0x1   :  { %v2264_v0 = vld [vmem:[%s3033_s1 + $0x40] sm:$0xff]   ;;  %2263 = vset.pattern.permute.xlu0 %v2386_v1  ;;  %v18_v2 = vstv %s3034_s4  ;;  %v20_v4 = vstv %s3035_s12  ;;  %v2268_v7 = vld [vmem:[%s3033_s1 + $0x48] sm:$0xff]  }
   0x2   :  { %v2265_v3 = vld [vmem:[%s3033_s1 + $0xc0] sm:$0xff]   ;;  %19 = vst [vmem:[#allocation2] sm:$0x1] %v18_v2  ;;  %1978 = vmatprep.subr.bf16.mxu0 %v2264_v0  ;;  %21 = vst [vmem:[#allocation3] sm:$0x1] %v20_v4  ;;  %v2269_v8 = vld [vmem:[%s3033_s1 + $0xc8] sm:$0xff]  }
   0x3   :  { %v2266_v5 = vld [vmem:[%s3033_s1] sm:$0xff]   ;;  %2018 = vmatprep.subr.bf16.mxu1 %v2265_v3  ;;  %v2270_v9 = vld [vmem:[%s3033_s1 + $0x8] sm:$0xff]   ;;  %v2272_v11 = vld [vmem:[%s3033_s1 + $0x50] sm:$0xff]  }
   0x4   :  { %v2267_v6 = vld [vmem:[%s3033_s1 + $0x80] sm:$0xff]   ;;  %1979 = vmatpush3.bf16.msra.mxu0 %v2266_v5  ;;  %v2271_v10 = vld [vmem:[%s3033_s1 + $0x88] sm:$0xff]   ;;  %v2273_v12 = vld [vmem:[%s3033_s1 + $0xd0] sm:$0xff]  }
   0x5   :  { %2019 = vmatpush3.bf16.msra.mxu1 %v2267_v6  ;;  %1980 = vmatprep.subr.bf16.mxu0 %v2268_v7  ;;  %v2274_v13 = vld [vmem:[%s3033_s1 + $0x10] sm:$0xff]   ;;  %v2276_v15 = vld [vmem:[%s3033_s1 + $0x58] sm:$0xff]   ;;  %v2280_v19 = vld [vmem:[%s3033_s1 + $0x60] sm:$0xff]  }
   0x6   :  { %2020 = vmatprep.subr.bf16.mxu1 %v2269_v8  ;;  %v2275_v14 = vld [vmem:[%s3033_s1 + $0x90] sm:$0xff]   ;;  %v2277_v16 = vld [vmem:[%s3033_s1 + $0xd8] sm:$0xff]   ;;  %v2281_v20 = vld [vmem:[%s3033_s1 + $0xe0] sm:$0xff]  }
   0x7   :  { %v2278_v17 = vld [vmem:[%s3033_s1 + $0x18] sm:$0xff]   ;;  %v2282_v21 = vld [vmem:[%s3033_s1 + $0x20] sm:$0xff]   ;;  %v2284_v23 = vld [vmem:[%s3033_s1 + $0x68] sm:$0xff]  }
   0x8   :  { %1981 = vmatpush3.bf16.msra.mxu0 %v2270_v9  ;;  %v2279_v18 = vld [vmem:[%s3033_s1 + $0x98] sm:$0xff]   ;;  %v2283_v22 = vld [vmem:[%s3033_s1 + $0xa0] sm:$0xff]   ;;  %v2285_v24 = vld [vmem:[%s3033_s1 + $0xe8] sm:$0xff]  }
   0x9   :  { %2021 = vmatpush3.bf16.msra.mxu1 %v2271_v10  ;;  %1982 = vmatprep.subr.bf16.mxu0 %v2272_v11  ;;  %v2286_v25 = vld [vmem:[%s3033_s1 + $0x28] sm:$0xff]   ;;  %v2288_v27 = vld [vmem:[%s3033_s1 + $0x70] sm:$0xff]   ;;  %v2292_v31 = vld [vmem:[%s3033_s1 + $0x78] sm:$0xff]  }
   0xa   :  { %2022 = vmatprep.subr.bf16.mxu1 %v2273_v12  ;;  %v2287_v26 = vld [vmem:[%s3033_s1 + $0xa8] sm:$0xff]   ;;  %v2289_v28 = vld [vmem:[%s3033_s1 + $0xf0] sm:$0xff]   ;;  %v2293_v32 = vld [vmem:[%s3033_s1 + $0xf8] sm:$0xff]  }
   0xb   :  { %v2290_v29 = vld [vmem:[%s3033_s1 + $0x30] sm:$0xff]   ;;  %v2294_v33 = vld [vmem:[%s3033_s1 + $0x38] sm:$0xff]   ;;  %v49_v39 = vld [vmem:[%s3036_s0] sm:$0xf] }
   0xc   :  { %1983 = vmatpush3.bf16.msra.mxu0 %v2274_v13  ;;  %v2291_v30 = vld [vmem:[%s3033_s1 + $0xb0] sm:$0xff]   ;;  %v2295_v34 = vld [vmem:[%s3033_s1 + $0xb8] sm:$0xff]   ;;  %v2579_v40 = vld [vmem:[%s3036_s0 + $0x4] sm:$0xf] }
   0xd   :  { %2023 = vmatpush3.bf16.msra.mxu1 %v2275_v14  ;;  %1984 = vmatprep.subr.bf16.mxu0 %v2276_v15  ;;  %v1774_v35 = vld [vmem:[%s3036_s0 + $0x18] sm:$0xf]  ;;  %v2565_v36 = vld [vmem:[%s3036_s0 + $0x1c] sm:$0xf]  ;;  %v2571_v38 = vld [vmem:[%s3036_s0 + $0x30] sm:$0xff]   ;;  %v1788_v43 = vcombine.low %v49_v39, %v2579_v40 }
   0xe   :  { %2024 = vmatprep.subr.bf16.mxu1 %v2277_v16  ;;  %v1790_v37 = vcombine.low %v1774_v35, %v2565_v36  ;;  %v2584_v41 = vld [vmem:[%s3036_s0 + $0x8] sm:$0xf]  ;;  %1042 = vmatprep.mubr.bf16.mxu1 %v2571_v38  ;;  %v2590_v42 = vld [vmem:[%s3036_s0 + $0xc] sm:$0xf]  ;;  %v2302_v44 = vld [vmem:[%s3033_s1 + $0x140] sm:$0xff]   ;;  %v153_v9 = vshll.u32 %v2571_v38, 16 }
   0xf   :  { %v1789_v45 = vcombine.low %v2584_v41, %v2590_v42  ;;  %v104_v46 = vshll.u32 %v1788_v43, 16  ;;  %v102_v47 = vshrl.u32 %v1788_v43, 16  ;;  %v2303_v48 = vld [vmem:[%s3033_s1 + $0x100] sm:$0xff]   ;;  %v2306_v54 = vld [vmem:[%s3033_s1 + $0x148] sm:$0xff]   ;;  %v2632_v62 = vld [vmem:[%s3036_s0 + $0x38] sm:$0xff]  }
  0x10   :  { %1985 = vmatpush3.bf16.msra.mxu0 %v2278_v17  ;;  %977 = vmatprep.mubr.bf16.mxu0 %v1790_v37  ;;  %v2304_v49 = vld [vmem:[%s3033_s1 + $0x1c0] sm:$0xff]   ;;  %v2307_v56 = vld [vmem:[%s3033_s1 + $0x108] sm:$0xff]   ;;  %v2312_v1 = vld [vmem:[%s3036_s0 + $0x10] ss:$0 sps:$4 sm:$0x11]   ;;  %v158_v13 = vshll.u32 %v2632_v62, 16 }
  0x11   :  { %2025 = vmatpush3.bf16.msra.mxu1 %v2279_v18  ;;  %1986 = vmatprep.subr.bf16.mxu0 %v2280_v19  ;;  %v2607_v50 = vld [vmem:[%s3036_s0 + $0x20] sm:$0xf]  ;;  %v109_v51 = vshll.u32 %v1789_v45, 16  ;;  %v106_v52 = vrot.slane %v104_v46, 1  ;;  %v2308_v58 = vld [vmem:[%s3033_s1 + $0x1c8] sm:$0xff]   ;;  %v113_v63 = vshrl.u32 %v1789_v45, 16 }
  0x12   :  { %2026 = vmatprep.subr.bf16.mxu1 %v2281_v20  ;;  %v2305_v53 = vld [vmem:[%s3033_s1 + $0x180] sm:$0xff]   ;;  %v2311_v0 = vld [vmem:[%s3033_s1 + $0x188] sm:$0xff]   ;;  %v2313_v2 = vld [vmem:[%s3033_s1 + $0x150] sm:$0xff]   ;;  %v117_v4 = vshll.u32 %v2312_v1, 16  ;;  %v151_v19 = vshrl.u32 %v2571_v38, 16 }
  0x13   :  { %v111_v55 = vrot.slane %v109_v51, 1  ;;  %v107_v57 = vor.u32 %v106_v52, %v102_v47  ;;  %v2624_v59 = vld [vmem:[%s3036_s0 + $0x24] sm:$0xf]  ;;  %v2314_v5 = vld [vmem:[%s3033_s1 + $0x110] sm:$0xff]   ;;  %v2317_v10 = vld [vmem:[%s3033_s1 + $0x158] sm:$0xff]  }
  0x14   :  { %1987 = vmatpush3.bf16.msra.mxu0 %v2282_v21  ;;  %v1791_v61 = vcombine.low %v2607_v50, %v2624_v59  ;;  %v2315_v6 = vld [vmem:[%s3033_s1 + $0x1d0] sm:$0xff]   ;;  %v119_v7 = vrot.slane %v117_v4, 1  ;;  %v2318_v12 = vld [vmem:[%s3033_s1 + $0x118] sm:$0xff]   ;;  %v155_v21 = vrot.slane %v153_v9, 1  ;;  %v2328_v35 = vld [vmem:[%s3033_s1 + $0x1a0] sm:$0xff]   ;;  %v2787_v9 = vcombine.low %v2579_v40, %v2584_v41 }
  0x15   :  { %2027 = vmatpush3.bf16.msra.mxu1 %v2283_v22  ;;  %1988 = vmatprep.subr.bf16.mxu0 %v2284_v23  ;;  %v112_v60 = vsel %vm100_vm0, %v107_v57, %v111_v55  ;;  %v115_v3 = vor.u32 %v113_v63, %v111_v55  ;;  %v2316_v8 = vld [vmem:[%s3033_s1 + $0x190] sm:$0xff]   ;;  %v2319_v14 = vld [vmem:[%s3033_s1 + $0x1d8] sm:$0xff]   ;;  %v1803_v22 = vld [vmem:[%s3036_s0 + $0x60] sm:$0xf] }
  0x16   :  { %2028 = vmatprep.subr.bf16.mxu1 %v2285_v24  ;;  %v1807_v15 = vld [vmem:[%s3036_s0 + $0x78] sm:$0xf]  ;;  %v2671_v16 = vld [vmem:[%s3036_s0 + $0x7c] sm:$0xf]  ;;  %v2677_v18 = vld [vmem:[%s3036_s0 + $0x90] sm:$0xff]   ;;  %v190_v40 = vshll.u32 %v2787_v9, 16 }
  0x17   :  { %v120_v11 = vsel %vm100_vm0, %v115_v3, %v119_v7  ;;  %v1826_v17 = vcombine.low %v1807_v15, %v2671_v16  ;;  %v2322_v20 = vld [vmem:[%s3033_s1 + $0x198] sm:$0xff]   ;;  %v2690_v23 = vld [vmem:[%s3036_s0 + $0x64] sm:$0xf]  ;;  %v2329_v38 = vld [vmem:[%s3033_s1 + $0x168] sm:$0xff]   ;;  %v313_v4 = vshll.u32 %v2677_v18, 16 }
  0x18   :  { %1989 = vmatpush3.bf16.msra.mxu0 %v2286_v25  ;;  %v2325_v24 = vld [vmem:[%s3033_s1 + $0x160] sm:$0xff]   ;;  %v2695_v25 = vrot.slane %v158_v13, 1  ;;  %v2331_v46 = vld [vmem:[%s3033_s1 + $0x1e8] sm:$0xff]   ;;  %v2744_v52 = vld [vmem:[%s3036_s0 + $0x98] sm:$0xff]  }
  0x19   :  { %2029 = vmatpush3.bf16.msra.mxu1 %v2287_v26  ;;  %1990 = vmatprep.subr.bf16.mxu0 %v2288_v27  ;;  %v1824_v26 = vcombine.low %v1803_v22, %v2690_v23  ;;  %v2701_v27 = vld [vmem:[%s3036_s0 + $0x68] sm:$0xf]  ;;  %v2731_v47 = vld [vmem:[%s3036_s0 + $0x80] sm:$0xf]  ;;  %v2336_v57 = vld [vmem:[%s3033_s1 + $0x170] sm:$0xff]  }
  0x1a   :  { %2030 = vmatprep.subr.bf16.mxu1 %v2289_v28  ;;  %v2706_v28 = vld [vmem:[%s3036_s0 + $0x6c] sm:$0xf]  ;;  %v2338_v63 = vld [vmem:[%s3033_s1 + $0x1f0] sm:$0xff]   ;;  %v2340_v3 = vld [vmem:[%s3033_s1 + $0x178] sm:$0xff]   ;;  %v2805_v15 = vcombine.low %v2690_v23, %v2701_v27 }
  0x1b   :  { %v2343_v7 = vld [vmem:[%s3033_s1 + $0x1b8] sm:$0xff]   ;;  %v2346_v13 = vld [vmem:[%s3033_s1 + $0x208] sm:$0xff]   ;;  %v2347_v41 = vld [vmem:[%s3036_s0 + $0x40] ss:$0 sps:$4 sm:$0x11]  }
  0x1c   :  { %1991 = vmatpush3.bf16.msra.mxu0 %v2290_v29  ;;  %v1825_v29 = vcombine.low %v2701_v27, %v2706_v28  ;;  %v2348_v27 = vld [vmem:[%s3036_s0 + $0x50] sm:$0xff]  }
  0x1d   :  { %2031 = vmatpush3.bf16.msra.mxu1 %v2291_v30  ;;  %1992 = vmatprep.subr.bf16.mxu0 %v2292_v31  ;;  %v264_v30 = vshll.u32 %v1824_v26, 16  ;;  %v262_v31 = vshrl.u32 %v1824_v26, 16 }
  0x1e   :  { %2032 = vmatprep.subr.bf16.mxu1 %v2293_v32  ;;  %v2326_v32 = vld [vmem:[%s3033_s1 + $0x120] sm:$0xff]  }
  0x1f   :  { %v266_v37 = vrot.slane %v264_v30, 1  ;;  %v322_v30 = vshrl.u32 %v2744_v52, 16 }
  0x20   :  { %1993 = vmatpush3.bf16.msra.mxu0 %v2294_v33  ;;  %v2327_v33 = vld [vmem:[%s3033_s1 + $0x1e0] sm:$0xff]  }
  0x21   :  { %2033 = vmatpush3.bf16.msra.mxu1 %v2295_v34  ;;  %2058 = vmatprep.subr.bf16.mxu0 %v2302_v44  ;;  %v269_v34 = vshll.u32 %v1825_v29, 16  ;;  %v156_v44 = vor.u32 %v155_v21, %v151_v19  ;;  %v2349_v19 = vld [vmem:[%s3033_s1 + $0x210] sm:$0xff]  }
  0x22   :  { %2098 = vmatprep.subr.bf16.mxu1 %v2304_v49  ;;  %v70_v21 = vld [vmem:[%s3036_s0 + $0x10] sm:$0xf] }
  0x23   :  { %978 = vmatmul.mubr.bf16.vlgmr.msra.gmra.mrb[0].mxu0 %v1788_v43  ;;  %v271_v39 = vrot.slane %v269_v34, 1  ;;  %v2330_v43 = vld [vmem:[%s3033_s1 + $0x128] sm:$0xff]   ;;  %v161_v55 = vsel %vm100_vm0, %v156_v44, %v2695_v25  ;;  %v348_v34 = vshrl.u32 %v2805_v15, 16 }
  0x24   :  { %2059 = vmatpush3.bf16.msra.mxu0 %v2303_v48  ;;  %1043 = vmatmul.mubr.bf16.vlgmr.msra.gmra.mrb[0].mxu1 %v112_v60  ;;  %v2736_v48 = vld [vmem:[%s3036_s0 + $0x84] sm:$0xf] }
  0x25   :  { %2060 = vmatprep.subr.bf16.mxu0 %v2306_v54  ;;  %2099 = vmatpush3.bf16.msra.mxu1 %v2305_v53  ;;  %v1827_v51 = vcombine.low %v2731_v47, %v2736_v48  ;;  %v273_v53 = vshrl.u32 %v1825_v29, 16  ;;  %v2334_v54 = vld [vmem:[%s3033_s1 + $0x1a8] sm:$0xff]  }
  0x26   :  { %985 = vmatprep.mubr.bf16.mxu0 %v1791_v61  ;;  %2100 = vmatprep.subr.bf16.mxu1 %v2308_v58  ;;  %v2337_v61 = vld [vmem:[%s3033_s1 + $0x130] sm:$0xff]  }
  0x27   :  { %1050 = vmatprep.mubr.bf16.mxu1 %v2632_v62  ;;  %v275_v58 = vor.u32 %v273_v53, %v271_v39  ;;  %v2364_v53 = vld [vmem:[%s3036_s0 + $0x14] ss:$0 sps:$4 sm:$0x11]  }
  0x28   :  { %2061 = vmatpush3.bf16.msra.mxu0 %v2307_v56  ;;  %v2335_v56 = vld [vmem:[%s3036_s0 + $0x70] ss:$0 sps:$4 sm:$0x11]  }
  0x29   :  { %2062 = vmatprep.subr.bf16.mxu0 %v2313_v2  ;;  %2101 = vmatpush3.bf16.msra.mxu1 %v2311_v0  ;;  %v277_v60 = vshll.u32 %v2335_v56, 16  ;;  %v1800_v0 = vcombine.low %v2565_v36, %v2607_v50  ;;  %v2339_v2 = vld [vmem:[%s3033_s1 + $0x1b0] sm:$0xff]   ;;  %v2341_v36 = vld [vmem:[%s3033_s1 + $0x138] sm:$0xff]  }
  0x2a   :  { %2102 = vmatprep.subr.bf16.mxu1 %v2315_v6  ;;  %v2342_v50 = vld [vmem:[%s3033_s1 + $0x1f8] sm:$0xff]   ;;  %v162_v6 = vshrl.u32 %v2632_v62, 16  ;;  %v2345_v62 = vld [vmem:[%s3033_s1 + $0x200] sm:$0xff]   ;;  %v2365_v56 = vld [vmem:[%s3036_s0 + $0x74] ss:$0 sps:$4 sm:$0x11]  }
  0x2b   :  { %986 = vmatmul.mubr.bf16.gmra.mrb[4].mxu0 %v1789_v45  ;;  %v267_v45 = vor.u32 %v266_v37, %v262_v31  ;;  %v279_v1 = vrot.slane %v277_v60, 1  ;;  %v192_v31 = vrot.slane %v190_v40, 1  ;;  %v1836_v37 = vcombine.low %v2671_v16, %v2731_v47  ;;  %v1822_v16 = vld [vmem:[%s3036_s0 + $0x88] sm:$0xf] }
  0x2c   :  { %2063 = vmatpush3.bf16.msra.mxu0 %v2314_v5  ;;  %1051 = vmatmul.mubr.bf16.gmra.mrb[4].mxu1 %v120_v11  ;;  %v311_v11 = vshrl.u32 %v2677_v18, 16  ;;  %v2891_v40 = vld [vmem:[%s3038_s9 + $0x8] sm:$0xff]  }
  0x2d   :  { %2064 = vmatprep.subr.bf16.mxu0 %v2317_v10  ;;  %2103 = vmatpush3.bf16.msra.mxu1 %v2316_v8  ;;  %v272_v49 = vsel %vm100_vm0, %v267_v45, %v271_v39  ;;  %v280_v5 = vsel %vm100_vm0, %v275_v58, %v279_v1  ;;  %v318_v8 = vshll.u32 %v2744_v52, 16  ;;  %v2344_v10 = vld [vmem:[%s3036_s0 + $0x48] sm:$0xff]   ;;  %v2354_v39 = vld [vmem:[%s3033_s1 + $0x220] sm:$0xff]   ;;  %v363_v1 = vshll.u32 %v2365_v56, 16 }
  0x2e   :  { %2104 = vmatprep.subr.bf16.mxu1 %v2319_v14  ;;  %993 = vmatprep.mubr.bf16.mxu0 %v1826_v17  ;;  %v164_v17 = vor.u32 %v162_v6, %v2695_v25  ;;  %v188_v25 = vshrl.u32 %v2787_v9, 16  ;;  %v2360_v6 = vld [vmem:[%s3033_s1 + $0x230] sm:$0xff]  }
  0x2f   :  { %1058 = vmatprep.mubr.bf16.mxu1 %v2677_v18  ;;  %v320_v14 = vrot.slane %v318_v8, 1  ;;  %v166_v18 = vshll.u32 %v2347_v41, 16  ;;  %v2370_v41 = vld [vmem:[%s3037_s5 + $0x10] sm:$0xff]  }
  0x30   :  { %2065 = vmatpush3.bf16.msra.mxu0 %v2318_v12  ;;  %v315_v12 = vrot.slane %v313_v4, 1 }
  0x31   :  { %2105 = vmatpush3.bf16.msra.mxu1 %v2322_v20  ;;  %2066 = vmatprep.subr.bf16.mxu0 %v2325_v24  ;;  %v1787_v20 = vld [vmem:[%s3036_s0 + $0x28] sm:$0xf]  ;;  %v350_v24 = vshll.u32 %v2805_v15, 16  ;;  %v324_v45 = vor.u32 %v322_v30, %v320_v14 }
  0x32   :  { %2106 = vmatprep.subr.bf16.mxu1 %v2327_v33  ;;  %v316_v22 = vor.u32 %v315_v12, %v311_v11  ;;  %v1801_v23 = vcombine.low %v2624_v59, %v1787_v20  ;;  %v2352_v59 = vld [vmem:[%s3033_s1 + $0x218] sm:$0xff]   ;;  %v2881_v12 = vld [vmem:[%s3038_s9] sm:$0xff]   ;;  %v2376_v20 = vld [vmem:[%s3037_s5 + $0x28] sm:$0xff]  }
  0x33   :  { %994 = vmatmul.mubr.bf16.gmra.mrb[8].mxu0 %v1824_v26  ;;  %v168_v26 = vrot.slane %v166_v18, 1  ;;  %v352_v44 = vrot.slane %v350_v24, 1  ;;  %v2374_v18 = vld [vmem:[%s3037_s5 + $0x20] sm:$0xff]   ;;  %v2380_v24 = vld [vmem:[%s3037_s5 + $0x38] sm:$0xff]  }
  0x34   :  { %2067 = vmatpush3.bf16.msra.mxu0 %v2326_v32  ;;  %1059 = vmatmul.mubr.bf16.gmra.mrb[8].mxu1 %v272_v49  ;;  %v321_v33 = vsel %vm100_vm0, %v316_v22, %v320_v14  ;;  %v2901_v14 = vld [vmem:[%s3038_s9 + $0x10] sm:$0xff]  }
  0x35   :  { %2107 = vmatpush3.bf16.msra.mxu1 %v2328_v35  ;;  %2068 = vmatprep.subr.bf16.mxu0 %v2329_v38  ;;  %v169_v32 = vsel %vm100_vm0, %v164_v17, %v168_v26  ;;  %v2358_v35 = vld [vmem:[%s3036_s0 + $0xa0] ss:$0 sps:$4 sm:$0x11]   ;;  %v2911_v17 = vld [vmem:[%s3038_s9 + $0x18] sm:$0xff]   ;;  %v2378_v22 = vld [vmem:[%s3037_s5 + $0x30] sm:$0xff]  }
  0x36   :  { %2108 = vmatprep.subr.bf16.mxu1 %v2331_v46  ;;  %1001 = vmatprep.mubr.bf16.mxu0 %v1827_v51  ;;  %v1821_v46 = vld [vmem:[%s3036_s0 + $0x70] sm:$0xf]  ;;  %v2382_v26 = vld [vmem:[%s3039_s8] sm:$0xff]  }
  0x37   :  { %1066 = vmatprep.mubr.bf16.mxu1 %v2744_v52  ;;  %v1835_v47 = vcombine.low %v2706_v28, %v1821_v46  ;;  %v2353_v52 = vld [vmem:[%s3036_s0 + $0xa8] sm:$0xff]  }
  0x38   :  { %2069 = vmatpush3.bf16.msra.mxu0 %v2330_v43  ;;  %v326_v43 = vshll.u32 %v2358_v35, 16  ;;  %v2357_v28 = vld [vmem:[%s3033_s1 + $0x228] sm:$0xff]  }
  0x39   :  { %2109 = vmatpush3.bf16.msra.mxu1 %v2334_v54  ;;  %2070 = vmatprep.subr.bf16.mxu0 %v2336_v57  ;;  %v353_v54 = vor.u32 %v352_v44, %v348_v34  ;;  %v1913_v57 = vld [vmem:[#allocation2] ss:$0 sm:$0xff] }
  0x3a   :  { %2110 = vmatprep.subr.bf16.mxu1 %v2338_v63  ;;  %v328_v49 = vrot.slane %v326_v43, 1  ;;  %v359_v63 = vshrl.u32 %v1835_v47, 16  ;;  %1315 = vperm.xlu0 %2263, %v1913_v57  }
  0x3b   :  { %1002 = vmatmul.mubr.bf16.gmra.mrb[12].mxu0 %v1825_v29  ;;  %v1799_v29 = vcombine.low %v2590_v42, %v70_v21  ;;  %v2931_v21 = vld [vmem:[%s3038_s9 + $0x28] sm:$0xff]  }
  0x3c   :  { %1107 = vmatprep.mubr.bf16.mxu0 %v161_v55  ;;  %2071 = vmatpush3.bf16.msra.mxu0 %v2337_v61  ;;  %v355_v55 = vshll.u32 %v1835_v47, 16  ;;  %v329_v58 = vsel %vm100_vm0, %v324_v45, %v328_v49  ;;  %v203_v61 = vshll.u32 %v2364_v53, 16 }
  0x3d   :  { %2111 = vmatpush3.bf16.msra.mxu1 %v2339_v2  ;;  %2072 = vmatprep.subr.bf16.mxu0 %v2340_v3  ;;  %v195_v42 = vshll.u32 %v1799_v29, 16  ;;  %v199_v38 = vshrl.u32 %v1799_v29, 16  ;;  %v1938_v2 = vld [vmem:[#allocation3] ss:$0 sm:$0xff]  ;;  %v1837_v3 = vcombine.low %v2736_v48, %v1822_v16 }
  0x3e   :  { %1067 = vmatmul.mubr.bf16.gmra.mrb[12].mxu1 %v280_v5  ;;  %2112 = vmatprep.subr.bf16.mxu1 %v2342_v50  ;;  %v205_v4 = vrot.slane %v203_v61, 1  ;;  %v365_v50 = vrot.slane %v363_v1, 1 }
  0x3f   :  { %1172 = vmatprep.mubr.bf16.mxu1 %v1800_v0  ;;  %v197_v51 = vrot.slane %v195_v42, 1  ;;  %v357_v0 = vrot.slane %v355_v55, 1  ;;  %1711 = vperm.xlu0 %2263, %v1938_v2  }
  0x40   :  { %2073 = vmatpush3.bf16.msra.mxu0 %v2341_v36 }
  0x41   :  { %2113 = vmatpush3.bf16.msra.mxu1 %v2343_v7  ;;  %2174 = vmatprep.subr.bf16.mxu0 %v2345_v62  ;;  %v201_v60 = vor.u32 %v199_v38, %v197_v51  ;;  %v358_v5 = vsel %vm100_vm0, %v353_v54, %v357_v0  ;;  %v361_v36 = vor.u32 %v359_v63, %v357_v0 }
  0x42   :  { %v193_v7 = vor.u32 %v192_v31, %v188_v25  ;;  %v2951_v25 = vld [vmem:[%s3038_s9 + $0x38] sm:$0xff]  }
  0x43   :  { %1108 = vmatmul.mubr.bf16.vlgmr.msra.gmra.mrb[16].mxu0 %v2344_v10  ;;  %v206_v8 = vsel %vm100_vm0, %v201_v60, %v205_v4  ;;  %v366_v48 = vsel %vm100_vm0, %v361_v36, %v365_v50  ;;  %v2363_v10 = vld [vmem:[%s3033_s1 + $0x238] sm:$0xff]  }
  0x44   :  { %2175 = vmatpush3.bf16.msra.mxu0 %v2345_v62  ;;  %1115 = vmatprep.mubr.bf16.mxu0 %v169_v32  ;;  %v198_v11 = vsel %vm100_vm0, %v193_v7, %v197_v51  ;;  %v2366_v62 = vld [vmem:[%s3037_s5] sm:$0xff]  }
  0x45   :  { %2176 = vmatprep.subr.bf16.mxu0 %v2346_v13  ;;  %2198 = vmatprep.subr.bf16.mxu1 %v2366_v62 }
  0x46   :  { %1173 = vmatmul.mubr.bf16.vlgmr.msra.gmra.mrb[16].mxu1 %v2787_v9  ;;  %v2359_v9 = vld [vmem:[%s3036_s0 + $0xb0] sm:$0xff]  }
  0x47   :  { %1180 = vmatprep.mubr.bf16.mxu1 %v1801_v23  ;;  %2199 = vmatpush3.bf16.msra.mxu1 %v2366_v62  ;;  %v2941_v23 = vld [vmem:[%s3038_s9 + $0x30] sm:$0xff]  }
  0x48   :  { %2177 = vmatpush3.bf16.msra.mxu0 %v2346_v13  ;;  %v2368_v13 = vld [vmem:[%s3037_s5 + $0x8] sm:$0xff]  }
  0x49   :  { %2178 = vmatprep.subr.bf16.mxu0 %v2349_v19  ;;  %2200 = vmatprep.subr.bf16.mxu1 %v2368_v13 }
  0x4b   :  { %1116 = vmatmul.mubr.bf16.gmra.mrb[20].mxu0 %v2348_v27  ;;  %2201 = vmatpush3.bf16.msra.mxu1 %v2368_v13  ;;  %v2383_v27 = vld [vmem:[%s3039_s8 + $0x8] sm:$0xff]  }
  0x4c   :  { %2179 = vmatpush3.bf16.msra.mxu0 %v2349_v19  ;;  %1123 = vmatprep.mubr.bf16.mxu0 %v321_v33  ;;  %v2921_v19 = vld [vmem:[%s3038_s9 + $0x20] sm:$0xff]  }
  0x4d   :  { %2180 = vmatprep.subr.bf16.mxu0 %v2352_v59  ;;  %2202 = vmatprep.subr.bf16.mxu1 %v2370_v41 }
  0x4e   :  { %1181 = vmatmul.mubr.bf16.gmra.mrb[20].mxu1 %v1799_v29 }
  0x4f   :  { %1188 = vmatprep.mubr.bf16.mxu1 %v1836_v37  ;;  %2203 = vmatpush3.bf16.msra.mxu1 %v2370_v41 }
  0x50   :  { %2181 = vmatpush3.bf16.msra.mxu0 %v2352_v59 }
  0x51   :  { %2182 = vmatprep.subr.bf16.mxu0 %v2354_v39 }
  0x53   :  { %1124 = vmatmul.mubr.bf16.gmra.mrb[24].mxu0 %v2353_v52 }
  0x54   :  { %2183 = vmatpush3.bf16.msra.mxu0 %v2354_v39  ;;  %1131 = vmatprep.mubr.bf16.mxu0 %v329_v58 }
  0x55   :  { %2184 = vmatprep.subr.bf16.mxu0 %v2357_v28 }
  0x56   :  { %1189 = vmatmul.mubr.bf16.gmra.mrb[24].mxu1 %v2805_v15  ;;  %v2372_v15 = vld [vmem:[%s3037_s5 + $0x18] sm:$0xff]  }
  0x57   :  { %1196 = vmatprep.mubr.bf16.mxu1 %v1837_v3  ;;  %2204 = vmatprep.subr.bf16.mxu1 %v2372_v15 }
  0x58   :  { %2185 = vmatpush3.bf16.msra.mxu0 %v2357_v28  ;;  %2205 = vmatpush3.bf16.msra.mxu1 %v2372_v15 }
  0x59   :  { %2186 = vmatprep.subr.bf16.mxu0 %v2360_v6  ;;  %2206 = vmatprep.subr.bf16.mxu1 %v2374_v18 }
  0x5b   :  { %1132 = vmatmul.mubr.bf16.gmra.mrb[28].mxu0 %v2359_v9 }
  0x5c   :  { %2187 = vmatpush3.bf16.msra.mxu0 %v2360_v6  ;;  %2190 = vmatprep.mubr.bf16.mxu0 %v198_v11 }
  0x5d   :  { %2188 = vmatprep.subr.bf16.mxu0 %v2363_v10  ;;  %2207 = vmatpush3.bf16.msra.mxu1 %v2374_v18 }
  0x5e   :  { %1197 = vmatmul.mubr.bf16.gmra.mrb[28].mxu1 %v1835_v47  ;;  %2208 = vmatprep.subr.bf16.mxu1 %v2376_v20 }
  0x60   :  { %2189 = vmatpush3.bf16.msra.mxu0 %v2363_v10 }
  0x61   :  { %2222 = vmatprep.subr.bf16.mxu0 %v2881_v12  ;;  %2209 = vmatpush3.bf16.msra.mxu1 %v2376_v20 }
  0x62   :  { %2210 = vmatprep.subr.bf16.mxu1 %v2378_v22 }
  0x63   :  { %2191 = vmatmul.mubr.bf16.vlgmr.msra.gmra.mrb[32].mxu0 %v206_v8 }
  0x64   :  { %2194 = vmatprep.mubr.bf16.mxu0 %v358_v5  ;;  %2223 = vmatpush3.bf16.msra.mxu0 %v2881_v12 }
  0x65   :  { %2224 = vmatprep.subr.bf16.mxu0 %v2891_v40  ;;  %2211 = vmatpush3.bf16.msra.mxu1 %v2378_v22 }
  0x66   :  { %2212 = vmatprep.subr.bf16.mxu1 %v2380_v24 }
  0x68   :  { %2225 = vmatpush3.bf16.msra.mxu0 %v2891_v40 }
  0x69   :  { %2226 = vmatprep.subr.bf16.mxu0 %v2901_v14  ;;  %2213 = vmatpush3.bf16.msra.mxu1 %v2380_v24 }
  0x6a   :  { %2246 = vmatprep.subr.bf16.mxu1 %v2881_v12 }
  0x6b   :  { %2195 = vmatmul.mubr.bf16.gmra.mrb[36].mxu0 %v366_v48 }
  0x6c   :  { %2227 = vmatpush3.bf16.msra.mxu0 %v2901_v14  ;;  %2238 = vmatprep.mubr.bf16.mxu0 %v2382_v26 }
  0x6d   :  { %2228 = vmatprep.subr.bf16.mxu0 %v2911_v17 }
  0x70   :  { %2229 = vmatpush3.bf16.msra.mxu0 %v2911_v17 }
  0x71   :  { %2230 = vmatprep.subr.bf16.mxu0 %v2921_v19 }
  0x74   :  { %2231 = vmatpush3.bf16.msra.mxu0 %v2921_v19 }
  0x75   :  { %2232 = vmatprep.subr.bf16.mxu0 %v2931_v21 }
  0x78   :  { %2233 = vmatpush3.bf16.msra.mxu0 %v2931_v21 }
  0x79   :  { %2234 = vmatprep.subr.bf16.mxu0 %v2941_v23 }
  0x7c   :  { %2235 = vmatpush3.bf16.msra.mxu0 %v2941_v23 }
  0x7d   :  { %2236 = vmatprep.subr.bf16.mxu0 %v2951_v25 }
  0x80   :  { %2237 = vmatpush3.bf16.msra.mxu0 %v2951_v25 }
  0x83   :  { %2239 = vmatmul.mubr.bf16.vlgmr.msra.gmra.mrb[40].mxu0 %v2383_v27 }
  0xf6   :  { %v1994_v29 = vpop.f32.mrb[0].mxu0 }
  0xf7   :  { %v1995_v30 = vpop.f32.mrb[1].mxu0  ;;  %v2034_v34 = vpop.f32.mrb[0].mxu1 }
  0xf8   :  { %v1996_v31 = vadd.f32 %v1995_v30, %v1994_v29  ;;  %v1997_v32 = vpop.f32.mrb[2].mxu0  ;;  %v2035_v35 = vpop.f32.mrb[1].mxu1 }
  0xf9   :  { %v1998_v59 = vpop.f32.mrb[3].mxu0  ;;  %v2036_v42 = vadd.f32 %v2035_v35, %v2034_v34  ;;  %v2037_v37 = vpop.f32.mrb[2].mxu1 }
  0xfa   :  { %v1999_v33 = vadd.f32 %v1998_v59, %v1997_v32  ;;  %v2038_v38 = vpop.f32.mrb[3].mxu1 }
  0xfb   :  { %v1045_v43 = vadd.f32 %v2036_v42, %v1996_v31  ;;  %v2039_v44 = vadd.f32 %v2038_v38, %v2037_v37 }
  0xfd   :  { %v1048_v16 = vadd.f32 %v2039_v44, %v1999_v33 }
  0xfe   :  { %v2000_v39 = vpop.f32.mrb[4].mxu0 }
  0xff   :  { %v2001_v45 = vpop.f32.mrb[5].mxu0  ;;  %v2040_v52 = vpop.f32.mrb[4].mxu1 }
 0x100   :  { %v2002_v46 = vadd.f32 %v2001_v45, %v2000_v39  ;;  %v2003_v49 = vpop.f32.mrb[6].mxu0  ;;  %v2041_v53 = vpop.f32.mrb[5].mxu1 }
 0x101   :  { %v2004_v47 = vpop.f32.mrb[7].mxu0  ;;  %v2042_v54 = vadd.f32 %v2041_v53, %v2040_v52  ;;  %v2043_v55 = vpop.f32.mrb[6].mxu1 }
 0x102   :  { %v2005_v51 = vadd.f32 %v2004_v47, %v2003_v49  ;;  %v2044_v56 = vpop.f32.mrb[7].mxu1 }
 0x103   :  { %v1053_v57 = vadd.f32 %v2042_v54, %v2002_v46  ;;  %v2045_v28 = vadd.f32 %v2044_v56, %v2043_v55 }
 0x105   :  { %v1056_v58 = vadd.f32 %v2045_v28, %v2005_v51 }
 0x106   :  { %v2006_v60 = vpop.f32.mrb[8].mxu0 }
 0x107   :  { %v2007_v61 = vpop.f32.mrb[9].mxu0  ;;  %v2046_v3 = vpop.f32.mrb[8].mxu1 }
 0x108   :  { %v2008_v63 = vadd.f32 %v2007_v61, %v2006_v60  ;;  %v2009_v0 = vpop.f32.mrb[10].mxu0  ;;  %v2047_v4 = vpop.f32.mrb[9].mxu1 }
 0x109   :  { %v2010_v1 = vpop.f32.mrb[11].mxu0  ;;  %v2048_v5 = vadd.f32 %v2047_v4, %v2046_v3  ;;  %v2049_v36 = vpop.f32.mrb[10].mxu1 }
 0x10a   :  { %v2011_v2 = vadd.f32 %v2010_v1, %v2009_v0  ;;  %v2050_v6 = vpop.f32.mrb[11].mxu1 }
 0x10b   :  { %v1061_v8 = vadd.f32 %v2048_v5, %v2008_v63  ;;  %v2051_v48 = vadd.f32 %v2050_v6, %v2049_v36 }
 0x10d   :  { %v1064_v62 = vadd.f32 %v2051_v48, %v2011_v2 }
 0x10e   :  { %v2012_v50 = vpop.f32.mrb[12].mxu0 }
 0x10f   :  { %v2013_v7 = vpop.f32.mrb[13].mxu0 }
 0x110   :  { %v2014_v9 = vadd.f32 %v2013_v7, %v2012_v50  ;;  %v2015_v10 = vpop.f32.mrb[14].mxu0 }
 0x111   :  { %v2016_v11 = vpop.f32.mrb[15].mxu0  ;;  %v2052_v41 = vpop.f32.mrb[12].mxu1 }
 0x112   :  { %v2017_v13 = vadd.f32 %v2016_v11, %v2015_v10  ;;  %v2053_v15 = vpop.f32.mrb[13].mxu1 }
 0x113   :  { %v2054_v18 = vadd.f32 %v2053_v15, %v2052_v41  ;;  %v2055_v20 = vpop.f32.mrb[14].mxu1 }
 0x114   :  { %v2056_v22 = vpop.f32.mrb[15].mxu1 }
 0x115   :  { %v1069_v24 = vadd.f32 %v2054_v18, %v2014_v9  ;;  %v2057_v26 = vadd.f32 %v2056_v22, %v2055_v20 }
 0x116   :  { %v2074_v27 = vpop.f32.mrb[16].mxu0 }
 0x117   :  { %v2075_v29 = vpop.f32.mrb[17].mxu0  ;;  %v1072_v30 = vadd.f32 %v2057_v26, %v2017_v13 }
 0x118   :  { %v2076_v31 = vadd.f32 %v2075_v29, %v2074_v27  ;;  %v2077_v32 = vpop.f32.mrb[18].mxu0 }
 0x119   :  { %v2078_v59 = vpop.f32.mrb[19].mxu0  ;;  %v2114_v34 = vpop.f32.mrb[16].mxu1 }
 0x11a   :  { %v1110_v33 = vadd.f32 %v2076_v31, %v1045_v43  ;;  %v2079_v35 = vadd.f32 %v2078_v59, %v2077_v32  ;;  %v2115_v42 = vpop.f32.mrb[17].mxu1 }
 0x11b   :  { %v2116_v38 = vadd.f32 %v2115_v42, %v2114_v34  ;;  %v2117_v39 = vpop.f32.mrb[18].mxu1 }
 0x11c   :  { %v1113_v37 = vadd.f32 %v2079_v35, %v1048_v16  ;;  %v2118_v44 = vpop.f32.mrb[19].mxu1 }
 0x11d   :  { %v2119_v45 = vadd.f32 %v2118_v44, %v2117_v39  ;;  %v1175_v46 = vadd.f32 %v2116_v38, %v1110_v33  ;;  %v1911_v38 = vld [vmem:[%s3040_s2] ss:$0 sm:$0xff] }
 0x11e   :  { %v2080_v49 = vpop.f32.mrb[20].mxu0 }
 0x11f   :  { %v2081_v47 = vpop.f32.mrb[21].mxu0  ;;  %v1178_v51 = vadd.f32 %v2119_v45, %v1113_v37 }
 0x120   :  { %v2082_v52 = vadd.f32 %v2081_v47, %v2080_v49  ;;  %v2083_v53 = vpop.f32.mrb[22].mxu0 }
 0x121   :  { %v2120_v54 = vpop.f32.mrb[20].mxu1  ;;  %v2084_v55 = vpop.f32.mrb[23].mxu0 }
 0x122   :  { %v1118_v56 = vadd.f32 %v2082_v52, %v1053_v57  ;;  %v2085_v28 = vadd.f32 %v2084_v55, %v2083_v53  ;;  %v2121_v60 = vpop.f32.mrb[21].mxu1 }
 0x123   :  { %v2122_v43 = vadd.f32 %v2121_v60, %v2120_v54  ;;  %v2123_v61 = vpop.f32.mrb[22].mxu1 }
 0x124   :  { %v1121_v63 = vadd.f32 %v2085_v28, %v1056_v58  ;;  %v2124_v0 = vpop.f32.mrb[23].mxu1 }
 0x125   :  { %v2125_v16 = vadd.f32 %v2124_v0, %v2123_v61  ;;  %v1183_v1 = vadd.f32 %v2122_v43, %v1118_v56  ;;  %v1316_v56 = vpop.permute.xlu0 %1315 }
 0x126   :  { %v2086_v2 = vpop.f32.mrb[24].mxu0 }
 0x127   :  { %v2087_v3 = vpop.f32.mrb[25].mxu0  ;;  %v1186_v4 = vadd.f32 %v2125_v16, %v1121_v63 }
 0x128   :  { %v2088_v5 = vadd.f32 %v2087_v3, %v2086_v2  ;;  %v2089_v36 = vpop.f32.mrb[26].mxu0 }
 0x129   :  { %v2126_v50 = vpop.f32.mrb[24].mxu1  ;;  %v2090_v6 = vpop.f32.mrb[27].mxu0 }
 0x12a   :  { %v1126_v7 = vadd.f32 %v2088_v5, %v1061_v8  ;;  %v2091_v48 = vadd.f32 %v2090_v6, %v2089_v36  ;;  %v2127_v9 = vpop.f32.mrb[25].mxu1 }
 0x12b   :  { %v2128_v10 = vadd.f32 %v2127_v9, %v2126_v50  ;;  %v2129_v57 = vpop.f32.mrb[26].mxu1 }
 0x12c   :  { %v1129_v11 = vadd.f32 %v2091_v48, %v1064_v62  ;;  %v2130_v13 = vpop.f32.mrb[27].mxu1 }
 0x12d   :  { %v2131_v41 = vadd.f32 %v2130_v13, %v2129_v57  ;;  %v1191_v15 = vadd.f32 %v2128_v10, %v1126_v7 }
 0x12e   :  { %v2092_v58 = vpop.f32.mrb[28].mxu0 }
 0x12f   :  { %v2093_v18 = vpop.f32.mrb[29].mxu0  ;;  %v1194_v20 = vadd.f32 %v2131_v41, %v1129_v11 }
 0x130   :  { %v2094_v22 = vadd.f32 %v2093_v18, %v2092_v58  ;;  %v2095_v26 = vpop.f32.mrb[30].mxu0 }
 0x131   :  { %v2132_v27 = vpop.f32.mrb[28].mxu1  ;;  %v2096_v29 = vpop.f32.mrb[31].mxu0 }
 0x132   :  { %v1134_v31 = vadd.f32 %v2094_v22, %v1069_v24  ;;  %v2097_v32 = vadd.f32 %v2096_v29, %v2095_v26  ;;  %v2133_v59 = vpop.f32.mrb[29].mxu1  ;;  %v1912_v24 = vld [vmem:[%s3041_s3] ss:$0 sm:$0xff] }
 0x133   :  { %v2134_v33 = vadd.f32 %v2133_v59, %v2132_v27  ;;  %v2135_v8 = vpop.f32.mrb[30].mxu1 }
 0x134   :  { %v1137_v34 = vadd.f32 %v2097_v32, %v1072_v30  ;;  %v2136_v35 = vpop.f32.mrb[31].mxu1 }
 0x135   :  { %v2137_v42 = vadd.f32 %v2136_v35, %v2135_v8  ;;  %v1199_v37 = vadd.f32 %v2134_v33, %v1134_v31 }
 0x136   :  { %v2192_v62 = vpop.f32.mrb[32].mxu0 }
 0x137   :  { %v1248_v39 = vadd.f32 %v2192_v62, %v1183_v1  ;;  %v1239_v44 = vpop.f32.mrb[33].mxu0  ;;  %v1202_v45 = vadd.f32 %v2137_v42, %v1137_v34  ;;  %v2384_v62 = vld [vmem:[%s3039_s8 + $0x10] sm:$0xff]  }
 0x138   :  { %v1240_v49 = vadd.f32 %v1239_v44, %v1175_v46  ;;  %v2193_v47 = vpop.f32.mrb[34].mxu0 }
 0x139   :  { %v1279_v52 = vmul.f32 %v1911_v38, %v1248_v39  ;;  %v1251_v53 = vadd.f32 %v2193_v47, %v1186_v4  ;;  %v1242_v30 = vpop.f32.mrb[35].mxu0  ;;  %v3000_v39 = vld [vmem:[%s3044_s7] ss:$0 sm:$0xff] }
 0x13a   :  { %v1277_v54 = vmul.f32 %v1911_v38, %v1240_v49  ;;  %v1243_v55 = vadd.f32 %v1242_v30, %v1178_v51 }
 0x13b   :  { %v1294_v28 = vadd.f32 %v1912_v24, %v1279_v52  ;;  %v1280_v60 = vmul.f32 %v1911_v38, %v1251_v53 }
 0x13c   :  { %v1292_v43 = vadd.f32 %v1912_v24, %v1277_v54  ;;  %v1278_v61 = vmul.f32 %v1911_v38, %v1243_v55 }
 0x13d   :  { %vm1303_vm1 = vcmp.ge.f32.partialorder %v1294_v28, 0.0  ;;  %v1295_v63 = vadd.f32 %v1912_v24, %v1280_v60  ;;  %v1320_v0 = vmul.f32 %v1316_v56, %v1294_v28 }
 0x13e   :  { %v1293_v16 = vadd.f32 %v1912_v24, %v1278_v61  ;;  %v2196_v1 = vpop.f32.mrb[36].mxu0  ;;  %vm1301_vm2 = vcmp.ge.f32.partialorder %v1292_v43, 0.0  ;;  %v1318_v2 = vmul.f32 %v1316_v56, %v1292_v43 }
 0x13f   :  { %vm1304_vm3 = vcmp.ge.f32.partialorder %v1295_v63, 0.0  ;;  %v1264_v46 = vadd.f32 %v2196_v1, %v1199_v37  ;;  %v1255_v3 = vpop.f32.mrb[37].mxu0  ;;  %v1321_v5 = vmul.f32 %v1316_v56, %v1295_v63  ;;  %v1328_v50 = vsel %vm1303_vm1, %v1294_v28, %v1320_v0 }
 0x140   :  { %v1256_v4 = vadd.f32 %v1255_v3, %v1191_v15  ;;  %v2197_v36 = vpop.f32.mrb[38].mxu0  ;;  %vm1302_vm4 = vcmp.ge.f32.partialorder %v1293_v16, 0.0  ;;  %v1319_v51 = vmul.f32 %v1316_v56, %v1293_v16  ;;  %v1326_v9 = vsel %vm1301_vm2, %v1292_v43, %v1318_v2  ;;  %v1712_v2 = vpop.permute.xlu0 %1711 }
 0x141   :  { %v1283_v6 = vmul.f32 %v1911_v38, %v1264_v46  ;;  %v1267_v7 = vadd.f32 %v2197_v36, %v1202_v45  ;;  %v1258_v48 = vpop.f32.mrb[39].mxu0  ;;  %v1329_v10 = vsel %vm1304_vm3, %v1295_v63, %v1321_v5 }
 0x142   :  { %v1281_v57 = vmul.f32 %v1911_v38, %v1256_v4  ;;  %v1259_v11 = vadd.f32 %v1258_v48, %v1194_v20  ;;  %v1327_v13 = vsel %vm1302_vm4, %v1293_v16, %v1319_v51  ;;  %v1335_v41 = vpack.c.bf16 %v1329_v10, %v1328_v50 }
 0x143   :  { %v1298_v58 = vadd.f32 %v1912_v24, %v1283_v6  ;;  %v1284_v18 = vmul.f32 %v1911_v38, %v1267_v7  ;;  %v1334_v22 = vpack.c.bf16 %v1327_v13, %v1326_v9 }
 0x144   :  { %v1296_v26 = vadd.f32 %v1912_v24, %v1281_v57  ;;  %v1282_v27 = vmul.f32 %v1911_v38, %v1259_v11 }
 0x145   :  { %v1324_v29 = vmul.f32 %v1316_v56, %v1298_v58  ;;  %v1299_v15 = vadd.f32 %v1912_v24, %v1284_v18  ;;  %2214 = vmatprep.mubr.bf16.mxu1 %v1334_v22  ;;  %vm1307_vm5 = vcmp.ge.f32.partialorder %v1298_v58, 0.0 }
 0x146   :  { %v1322_v31 = vmul.f32 %v1316_v56, %v1296_v26  ;;  %v1297_v32 = vadd.f32 %v1912_v24, %v1282_v27  ;;  %2215 = vmatmul.mubr.bf16.vlgmr.msra.gmra.mrb[32].mxu1 %v1335_v41  ;;  %vm1305_vm6 = vcmp.ge.f32.partialorder %v1296_v26, 0.0 }
 0x147   :  { %v1325_v59 = vmul.f32 %v1316_v56, %v1299_v15  ;;  %2254 = vmatpush3.bf16.msra.mxu1 %v2881_v12  ;;  %vm1308_vm7 = vcmp.ge.f32.partialorder %v1299_v15, 0.0  ;;  %v1332_v33 = vsel %vm1307_vm5, %v1298_v58, %v1324_v29  ;;  %v2385_v12 = vld [vmem:[%s3039_s8 + $0x18] sm:$0xff]  }
 0x148   :  { %v1323_v20 = vmul.f32 %v1316_v56, %v1297_v32  ;;  %2247 = vmatprep.subr.bf16.mxu1 %v2891_v40  ;;  %vm1306_vm8 = vcmp.ge.f32.partialorder %v1297_v32, 0.0  ;;  %v1330_v34 = vsel %vm1305_vm6, %v1296_v26, %v1322_v31  ;;  %v1937_v56 = vld [vmem:[%s3045_s11] ss:$0 sm:$0xff] }
 0x149   :  { %v1333_v8 = vsel %vm1308_vm7, %v1299_v15, %v1325_v59 }
 0x14a   :  { %v1331_v35 = vsel %vm1306_vm8, %v1297_v32, %v1323_v20  ;;  %v1337_v42 = vpack.c.bf16 %v1333_v8, %v1332_v33 }
 0x14b   :  { %2255 = vmatpush3.bf16.msra.mxu1 %v2891_v40  ;;  %v1336_v37 = vpack.c.bf16 %v1331_v35, %v1330_v34 }
 0x14c   :  { %2248 = vmatprep.subr.bf16.mxu1 %v2901_v14 }
 0x14d   :  { %2218 = vmatprep.mubr.bf16.mxu1 %v1336_v37 }
 0x14e   :  { %2219 = vmatmul.mubr.bf16.gmra.mrb[36].mxu1 %v1337_v42 }
 0x14f   :  { %2256 = vmatpush3.bf16.msra.mxu1 %v2901_v14  ;;  %2242 = vmatprep.mubr.bf16.mxu1 %v2384_v62 }
 0x150   :  { %2249 = vmatprep.subr.bf16.mxu1 %v2911_v17 }
 0x153   :  { %2257 = vmatpush3.bf16.msra.mxu1 %v2911_v17 }
 0x154   :  { %2250 = vmatprep.subr.bf16.mxu1 %v2921_v19 }
 0x156   :  { %v2240_v40 = vpop.f32.mrb[40].mxu0 }
 0x157   :  { %2258 = vmatpush3.bf16.msra.mxu1 %v2921_v19  ;;  %v1627_v14 = vpop.f32.mrb[41].mxu0 }
 0x158   :  { %2251 = vmatprep.subr.bf16.mxu1 %v2931_v21  ;;  %v2241_v17 = vpop.f32.mrb[42].mxu0 }
 0x159   :  { %v1630_v19 = vpop.f32.mrb[43].mxu0 }
 0x15b   :  { %2259 = vmatpush3.bf16.msra.mxu1 %v2931_v21  ;;  %v1922_v21 = vld [vmem:[%s3042_s6] ss:$0 sm:$0xff] }
 0x15c   :  { %2252 = vmatprep.subr.bf16.mxu1 %v2941_v23 }
 0x15f   :  { %2260 = vmatpush3.bf16.msra.mxu1 %v2941_v23  ;;  %v2995_v23 = vld [vmem:[%s3043_s10] ss:$0 sm:$0xff] }
 0x160   :  { %2253 = vmatprep.subr.bf16.mxu1 %v2951_v25  ;;  %v1667_v45 = vmul.f32 %v2240_v40, %v2995_v23  ;;  %v1665_v47 = vmul.f32 %v2995_v23, %v1627_v14  ;;  %v1668_v54 = vmul.f32 %v2241_v17, %v2995_v23  ;;  %v1666_v60 = vmul.f32 %v2995_v23, %v1630_v19 }
 0x163   :  { %2261 = vmatpush3.bf16.msra.mxu1 %v2951_v25 }
 0x166   :  { %2243 = vmatmul.mubr.bf16.vlgmr.msra.gmra.mrb[40].mxu1 %v2385_v12 }
 0x219   :  { %v2216_v38 = vpop.f32.mrb[32].mxu1 }
 0x21a   :  { %v1476_v25 = vmul.f32 %v2216_v38, %v1922_v21  ;;  %v1436_v44 = vpop.f32.mrb[33].mxu1 }
 0x21b   :  { %v1474_v24 = vmul.f32 %v1922_v21, %v1436_v44  ;;  %v2217_v49 = vpop.f32.mrb[34].mxu1 }
 0x21c   :  { %v1491_v52 = vadd.f32 %v3000_v39, %v1476_v25  ;;  %v1477_v53 = vmul.f32 %v2217_v49, %v1922_v21  ;;  %v1439_v30 = vpop.f32.mrb[35].mxu1 }
 0x21d   :  { %v1489_v55 = vadd.f32 %v3000_v39, %v1474_v24  ;;  %v1475_v28 = vmul.f32 %v1922_v21, %v1439_v30 }
 0x21e   :  { %v1492_v43 = vadd.f32 %v3000_v39, %v1477_v53  ;;  %v1675_v61 = vadd.f32 %v1667_v45, %v1491_v52 }
 0x21f   :  { %v1490_v63 = vadd.f32 %v3000_v39, %v1475_v28  ;;  %v1673_v0 = vadd.f32 %v1665_v47, %v1489_v55 }
 0x220   :  { %v1690_v16 = vadd.f32 %v1937_v56, %v1675_v61  ;;  %v1676_v1 = vadd.f32 %v1668_v54, %v1492_v43 }
 0x221   :  { %v1688_v46 = vadd.f32 %v1937_v56, %v1673_v0  ;;  %v1674_v3 = vadd.f32 %v1666_v60, %v1490_v63  ;;  %v2220_v5 = vpop.f32.mrb[36].mxu1 }
 0x222   :  { %v1716_v4 = vmul.f32 %v1712_v2, %v1690_v16  ;;  %v1691_v36 = vadd.f32 %v1937_v56, %v1676_v1  ;;  %v1452_v51 = vpop.f32.mrb[37].mxu1  ;;  %vm1699_vm9 = vcmp.ge.f32.partialorder %v1690_v16, 0.0  ;;  %v1480_v22 = vmul.f32 %v2220_v5, %v1922_v21 }
 0x223   :  { %v1714_v50 = vmul.f32 %v1712_v2, %v1688_v46  ;;  %v1689_v6 = vadd.f32 %v1937_v56, %v1674_v3  ;;  %v2221_v7 = vpop.f32.mrb[38].mxu1  ;;  %vm1697_vm10 = vcmp.ge.f32.partialorder %v1688_v46, 0.0  ;;  %v1478_v26 = vmul.f32 %v1922_v21, %v1452_v51 }
 0x224   :  { %vm1700_vm11 = vcmp.ge.f32.partialorder %v1691_v36, 0.0  ;;  %v1717_v48 = vmul.f32 %v1712_v2, %v1691_v36  ;;  %v1455_v9 = vpop.f32.mrb[39].mxu1  ;;  %v1724_v57 = vsel %vm1699_vm9, %v1690_v16, %v1716_v4  ;;  %v1481_v27 = vmul.f32 %v2221_v7, %v1922_v21 }
 0x225   :  { %vm1698_vm12 = vcmp.ge.f32.partialorder %v1689_v6, 0.0  ;;  %v1715_v10 = vmul.f32 %v1712_v2, %v1689_v6  ;;  %v1722_v13 = vsel %vm1697_vm10, %v1688_v46, %v1714_v50  ;;  %v1479_v29 = vmul.f32 %v1922_v21, %v1455_v9 }
 0x226   :  { %v1725_v11 = vsel %vm1700_vm11, %v1691_v36, %v1717_v48  ;;  %v1495_v31 = vadd.f32 %v3000_v39, %v1480_v22  ;;  %v1493_v20 = vadd.f32 %v3000_v39, %v1478_v26  ;;  %v1496_v34 = vadd.f32 %v3000_v39, %v1481_v27 }
 0x227   :  { %v1963_v41 = vpack.c.bf16 %v1725_v11, %v1724_v57  ;;  %v1723_v58 = vsel %vm1698_vm12, %v1689_v6, %v1715_v10  ;;  %v1494_v62 = vadd.f32 %v3000_v39, %v1479_v29 }
 0x228   :  { %v1958_v18 = vpack.c.bf16 %v1723_v58, %v1722_v13 }
 0x229   :  { %1975 = vst [vmem:[%s3046_s13 + $0x8] sm:$0xff] %v1963_v41  }
 0x22a   :  { %1959 = vst [vmem:[%s3046_s13] sm:$0xff] %v1958_v18  }
 0x239   :  { %v2244_v15 = vpop.f32.mrb[40].mxu1 }
 0x23a   :  { %v1671_v32 = vmul.f32 %v2244_v15, %v2995_v23  ;;  %v1643_v59 = vpop.f32.mrb[41].mxu1 }
 0x23b   :  { %v1669_v33 = vmul.f32 %v2995_v23, %v1643_v59  ;;  %v2245_v8 = vpop.f32.mrb[42].mxu1 }
 0x23c   :  { %v1679_v35 = vadd.f32 %v1671_v32, %v1495_v31  ;;  %v1672_v42 = vmul.f32 %v2245_v8, %v2995_v23  ;;  %v1646_v37 = vpop.f32.mrb[43].mxu1 }
 0x23d   :  { %v1677_v12 = vadd.f32 %v1669_v33, %v1493_v20  ;;  %v1670_v40 = vmul.f32 %v2995_v23, %v1646_v37 }
 0x23e   :  { %v1694_v14 = vadd.f32 %v1937_v56, %v1679_v35  ;;  %v1680_v17 = vadd.f32 %v1672_v42, %v1496_v34 }
 0x23f   :  { %v1692_v19 = vadd.f32 %v1937_v56, %v1677_v12  ;;  %v1678_v21 = vadd.f32 %v1670_v40, %v1494_v62 }
 0x240   :  { %v1720_v38 = vmul.f32 %v1712_v2, %v1694_v14  ;;  %v1695_v25 = vadd.f32 %v1937_v56, %v1680_v17  ;;  %vm1703_vm13 = vcmp.ge.f32.partialorder %v1694_v14, 0.0 }
 0x241   :  { %v1718_v44 = vmul.f32 %v1712_v2, %v1692_v19  ;;  %v1693_v45 = vadd.f32 %v1937_v56, %v1678_v21  ;;  %vm1701_vm14 = vcmp.ge.f32.partialorder %v1692_v19, 0.0 }
 0x242   :  { %vm1704_vm15 = vcmp.ge.f32.partialorder %v1695_v25, 0.0  ;;  %v1721_v24 = vmul.f32 %v1712_v2, %v1695_v25  ;;  %v1728_v47 = vsel %vm1703_vm13, %v1694_v14, %v1720_v38 }
 0x243   :  { %vm1702_vm0 = vcmp.ge.f32.partialorder %v1693_v45, 0.0  ;;  %v1719_v49 = vmul.f32 %v1712_v2, %v1693_v45  ;;  %v1726_v39 = vsel %vm1701_vm14, %v1692_v19, %v1718_v44 }
 0x244   :  { %v1729_v52 = vsel %vm1704_vm15, %v1695_v25, %v1721_v24 }
 0x245   :  { %v1973_v53 = vpack.c.bf16 %v1729_v52, %v1728_v47  ;;  %v1727_v30 = vsel %vm1702_vm0, %v1693_v45, %v1719_v49 }
 0x246   :  { %v1968_v23 = vpack.c.bf16 %v1727_v30, %v1726_v39 }
 0x247   :  { %1977 = vst [vmem:[%s3046_s13 + $0x18] sm:$0xff] %v1973_v53  }
 0x248   :  { %1976 = vst [vmem:[%s3046_s13 + $0x10] sm:$0xff] %v1968_v23  }

// kernel: _lambda_.16
= control target key start
LH: loop header
LB: loop body
LE: loop exit
PB: predicated region body
PF: predicated region fallthrough
CT: control target
= control target key end

     0   :  { %v2051_v1 = vmov 0   ;;  %vm67_vm0 = vsmask.f32 7424  ;;  %vm93_vm1 = vcmask 1046528   ;;  %s2582_s1 = inlined_call_operand.vmem [shape: bf16[1152,128], index: 1, kind: input, shape index: {}]   ;;  %s2583_s4 = inlined_call_operand.<no memory space> [shape: f32[1,1], index: 4, kind: input, shape index: {}, may-alias: {4,9}]   ;;  %s2584_s9 = inlined_call_operand.<no memory space> [shape: f32[1,1], index: 9, kind: input, shape index: {}, may-alias: {4,9}]   ;;  %s2585_s0 = inlined_call_operand.vmem [shape: bf16[2,1,56,128], index: 0, kind: input, shape index: {}]   ;;  %s2586_s5 = inlined_call_operand.vmem [shape: bf16[128,128], index: 5, kind: input, shape index: {}]   ;;  %s2587_s2 = inlined_call_operand.vmem [shape: f32[1,128], index: 2, kind: input, shape index: {}]   ;;  %s2588_s3 = inlined_call_operand.vmem [shape: f32[1,128], index: 3, kind: input, shape index: {}]   ;;  %s2589_s6 = inlined_call_operand.vmem [shape: f32[1,128], index: 6, kind: input, shape index: {}]   ;;  %s2590_s8 = inlined_call_operand.vmem [shape: bf16[64,128], index: 8, kind: input, shape index: {}]   ;;  %s2591_s7 = inlined_call_operand.vmem [shape: f32[1,128], index: 7, kind: input, shape index: {}]   ;;  %s2592_s10 = inlined_call_operand.vmem [shape: bf16[64,128], index: 10, kind: output, shape index: {}]  }
   0x1   :  { %v1949_v0 = vld [vmem:[%s2582_s1 + $0x40] sm:$0xff]   ;;  %1948 = vset.pattern.permute.xlu0 %v2051_v1  ;;  %v15_v2 = vstv %s2583_s4  ;;  %v17_v4 = vstv %s2584_s9  ;;  %v1953_v7 = vld [vmem:[%s2582_s1 + $0x48] sm:$0xff]  }
   0x2   :  { %v1950_v3 = vld [vmem:[%s2582_s1 + $0xc0] sm:$0xff]   ;;  %16 = vst [vmem:[#allocation2] sm:$0x1] %v15_v2  ;;  %1715 = vmatprep.subr.bf16.mxu0 %v1949_v0  ;;  %18 = vst [vmem:[#allocation3] sm:$0x1] %v17_v4  ;;  %v1954_v8 = vld [vmem:[%s2582_s1 + $0xc8] sm:$0xff]  }
   0x3   :  { %v1951_v5 = vld [vmem:[%s2582_s1] sm:$0xff]   ;;  %1755 = vmatprep.subr.bf16.mxu1 %v1950_v3  ;;  %v1955_v9 = vld [vmem:[%s2582_s1 + $0x8] sm:$0xff]   ;;  %v1957_v11 = vld [vmem:[%s2582_s1 + $0x50] sm:$0xff]  }
   0x4   :  { %v1952_v6 = vld [vmem:[%s2582_s1 + $0x80] sm:$0xff]   ;;  %1716 = vmatpush3.bf16.msra.mxu0 %v1951_v5  ;;  %v1956_v10 = vld [vmem:[%s2582_s1 + $0x88] sm:$0xff]   ;;  %v1958_v12 = vld [vmem:[%s2582_s1 + $0xd0] sm:$0xff]  }
   0x5   :  { %1756 = vmatpush3.bf16.msra.mxu1 %v1952_v6  ;;  %1717 = vmatprep.subr.bf16.mxu0 %v1953_v7  ;;  %v1959_v13 = vld [vmem:[%s2582_s1 + $0x10] sm:$0xff]   ;;  %v1961_v15 = vld [vmem:[%s2582_s1 + $0x58] sm:$0xff]   ;;  %v1965_v19 = vld [vmem:[%s2582_s1 + $0x60] sm:$0xff]  }
   0x6   :  { %1757 = vmatprep.subr.bf16.mxu1 %v1954_v8  ;;  %v1960_v14 = vld [vmem:[%s2582_s1 + $0x90] sm:$0xff]   ;;  %v1962_v16 = vld [vmem:[%s2582_s1 + $0xd8] sm:$0xff]   ;;  %v1966_v20 = vld [vmem:[%s2582_s1 + $0xe0] sm:$0xff]  }
   0x7   :  { %v1963_v17 = vld [vmem:[%s2582_s1 + $0x18] sm:$0xff]   ;;  %v1967_v21 = vld [vmem:[%s2582_s1 + $0x20] sm:$0xff]   ;;  %v1969_v23 = vld [vmem:[%s2582_s1 + $0x68] sm:$0xff]  }
   0x8   :  { %1718 = vmatpush3.bf16.msra.mxu0 %v1955_v9  ;;  %v1964_v18 = vld [vmem:[%s2582_s1 + $0x98] sm:$0xff]   ;;  %v1968_v22 = vld [vmem:[%s2582_s1 + $0xa0] sm:$0xff]   ;;  %v1970_v24 = vld [vmem:[%s2582_s1 + $0xe8] sm:$0xff]  }
   0x9   :  { %1758 = vmatpush3.bf16.msra.mxu1 %v1956_v10  ;;  %1719 = vmatprep.subr.bf16.mxu0 %v1957_v11  ;;  %v1971_v25 = vld [vmem:[%s2582_s1 + $0x28] sm:$0xff]   ;;  %v1973_v27 = vld [vmem:[%s2582_s1 + $0x70] sm:$0xff]   ;;  %v1977_v31 = vld [vmem:[%s2582_s1 + $0x78] sm:$0xff]  }
   0xa   :  { %1759 = vmatprep.subr.bf16.mxu1 %v1958_v12  ;;  %v1972_v26 = vld [vmem:[%s2582_s1 + $0xa8] sm:$0xff]   ;;  %v1974_v28 = vld [vmem:[%s2582_s1 + $0xf0] sm:$0xff]   ;;  %v1978_v32 = vld [vmem:[%s2582_s1 + $0xf8] sm:$0xff]  }
   0xb   :  { %v1975_v29 = vld [vmem:[%s2582_s1 + $0x30] sm:$0xff]   ;;  %v1979_v33 = vld [vmem:[%s2582_s1 + $0x38] sm:$0xff]   ;;  %v40_v35 = vld [vmem:[%s2585_s0] sm:$0xf] }
   0xc   :  { %1720 = vmatpush3.bf16.msra.mxu0 %v1959_v13  ;;  %v1976_v30 = vld [vmem:[%s2582_s1 + $0xb0] sm:$0xff]   ;;  %v1980_v34 = vld [vmem:[%s2582_s1 + $0xb8] sm:$0xff]   ;;  %v41_v36 = vld [vmem:[%s2585_s0 + $0x4] sm:$0xf] }
   0xd   :  { %1760 = vmatpush3.bf16.msra.mxu1 %v1960_v14  ;;  %1721 = vmatprep.subr.bf16.mxu0 %v1961_v15  ;;  %v2218_v37 = vld [vmem:[%s2585_s0 + $0x8] sm:$0xf]  ;;  %v2223_v38 = vld [vmem:[%s2585_s0 + $0xc] sm:$0xf]  ;;  %v1537_v39 = vcombine.low %v40_v35, %v41_v36  ;;  %v45_v41 = vld [vmem:[%s2585_s0] sm:$0xe] }
   0xe   :  { %1761 = vmatprep.subr.bf16.mxu1 %v1962_v16  ;;  %v2226_v40 = vcombine.low %v41_v36, %v2218_v37  ;;  %v2233_v42 = vcombine.low %v2218_v37, %v2223_v38  ;;  %v1540_v43 = vcombine.low %v45_v41, %v41_v36  ;;  %v1985_v44 = vld [vmem:[%s2582_s1 + $0x140] sm:$0xff]   ;;  %v1989_v57 = vld [vmem:[%s2582_s1 + $0x148] sm:$0xff]   ;;  %v1992_v61 = vld [vmem:[%s2585_s0 + $0x10] ss:$0 sps:$4 sm:$0x11]  }
   0xf   :  { %v69_v45 = vshrl.u32 %v1537_v39, 16  ;;  %v71_v46 = vshll.u32 %v1537_v39, 16  ;;  %v1987_v51 = vld [vmem:[%s2582_s1 + $0x1c0] sm:$0xff]   ;;  %v1991_v60 = vld [vmem:[%s2582_s1 + $0x1c8] sm:$0xff]   ;;  %v46_v62 = vld [vmem:[%s2585_s0 + $0x10] sm:$0xf] }
  0x10   :  { %1722 = vmatpush3.bf16.msra.mxu0 %v1963_v17  ;;  %980 = vmatprep.mubr.bf16.mxu1 %v2226_v40  ;;  %v76_v47 = vshll.u32 %v2233_v42, 16  ;;  %v94_v48 = vrot.slane %v1540_v43, 1  ;;  %v95_v49 = vrot.slane %v2233_v42, 1  ;;  %v1988_v52 = vld [vmem:[%s2582_s1 + $0x180] sm:$0xff]   ;;  %v80_v58 = vshrl.u32 %v2233_v42, 16  ;;  %v1995_v63 = vld [vmem:[%s2582_s1 + $0x188] sm:$0xff]  }
  0x11   :  { %1762 = vmatpush3.bf16.msra.mxu1 %v1964_v18  ;;  %1723 = vmatprep.subr.bf16.mxu0 %v1965_v19  ;;  %v73_v50 = vrot.slane %v71_v46, 1  ;;  %v1986_v55 = vld [vmem:[%s2582_s1 + $0x100] sm:$0xff]   ;;  %v1990_v0 = vld [vmem:[%s2582_s1 + $0x108] sm:$0xff]   ;;  %v2272_v1 = vcombine.low %v2223_v38, %v46_v62  ;;  %v84_v3 = vshll.u32 %v1992_v61, 16  ;;  %v97_v4 = vrot.slane %v1992_v61, 1  ;;  %v1996_v5 = vld [vmem:[%s2582_s1 + $0x150] sm:$0xff]  }
  0x12   :  { %1763 = vmatprep.subr.bf16.mxu1 %v1966_v20  ;;  %v78_v53 = vrot.slane %v76_v47, 1  ;;  %v96_v54 = vsel %vm93_vm1, %v94_v48, %v95_v49  ;;  %v49_v7 = vld [vmem:[%s2585_s0 + $0x14] sm:$0xf]  ;;  %v2000_v13 = vld [vmem:[%s2582_s1 + $0x158] sm:$0xff]   ;;  %v1549_v18 = vld [vmem:[%s2585_s0 + $0x20] sm:$0xf] }
  0x13   :  { %v74_v56 = vor.u32 %v73_v50, %v69_v45  ;;  %v86_v6 = vrot.slane %v84_v3, 1  ;;  %v98_v8 = vsel %vm93_vm1, %v95_v49, %v97_v4  ;;  %v1997_v9 = vld [vmem:[%s2582_s1 + $0x110] sm:$0xff]   ;;  %v2001_v14 = vld [vmem:[%s2582_s1 + $0x118] sm:$0xff]   ;;  %v2301_v15 = vcombine.low %v46_v62, %v49_v7  ;;  %v2316_v19 = vld [vmem:[%s2585_s0 + $0x24] sm:$0xf] }
  0x14   :  { %1724 = vmatpush3.bf16.msra.mxu0 %v1967_v21  ;;  %v2274_v2 = vor.u32 %v80_v58, %v78_v53  ;;  %v1998_v10 = vld [vmem:[%s2582_s1 + $0x1d0] sm:$0xff]   ;;  %v2002_v16 = vld [vmem:[%s2582_s1 + $0x1d8] sm:$0xff]   ;;  %v2321_v20 = vld [vmem:[%s2585_s0 + $0x28] sm:$0xf]  ;;  %v113_v46 = vshll.u32 %v2226_v40, 16  ;;  %v118_v58 = vshll.u32 %v2272_v1, 16 }
  0x15   :  { %1764 = vmatpush3.bf16.msra.mxu1 %v1968_v22  ;;  %1725 = vmatprep.subr.bf16.mxu0 %v1969_v23  ;;  %v79_v59 = vsel %vm67_vm0, %v74_v56, %v78_v53  ;;  %v1999_v12 = vld [vmem:[%s2582_s1 + $0x190] sm:$0xff]   ;;  %v1548_v17 = vld [vmem:[%s2585_s0 + $0x1c] sm:$0xf]  ;;  %v111_v22 = vshrl.u32 %v2226_v40, 16  ;;  %v2326_v23 = vcombine.low %v2316_v19, %v2321_v20  ;;  %v2009_v36 = vld [vmem:[%s2582_s1 + $0x120] sm:$0xff]  }
  0x16   :  { %1765 = vmatprep.subr.bf16.mxu1 %v1970_v24  ;;  %915 = vmatprep.mubr.bf16.mxu0 %v79_v59  ;;  %v87_v11 = vsel %vm67_vm0, %v2274_v2, %v86_v6  ;;  %v1560_v21 = vcombine.low %v1548_v17, %v1549_v18  ;;  %v2329_v24 = vcombine.low %v1549_v18, %v2316_v19  ;;  %v2011_v43 = vld [vmem:[%s2582_s1 + $0x1a0] sm:$0xff]   ;;  %v2012_v47 = vld [vmem:[%s2582_s1 + $0x168] sm:$0xff]   ;;  %v115_v56 = vrot.slane %v113_v46, 1  ;;  %v1557_v61 = vld [vmem:[%s2585_s0 + $0x30] sm:$0xf] }
  0x17   :  { %v2013_v49 = vld [vmem:[%s2582_s1 + $0x128] sm:$0xff]   ;;  %v214_v50 = vshrl.u32 %v2326_v23, 16  ;;  %v2020_v6 = vld [vmem:[%s2582_s1 + $0x130] sm:$0xff]   ;;  %v2025_v17 = vld [vmem:[%s2582_s1 + $0x1f8] sm:$0xff]  }
  0x18   :  { %1726 = vmatpush3.bf16.msra.mxu0 %v1971_v25  ;;  %v2006_v25 = vld [vmem:[%s2582_s1 + $0x198] sm:$0xff]   ;;  %v2015_v53 = vld [vmem:[%s2585_s0 + $0x2c] ss:$0 sps:$4 sm:$0x11]   ;;  %v2021_v7 = vld [vmem:[%s2582_s1 + $0x1f0] sm:$0xff]  }
  0x19   :  { %1766 = vmatpush3.bf16.msra.mxu1 %v1972_v26  ;;  %1727 = vmatprep.subr.bf16.mxu0 %v1973_v27  ;;  %v1553_v26 = vld [vmem:[%s2585_s0 + $0x1c] sm:$0xe]  ;;  %v203_v27 = vshrl.u32 %v1560_v21, 16  ;;  %v230_v62 = vrot.slane %v2015_v53, 1 }
  0x1a   :  { %1767 = vmatprep.subr.bf16.mxu1 %v1974_v28  ;;  %v205_v28 = vshll.u32 %v1560_v21, 16 }
  0x1c   :  { %1728 = vmatpush3.bf16.msra.mxu0 %v1975_v29  ;;  %v1563_v29 = vcombine.low %v1553_v26, %v1549_v18  ;;  %v48_v18 = vld [vmem:[%s2585_s0 + $0x4] sm:$0xe]  ;;  %v2027_v26 = vld [vmem:[%s2582_s1 + $0x1b8] sm:$0xff]  }
  0x1d   :  { %1768 = vmatpush3.bf16.msra.mxu1 %v1976_v30  ;;  %1729 = vmatprep.subr.bf16.mxu0 %v1977_v31  ;;  %v210_v30 = vshll.u32 %v2326_v23, 16  ;;  %v228_v31 = vrot.slane %v2326_v23, 1 }
  0x1e   :  { %1769 = vmatprep.subr.bf16.mxu1 %v1978_v32  ;;  %v2008_v32 = vld [vmem:[%s2582_s1 + $0x160] sm:$0xff]   ;;  %v227_v35 = vrot.slane %v1563_v29, 1 }
  0x1f   :  { %v212_v41 = vrot.slane %v210_v30, 1 }
  0x20   :  { %1730 = vmatpush3.bf16.msra.mxu0 %v1979_v33  ;;  %v150_v33 = vshll.u32 %v2301_v15, 16  ;;  %v229_v45 = vsel %vm93_vm1, %v227_v35, %v228_v31 }
  0x21   :  { %1770 = vmatpush3.bf16.msra.mxu1 %v1980_v34  ;;  %1795 = vmatprep.subr.bf16.mxu0 %v1985_v44  ;;  %v207_v34 = vrot.slane %v205_v28, 1  ;;  %v2381_v59 = vor.u32 %v214_v50, %v212_v41  ;;  %v2028_v28 = vld [vmem:[%s2582_s1 + $0x200] sm:$0xff]  }
  0x22   :  { %1835 = vmatprep.subr.bf16.mxu1 %v1987_v51  ;;  %v2014_v51 = vld [vmem:[%s2582_s1 + $0x1e8] sm:$0xff]  }
  0x23   :  { %916 = vmatmul.mubr.bf16.vlgmr.msra.gmra.mrb[0].mxu0 %v1537_v39  ;;  %v2010_v39 = vld [vmem:[%s2582_s1 + $0x1e0] sm:$0xff]   ;;  %v208_v44 = vor.u32 %v207_v34, %v203_v27  ;;  %v2448_v34 = vld [vmem:[%s2585_s0 + $0x18] ss:$0 sps:$4 sm:$0x11]  }
  0x24   :  { %981 = vmatmul.mubr.bf16.vlgmr.msra.gmra.mrb[0].mxu1 %v96_v54  ;;  %1796 = vmatpush3.bf16.msra.mxu0 %v1986_v55  ;;  %v1554_v54 = vld [vmem:[%s2585_s0 + $0x2c] sm:$0xf] }
  0x25   :  { %1836 = vmatpush3.bf16.msra.mxu1 %v1988_v52  ;;  %1797 = vmatprep.subr.bf16.mxu0 %v1989_v57  ;;  %v213_v48 = vsel %vm67_vm0, %v208_v44, %v212_v41  ;;  %v2366_v52 = vrot.slane %v150_v33, 1  ;;  %v2018_v55 = vld [vmem:[%s2582_s1 + $0x1a8] sm:$0xff]   ;;  %v2378_v57 = vcombine.low %v2321_v20, %v1554_v54  ;;  %v1556_v41 = vld [vmem:[%s2585_s0 + $0x20] sm:$0xe]  ;;  %v2031_v44 = vld [vmem:[%s2582_s1 + $0x210] sm:$0xff]  }
  0x26   :  { %1837 = vmatprep.subr.bf16.mxu1 %v1991_v60  ;;  %988 = vmatprep.mubr.bf16.mxu1 %v2272_v1  ;;  %v218_v60 = vshll.u32 %v2015_v53, 16  ;;  %v1567_v46 = vcombine.low %v1556_v41, %v2316_v19 }
  0x27   :  { %923 = vmatprep.mubr.bf16.mxu0 %v87_v11  ;;  %v153_v3 = vsel %vm67_vm0, %v2274_v2, %v2366_v52  ;;  %v2022_v2 = vld [vmem:[%s2582_s1 + $0x1b0] sm:$0xff]   ;;  %v2407_v11 = vcombine.low %v1554_v54, %v1557_v61  ;;  %v269_v40 = vrot.slane %v2378_v57, 1  ;;  %v168_v61 = vrot.slane %v2301_v15, 1 }
  0x28   :  { %1798 = vmatpush3.bf16.msra.mxu0 %v1990_v0  ;;  %v136_v0 = vrot.slane %v2272_v1, 1  ;;  %v220_v4 = vrot.slane %v218_v60, 1  ;;  %v2037_v54 = vld [vmem:[%s2585_s0 + $0x30] ss:$0 sps:$4 sm:$0x11]  }
  0x29   :  { %1838 = vmatpush3.bf16.msra.mxu1 %v1995_v63  ;;  %1799 = vmatprep.subr.bf16.mxu0 %v1996_v5  ;;  %v2019_v63 = vld [vmem:[%s2582_s1 + $0x170] sm:$0xff]   ;;  %v231_v5 = vsel %vm93_vm1, %v228_v31, %v230_v62  ;;  %v283_v29 = vshll.u32 %v2407_v11, 16  ;;  %v287_v50 = vshrl.u32 %v2407_v11, 16  ;;  %v1559_v62 = vld [vmem:[%s2585_s0 + $0x24] sm:$0xe] }
  0x2a   :  { %1839 = vmatprep.subr.bf16.mxu1 %v1998_v10  ;;  %v221_v10 = vsel %vm67_vm0, %v2381_v59, %v220_v4  ;;  %v301_v4 = vrot.slane %v2407_v11, 1 }
  0x2b   :  { %924 = vmatmul.mubr.bf16.gmra.mrb[4].mxu0 %v2233_v42  ;;  %v285_v35 = vrot.slane %v283_v29, 1 }
  0x2c   :  { %989 = vmatmul.mubr.bf16.gmra.mrb[4].mxu1 %v98_v8  ;;  %1800 = vmatpush3.bf16.msra.mxu0 %v1997_v9  ;;  %v120_v8 = vrot.slane %v118_v58, 1  ;;  %v246_v9 = vshll.u32 %v2329_v24, 16  ;;  %v51_v58 = vld [vmem:[%s2585_s0 + $0x8] sm:$0xe] }
  0x2d   :  { %1840 = vmatpush3.bf16.msra.mxu1 %v1999_v12  ;;  %1801 = vmatprep.subr.bf16.mxu0 %v2000_v13  ;;  %v2023_v12 = vld [vmem:[%s2582_s1 + $0x178] sm:$0xff]   ;;  %v122_v13 = vshrl.u32 %v2272_v1, 16  ;;  %v116_v1 = vor.u32 %v115_v56, %v111_v22  ;;  %v286_v19 = vsel %vm67_vm0, %v2381_v59, %v285_v35  ;;  %v1547_v60 = vcombine.low %v51_v58, %v2223_v38 }
  0x2e   :  { %1841 = vmatprep.subr.bf16.mxu1 %v2002_v16  ;;  %996 = vmatprep.mubr.bf16.mxu1 %v2329_v24  ;;  %v154_v16 = vshrl.u32 %v2301_v15, 16  ;;  %v248_v27 = vrot.slane %v246_v9, 1 }
  0x2f   :  { %931 = vmatprep.mubr.bf16.mxu0 %v213_v48  ;;  %v121_v22 = vsel %vm67_vm0, %v116_v1, %v120_v8  ;;  %v268_v48 = vrot.slane %v1567_v46, 1  ;;  %v167_v38 = vrot.slane %v1547_v60, 1 }
  0x30   :  { %1802 = vmatpush3.bf16.msra.mxu0 %v2001_v14  ;;  %v2024_v14 = vld [vmem:[%s2582_s1 + $0x138] sm:$0xff]  }
  0x31   :  { %1842 = vmatpush3.bf16.msra.mxu1 %v2006_v25  ;;  %1803 = vmatprep.subr.bf16.mxu0 %v2008_v32  ;;  %v1544_v25 = vcombine.low %v48_v18, %v2218_v37  ;;  %v2029_v37 = vld [vmem:[%s2582_s1 + $0x208] sm:$0xff]   ;;  %v270_v56 = vsel %vm93_vm1, %v268_v48, %v269_v40 }
  0x32   :  { %1843 = vmatprep.subr.bf16.mxu1 %v2010_v39  ;;  %v156_v39 = vor.u32 %v154_v16, %v2366_v52 }
  0x33   :  { %932 = vmatmul.mubr.bf16.gmra.mrb[8].mxu0 %v1560_v21  ;;  %v244_v21 = vshrl.u32 %v2329_v24, 16  ;;  %v135_v30 = vrot.slane %v1544_v25, 1  ;;  %v2030_v24 = vld [vmem:[%s2585_s0 + $0x14] ss:$0 sps:$4 sm:$0x11]  }
  0x34   :  { %997 = vmatmul.mubr.bf16.gmra.mrb[8].mxu1 %v229_v45  ;;  %1804 = vmatpush3.bf16.msra.mxu0 %v2009_v36  ;;  %v138_v32 = vrot.slane %v2030_v24, 1  ;;  %v126_v33 = vshll.u32 %v2030_v24, 16  ;;  %v124_v36 = vor.u32 %v122_v13, %v120_v8  ;;  %v158_v45 = vshll.u32 %v2448_v34, 16  ;;  %v2038_v25 = vld [vmem:[%s2582_s1 + $0x230] sm:$0xff]   ;;  %v2048_v24 = vld [vmem:[%s2586_s5 + $0x28] sm:$0xff]  }
  0x35   :  { %1844 = vmatpush3.bf16.msra.mxu1 %v2011_v43  ;;  %1805 = vmatprep.subr.bf16.mxu0 %v2012_v47  ;;  %v137_v31 = vsel %vm93_vm1, %v135_v30, %v136_v0  ;;  %v271_v8 = vrot.slane %v2037_v54, 1  ;;  %v255_v13 = vshrl.u32 %v2378_v57, 16  ;;  %v2044_v30 = vld [vmem:[%s2586_s5 + $0x8] sm:$0xff]  }
  0x36   :  { %1845 = vmatprep.subr.bf16.mxu1 %v2014_v51  ;;  %1004 = vmatprep.mubr.bf16.mxu1 %v2378_v57  ;;  %v139_v43 = vsel %vm93_vm1, %v136_v0, %v138_v32  ;;  %v160_v47 = vrot.slane %v158_v45, 1  ;;  %v2033_v51 = vld [vmem:[%s2582_s1 + $0x218] sm:$0xff]   ;;  %v249_v0 = vor.u32 %v248_v27, %v244_v21 }
  0x37   :  { %939 = vmatprep.mubr.bf16.mxu0 %v221_v10  ;;  %v169_v10 = vsel %vm93_vm1, %v167_v38, %v168_v61  ;;  %v272_v18 = vsel %vm93_vm1, %v269_v40, %v271_v8  ;;  %v2045_v40 = vld [vmem:[%s2586_s5 + $0x10] sm:$0xff]   ;;  %v2050_v32 = vld [vmem:[%s2586_s5 + $0x38] sm:$0xff]  }
  0x38   :  { %1806 = vmatpush3.bf16.msra.mxu0 %v2013_v49  ;;  %v251_v49 = vshll.u32 %v2378_v57, 16  ;;  %v161_v53 = vsel %vm67_vm0, %v156_v39, %v160_v47  ;;  %v2040_v57 = vld [vmem:[%s2582_s1 + $0x238] sm:$0xff]  }
  0x39   :  { %1846 = vmatpush3.bf16.msra.mxu1 %v2018_v55  ;;  %1807 = vmatprep.subr.bf16.mxu0 %v2019_v63  ;;  %v2475_v55 = vld [vmem:[%s2585_s0 + $0x34] ss:$0 sps:$4 sm:$0x11]   ;;  %v1645_v63 = vld [vmem:[#allocation2] ss:$0 sm:$0xff] }
  0x3a   :  { %1847 = vmatprep.subr.bf16.mxu1 %v2021_v7  ;;  %v291_v59 = vshll.u32 %v2475_v55, 16  ;;  %1253 = vperm.xlu0 %1948, %v1645_v63  }
  0x3b   :  { %940 = vmatmul.mubr.bf16.gmra.mrb[12].mxu0 %v2326_v23 }
  0x3c   :  { %1005 = vmatmul.mubr.bf16.gmra.mrb[12].mxu1 %v231_v5  ;;  %1808 = vmatpush3.bf16.msra.mxu0 %v2020_v6  ;;  %v253_v5 = vrot.slane %v251_v49, 1  ;;  %v289_v6 = vor.u32 %v287_v50, %v285_v35  ;;  %v293_v7 = vrot.slane %v291_v59, 1 }
  0x3d   :  { %1110 = vmatprep.mubr.bf16.mxu1 %v153_v3  ;;  %1848 = vmatpush3.bf16.msra.mxu1 %v2022_v2  ;;  %v1570_v3 = vcombine.low %v1559_v62, %v2321_v20  ;;  %v1656_v2 = vld [vmem:[#allocation3] ss:$0 sm:$0xff] }
  0x3e   :  { %1809 = vmatprep.subr.bf16.mxu0 %v2023_v12  ;;  %1849 = vmatprep.subr.bf16.mxu1 %v2025_v17  ;;  %v254_v12 = vsel %vm67_vm0, %v249_v0, %v253_v5  ;;  %v294_v16 = vsel %vm67_vm0, %v289_v6, %v293_v7  ;;  %v2036_v17 = vld [vmem:[%s2582_s1 + $0x228] sm:$0xff]   ;;  %v257_v1 = vor.u32 %v255_v13, %v253_v5 }
  0x3f   :  { %1045 = vmatprep.mubr.bf16.mxu0 %v137_v31  ;;  %v300_v9 = vrot.slane %v1570_v3, 1  ;;  %1474 = vperm.xlu0 %1948, %v1656_v2   ;;  %v2049_v31 = vld [vmem:[%s2586_s5 + $0x30] sm:$0xff]  }
  0x40   :  { %1810 = vmatpush3.bf16.msra.mxu0 %v2024_v14  ;;  %v259_v14 = vshll.u32 %v2037_v54, 16 }
  0x41   :  { %1850 = vmatpush3.bf16.msra.mxu1 %v2027_v26  ;;  %1899 = vmatprep.subr.bf16.mxu0 %v2028_v28  ;;  %v302_v20 = vsel %vm93_vm1, %v300_v9, %v301_v4 }
  0x42   :  { %v261_v21 = vrot.slane %v259_v14, 1 }
  0x43   :  { %1046 = vmatmul.mubr.bf16.vlgmr.msra.gmra.mrb[16].mxu0 %v121_v22  ;;  %v2046_v22 = vld [vmem:[%s2586_s5 + $0x18] sm:$0xff]  }
  0x44   :  { %1111 = vmatmul.mubr.bf16.vlgmr.msra.gmra.mrb[16].mxu1 %v2233_v42  ;;  %1900 = vmatpush3.bf16.msra.mxu0 %v2028_v28  ;;  %v128_v42 = vrot.slane %v126_v33, 1  ;;  %v262_v26 = vsel %vm67_vm0, %v257_v1, %v261_v21  ;;  %v303_v28 = vrot.slane %v2475_v55, 1 }
  0x45   :  { %1901 = vmatprep.subr.bf16.mxu0 %v2029_v37  ;;  %1053 = vmatprep.mubr.bf16.mxu0 %v139_v43 }
  0x46   :  { %v129_v52 = vsel %vm67_vm0, %v124_v36, %v128_v42  ;;  %1118 = vmatprep.mubr.bf16.mxu1 %v161_v53  ;;  %v304_v29 = vsel %vm93_vm1, %v301_v4, %v303_v28 }
  0x48   :  { %1902 = vmatpush3.bf16.msra.mxu0 %v2029_v37  ;;  %v2047_v37 = vld [vmem:[%s2586_s5 + $0x20] sm:$0xff]  }
  0x49   :  { %1903 = vmatprep.subr.bf16.mxu0 %v2031_v44 }
  0x4b   :  { %1054 = vmatmul.mubr.bf16.gmra.mrb[20].mxu0 %v129_v52 }
  0x4c   :  { %1119 = vmatmul.mubr.bf16.gmra.mrb[20].mxu1 %v2301_v15  ;;  %1904 = vmatpush3.bf16.msra.mxu0 %v2031_v44  ;;  %v2035_v15 = vld [vmem:[%s2582_s1 + $0x220] sm:$0xff]  }
  0x4d   :  { %1126 = vmatprep.mubr.bf16.mxu1 %v286_v19  ;;  %1061 = vmatprep.mubr.bf16.mxu0 %v270_v56 }
  0x4e   :  { %1905 = vmatprep.subr.bf16.mxu0 %v2033_v51 }
  0x50   :  { %1906 = vmatpush3.bf16.msra.mxu0 %v2033_v51 }
  0x51   :  { %1907 = vmatprep.subr.bf16.mxu0 %v2035_v15 }
  0x53   :  { %1062 = vmatmul.mubr.bf16.gmra.mrb[24].mxu0 %v254_v12 }
  0x54   :  { %1127 = vmatmul.mubr.bf16.gmra.mrb[24].mxu1 %v2326_v23  ;;  %1908 = vmatpush3.bf16.msra.mxu0 %v2035_v15  ;;  %v170_v23 = vrot.slane %v2448_v34, 1 }
  0x55   :  { %1134 = vmatprep.mubr.bf16.mxu1 %v294_v16  ;;  %1069 = vmatprep.mubr.bf16.mxu0 %v272_v18 }
  0x56   :  { %1909 = vmatprep.subr.bf16.mxu0 %v2036_v17  ;;  %v171_v27 = vsel %vm93_vm1, %v168_v61, %v170_v23 }
  0x58   :  { %1910 = vmatpush3.bf16.msra.mxu0 %v2036_v17 }
  0x59   :  { %1911 = vmatprep.subr.bf16.mxu0 %v2038_v25 }
  0x5b   :  { %1070 = vmatmul.mubr.bf16.gmra.mrb[28].mxu0 %v262_v26 }
  0x5c   :  { %1135 = vmatmul.mubr.bf16.gmra.mrb[28].mxu1 %v2407_v11  ;;  %1912 = vmatpush3.bf16.msra.mxu0 %v2038_v25  ;;  %v2043_v11 = vld [vmem:[%s2586_s5] sm:$0xff]  }
  0x5d   :  { %1915 = vmatprep.mubr.bf16.mxu0 %v169_v10  ;;  %1913 = vmatprep.subr.bf16.mxu0 %v2040_v57 }
  0x5e   :  { %1923 = vmatprep.subr.bf16.mxu1 %v2043_v11 }
  0x5f   :  { %1924 = vmatpush3.bf16.msra.mxu1 %v2043_v11 }
  0x60   :  { %1914 = vmatpush3.bf16.msra.mxu0 %v2040_v57  ;;  %1925 = vmatprep.subr.bf16.mxu1 %v2044_v30 }
  0x63   :  { %1916 = vmatmul.mubr.bf16.vlgmr.msra.gmra.mrb[32].mxu0 %v171_v27  ;;  %1926 = vmatpush3.bf16.msra.mxu1 %v2044_v30 }
  0x64   :  { %1919 = vmatprep.mubr.bf16.mxu0 %v302_v20  ;;  %1927 = vmatprep.subr.bf16.mxu1 %v2045_v40 }
  0x67   :  { %1928 = vmatpush3.bf16.msra.mxu1 %v2045_v40 }
  0x68   :  { %1929 = vmatprep.subr.bf16.mxu1 %v2046_v22 }
  0x6b   :  { %1920 = vmatmul.mubr.bf16.gmra.mrb[36].mxu0 %v304_v29  ;;  %1930 = vmatpush3.bf16.msra.mxu1 %v2046_v22 }
  0x6c   :  { %1931 = vmatprep.subr.bf16.mxu1 %v2047_v37 }
  0x6f   :  { %1932 = vmatpush3.bf16.msra.mxu1 %v2047_v37 }
  0x70   :  { %1933 = vmatprep.subr.bf16.mxu1 %v2048_v24 }
  0x73   :  { %1934 = vmatpush3.bf16.msra.mxu1 %v2048_v24 }
  0x74   :  { %1935 = vmatprep.subr.bf16.mxu1 %v2049_v31 }
  0x77   :  { %1936 = vmatpush3.bf16.msra.mxu1 %v2049_v31 }
  0x78   :  { %1937 = vmatprep.subr.bf16.mxu1 %v2050_v32 }
  0x7b   :  { %1938 = vmatpush3.bf16.msra.mxu1 %v2050_v32 }
  0xf6   :  { %v1731_v41 = vpop.f32.mrb[0].mxu0 }
  0xf7   :  { %v1771_v33 = vpop.f32.mrb[0].mxu1  ;;  %v1732_v42 = vpop.f32.mrb[1].mxu0 }
  0xf8   :  { %v1772_v34 = vpop.f32.mrb[1].mxu1  ;;  %v1733_v44 = vadd.f32 %v1732_v42, %v1731_v41  ;;  %v1734_v45 = vpop.f32.mrb[2].mxu0 }
  0xf9   :  { %v1773_v35 = vadd.f32 %v1772_v34, %v1771_v33  ;;  %v1774_v36 = vpop.f32.mrb[2].mxu1  ;;  %v1735_v46 = vpop.f32.mrb[3].mxu0 }
  0xfa   :  { %v1775_v39 = vpop.f32.mrb[3].mxu1  ;;  %v1736_v48 = vadd.f32 %v1735_v46, %v1734_v45 }
  0xfb   :  { %v1776_v43 = vadd.f32 %v1775_v39, %v1774_v36  ;;  %v983_v47 = vadd.f32 %v1773_v35, %v1733_v44 }
  0xfd   :  { %v986_v51 = vadd.f32 %v1776_v43, %v1736_v48 }
  0xfe   :  { %v1737_v54 = vpop.f32.mrb[4].mxu0 }
  0xff   :  { %v1777_v49 = vpop.f32.mrb[4].mxu1  ;;  %v1738_v56 = vpop.f32.mrb[5].mxu0 }
 0x100   :  { %v1778_v50 = vpop.f32.mrb[5].mxu1  ;;  %v1739_v58 = vadd.f32 %v1738_v56, %v1737_v54  ;;  %v1740_v59 = vpop.f32.mrb[6].mxu0 }
 0x101   :  { %v1779_v52 = vadd.f32 %v1778_v50, %v1777_v49  ;;  %v1780_v53 = vpop.f32.mrb[6].mxu1  ;;  %v1741_v60 = vpop.f32.mrb[7].mxu0 }
 0x102   :  { %v1781_v19 = vpop.f32.mrb[7].mxu1  ;;  %v1742_v62 = vadd.f32 %v1741_v60, %v1740_v59 }
 0x103   :  { %v1782_v55 = vadd.f32 %v1781_v19, %v1780_v53  ;;  %v991_v61 = vadd.f32 %v1779_v52, %v1739_v58 }
 0x105   :  { %v994_v63 = vadd.f32 %v1782_v55, %v1742_v62 }
 0x106   :  { %v1743_v6 = vpop.f32.mrb[8].mxu0 }
 0x107   :  { %v1783_v0 = vpop.f32.mrb[8].mxu1  ;;  %v1744_v38 = vpop.f32.mrb[9].mxu0 }
 0x108   :  { %v1784_v3 = vpop.f32.mrb[9].mxu1  ;;  %v1745_v8 = vadd.f32 %v1744_v38, %v1743_v6  ;;  %v1746_v9 = vpop.f32.mrb[10].mxu0 }
 0x109   :  { %v1785_v4 = vadd.f32 %v1784_v3, %v1783_v0  ;;  %v1786_v5 = vpop.f32.mrb[10].mxu1  ;;  %v1747_v10 = vpop.f32.mrb[11].mxu0 }
 0x10a   :  { %v1787_v7 = vpop.f32.mrb[11].mxu1  ;;  %v1748_v20 = vadd.f32 %v1747_v10, %v1746_v9 }
 0x10b   :  { %v1788_v15 = vadd.f32 %v1787_v7, %v1786_v5  ;;  %v999_v2 = vadd.f32 %v1785_v4, %v1745_v8 }
 0x10d   :  { %v1002_v13 = vadd.f32 %v1788_v15, %v1748_v20 }
 0x10e   :  { %v1749_v18 = vpop.f32.mrb[12].mxu0 }
 0x10f   :  { %v1789_v12 = vpop.f32.mrb[12].mxu1  ;;  %v1750_v21 = vpop.f32.mrb[13].mxu0 }
 0x110   :  { %v1790_v14 = vpop.f32.mrb[13].mxu1  ;;  %v1751_v26 = vadd.f32 %v1750_v21, %v1749_v18  ;;  %v1752_v57 = vpop.f32.mrb[14].mxu0 }
 0x111   :  { %v1791_v16 = vadd.f32 %v1790_v14, %v1789_v12  ;;  %v1792_v17 = vpop.f32.mrb[14].mxu1  ;;  %v1753_v23 = vpop.f32.mrb[15].mxu0 }
 0x112   :  { %v1793_v1 = vpop.f32.mrb[15].mxu1  ;;  %v1754_v28 = vadd.f32 %v1753_v23, %v1752_v57 }
 0x113   :  { %v1794_v25 = vadd.f32 %v1793_v1, %v1792_v17  ;;  %v1007_v27 = vadd.f32 %v1791_v16, %v1751_v26 }
 0x115   :  { %v2543_v29 = vadd.f32 %v1794_v25, %v1754_v28 }
 0x116   :  { %v1811_v30 = vpop.f32.mrb[16].mxu0 }
 0x117   :  { %v1851_v11 = vpop.f32.mrb[16].mxu1  ;;  %v1812_v22 = vpop.f32.mrb[17].mxu0 }
 0x118   :  { %v1852_v40 = vpop.f32.mrb[17].mxu1  ;;  %v1813_v31 = vadd.f32 %v1812_v22, %v1811_v30  ;;  %v1814_v32 = vpop.f32.mrb[18].mxu0 }
 0x119   :  { %v1853_v37 = vadd.f32 %v1852_v40, %v1851_v11  ;;  %v1854_v24 = vpop.f32.mrb[18].mxu1  ;;  %v1815_v34 = vpop.f32.mrb[19].mxu0 }
 0x11a   :  { %v1855_v33 = vpop.f32.mrb[19].mxu1  ;;  %v1048_v36 = vadd.f32 %v1813_v31, %v983_v47  ;;  %v1816_v39 = vadd.f32 %v1815_v34, %v1814_v32  ;;  %v1644_v31 = vld [vmem:[%s2588_s3] ss:$0 sm:$0xff] }
 0x11b   :  { %v1856_v35 = vadd.f32 %v1855_v33, %v1854_v24 }
 0x11c   :  { %v1051_v41 = vadd.f32 %v1816_v39, %v986_v51  ;;  %v1113_v43 = vadd.f32 %v1853_v37, %v1048_v36  ;;  %v1254_v39 = vpop.permute.xlu0 %1253 }
 0x11e   :  { %v1817_v44 = vpop.f32.mrb[20].mxu0  ;;  %v1116_v46 = vadd.f32 %v1856_v35, %v1051_v41 }
 0x11f   :  { %v1857_v42 = vpop.f32.mrb[20].mxu1  ;;  %v1818_v48 = vpop.f32.mrb[21].mxu0 }
 0x120   :  { %v1858_v45 = vpop.f32.mrb[21].mxu1  ;;  %v1819_v52 = vadd.f32 %v1818_v48, %v1817_v44  ;;  %v1820_v53 = vpop.f32.mrb[22].mxu0 }
 0x121   :  { %v1859_v49 = vadd.f32 %v1858_v45, %v1857_v42  ;;  %v1860_v50 = vpop.f32.mrb[22].mxu1  ;;  %v1821_v54 = vpop.f32.mrb[23].mxu0 }
 0x122   :  { %v1861_v19 = vpop.f32.mrb[23].mxu1  ;;  %v1056_v56 = vadd.f32 %v1819_v52, %v991_v61  ;;  %v1822_v58 = vadd.f32 %v1821_v54, %v1820_v53 }
 0x123   :  { %v1862_v55 = vadd.f32 %v1861_v19, %v1860_v50 }
 0x124   :  { %v1059_v59 = vadd.f32 %v1822_v58, %v994_v63  ;;  %v1121_v60 = vadd.f32 %v1859_v49, %v1056_v56 }
 0x126   :  { %v1823_v62 = vpop.f32.mrb[24].mxu0  ;;  %v1124_v0 = vadd.f32 %v1862_v55, %v1059_v59 }
 0x127   :  { %v1863_v47 = vpop.f32.mrb[24].mxu1  ;;  %v1824_v3 = vpop.f32.mrb[25].mxu0 }
 0x128   :  { %v1864_v51 = vpop.f32.mrb[25].mxu1  ;;  %v1825_v6 = vadd.f32 %v1824_v3, %v1823_v62  ;;  %v1826_v7 = vpop.f32.mrb[26].mxu0 }
 0x129   :  { %v1865_v4 = vadd.f32 %v1864_v51, %v1863_v47  ;;  %v1866_v5 = vpop.f32.mrb[26].mxu1  ;;  %v1827_v15 = vpop.f32.mrb[27].mxu0 }
 0x12a   :  { %v1867_v38 = vpop.f32.mrb[27].mxu1  ;;  %v1064_v9 = vadd.f32 %v1825_v6, %v999_v2  ;;  %v1828_v10 = vadd.f32 %v1827_v15, %v1826_v7 }
 0x12b   :  { %v1868_v8 = vadd.f32 %v1867_v38, %v1866_v5 }
 0x12c   :  { %v1067_v20 = vadd.f32 %v1828_v10, %v1002_v13  ;;  %v1129_v12 = vadd.f32 %v1865_v4, %v1064_v9  ;;  %v1643_v13 = vld [vmem:[%s2587_s2] ss:$0 sm:$0xff] }
 0x12e   :  { %v1829_v14 = vpop.f32.mrb[28].mxu0  ;;  %v1132_v16 = vadd.f32 %v1868_v8, %v1067_v20 }
 0x12f   :  { %v1869_v61 = vpop.f32.mrb[28].mxu1  ;;  %v1830_v17 = vpop.f32.mrb[29].mxu0 }
 0x130   :  { %v1870_v63 = vpop.f32.mrb[29].mxu1  ;;  %v1831_v21 = vadd.f32 %v1830_v17, %v1829_v14  ;;  %v1832_v25 = vpop.f32.mrb[30].mxu0 }
 0x131   :  { %v1871_v18 = vadd.f32 %v1870_v63, %v1869_v61  ;;  %v1872_v1 = vpop.f32.mrb[30].mxu1  ;;  %v1833_v57 = vpop.f32.mrb[31].mxu0 }
 0x132   :  { %v1873_v26 = vpop.f32.mrb[31].mxu1  ;;  %v1072_v28 = vadd.f32 %v1831_v21, %v1007_v27  ;;  %v1834_v11 = vadd.f32 %v1833_v57, %v1832_v25  ;;  %v1654_v25 = vld [vmem:[%s2589_s6] ss:$0 sm:$0xff] }
 0x133   :  { %v1874_v23 = vadd.f32 %v1873_v26, %v1872_v1  ;;  %v1709_v26 = vld [vmem:[%s2590_s8 + $0x8] sm:$0xff]   ;;  %v1674_v57 = vld [vmem:[%s2590_s8] sm:$0xff]  }
 0x134   :  { %v1075_v30 = vadd.f32 %v1834_v11, %v2543_v29  ;;  %v1137_v2 = vadd.f32 %v1871_v18, %v1072_v28  ;;  %v1655_v28 = vld [vmem:[%s2591_s7] ss:$0 sm:$0xff] }
 0x136   :  { %v1917_v40 = vpop.f32.mrb[32].mxu0  ;;  %v1140_v22 = vadd.f32 %v1874_v23, %v1075_v30  ;;  %v1679_v30 = vunpack.c.l.bf16 %v1709_v26 }
 0x137   :  { %v1186_v37 = vadd.f32 %v1917_v40, %v1121_v60  ;;  %v1177_v24 = vpop.f32.mrb[33].mxu0 }
 0x138   :  { %v1178_v32 = vadd.f32 %v1177_v24, %v1113_v43  ;;  %v1918_v33 = vpop.f32.mrb[34].mxu0 }
 0x139   :  { %v1217_v34 = vmul.f32 %v1643_v13, %v1186_v37  ;;  %v1189_v27 = vadd.f32 %v1918_v33, %v1124_v0  ;;  %v1180_v35 = vpop.f32.mrb[35].mxu0  ;;  %v1711_v33 = vld [vmem:[%s2590_s8 + $0x18] sm:$0xff]  }
 0x13a   :  { %v1215_v36 = vmul.f32 %v1643_v13, %v1178_v32  ;;  %v1181_v29 = vadd.f32 %v1180_v35, %v1116_v46  ;;  %v1676_v35 = vunpack.c.h.bf16 %v1674_v57 }
 0x13b   :  { %v1232_v41 = vadd.f32 %v1644_v31, %v1217_v34  ;;  %v1218_v42 = vmul.f32 %v1643_v13, %v1189_v27 }
 0x13c   :  { %v1230_v44 = vadd.f32 %v1644_v31, %v1215_v36  ;;  %v1216_v45 = vmul.f32 %v1643_v13, %v1181_v29  ;;  %v1710_v36 = vld [vmem:[%s2590_s8 + $0x10] sm:$0xff]  }
 0x13d   :  { %vm1241_vm2 = vcmp.ge.f32.partialorder %v1232_v41, 0.0  ;;  %v1233_v48 = vadd.f32 %v1644_v31, %v1218_v42  ;;  %v1258_v49 = vmul.f32 %v1254_v39, %v1232_v41 }
 0x13e   :  { %v1231_v50 = vadd.f32 %v1644_v31, %v1216_v45  ;;  %v1921_v52 = vpop.f32.mrb[36].mxu0  ;;  %vm1239_vm3 = vcmp.ge.f32.partialorder %v1230_v44, 0.0  ;;  %v1256_v53 = vmul.f32 %v1254_v39, %v1230_v44  ;;  %v1687_v45 = vunpack.c.l.bf16 %v1711_v33 }
 0x13f   :  { %vm1242_vm4 = vcmp.ge.f32.partialorder %v1233_v48, 0.0  ;;  %v1202_v43 = vadd.f32 %v1921_v52, %v1137_v2  ;;  %v1193_v19 = vpop.f32.mrb[37].mxu0  ;;  %v1259_v54 = vmul.f32 %v1254_v39, %v1233_v48  ;;  %v1266_v58 = vsel %vm1241_vm2, %v1232_v41, %v1258_v49  ;;  %v1475_v41 = vpop.permute.xlu0 %1474 }
 0x140   :  { %v1194_v55 = vadd.f32 %v1193_v19, %v1129_v12  ;;  %v1922_v56 = vpop.f32.mrb[38].mxu0  ;;  %vm1240_vm5 = vcmp.ge.f32.partialorder %v1231_v50, 0.0  ;;  %v1257_v46 = vmul.f32 %v1254_v39, %v1231_v50  ;;  %v1264_v62 = vsel %vm1239_vm3, %v1230_v44, %v1256_v53 }
 0x141   :  { %v1221_v59 = vmul.f32 %v1643_v13, %v1202_v43  ;;  %v1205_v60 = vadd.f32 %v1922_v56, %v1140_v22  ;;  %v1196_v47 = vpop.f32.mrb[39].mxu0  ;;  %v1267_v51 = vsel %vm1242_vm4, %v1233_v48, %v1259_v54  ;;  %v1688_v19 = vunpack.c.h.bf16 %v1711_v33 }
 0x142   :  { %v1219_v0 = vmul.f32 %v1643_v13, %v1194_v55  ;;  %v1197_v3 = vadd.f32 %v1196_v47, %v1132_v16  ;;  %v1265_v4 = vsel %vm1240_vm5, %v1231_v50, %v1257_v46  ;;  %v1273_v5 = vpack.c.bf16 %v1267_v51, %v1266_v58 }
 0x143   :  { %v1236_v6 = vadd.f32 %v1644_v31, %v1221_v59  ;;  %v1222_v7 = vmul.f32 %v1643_v13, %v1205_v60  ;;  %v1272_v38 = vpack.c.bf16 %v1265_v4, %v1264_v62  ;;  %v1683_v50 = vunpack.c.l.bf16 %v1710_v36 }
 0x144   :  { %v1234_v15 = vadd.f32 %v1644_v31, %v1219_v0  ;;  %v1220_v8 = vmul.f32 %v1643_v13, %v1197_v3  ;;  %v1675_v13 = vunpack.c.l.bf16 %v1674_v57  ;;  %v1684_v46 = vunpack.c.h.bf16 %v1710_v36 }
 0x145   :  { %v1262_v9 = vmul.f32 %v1254_v39, %v1236_v6  ;;  %v1237_v10 = vadd.f32 %v1644_v31, %v1222_v7  ;;  %1939 = vmatprep.mubr.bf16.mxu1 %v1272_v38  ;;  %vm1245_vm6 = vcmp.ge.f32.partialorder %v1236_v6, 0.0 }
 0x146   :  { %v1260_v20 = vmul.f32 %v1254_v39, %v1234_v15  ;;  %v1235_v12 = vadd.f32 %v1644_v31, %v1220_v8  ;;  %1940 = vmatmul.mubr.bf16.vlgmr.msra.gmra.mrb[32].mxu1 %v1273_v5  ;;  %vm1243_vm7 = vcmp.ge.f32.partialorder %v1234_v15, 0.0  ;;  %v1680_v31 = vunpack.c.h.bf16 %v1709_v26 }
 0x147   :  { %v1263_v61 = vmul.f32 %v1254_v39, %v1237_v10  ;;  %vm1246_vm8 = vcmp.ge.f32.partialorder %v1237_v10, 0.0  ;;  %v1270_v63 = vsel %vm1245_vm6, %v1236_v6, %v1262_v9 }
 0x148   :  { %v1261_v14 = vmul.f32 %v1254_v39, %v1235_v12  ;;  %vm1244_vm9 = vcmp.ge.f32.partialorder %v1235_v12, 0.0  ;;  %v1268_v17 = vsel %vm1243_vm7, %v1234_v15, %v1260_v20 }
 0x149   :  { %v1271_v16 = vsel %vm1246_vm8, %v1237_v10, %v1263_v61 }
 0x14a   :  { %v1269_v18 = vsel %vm1244_vm9, %v1235_v12, %v1261_v14  ;;  %v1275_v1 = vpack.c.bf16 %v1271_v16, %v1270_v63 }
 0x14b   :  { %v1274_v21 = vpack.c.bf16 %v1269_v18, %v1268_v17 }
 0x14d   :  { %1943 = vmatprep.mubr.bf16.mxu1 %v1274_v21 }
 0x14e   :  { %1944 = vmatmul.mubr.bf16.gmra.mrb[36].mxu1 %v1275_v1 }
 0x219   :  { %v1941_v23 = vpop.f32.mrb[32].mxu1 }
 0x21a   :  { %v1414_v11 = vmul.f32 %v1941_v23, %v1654_v25  ;;  %v1374_v2 = vpop.f32.mrb[33].mxu1 }
 0x21b   :  { %v1412_v40 = vmul.f32 %v1654_v25, %v1374_v2  ;;  %v1942_v22 = vpop.f32.mrb[34].mxu1 }
 0x21c   :  { %v1429_v37 = vadd.f32 %v1655_v28, %v1414_v11  ;;  %v1415_v24 = vmul.f32 %v1942_v22, %v1654_v25  ;;  %v1377_v32 = vpop.f32.mrb[35].mxu1 }
 0x21d   :  { %v1427_v34 = vadd.f32 %v1655_v28, %v1412_v40  ;;  %v1413_v27 = vmul.f32 %v1654_v25, %v1377_v32 }
 0x21e   :  { %v1453_v29 = vadd.f32 %v1679_v30, %v1429_v37  ;;  %v1430_v39 = vadd.f32 %v1655_v28, %v1415_v24 }
 0x21f   :  { %v1451_v42 = vadd.f32 %v1675_v13, %v1427_v34  ;;  %v1428_v44 = vadd.f32 %v1655_v28, %v1413_v27 }
 0x220   :  { %vm1462_vm10 = vcmp.ge.f32.partialorder %v1453_v29, 0.0  ;;  %v1479_v48 = vmul.f32 %v1475_v41, %v1453_v29  ;;  %v1454_v49 = vadd.f32 %v1680_v31, %v1430_v39 }
 0x221   :  { %vm1460_vm11 = vcmp.ge.f32.partialorder %v1451_v42, 0.0  ;;  %v1477_v52 = vmul.f32 %v1475_v41, %v1451_v42  ;;  %v1452_v53 = vadd.f32 %v1676_v35, %v1428_v44  ;;  %v1945_v43 = vpop.f32.mrb[36].mxu1 }
 0x222   :  { %vm1463_vm12 = vcmp.ge.f32.partialorder %v1454_v49, 0.0  ;;  %v1480_v54 = vmul.f32 %v1475_v41, %v1454_v49  ;;  %v1418_v55 = vmul.f32 %v1945_v43, %v1654_v25  ;;  %v1390_v56 = vpop.f32.mrb[37].mxu1  ;;  %v1487_v58 = vsel %vm1462_vm10, %v1453_v29, %v1479_v48 }
 0x223   :  { %vm1461_vm13 = vcmp.ge.f32.partialorder %v1452_v53, 0.0  ;;  %v1478_v59 = vmul.f32 %v1475_v41, %v1452_v53  ;;  %v1416_v60 = vmul.f32 %v1654_v25, %v1390_v56  ;;  %v1946_v47 = vpop.f32.mrb[38].mxu1  ;;  %v1485_v62 = vsel %vm1460_vm11, %v1451_v42, %v1477_v52 }
 0x224   :  { %v1488_v51 = vsel %vm1463_vm12, %v1454_v49, %v1480_v54  ;;  %v1433_v0 = vadd.f32 %v1655_v28, %v1418_v55  ;;  %v1419_v3 = vmul.f32 %v1946_v47, %v1654_v25  ;;  %v1393_v4 = vpop.f32.mrb[39].mxu1 }
 0x225   :  { %v1697_v5 = vpack.c.bf16 %v1488_v51, %v1487_v58  ;;  %v1486_v6 = vsel %vm1461_vm13, %v1452_v53, %v1478_v59  ;;  %v1431_v7 = vadd.f32 %v1655_v28, %v1416_v60  ;;  %v1417_v38 = vmul.f32 %v1654_v25, %v1393_v4 }
 0x226   :  { %v1692_v15 = vpack.c.bf16 %v1486_v6, %v1485_v62  ;;  %v1457_v8 = vadd.f32 %v1687_v45, %v1433_v0  ;;  %v1434_v9 = vadd.f32 %v1655_v28, %v1419_v3 }
 0x227   :  { %1712 = vst [vmem:[%s2592_s10 + $0x8] sm:$0xff] %v1697_v5   ;;  %v1455_v10 = vadd.f32 %v1683_v50, %v1431_v7  ;;  %v1432_v20 = vadd.f32 %v1655_v28, %v1417_v38 }
 0x228   :  { %1693 = vst [vmem:[%s2592_s10] sm:$0xff] %v1692_v15   ;;  %v1483_v12 = vmul.f32 %v1475_v41, %v1457_v8  ;;  %v1458_v61 = vadd.f32 %v1688_v19, %v1434_v9  ;;  %vm1466_vm14 = vcmp.ge.f32.partialorder %v1457_v8, 0.0 }
 0x229   :  { %v1481_v14 = vmul.f32 %v1475_v41, %v1455_v10  ;;  %v1456_v63 = vadd.f32 %v1684_v46, %v1432_v20  ;;  %vm1464_vm15 = vcmp.ge.f32.partialorder %v1455_v10, 0.0 }
 0x22a   :  { %vm1467_vm0 = vcmp.ge.f32.partialorder %v1458_v61, 0.0  ;;  %v1484_v16 = vmul.f32 %v1475_v41, %v1458_v61  ;;  %v1491_v18 = vsel %vm1466_vm14, %v1457_v8, %v1483_v12 }
 0x22b   :  { %vm1465_vm1 = vcmp.ge.f32.partialorder %v1456_v63, 0.0  ;;  %v1482_v17 = vmul.f32 %v1475_v41, %v1456_v63  ;;  %v1489_v21 = vsel %vm1464_vm15, %v1455_v10, %v1481_v14 }
 0x22c   :  { %v1492_v1 = vsel %vm1467_vm0, %v1458_v61, %v1484_v16 }
 0x22d   :  { %v1707_v25 = vpack.c.bf16 %v1492_v1, %v1491_v18  ;;  %v1490_v26 = vsel %vm1465_vm1, %v1456_v63, %v1482_v17 }
 0x22e   :  { %v1702_v57 = vpack.c.bf16 %v1490_v26, %v1489_v21 }
 0x22f   :  { %1714 = vst [vmem:[%s2592_s10 + $0x18] sm:$0xff] %v1707_v25  }
 0x230   :  { %1713 = vst [vmem:[%s2592_s10 + $0x10] sm:$0xff] %v1702_v57  }

</bundles_post_ra>
